<compile_context>
chip_gen: v5e
topology: v5e:2x2
jax: 0.10.0
libtpu: 0.0.40
codegen_flags: <defaults>
</compile_context>

<pallas_src>
import functools
import math

import jax
import jax.numpy as jnp
from jax.experimental import pallas as pl
from jax.experimental.pallas import tpu as pltpu

F32 = jnp.float32
BF16 = jnp.bfloat16
LN_EPS = 1e-5
NEG_INF = -1e9                    # large negative instead of -inf (no NaNs on fully-masked rows)
VMEM_LIMIT = 40 * 1024 * 1024     # v7x has 64 MiB/TC; 40 MiB leaves headroom, v5e/v6e have 128 MiB


# ----------------------------- tiling helpers -----------------------------

def _row_tile(m, target=512):
    """Largest multiple-of-8 divisor of m <= target (prefer >= 2 tiles for 2-TC chips)."""
    if m % 8 != 0 or m <= 8:
        return m
    best = 8
    for d in range(8, min(target, m // 2) + 1, 8):
        if m % d == 0:
            best = d
    return best


def _col_tile(n, target=1024):
    """Largest multiple-of-128 divisor of n <= target, else the full dim (legal full-dim block)."""
    if n % 128 != 0:
        return n
    best = 128
    for d in range(128, min(target, n) + 1, 128):
        if n % d == 0:
            best = d
    return best


def _q_tile(L, target=256):
    """Query-row tile for attention kernels (multiple of 8, or full L)."""
    if L % 8 != 0 or L <= target:
        return L
    best = 8
    for d in range(8, target + 1, 8):
        if L % d == 0:
            best = d
    return best


def _full_spec(shape):
    zeros = (0,) * len(shape)
    return pl.BlockSpec(shape, lambda *_, _z=zeros: _z)


def _cparams(n_axes):
    return pltpu.CompilerParams(
        dimension_semantics=tuple("parallel" for _ in range(n_axes)),
        vmem_limit_bytes=VMEM_LIMIT)


# ----------------------------- in-kernel helpers -----------------------------

def _bf16_dot(a, w):
    # Activations cast to bf16 once; weights already bf16; f32 accumulation on the MXU.
    return jnp.dot(a.astype(BF16), w, preferred_element_type=F32)


def _layernorm(x, g, b):
    mu = jnp.mean(x, axis=-1, keepdims=True)
    var = jnp.mean(jnp.square(x - mu), axis=-1, keepdims=True)
    return (x - mu) * jax.lax.rsqrt(var + LN_EPS) * g + b


def _add_layernorm(x, y, g, b):
    return _layernorm(x + y, g, b)


def _mha_core(q, k, v, mask, wo, num_heads):
    """q:(Lq,E) f32, k/v:(Lk,E) f32, mask:(Lq,Lk) or (1,Lk) additive f32, wo:(E,E) bf16.

    Per-head QK^T / softmax / PV with heads lane-concatenated into one (Lq,E) bf16 block,
    then a SINGLE K=E output-projection matmul."""
    _, E = q.shape
    Dh = E // num_heads
    scale = 1.0 / math.sqrt(Dh)
    qb = (q * scale).astype(BF16)           # scale + cast once (not per head)
    kb = k.astype(BF16)
    vb = v.astype(BF16)
    heads = []
    for h in range(num_heads):              # static unroll over heads
        sl = slice(h * Dh, (h + 1) * Dh)
        s = jnp.einsum('qd,kd->qk', qb[:, sl], kb[:, sl],
                       preferred_element_type=F32)
        s = s + mask                        # f32 score math (v5e-safe)
        s = s - jnp.max(s, axis=-1, keepdims=True)
        p = jnp.exp(s)
        # normalization via the EUP reciprocal slot instead of a VPU divide
        p = p * pl.reciprocal(jnp.sum(p, axis=-1, keepdims=True), approx=True)
        heads.append(_bf16_dot(p, vb[:, sl]).astype(BF16))     # (Lq, Dh)
    concat = jnp.concatenate(heads, axis=-1)                   # lane-concat -> (Lq, E) bf16
    return jnp.dot(concat, wo, preferred_element_type=F32)     # ONE output projection


def _attn_sublayer(x_tile, kv_src, mask, wq, bq, wkv, bkv, wo, bo, ln_g, ln_b, num_heads):
    """Q from the row tile, fused K/V projection from the full source, residual + LayerNorm."""
    E = x_tile.shape[-1]
    q = _bf16_dot(x_tile, wq) + bq
    kv = _bf16_dot(kv_src, wkv) + bkv
    k, v = kv[:, :E], kv[:, E:]
    attn = _mha_core(q, k, v, mask, wo, num_heads) + bo
    return _add_layernorm(x_tile, attn, ln_g, ln_b)


def _ffn_sublayer(x, w1, b1, w2, b2, ln_g, ln_b):
    h = jnp.maximum(_bf16_dot(x, w1) + b1, 0.0)    # hidden stays in VMEM/vregs
    y = _bf16_dot(h, w2) + b2
    return _add_layernorm(x, y, ln_g, ln_b)


# ----------------------------- fused Pallas kernels -----------------------------

def _enc_layer_kernel(x_ref, xf_ref, am_ref, pm_ref,
                      wq_ref, bq_ref, wkv_ref, bkv_ref, wo_ref, bo_ref,
                      ln1g_ref, ln1b_ref,
                      w1_ref, b1_ref, w2_ref, b2_ref, ln2g_ref, ln2b_ref,
                      *rest, num_heads, final_ln):
    if final_ln:
        fg_ref, fb_ref, o_ref = rest
    else:
        (o_ref,) = rest
    x = x_ref[...]                                   # (tq, E) query-row tile
    mask = am_ref[...] + pm_ref[0]                   # (tq, L) additive, built in-register
    h1 = _attn_sublayer(x, xf_ref[...], mask, wq_ref[...], bq_ref[...],
                        wkv_ref[...], bkv_ref[...], wo_ref[...], bo_ref[...],
                        ln1g_ref[...], ln1b_ref[...], num_heads)
    y = _ffn_sublayer(h1, w1_ref[...], b1_ref[...], w2_ref[...], b2_ref[...],
                      ln2g_ref[...], ln2b_ref[...])
    if final_ln:                                     # folded final encoder LayerNorm
        y = _layernorm(y, fg_ref[...], fb_ref[...])
    o_ref[...] = y


def _dec_layer_kernel(x_ref, xf_ref, mem_ref, am_ref, tpm_ref, mpm_ref,
                      swq_ref, sbq_ref, swkv_ref, sbkv_ref, swo_ref, sbo_ref,
                      ln1g_ref, ln1b_ref,
                      cwq_ref, cbq_ref, cwkv_ref, cbkv_ref, cwo_ref, cbo_ref,
                      ln2g_ref, ln2b_ref,
                      w1_ref, b1_ref, w2_ref, b2_ref, ln3g_ref, ln3b_ref,
                      *rest, num_heads, final_ln):
    if final_ln:
        fg_ref, fb_ref, o_ref = rest
    else:
        (o_ref,) = rest
    x = x_ref[...]                                   # (tq, E)
    self_mask = am_ref[...] + tpm_ref[0]             # (tq, T)
    h1 = _attn_sublayer(x, xf_ref[...], self_mask, swq_ref[...], sbq_ref[...],
                        swkv_ref[...], sbkv_ref[...], swo_ref[...], sbo_ref[...],
                        ln1g_ref[...], ln1b_ref[...], num_heads)
    cross_mask = mpm_ref[0]                          # (1, S); memory_mask is None in the spec
    h2 = _attn_sublayer(h1, mem_ref[...], cross_mask, cwq_ref[...], cbq_ref[...],
                        cwkv_ref[...], cbkv_ref[...], cwo_ref[...], cbo_ref[...],
                        ln2g_ref[...], ln2b_ref[...], num_heads)
    y = _ffn_sublayer(h2, w1_ref[...], b1_ref[...], w2_ref[...], b2_ref[...],
                      ln3g_ref[...], ln3b_ref[...])
    if final_ln:                                     # folded final decoder LayerNorm
        y = _layernorm(y, fg_ref[...], fb_ref[...])
    o_ref[...] = y


def _linear_kernel(x_ref, w_ref, b_ref, o_ref):
    o_ref[...] = _bf16_dot(x_ref[...], w_ref[...]) + b_ref[...]


# ----------------------------- pallas_call wrappers -----------------------------

_ENC_KEYS = ('wq', 'bq', 'wkv', 'bkv', 'wo', 'bo', 'ln1_g', 'ln1_b',
             'w1', 'b1', 'w2', 'b2', 'ln2_g', 'ln2_b')
_DEC_KEYS = ('s_wq', 's_bq', 's_wkv', 's_bkv', 's_wo', 's_bo', 'ln1_g', 'ln1_b',
             'c_wq', 'c_bq', 'c_wkv', 'c_bkv', 'c_wo', 'c_bo', 'ln2_g', 'ln2_b',
             'w1', 'b1', 'w2', 'b2', 'ln3_g', 'ln3_b')


def encoder_layer(x, attn_mask, pad_mask, p, *, num_heads, n_batch, final_ln=None):
    # x: (N*L, E) f32; attn_mask: (L, L) f32 additive; pad_mask: (N, 1, L) f32 additive.
    M, E = x.shape
    L = M // n_batch
    tq = _q_tile(L)
    nqt = L // tq
    args = [x, x, attn_mask, pad_mask] + [p[k] for k in _ENC_KEYS]
    in_specs = [
        pl.BlockSpec((tq, E), lambda b, t: (b * nqt + t, 0)),   # query rows
        pl.BlockSpec((L, E), lambda b, t: (b, 0)),              # full sequence for K/V
        pl.BlockSpec((tq, L), lambda b, t: (t, 0)),             # attn mask rows
        pl.BlockSpec((1, 1, L), lambda b, t: (b, 0, 0)),        # key-padding mask
    ] + [_full_spec(p[k].shape) for k in _ENC_KEYS]
    if final_ln is not None:
        args += list(final_ln)
        in_specs += [_full_spec(a.shape) for a in final_ln]
    return pl.pallas_call(
        functools.partial(_enc_layer_kernel, num_heads=num_heads,
                          final_ln=final_ln is not None),
        out_shape=jax.ShapeDtypeStruct((M, E), F32),
        grid=(n_batch, nqt),
        in_specs=in_specs,
        out_specs=pl.BlockSpec((tq, E), lambda b, t: (b * nqt + t, 0)),
        compiler_params=_cparams(2),
    )(*args)


def decoder_layer(x, mem, attn_mask, tgt_pad, mem_pad, p, *, num_heads, n_batch, final_ln=None):
    M, E = x.shape
    T = M // n_batch
    S = mem.shape[0] // n_batch
    tq = _q_tile(T)
    nqt = T // tq
    args = [x, x, mem, attn_mask, tgt_pad, mem_pad] + [p[k] for k in _DEC_KEYS]
    in_specs = [
        pl.BlockSpec((tq, E), lambda b, t: (b * nqt + t, 0)),   # query rows
        pl.BlockSpec((T, E), lambda b, t: (b, 0)),              # full tgt sequence (self K/V)
        pl.BlockSpec((S, E), lambda b, t: (b, 0)),              # memory (cross K/V)
        pl.BlockSpec((tq, T), lambda b, t: (t, 0)),             # tgt attn mask rows
        pl.BlockSpec((1, 1, T), lambda b, t: (b, 0, 0)),        # tgt key-padding mask
        pl.BlockSpec((1, 1, S), lambda b, t: (b, 0, 0)),        # memory key-padding mask
    ] + [_full_spec(p[k].shape) for k in _DEC_KEYS]
    if final_ln is not None:
        args += list(final_ln)
        in_specs += [_full_spec(a.shape) for a in final_ln]
    return pl.pallas_call(
        functools.partial(_dec_layer_kernel, num_heads=num_heads,
                          final_ln=final_ln is not None),
        out_shape=jax.ShapeDtypeStruct((M, E), F32),
        grid=(n_batch, nqt),
        in_specs=in_specs,
        out_specs=pl.BlockSpec((tq, E), lambda b, t: (b * nqt + t, 0)),
        compiler_params=_cparams(2),
    )(*args)


def tiled_linear(x, w, b):
    # Generator: grid over (row tiles, vocab tiles), both parallel; lane-dense stores on V.
    M, K = x.shape
    N = w.shape[1]
    tm = _row_tile(M)
    tn = _col_tile(N)
    # TODO(synk): tile K with an f32 VMEM accumulator ("arbitrary" K axis) for very large E.
    return pl.pallas_call(
        _linear_kernel,
        out_shape=jax.ShapeDtypeStruct((M, N), F32),
        grid=(M // tm, N // tn),
        in_specs=[pl.BlockSpec((tm, K), lambda i, j: (i, 0)),
                  pl.BlockSpec((K, tn), lambda i, j: (0, j)),
                  pl.BlockSpec((1, tn), lambda i, j: (0, j))],
        out_specs=pl.BlockSpec((tm, tn), lambda i, j: (i, j)),
        compiler_params=_cparams(2),
    )(x, w, b)


# ----------------------------- model forward -----------------------------

def positional_encoding_table(maxlen, emb_size):
    den = jnp.exp(-jnp.arange(0, emb_size, 2, dtype=F32) * (math.log(10000.0) / emb_size))
    pos = jnp.arange(0, maxlen, dtype=F32)[:, None]
    pe = jnp.zeros((maxlen, emb_size), F32)
    pe = pe.at[:, 0::2].set(jnp.sin(pos * den))
    pe = pe.at[:, 1::2].set(jnp.cos(pos * den))
    return pe[:, None, :]  # (maxlen, 1, E)


def translator_forward(params, src, trg, src_mask, tgt_mask,
                       src_padding_mask, tgt_padding_mask, memory_key_padding_mask,
                       *, num_heads):
    S, Nb = src.shape
    T = trg.shape[0]
    E = params['src_emb'].shape[1]
    pe = params['pos_embedding']

    # Embedding lookup + positional encoding (glue; dropout is eval-mode identity).
    src_emb = jnp.take(params['src_emb'], src, axis=0) + pe[:S]    # (S, Nb, E)
    tgt_emb = jnp.take(params['tgt_emb'], trg, axis=0) + pe[:T]    # (T, Nb, E)
    # Batch-first, flattened: each grid step sees a contiguous (L, E) block per batch element.
    x_src = src_emb.transpose(1, 0, 2).reshape(Nb * S, E)
    x_tgt = tgt_emb.transpose(1, 0, 2).reshape(Nb * T, E)

    def pad_to_f32(m, L):
        if m is None:
            return jnp.zeros((Nb, 1, L), F32)
        return jnp.where(m, NEG_INF, 0.0).astype(F32)[:, None, :]   # (Nb, 1, L)

    def am_to_f32(m, L):
        if m is None:
            return jnp.zeros((L, L), F32)
        if m.dtype == jnp.bool_:
            return jnp.where(m, NEG_INF, 0.0).astype(F32)
        return m.astype(F32)

    src_pad = pad_to_f32(src_padding_mask, S)
    tgt_pad = pad_to_f32(tgt_padding_mask, T)
    mem_pad = pad_to_f32(memory_key_padding_mask, S)
    src_am = am_to_f32(src_mask, S)
    tgt_am = am_to_f32(tgt_mask, T)

    # ---- encoder (final encoder LayerNorm folded into the last layer's kernel) ----
    mem = x_src
    n_enc = len(params['enc_layers'])
    for i, p in enumerate(params['enc_layers']):
        fin = (params['enc_norm_g'], params['enc_norm_b']) if i == n_enc - 1 else None
        mem = encoder_layer(mem, src_am, src_pad, p,
                            num_heads=num_heads, n_batch=Nb, final_ln=fin)

    # ---- decoder (final decoder LayerNorm folded into the last layer's kernel) ----
    out = x_tgt
    n_dec = len(params['dec_layers'])
    for i, p in enumerate(params['dec_layers']):
        fin = (params['dec_norm_g'], params['dec_norm_b']) if i == n_dec - 1 else None
        out = decoder_layer(out, mem, tgt_am, tgt_pad, mem_pad, p,
                            num_heads=num_heads, n_batch=Nb, final_ln=fin)

    # ---- generator ----
    # Go seq-first BEFORE the matmul: transposing the (Nb*T, E) activations is V/E times
    # cheaper than transposing the (T, Nb, V) logits, and the result reshapes for free.
    out_sf = out.reshape(Nb, T, E).transpose(1, 0, 2).reshape(T * Nb, E)
    logits = tiled_linear(out_sf, params['ff_w'], params['ff_b'])   # (T*Nb, V)
    V = params['ff_w'].shape[1]
    return logits.reshape(T, Nb, V)                                 # seq-first, like PyTorch


# ----------------------------- deterministic parameter init -----------------------------

def _xavier(key, shape):
    fan_in, fan_out = shape
    a = math.sqrt(6.0 / (fan_in + fan_out))
    return jax.random.uniform(key, shape, F32, -a, a)


def init_params(key, num_encoder_layers, num_decoder_layers, embed_size, num_heads,
                src_vocab_size, tgt_vocab_size, dim_feedforward, maxlen=5000):
    keys = iter(jax.random.split(key, 1024))
    E, Fd = embed_size, dim_feedforward

    def xavier_bf16(shape):
        return _xavier(next(keys), shape).astype(BF16)   # weights live in bf16

    def attn_params(prefix):
        return {
            prefix + 'wq': xavier_bf16((E, E)),
            prefix + 'bq': jnp.zeros((1, E), F32),
            prefix + 'wkv': jnp.concatenate(
                [_xavier(next(keys), (E, E)), _xavier(next(keys), (E, E))],
                axis=1).astype(BF16),                    # fused (E, 2E) K/V projection
            prefix + 'bkv': jnp.zeros((1, 2 * E), F32),
            prefix + 'wo': xavier_bf16((E, E)),
            prefix + 'bo': jnp.zeros((1, E), F32),
        }

    def ln_params(name):
        return {name + '_g': jnp.ones((1, E), F32), name + '_b': jnp.zeros((1, E), F32)}

    def ffn_params():
        return {'w1': xavier_bf16((E, Fd)), 'b1': jnp.zeros((1, Fd), F32),
                'w2': xavier_bf16((Fd, E)), 'b2': jnp.zeros((1, E), F32)}

    def enc_layer():
        d = {}
        d.update(attn_params(''))
        d.update(ln_params('ln1'))
        d.update(ffn_params())
        d.update(ln_params('ln2'))
        return d

    def dec_layer():
        d = {}
        d.update(attn_params('s_'))
        d.update(ln_params('ln1'))
        d.update(attn_params('c_'))
        d.update(ln_params('ln2'))
        d.update(ffn_params())
        d.update(ln_params('ln3'))
        return d

    return dict(
        src_emb=_xavier(next(keys), (src_vocab_size, E)),
        tgt_emb=_xavier(next(keys), (tgt_vocab_size, E)),
        pos_embedding=positional_encoding_table(maxlen, E),
        enc_layers=[enc_layer() for _ in range(num_encoder_layers)],
        dec_layers=[dec_layer() for _ in range(num_decoder_layers)],
        enc_norm_g=jnp.ones((1, E), F32), enc_norm_b=jnp.zeros((1, E), F32),
        dec_norm_g=jnp.ones((1, E), F32), dec_norm_b=jnp.zeros((1, E), F32),
        ff_w=xavier_bf16((E, tgt_vocab_size)),
        ff_b=jnp.zeros((1, tgt_vocab_size), F32),
    )


# ----------------------------- main -----------------------------

if __name__ == "__main__":
    num_encoder_layers = 2
    num_decoder_layers = 2
    embed_size = 32
    num_heads = 4
    src_vocab_size = 48
    tgt_vocab_size = 50
    dim_feedforward = 64
    S, T, N = 8, 8, 2          # src len, tgt len, batch (seq lens multiples of 8)
    maxlen = 64

    key = jax.random.PRNGKey(0)
    k_params, k_src, k_trg = jax.random.split(key, 3)

    params = init_params(k_params, num_encoder_layers, num_decoder_layers, embed_size,
                         num_heads, src_vocab_size, tgt_vocab_size, dim_feedforward,
                         maxlen=maxlen)

    src = jax.random.randint(k_src, (S, N), 0, src_vocab_size, dtype=jnp.int32)
    trg = jax.random.randint(k_trg, (T, N), 0, tgt_vocab_size, dtype=jnp.int32)

    # src_mask: zeros (no masking); tgt_mask: causal additive mask
    src_mask = jnp.zeros((S, S), F32)
    tgt_mask = jnp.where(jnp.triu(jnp.ones((T, T), bool), k=1), NEG_INF, 0.0).astype(F32)

    # padding masks (bool, True = ignore): last src position of batch element 1 is padding
    src_padding_mask = jnp.zeros((N, S), bool).at[1, S - 1].set(True)
    tgt_padding_mask = jnp.zeros((N, T), bool)
    memory_key_padding_mask = src_padding_mask

    fwd = jax.jit(functools.partial(translator_forward, num_heads=num_heads))
    logits = fwd(params, src, trg, src_mask, tgt_mask,
                 src_padding_mask, tgt_padding_mask, memory_key_padding_mask)
    logits = jax.block_until_ready(logits)

    assert logits.shape == (T, N, tgt_vocab_size), logits.shape
    assert bool(jnp.all(jnp.isfinite(logits)))
    print("KERNEL_OK")
</pallas_src>

<mosaic_0001>
module attributes {stable_mosaic.version = 11 : i64} {
  func.func @_enc_layer_kernel(%arg0: i32, %arg1: i32, %arg2: memref<8x32xf32, #tpu.memory_space<vmem>>, %arg3: memref<8x32xf32, #tpu.memory_space<vmem>>, %arg4: memref<8x8xf32, #tpu.memory_space<vmem>>, %arg5: memref<1x1x8xf32, #tpu.memory_space<vmem>>, %arg6: memref<32x32xbf16, #tpu.memory_space<vmem>>, %arg7: memref<1x32xf32, #tpu.memory_space<vmem>>, %arg8: memref<32x64xbf16, #tpu.memory_space<vmem>>, %arg9: memref<1x64xf32, #tpu.memory_space<vmem>>, %arg10: memref<32x32xbf16, #tpu.memory_space<vmem>>, %arg11: memref<1x32xf32, #tpu.memory_space<vmem>>, %arg12: memref<1x32xf32, #tpu.memory_space<vmem>>, %arg13: memref<1x32xf32, #tpu.memory_space<vmem>>, %arg14: memref<32x64xbf16, #tpu.memory_space<vmem>>, %arg15: memref<1x64xf32, #tpu.memory_space<vmem>>, %arg16: memref<64x32xbf16, #tpu.memory_space<vmem>>, %arg17: memref<1x32xf32, #tpu.memory_space<vmem>>, %arg18: memref<1x32xf32, #tpu.memory_space<vmem>>, %arg19: memref<1x32xf32, #tpu.memory_space<vmem>>, %arg20: memref<8x32xf32, #tpu.memory_space<vmem>>) attributes {dimension_semantics = [#tpu.dimension_semantics<parallel>, #tpu.dimension_semantics<parallel>], iteration_bounds = array<i64: 2, 1>, scalar_prefetch = 0 : i64, scratch_operands = 0 : i64, tpu.core_type = #tpu.core_type<tc>, window_params = [{transform_indices = @transform_0, window_bounds = array<i64: 8, 32>}, {transform_indices = @transform_1, window_bounds = array<i64: 8, 32>}, {transform_indices = @transform_2, window_bounds = array<i64: 8, 8>}, {transform_indices = @transform_3, window_bounds = array<i64: 1, 1, 8>}, {pipeline_mode = #tpu.pipeline_mode<synchronous>, transform_indices = @transform_4, window_bounds = array<i64: 32, 32>}, {pipeline_mode = #tpu.pipeline_mode<synchronous>, transform_indices = @transform_5, window_bounds = array<i64: 1, 32>}, {pipeline_mode = #tpu.pipeline_mode<synchronous>, transform_indices = @transform_6, window_bounds = array<i64: 32, 64>}, {pipeline_mode = #tpu.pipeline_mode<synchronous>, transform_indices = @transform_7, window_bounds = array<i64: 1, 64>}, {pipeline_mode = #tpu.pipeline_mode<synchronous>, transform_indices = @transform_8, window_bounds = array<i64: 32, 32>}, {pipeline_mode = #tpu.pipeline_mode<synchronous>, transform_indices = @transform_9, window_bounds = array<i64: 1, 32>}, {pipeline_mode = #tpu.pipeline_mode<synchronous>, transform_indices = @transform_10, window_bounds = array<i64: 1, 32>}, {pipeline_mode = #tpu.pipeline_mode<synchronous>, transform_indices = @transform_11, window_bounds = array<i64: 1, 32>}, {pipeline_mode = #tpu.pipeline_mode<synchronous>, transform_indices = @transform_12, window_bounds = array<i64: 32, 64>}, {pipeline_mode = #tpu.pipeline_mode<synchronous>, transform_indices = @transform_13, window_bounds = array<i64: 1, 64>}, {pipeline_mode = #tpu.pipeline_mode<synchronous>, transform_indices = @transform_14, window_bounds = array<i64: 64, 32>}, {pipeline_mode = #tpu.pipeline_mode<synchronous>, transform_indices = @transform_15, window_bounds = array<i64: 1, 32>}, {pipeline_mode = #tpu.pipeline_mode<synchronous>, transform_indices = @transform_16, window_bounds = array<i64: 1, 32>}, {pipeline_mode = #tpu.pipeline_mode<synchronous>, transform_indices = @transform_17, window_bounds = array<i64: 1, 32>}, {transform_indices = @transform_18, window_bounds = array<i64: 8, 32>}]} {
    %c0 = arith.constant 0 : index
    %c0_0 = arith.constant 0 : index
    %0 = vector.load %arg2[%c0, %c0_0] : memref<8x32xf32, #tpu.memory_space<vmem>>, vector<8x32xf32>
    %c0_1 = arith.constant 0 : index
    %c0_2 = arith.constant 0 : index
    %1 = vector.load %arg4[%c0_1, %c0_2] : memref<8x8xf32, #tpu.memory_space<vmem>>, vector<8x8xf32>
    %c0_3 = arith.constant 0 : index
    %c0_4 = arith.constant 0 : index
    %c0_5 = arith.constant 0 : index
    %2 = vector.load %arg5[%c0_3, %c0_4, %c0_5] : memref<1x1x8xf32, #tpu.memory_space<vmem>>, vector<1x1x8xf32>
    %3 = vector.shape_cast %2 : vector<1x1x8xf32> to vector<1x8xf32>
    %4 = vector.broadcast %3 : vector<1x8xf32> to vector<8x8xf32>
    %5 = arith.addf %1, %4 : vector<8x8xf32>
    %c0_6 = arith.constant 0 : index
    %c0_7 = arith.constant 0 : index
    %6 = vector.load %arg3[%c0_6, %c0_7] : memref<8x32xf32, #tpu.memory_space<vmem>>, vector<8x32xf32>
    %c0_8 = arith.constant 0 : index
    %c0_9 = arith.constant 0 : index
    %7 = vector.load %arg6[%c0_8, %c0_9] : memref<32x32xbf16, #tpu.memory_space<vmem>>, vector<32x32xbf16>
    %c0_10 = arith.constant 0 : index
    %c0_11 = arith.constant 0 : index
    %8 = vector.load %arg7[%c0_10, %c0_11] : memref<1x32xf32, #tpu.memory_space<vmem>>, vector<1x32xf32>
    %c0_12 = arith.constant 0 : index
    %c0_13 = arith.constant 0 : index
    %9 = vector.load %arg8[%c0_12, %c0_13] : memref<32x64xbf16, #tpu.memory_space<vmem>>, vector<32x64xbf16>
    %c0_14 = arith.constant 0 : index
    %c0_15 = arith.constant 0 : index
    %10 = vector.load %arg9[%c0_14, %c0_15] : memref<1x64xf32, #tpu.memory_space<vmem>>, vector<1x64xf32>
    %c0_16 = arith.constant 0 : index
    %c0_17 = arith.constant 0 : index
    %11 = vector.load %arg10[%c0_16, %c0_17] : memref<32x32xbf16, #tpu.memory_space<vmem>>, vector<32x32xbf16>
    %c0_18 = arith.constant 0 : index
    %c0_19 = arith.constant 0 : index
    %12 = vector.load %arg11[%c0_18, %c0_19] : memref<1x32xf32, #tpu.memory_space<vmem>>, vector<1x32xf32>
    %c0_20 = arith.constant 0 : index
    %c0_21 = arith.constant 0 : index
    %13 = vector.load %arg12[%c0_20, %c0_21] : memref<1x32xf32, #tpu.memory_space<vmem>>, vector<1x32xf32>
    %c0_22 = arith.constant 0 : index
    %c0_23 = arith.constant 0 : index
    %14 = vector.load %arg13[%c0_22, %c0_23] : memref<1x32xf32, #tpu.memory_space<vmem>>, vector<1x32xf32>
    %15 = arith.truncf %0 : vector<8x32xf32> to vector<8x32xbf16>
    %cst = arith.constant dense<0.000000e+00> : vector<8x32xf32>
    %16 = tpu.matmul %15, %7, %cst {dimension_numbers = #tpu.dot_dimension_numbers<[1], [0], [0], [1], [0, 0, 1, 1], [], []>} : vector<8x32xbf16>, vector<32x32xbf16>, vector<8x32xf32> -> vector<8x32xf32>
    %17 = vector.broadcast %8 : vector<1x32xf32> to vector<8x32xf32>
    %18 = arith.addf %16, %17 : vector<8x32xf32>
    %19 = arith.truncf %6 : vector<8x32xf32> to vector<8x32xbf16>
    %cst_24 = arith.constant dense<0.000000e+00> : vector<8x64xf32>
    %20 = tpu.matmul %19, %9, %cst_24 {dimension_numbers = #tpu.dot_dimension_numbers<[1], [0], [0], [1], [0, 0, 1, 1], [], []>} : vector<8x32xbf16>, vector<32x64xbf16>, vector<8x64xf32> -> vector<8x64xf32>
    %21 = vector.broadcast %10 : vector<1x64xf32> to vector<8x64xf32>
    %22 = arith.addf %20, %21 : vector<8x64xf32>
    %23 = vector.extract_strided_slice %22 {offsets = [0, 0], sizes = [8, 32], strides = [1, 1]} : vector<8x64xf32> to vector<8x32xf32>
    %24 = vector.extract_strided_slice %22 {offsets = [0, 32], sizes = [8, 32], strides = [1, 1]} : vector<8x64xf32> to vector<8x32xf32>
    %cst_25 = arith.constant 0.353553385 : f32
    %25 = vector.broadcast %cst_25 : f32 to vector<8x32xf32>
    %26 = arith.mulf %18, %25 : vector<8x32xf32>
    %27 = arith.truncf %26 : vector<8x32xf32> to vector<8x32xbf16>
    %28 = arith.truncf %23 : vector<8x32xf32> to vector<8x32xbf16>
    %29 = arith.truncf %24 : vector<8x32xf32> to vector<8x32xbf16>
    %30 = vector.extract_strided_slice %27 {offsets = [0, 0], sizes = [8, 8], strides = [1, 1]} : vector<8x32xbf16> to vector<8x8xbf16>
    %31 = vector.extract_strided_slice %28 {offsets = [0, 0], sizes = [8, 8], strides = [1, 1]} : vector<8x32xbf16> to vector<8x8xbf16>
    "tpu.trace_start"() <{level = 10 : i32, message = "qd,kd->qk"}> : () -> ()
    %cst_26 = arith.constant dense<0.000000e+00> : vector<8x8xf32>
    %32 = tpu.matmul %30, %31, %cst_26 {dimension_numbers = #tpu.dot_dimension_numbers<[1], [1], [0], [0], [0, 0, 1, 0], [], []>} : vector<8x8xbf16>, vector<8x8xbf16>, vector<8x8xf32> -> vector<8x8xf32>
    "tpu.trace_stop"() : () -> ()
    %33 = arith.addf %32, %5 : vector<8x8xf32>
    %cst_27 = arith.constant dense<0xFF800000> : vector<8xf32>
    %34 = vector.multi_reduction <maximumf>, %33, %cst_27 [1] : vector<8x8xf32> to vector<8xf32>
    %35 = vector.shape_cast %34 : vector<8xf32> to vector<8x1xf32>
    %36 = vector.broadcast %35 : vector<8x1xf32> to vector<8x8xf32>
    %37 = arith.subf %33, %36 : vector<8x8xf32>
    %38 = math.exp %37 : vector<8x8xf32>
    %cst_28 = arith.constant dense<0.000000e+00> : vector<8xf32>
    %39 = vector.multi_reduction <add>, %38, %cst_28 [1] : vector<8x8xf32> to vector<8xf32>
    %40 = vector.shape_cast %39 : vector<8xf32> to vector<8x1xf32>
    %41 = tpu.reciprocal %40 {approx = true} : vector<8x1xf32> -> vector<8x1xf32>
    %42 = vector.broadcast %41 : vector<8x1xf32> to vector<8x8xf32>
    %43 = arith.mulf %38, %42 : vector<8x8xf32>
    %44 = vector.extract_strided_slice %29 {offsets = [0, 0], sizes = [8, 8], strides = [1, 1]} : vector<8x32xbf16> to vector<8x8xbf16>
    %45 = arith.truncf %43 : vector<8x8xf32> to vector<8x8xbf16>
    %cst_29 = arith.constant dense<0.000000e+00> : vector<8x8xf32>
    %46 = tpu.matmul %45, %44, %cst_29 {dimension_numbers = #tpu.dot_dimension_numbers<[1], [0], [0], [1], [0, 0, 1, 1], [], []>} : vector<8x8xbf16>, vector<8x8xbf16>, vector<8x8xf32> -> vector<8x8xf32>
    %47 = arith.truncf %46 : vector<8x8xf32> to vector<8x8xbf16>
    %48 = vector.extract_strided_slice %27 {offsets = [0, 8], sizes = [8, 8], strides = [1, 1]} : vector<8x32xbf16> to vector<8x8xbf16>
    %49 = vector.extract_strided_slice %28 {offsets = [0, 8], sizes = [8, 8], strides = [1, 1]} : vector<8x32xbf16> to vector<8x8xbf16>
    "tpu.trace_start"() <{level = 10 : i32, message = "qd,kd->qk"}> : () -> ()
    %cst_30 = arith.constant dense<0.000000e+00> : vector<8x8xf32>
    %50 = tpu.matmul %48, %49, %cst_30 {dimension_numbers = #tpu.dot_dimension_numbers<[1], [1], [0], [0], [0, 0, 1, 0], [], []>} : vector<8x8xbf16>, vector<8x8xbf16>, vector<8x8xf32> -> vector<8x8xf32>
    "tpu.trace_stop"() : () -> ()
    %51 = arith.addf %50, %5 : vector<8x8xf32>
    %cst_31 = arith.constant dense<0xFF800000> : vector<8xf32>
    %52 = vector.multi_reduction <maximumf>, %51, %cst_31 [1] : vector<8x8xf32> to vector<8xf32>
    %53 = vector.shape_cast %52 : vector<8xf32> to vector<8x1xf32>
    %54 = vector.broadcast %53 : vector<8x1xf32> to vector<8x8xf32>
    %55 = arith.subf %51, %54 : vector<8x8xf32>
    %56 = math.exp %55 : vector<8x8xf32>
    %cst_32 = arith.constant dense<0.000000e+00> : vector<8xf32>
    %57 = vector.multi_reduction <add>, %56, %cst_32 [1] : vector<8x8xf32> to vector<8xf32>
    %58 = vector.shape_cast %57 : vector<8xf32> to vector<8x1xf32>
    %59 = tpu.reciprocal %58 {approx = true} : vector<8x1xf32> -> vector<8x1xf32>
    %60 = vector.broadcast %59 : vector<8x1xf32> to vector<8x8xf32>
    %61 = arith.mulf %56, %60 : vector<8x8xf32>
    %62 = vector.extract_strided_slice %29 {offsets = [0, 8], sizes = [8, 8], strides = [1, 1]} : vector<8x32xbf16> to vector<8x8xbf16>
    %63 = arith.truncf %61 : vector<8x8xf32> to vector<8x8xbf16>
    %cst_33 = arith.constant dense<0.000000e+00> : vector<8x8xf32>
    %64 = tpu.matmul %63, %62, %cst_33 {dimension_numbers = #tpu.dot_dimension_numbers<[1], [0], [0], [1], [0, 0, 1, 1], [], []>} : vector<8x8xbf16>, vector<8x8xbf16>, vector<8x8xf32> -> vector<8x8xf32>
    %65 = arith.truncf %64 : vector<8x8xf32> to vector<8x8xbf16>
    %66 = vector.extract_strided_slice %27 {offsets = [0, 16], sizes = [8, 8], strides = [1, 1]} : vector<8x32xbf16> to vector<8x8xbf16>
    %67 = vector.extract_strided_slice %28 {offsets = [0, 16], sizes = [8, 8], strides = [1, 1]} : vector<8x32xbf16> to vector<8x8xbf16>
    "tpu.trace_start"() <{level = 10 : i32, message = "qd,kd->qk"}> : () -> ()
    %cst_34 = arith.constant dense<0.000000e+00> : vector<8x8xf32>
    %68 = tpu.matmul %66, %67, %cst_34 {dimension_numbers = #tpu.dot_dimension_numbers<[1], [1], [0], [0], [0, 0, 1, 0], [], []>} : vector<8x8xbf16>, vector<8x8xbf16>, vector<8x8xf32> -> vector<8x8xf32>
    "tpu.trace_stop"() : () -> ()
    %69 = arith.addf %68, %5 : vector<8x8xf32>
    %cst_35 = arith.constant dense<0xFF800000> : vector<8xf32>
    %70 = vector.multi_reduction <maximumf>, %69, %cst_35 [1] : vector<8x8xf32> to vector<8xf32>
    %71 = vector.shape_cast %70 : vector<8xf32> to vector<8x1xf32>
    %72 = vector.broadcast %71 : vector<8x1xf32> to vector<8x8xf32>
    %73 = arith.subf %69, %72 : vector<8x8xf32>
    %74 = math.exp %73 : vector<8x8xf32>
    %cst_36 = arith.constant dense<0.000000e+00> : vector<8xf32>
    %75 = vector.multi_reduction <add>, %74, %cst_36 [1] : vector<8x8xf32> to vector<8xf32>
    %76 = vector.shape_cast %75 : vector<8xf32> to vector<8x1xf32>
    %77 = tpu.reciprocal %76 {approx = true} : vector<8x1xf32> -> vector<8x1xf32>
    %78 = vector.broadcast %77 : vector<8x1xf32> to vector<8x8xf32>
    %79 = arith.mulf %74, %78 : vector<8x8xf32>
    %80 = vector.extract_strided_slice %29 {offsets = [0, 16], sizes = [8, 8], strides = [1, 1]} : vector<8x32xbf16> to vector<8x8xbf16>
    %81 = arith.truncf %79 : vector<8x8xf32> to vector<8x8xbf16>
    %cst_37 = arith.constant dense<0.000000e+00> : vector<8x8xf32>
    %82 = tpu.matmul %81, %80, %cst_37 {dimension_numbers = #tpu.dot_dimension_numbers<[1], [0], [0], [1], [0, 0, 1, 1], [], []>} : vector<8x8xbf16>, vector<8x8xbf16>, vector<8x8xf32> -> vector<8x8xf32>
    %83 = arith.truncf %82 : vector<8x8xf32> to vector<8x8xbf16>
    %84 = vector.extract_strided_slice %27 {offsets = [0, 24], sizes = [8, 8], strides = [1, 1]} : vector<8x32xbf16> to vector<8x8xbf16>
    %85 = vector.extract_strided_slice %28 {offsets = [0, 24], sizes = [8, 8], strides = [1, 1]} : vector<8x32xbf16> to vector<8x8xbf16>
    "tpu.trace_start"() <{level = 10 : i32, message = "qd,kd->qk"}> : () -> ()
    %cst_38 = arith.constant dense<0.000000e+00> : vector<8x8xf32>
    %86 = tpu.matmul %84, %85, %cst_38 {dimension_numbers = #tpu.dot_dimension_numbers<[1], [1], [0], [0], [0, 0, 1, 0], [], []>} : vector<8x8xbf16>, vector<8x8xbf16>, vector<8x8xf32> -> vector<8x8xf32>
    "tpu.trace_stop"() : () -> ()
    %87 = arith.addf %86, %5 : vector<8x8xf32>
    %cst_39 = arith.constant dense<0xFF800000> : vector<8xf32>
    %88 = vector.multi_reduction <maximumf>, %87, %cst_39 [1] : vector<8x8xf32> to vector<8xf32>
    %89 = vector.shape_cast %88 : vector<8xf32> to vector<8x1xf32>
    %90 = vector.broadcast %89 : vector<8x1xf32> to vector<8x8xf32>
    %91 = arith.subf %87, %90 : vector<8x8xf32>
    %92 = math.exp %91 : vector<8x8xf32>
    %cst_40 = arith.constant dense<0.000000e+00> : vector<8xf32>
    %93 = vector.multi_reduction <add>, %92, %cst_40 [1] : vector<8x8xf32> to vector<8xf32>
    %94 = vector.shape_cast %93 : vector<8xf32> to vector<8x1xf32>
    %95 = tpu.reciprocal %94 {approx = true} : vector<8x1xf32> -> vector<8x1xf32>
    %96 = vector.broadcast %95 : vector<8x1xf32> to vector<8x8xf32>
    %97 = arith.mulf %92, %96 : vector<8x8xf32>
    %98 = vector.extract_strided_slice %29 {offsets = [0, 24], sizes = [8, 8], strides = [1, 1]} : vector<8x32xbf16> to vector<8x8xbf16>
    %99 = arith.truncf %97 : vector<8x8xf32> to vector<8x8xbf16>
    %cst_41 = arith.constant dense<0.000000e+00> : vector<8x8xf32>
    %100 = tpu.matmul %99, %98, %cst_41 {dimension_numbers = #tpu.dot_dimension_numbers<[1], [0], [0], [1], [0, 0, 1, 1], [], []>} : vector<8x8xbf16>, vector<8x8xbf16>, vector<8x8xf32> -> vector<8x8xf32>
    %101 = arith.truncf %100 : vector<8x8xf32> to vector<8x8xbf16>
    %102 = tpu.concatenate %47, %65, %83, %101 in 1 : vector<8x8xbf16>, vector<8x8xbf16>, vector<8x8xbf16>, vector<8x8xbf16> -> vector<8x32xbf16>
    %cst_42 = arith.constant dense<0.000000e+00> : vector<8x32xf32>
    %103 = tpu.matmul %102, %11, %cst_42 {dimension_numbers = #tpu.dot_dimension_numbers<[1], [0], [0], [1], [0, 0, 1, 1], [], []>} : vector<8x32xbf16>, vector<32x32xbf16>, vector<8x32xf32> -> vector<8x32xf32>
    %104 = vector.broadcast %12 : vector<1x32xf32> to vector<8x32xf32>
    %105 = arith.addf %103, %104 : vector<8x32xf32>
    %106 = arith.addf %0, %105 : vector<8x32xf32>
    %cst_43 = arith.constant dense<0.000000e+00> : vector<8xf32>
    %107 = vector.multi_reduction <add>, %106, %cst_43 [1] : vector<8x32xf32> to vector<8xf32>
    %108 = vector.shape_cast %107 : vector<8xf32> to vector<8x1xf32>
    %cst_44 = arith.constant 3.200000e+01 : f32
    %109 = vector.broadcast %cst_44 : f32 to vector<8x1xf32>
    %110 = arith.divf %108, %109 : vector<8x1xf32>
    %111 = vector.broadcast %110 : vector<8x1xf32> to vector<8x32xf32>
    %112 = arith.subf %106, %111 : vector<8x32xf32>
    %113 = arith.mulf %112, %112 : vector<8x32xf32>
    %cst_45 = arith.constant dense<0.000000e+00> : vector<8xf32>
    %114 = vector.multi_reduction <add>, %113, %cst_45 [1] : vector<8x32xf32> to vector<8xf32>
    %115 = vector.shape_cast %114 : vector<8xf32> to vector<8x1xf32>
    %cst_46 = arith.constant 3.200000e+01 : f32
    %116 = vector.broadcast %cst_46 : f32 to vector<8x1xf32>
    %117 = arith.divf %115, %116 : vector<8x1xf32>
    %118 = vector.broadcast %110 : vector<8x1xf32> to vector<8x32xf32>
    %119 = arith.subf %106, %118 : vector<8x32xf32>
    %cst_47 = arith.constant 9.99999974E-6 : f32
    %120 = vector.broadcast %cst_47 : f32 to vector<8x1xf32>
    %121 = arith.addf %117, %120 : vector<8x1xf32>
    %122 = math.rsqrt %121 : vector<8x1xf32>
    %123 = vector.broadcast %122 : vector<8x1xf32> to vector<8x32xf32>
    %124 = arith.mulf %119, %123 : vector<8x32xf32>
    %125 = vector.broadcast %13 : vector<1x32xf32> to vector<8x32xf32>
    %126 = arith.mulf %124, %125 : vector<8x32xf32>
    %127 = vector.broadcast %14 : vector<1x32xf32> to vector<8x32xf32>
    %128 = arith.addf %126, %127 : vector<8x32xf32>
    %c0_48 = arith.constant 0 : index
    %c0_49 = arith.constant 0 : index
    %129 = vector.load %arg14[%c0_48, %c0_49] : memref<32x64xbf16, #tpu.memory_space<vmem>>, vector<32x64xbf16>
    %c0_50 = arith.constant 0 : index
    %c0_51 = arith.constant 0 : index
    %130 = vector.load %arg15[%c0_50, %c0_51] : memref<1x64xf32, #tpu.memory_space<vmem>>, vector<1x64xf32>
    %c0_52 = arith.constant 0 : index
    %c0_53 = arith.constant 0 : index
    %131 = vector.load %arg16[%c0_52, %c0_53] : memref<64x32xbf16, #tpu.memory_space<vmem>>, vector<64x32xbf16>
    %c0_54 = arith.constant 0 : index
    %c0_55 = arith.constant 0 : index
    %132 = vector.load %arg17[%c0_54, %c0_55] : memref<1x32xf32, #tpu.memory_space<vmem>>, vector<1x32xf32>
    %c0_56 = arith.constant 0 : index
    %c0_57 = arith.constant 0 : index
    %133 = vector.load %arg18[%c0_56, %c0_57] : memref<1x32xf32, #tpu.memory_space<vmem>>, vector<1x32xf32>
    %c0_58 = arith.constant 0 : index
    %c0_59 = arith.constant 0 : index
    %134 = vector.load %arg19[%c0_58, %c0_59] : memref<1x32xf32, #tpu.memory_space<vmem>>, vector<1x32xf32>
    %135 = arith.truncf %128 : vector<8x32xf32> to vector<8x32xbf16>
    %cst_60 = arith.constant dense<0.000000e+00> : vector<8x64xf32>
    %136 = tpu.matmul %135, %129, %cst_60 {dimension_numbers = #tpu.dot_dimension_numbers<[1], [0], [0], [1], [0, 0, 1, 1], [], []>} : vector<8x32xbf16>, vector<32x64xbf16>, vector<8x64xf32> -> vector<8x64xf32>
    %137 = vector.broadcast %130 : vector<1x64xf32> to vector<8x64xf32>
    %138 = arith.addf %136, %137 : vector<8x64xf32>
    %cst_61 = arith.constant 0.000000e+00 : f32
    %139 = vector.broadcast %cst_61 : f32 to vector<8x64xf32>
    %140 = arith.maximumf %138, %139 : vector<8x64xf32>
    %141 = arith.truncf %140 : vector<8x64xf32> to vector<8x64xbf16>
    %cst_62 = arith.constant dense<0.000000e+00> : vector<8x32xf32>
    %142 = tpu.matmul %141, %131, %cst_62 {dimension_numbers = #tpu.dot_dimension_numbers<[1], [0], [0], [1], [0, 0, 1, 1], [], []>} : vector<8x64xbf16>, vector<64x32xbf16>, vector<8x32xf32> -> vector<8x32xf32>
    %143 = vector.broadcast %132 : vector<1x32xf32> to vector<8x32xf32>
    %144 = arith.addf %142, %143 : vector<8x32xf32>
    %145 = arith.addf %128, %144 : vector<8x32xf32>
    %cst_63 = arith.constant dense<0.000000e+00> : vector<8xf32>
    %146 = vector.multi_reduction <add>, %145, %cst_63 [1] : vector<8x32xf32> to vector<8xf32>
    %147 = vector.shape_cast %146 : vector<8xf32> to vector<8x1xf32>
    %cst_64 = arith.constant 3.200000e+01 : f32
    %148 = vector.broadcast %cst_64 : f32 to vector<8x1xf32>
    %149 = arith.divf %147, %148 : vector<8x1xf32>
    %150 = vector.broadcast %149 : vector<8x1xf32> to vector<8x32xf32>
    %151 = arith.subf %145, %150 : vector<8x32xf32>
    %152 = arith.mulf %151, %151 : vector<8x32xf32>
    %cst_65 = arith.constant dense<0.000000e+00> : vector<8xf32>
    %153 = vector.multi_reduction <add>, %152, %cst_65 [1] : vector<8x32xf32> to vector<8xf32>
    %154 = vector.shape_cast %153 : vector<8xf32> to vector<8x1xf32>
    %cst_66 = arith.constant 3.200000e+01 : f32
    %155 = vector.broadcast %cst_66 : f32 to vector<8x1xf32>
    %156 = arith.divf %154, %155 : vector<8x1xf32>
    %157 = vector.broadcast %149 : vector<8x1xf32> to vector<8x32xf32>
    %158 = arith.subf %145, %157 : vector<8x32xf32>
    %cst_67 = arith.constant 9.99999974E-6 : f32
    %159 = vector.broadcast %cst_67 : f32 to vector<8x1xf32>
    %160 = arith.addf %156, %159 : vector<8x1xf32>
    %161 = math.rsqrt %160 : vector<8x1xf32>
    %162 = vector.broadcast %161 : vector<8x1xf32> to vector<8x32xf32>
    %163 = arith.mulf %158, %162 : vector<8x32xf32>
    %164 = vector.broadcast %133 : vector<1x32xf32> to vector<8x32xf32>
    %165 = arith.mulf %163, %164 : vector<8x32xf32>
    %166 = vector.broadcast %134 : vector<1x32xf32> to vector<8x32xf32>
    %167 = arith.addf %165, %166 : vector<8x32xf32>
    %c0_68 = arith.constant 0 : index
    %c0_69 = arith.constant 0 : index
    %168 = vector.load %arg20[%c0_68, %c0_69] : memref<8x32xf32, #tpu.memory_space<vmem>>, vector<8x32xf32>
    tpu.vector_store %arg20[%c0_68, %c0_69], %167 {strides = array<i32>} : memref<8x32xf32, #tpu.memory_space<vmem>>, vector<8x32xf32>,
    return
  }
  func.func @transform_0(%arg0: i32, %arg1: i32) -> (i32, i32) {
    %c1_i32 = arith.constant 1 : i32
    %0 = arith.muli %arg0, %c1_i32 : i32
    %1 = arith.addi %0, %arg1 : i32
    %c0_i32 = arith.constant 0 : i32
    %c0_i32_0 = arith.constant 0 : i32
    return %1, %c0_i32 : i32, i32
  }
  func.func @transform_1(%arg0: i32, %arg1: i32) -> (i32, i32) {
    %c0_i32 = arith.constant 0 : i32
    %c0_i32_0 = arith.constant 0 : i32
    return %arg0, %c0_i32 : i32, i32
  }
  func.func @transform_2(%arg0: i32, %arg1: i32) -> (i32, i32) {
    %c0_i32 = arith.constant 0 : i32
    %c0_i32_0 = arith.constant 0 : i32
    return %arg1, %c0_i32 : i32, i32
  }
  func.func @transform_3(%arg0: i32, %arg1: i32) -> (i32, i32, i32) {
    %c0_i32 = arith.constant 0 : i32
    %c0_i32_0 = arith.constant 0 : i32
    %c0_i32_1 = arith.constant 0 : i32
    return %arg0, %c0_i32, %c0_i32_0 : i32, i32, i32
  }
  func.func @transform_4(%arg0: i32, %arg1: i32) -> (i32, i32) {
    %c0_i32 = arith.constant 0 : i32
    %c0_i32_0 = arith.constant 0 : i32
    %c0_i32_1 = arith.constant 0 : i32
    return %c0_i32, %c0_i32_0 : i32, i32
  }
  func.func @transform_5(%arg0: i32, %arg1: i32) -> (i32, i32) {
    %c0_i32 = arith.constant 0 : i32
    %c0_i32_0 = arith.constant 0 : i32
    %c0_i32_1 = arith.constant 0 : i32
    return %c0_i32, %c0_i32_0 : i32, i32
  }
  func.func @transform_6(%arg0: i32, %arg1: i32) -> (i32, i32) {
    %c0_i32 = arith.constant 0 : i32
    %c0_i32_0 = arith.constant 0 : i32
    %c0_i32_1 = arith.constant 0 : i32
    return %c0_i32, %c0_i32_0 : i32, i32
  }
  func.func @transform_7(%arg0: i32, %arg1: i32) -> (i32, i32) {
    %c0_i32 = arith.constant 0 : i32
    %c0_i32_0 = arith.constant 0 : i32
    %c0_i32_1 = arith.constant 0 : i32
    return %c0_i32, %c0_i32_0 : i32, i32
  }
  func.func @transform_8(%arg0: i32, %arg1: i32) -> (i32, i32) {
    %c0_i32 = arith.constant 0 : i32
    %c0_i32_0 = arith.constant 0 : i32
    %c0_i32_1 = arith.constant 0 : i32
    return %c0_i32, %c0_i32_0 : i32, i32
  }
  func.func @transform_9(%arg0: i32, %arg1: i32) -> (i32, i32) {
    %c0_i32 = arith.constant 0 : i32
    %c0_i32_0 = arith.constant 0 : i32
    %c0_i32_1 = arith.constant 0 : i32
    return %c0_i32, %c0_i32_0 : i32, i32
  }
  func.func @transform_10(%arg0: i32, %arg1: i32) -> (i32, i32) {
    %c0_i32 = arith.constant 0 : i32
    %c0_i32_0 = arith.constant 0 : i32
    %c0_i32_1 = arith.constant 0 : i32
    return %c0_i32, %c0_i32_0 : i32, i32
  }
  func.func @transform_11(%arg0: i32, %arg1: i32) -> (i32, i32) {
    %c0_i32 = arith.constant 0 : i32
    %c0_i32_0 = arith.constant 0 : i32
    %c0_i32_1 = arith.constant 0 : i32
    return %c0_i32, %c0_i32_0 : i32, i32
  }
  func.func @transform_12(%arg0: i32, %arg1: i32) -> (i32, i32) {
    %c0_i32 = arith.constant 0 : i32
    %c0_i32_0 = arith.constant 0 : i32
    %c0_i32_1 = arith.constant 0 : i32
    return %c0_i32, %c0_i32_0 : i32, i32
  }
  func.func @transform_13(%arg0: i32, %arg1: i32) -> (i32, i32) {
    %c0_i32 = arith.constant 0 : i32
    %c0_i32_0 = arith.constant 0 : i32
    %c0_i32_1 = arith.constant 0 : i32
    return %c0_i32, %c0_i32_0 : i32, i32
  }
  func.func @transform_14(%arg0: i32, %arg1: i32) -> (i32, i32) {
    %c0_i32 = arith.constant 0 : i32
    %c0_i32_0 = arith.constant 0 : i32
    %c0_i32_1 = arith.constant 0 : i32
    return %c0_i32, %c0_i32_0 : i32, i32
  }
  func.func @transform_15(%arg0: i32, %arg1: i32) -> (i32, i32) {
    %c0_i32 = arith.constant 0 : i32
    %c0_i32_0 = arith.constant 0 : i32
    %c0_i32_1 = arith.constant 0 : i32
    return %c0_i32, %c0_i32_0 : i32, i32
  }
  func.func @transform_16(%arg0: i32, %arg1: i32) -> (i32, i32) {
    %c0_i32 = arith.constant 0 : i32
    %c0_i32_0 = arith.constant 0 : i32
    %c0_i32_1 = arith.constant 0 : i32
    return %c0_i32, %c0_i32_0 : i32, i32
  }
  func.func @transform_17(%arg0: i32, %arg1: i32) -> (i32, i32) {
    %c0_i32 = arith.constant 0 : i32
    %c0_i32_0 = arith.constant 0 : i32
    %c0_i32_1 = arith.constant 0 : i32
    return %c0_i32, %c0_i32_0 : i32, i32
  }
  func.func @transform_18(%arg0: i32, %arg1: i32) -> (i32, i32) {
    %c1_i32 = arith.constant 1 : i32
    %0 = arith.muli %arg0, %c1_i32 : i32
    %1 = arith.addi %0, %arg1 : i32
    %c0_i32 = arith.constant 0 : i32
    %c0_i32_0 = arith.constant 0 : i32
    return %1, %c0_i32 : i32, i32
  }
}

module attributes {stable_mosaic.version = 11 : i64} {
  func.func @_enc_layer_kernel(%arg0: i32, %arg1: i32, %arg2: memref<8x32xf32, #tpu.memory_space<vmem>>, %arg3: memref<8x32xf32, #tpu.memory_space<vmem>>, %arg4: memref<8x8xf32, #tpu.memory_space<vmem>>, %arg5: memref<1x1x8xf32, #tpu.memory_space<vmem>>, %arg6: memref<32x32xbf16, #tpu.memory_space<vmem>>, %arg7: memref<1x32xf32, #tpu.memory_space<vmem>>, %arg8: memref<32x64xbf16, #tpu.memory_space<vmem>>, %arg9: memref<1x64xf32, #tpu.memory_space<vmem>>, %arg10: memref<32x32xbf16, #tpu.memory_space<vmem>>, %arg11: memref<1x32xf32, #tpu.memory_space<vmem>>, %arg12: memref<1x32xf32, #tpu.memory_space<vmem>>, %arg13: memref<1x32xf32, #tpu.memory_space<vmem>>, %arg14: memref<32x64xbf16, #tpu.memory_space<vmem>>, %arg15: memref<1x64xf32, #tpu.memory_space<vmem>>, %arg16: memref<64x32xbf16, #tpu.memory_space<vmem>>, %arg17: memref<1x32xf32, #tpu.memory_space<vmem>>, %arg18: memref<1x32xf32, #tpu.memory_space<vmem>>, %arg19: memref<1x32xf32, #tpu.memory_space<vmem>>, %arg20: memref<1x32xf32, #tpu.memory_space<vmem>>, %arg21: memref<1x32xf32, #tpu.memory_space<vmem>>, %arg22: memref<8x32xf32, #tpu.memory_space<vmem>>) attributes {dimension_semantics = [#tpu.dimension_semantics<parallel>, #tpu.dimension_semantics<parallel>], iteration_bounds = array<i64: 2, 1>, scalar_prefetch = 0 : i64, scratch_operands = 0 : i64, tpu.core_type = #tpu.core_type<tc>, window_params = [{transform_indices = @transform_0, window_bounds = array<i64: 8, 32>}, {transform_indices = @transform_1, window_bounds = array<i64: 8, 32>}, {transform_indices = @transform_2, window_bounds = array<i64: 8, 8>}, {transform_indices = @transform_3, window_bounds = array<i64: 1, 1, 8>}, {pipeline_mode = #tpu.pipeline_mode<synchronous>, transform_indices = @transform_4, window_bounds = array<i64: 32, 32>}, {pipeline_mode = #tpu.pipeline_mode<synchronous>, transform_indices = @transform_5, window_bounds = array<i64: 1, 32>}, {pipeline_mode = #tpu.pipeline_mode<synchronous>, transform_indices = @transform_6, window_bounds = array<i64: 32, 64>}, {pipeline_mode = #tpu.pipeline_mode<synchronous>, transform_indices = @transform_7, window_bounds = array<i64: 1, 64>}, {pipeline_mode = #tpu.pipeline_mode<synchronous>, transform_indices = @transform_8, window_bounds = array<i64: 32, 32>}, {pipeline_mode = #tpu.pipeline_mode<synchronous>, transform_indices = @transform_9, window_bounds = array<i64: 1, 32>}, {pipeline_mode = #tpu.pipeline_mode<synchronous>, transform_indices = @transform_10, window_bounds = array<i64: 1, 32>}, {pipeline_mode = #tpu.pipeline_mode<synchronous>, transform_indices = @transform_11, window_bounds = array<i64: 1, 32>}, {pipeline_mode = #tpu.pipeline_mode<synchronous>, transform_indices = @transform_12, window_bounds = array<i64: 32, 64>}, {pipeline_mode = #tpu.pipeline_mode<synchronous>, transform_indices = @transform_13, window_bounds = array<i64: 1, 64>}, {pipeline_mode = #tpu.pipeline_mode<synchronous>, transform_indices = @transform_14, window_bounds = array<i64: 64, 32>}, {pipeline_mode = #tpu.pipeline_mode<synchronous>, transform_indices = @transform_15, window_bounds = array<i64: 1, 32>}, {pipeline_mode = #tpu.pipeline_mode<synchronous>, transform_indices = @transform_16, window_bounds = array<i64: 1, 32>}, {pipeline_mode = #tpu.pipeline_mode<synchronous>, transform_indices = @transform_17, window_bounds = array<i64: 1, 32>}, {pipeline_mode = #tpu.pipeline_mode<synchronous>, transform_indices = @transform_18, window_bounds = array<i64: 1, 32>}, {pipeline_mode = #tpu.pipeline_mode<synchronous>, transform_indices = @transform_19, window_bounds = array<i64: 1, 32>}, {transform_indices = @transform_20, window_bounds = array<i64: 8, 32>}]} {
    %c0 = arith.constant 0 : index
    %c0_0 = arith.constant 0 : index
    %0 = vector.load %arg2[%c0, %c0_0] : memref<8x32xf32, #tpu.memory_space<vmem>>, vector<8x32xf32>
    %c0_1 = arith.constant 0 : index
    %c0_2 = arith.constant 0 : index
    %1 = vector.load %arg4[%c0_1, %c0_2] : memref<8x8xf32, #tpu.memory_space<vmem>>, vector<8x8xf32>
    %c0_3 = arith.constant 0 : index
    %c0_4 = arith.constant 0 : index
    %c0_5 = arith.constant 0 : index
    %2 = vector.load %arg5[%c0_3, %c0_4, %c0_5] : memref<1x1x8xf32, #tpu.memory_space<vmem>>, vector<1x1x8xf32>
    %3 = vector.shape_cast %2 : vector<1x1x8xf32> to vector<1x8xf32>
    %4 = vector.broadcast %3 : vector<1x8xf32> to vector<8x8xf32>
    %5 = arith.addf %1, %4 : vector<8x8xf32>
    %c0_6 = arith.constant 0 : index
    %c0_7 = arith.constant 0 : index
    %6 = vector.load %arg3[%c0_6, %c0_7] : memref<8x32xf32, #tpu.memory_space<vmem>>, vector<8x32xf32>
    %c0_8 = arith.constant 0 : index
    %c0_9 = arith.constant 0 : index
    %7 = vector.load %arg6[%c0_8, %c0_9] : memref<32x32xbf16, #tpu.memory_space<vmem>>, vector<32x32xbf16>
    %c0_10 = arith.constant 0 : index
    %c0_11 = arith.constant 0 : index
    %8 = vector.load %arg7[%c0_10, %c0_11] : memref<1x32xf32, #tpu.memory_space<vmem>>, vector<1x32xf32>
    %c0_12 = arith.constant 0 : index
    %c0_13 = arith.constant 0 : index
    %9 = vector.load %arg8[%c0_12, %c0_13] : memref<32x64xbf16, #tpu.memory_space<vmem>>, vector<32x64xbf16>
    %c0_14 = arith.constant 0 : index
    %c0_15 = arith.constant 0 : index
    %10 = vector.load %arg9[%c0_14, %c0_15] : memref<1x64xf32, #tpu.memory_space<vmem>>, vector<1x64xf32>
    %c0_16 = arith.constant 0 : index
    %c0_17 = arith.constant 0 : index
    %11 = vector.load %arg10[%c0_16, %c0_17] : memref<32x32xbf16, #tpu.memory_space<vmem>>, vector<32x32xbf16>
    %c0_18 = arith.constant 0 : index
    %c0_19 = arith.constant 0 : index
    %12 = vector.load %arg11[%c0_18, %c0_19] : memref<1x32xf32, #tpu.memory_space<vmem>>, vector<1x32xf32>
    %c0_20 = arith.constant 0 : index
    %c0_21 = arith.constant 0 : index
    %13 = vector.load %arg12[%c0_20, %c0_21] : memref<1x32xf32, #tpu.memory_space<vmem>>, vector<1x32xf32>
    %c0_22 = arith.constant 0 : index
    %c0_23 = arith.constant 0 : index
    %14 = vector.load %arg13[%c0_22, %c0_23] : memref<1x32xf32, #tpu.memory_space<vmem>>, vector<1x32xf32>
    %15 = arith.truncf %0 : vector<8x32xf32> to vector<8x32xbf16>
    %cst = arith.constant dense<0.000000e+00> : vector<8x32xf32>
    %16 = tpu.matmul %15, %7, %cst {dimension_numbers = #tpu.dot_dimension_numbers<[1], [0], [0], [1], [0, 0, 1, 1], [], []>} : vector<8x32xbf16>, vector<32x32xbf16>, vector<8x32xf32> -> vector<8x32xf32>
    %17 = vector.broadcast %8 : vector<1x32xf32> to vector<8x32xf32>
    %18 = arith.addf %16, %17 : vector<8x32xf32>
    %19 = arith.truncf %6 : vector<8x32xf32> to vector<8x32xbf16>
    %cst_24 = arith.constant dense<0.000000e+00> : vector<8x64xf32>
    %20 = tpu.matmul %19, %9, %cst_24 {dimension_numbers = #tpu.dot_dimension_numbers<[1], [0], [0], [1], [0, 0, 1, 1], [], []>} : vector<8x32xbf16>, vector<32x64xbf16>, vector<8x64xf32> -> vector<8x64xf32>
    %21 = vector.broadcast %10 : vector<1x64xf32> to vector<8x64xf32>
    %22 = arith.addf %20, %21 : vector<8x64xf32>
    %23 = vector.extract_strided_slice %22 {offsets = [0, 0], sizes = [8, 32], strides = [1, 1]} : vector<8x64xf32> to vector<8x32xf32>
    %24 = vector.extract_strided_slice %22 {offsets = [0, 32], sizes = [8, 32], strides = [1, 1]} : vector<8x64xf32> to vector<8x32xf32>
    %cst_25 = arith.constant 0.353553385 : f32
    %25 = vector.broadcast %cst_25 : f32 to vector<8x32xf32>
    %26 = arith.mulf %18, %25 : vector<8x32xf32>
    %27 = arith.truncf %26 : vector<8x32xf32> to vector<8x32xbf16>
    %28 = arith.truncf %23 : vector<8x32xf32> to vector<8x32xbf16>
    %29 = arith.truncf %24 : vector<8x32xf32> to vector<8x32xbf16>
    %30 = vector.extract_strided_slice %27 {offsets = [0, 0], sizes = [8, 8], strides = [1, 1]} : vector<8x32xbf16> to vector<8x8xbf16>
    %31 = vector.extract_strided_slice %28 {offsets = [0, 0], sizes = [8, 8], strides = [1, 1]} : vector<8x32xbf16> to vector<8x8xbf16>
    "tpu.trace_start"() <{level = 10 : i32, message = "qd,kd->qk"}> : () -> ()
    %cst_26 = arith.constant dense<0.000000e+00> : vector<8x8xf32>
    %32 = tpu.matmul %30, %31, %cst_26 {dimension_numbers = #tpu.dot_dimension_numbers<[1], [1], [0], [0], [0, 0, 1, 0], [], []>} : vector<8x8xbf16>, vector<8x8xbf16>, vector<8x8xf32> -> vector<8x8xf32>
    "tpu.trace_stop"() : () -> ()
    %33 = arith.addf %32, %5 : vector<8x8xf32>
    %cst_27 = arith.constant dense<0xFF800000> : vector<8xf32>
    %34 = vector.multi_reduction <maximumf>, %33, %cst_27 [1] : vector<8x8xf32> to vector<8xf32>
    %35 = vector.shape_cast %34 : vector<8xf32> to vector<8x1xf32>
    %36 = vector.broadcast %35 : vector<8x1xf32> to vector<8x8xf32>
    %37 = arith.subf %33, %36 : vector<8x8xf32>
    %38 = math.exp %37 : vector<8x8xf32>
    %cst_28 = arith.constant dense<0.000000e+00> : vector<8xf32>
    %39 = vector.multi_reduction <add>, %38, %cst_28 [1] : vector<8x8xf32> to vector<8xf32>
    %40 = vector.shape_cast %39 : vector<8xf32> to vector<8x1xf32>
    %41 = tpu.reciprocal %40 {approx = true} : vector<8x1xf32> -> vector<8x1xf32>
    %42 = vector.broadcast %41 : vector<8x1xf32> to vector<8x8xf32>
    %43 = arith.mulf %38, %42 : vector<8x8xf32>
    %44 = vector.extract_strided_slice %29 {offsets = [0, 0], sizes = [8, 8], strides = [1, 1]} : vector<8x32xbf16> to vector<8x8xbf16>
    %45 = arith.truncf %43 : vector<8x8xf32> to vector<8x8xbf16>
    %cst_29 = arith.constant dense<0.000000e+00> : vector<8x8xf32>
    %46 = tpu.matmul %45, %44, %cst_29 {dimension_numbers = #tpu.dot_dimension_numbers<[1], [0], [0], [1], [0, 0, 1, 1], [], []>} : vector<8x8xbf16>, vector<8x8xbf16>, vector<8x8xf32> -> vector<8x8xf32>
    %47 = arith.truncf %46 : vector<8x8xf32> to vector<8x8xbf16>
    %48 = vector.extract_strided_slice %27 {offsets = [0, 8], sizes = [8, 8], strides = [1, 1]} : vector<8x32xbf16> to vector<8x8xbf16>
    %49 = vector.extract_strided_slice %28 {offsets = [0, 8], sizes = [8, 8], strides = [1, 1]} : vector<8x32xbf16> to vector<8x8xbf16>
    "tpu.trace_start"() <{level = 10 : i32, message = "qd,kd->qk"}> : () -> ()
    %cst_30 = arith.constant dense<0.000000e+00> : vector<8x8xf32>
    %50 = tpu.matmul %48, %49, %cst_30 {dimension_numbers = #tpu.dot_dimension_numbers<[1], [1], [0], [0], [0, 0, 1, 0], [], []>} : vector<8x8xbf16>, vector<8x8xbf16>, vector<8x8xf32> -> vector<8x8xf32>
    "tpu.trace_stop"() : () -> ()
    %51 = arith.addf %50, %5 : vector<8x8xf32>
    %cst_31 = arith.constant dense<0xFF800000> : vector<8xf32>
    %52 = vector.multi_reduction <maximumf>, %51, %cst_31 [1] : vector<8x8xf32> to vector<8xf32>
    %53 = vector.shape_cast %52 : vector<8xf32> to vector<8x1xf32>
    %54 = vector.broadcast %53 : vector<8x1xf32> to vector<8x8xf32>
    %55 = arith.subf %51, %54 : vector<8x8xf32>
    %56 = math.exp %55 : vector<8x8xf32>
    %cst_32 = arith.constant dense<0.000000e+00> : vector<8xf32>
    %57 = vector.multi_reduction <add>, %56, %cst_32 [1] : vector<8x8xf32> to vector<8xf32>
    %58 = vector.shape_cast %57 : vector<8xf32> to vector<8x1xf32>
    %59 = tpu.reciprocal %58 {approx = true} : vector<8x1xf32> -> vector<8x1xf32>
    %60 = vector.broadcast %59 : vector<8x1xf32> to vector<8x8xf32>
    %61 = arith.mulf %56, %60 : vector<8x8xf32>
    %62 = vector.extract_strided_slice %29 {offsets = [0, 8], sizes = [8, 8], strides = [1, 1]} : vector<8x32xbf16> to vector<8x8xbf16>
    %63 = arith.truncf %61 : vector<8x8xf32> to vector<8x8xbf16>
    %cst_33 = arith.constant dense<0.000000e+00> : vector<8x8xf32>
    %64 = tpu.matmul %63, %62, %cst_33 {dimension_numbers = #tpu.dot_dimension_numbers<[1], [0], [0], [1], [0, 0, 1, 1], [], []>} : vector<8x8xbf16>, vector<8x8xbf16>, vector<8x8xf32> -> vector<8x8xf32>
    %65 = arith.truncf %64 : vector<8x8xf32> to vector<8x8xbf16>
    %66 = vector.extract_strided_slice %27 {offsets = [0, 16], sizes = [8, 8], strides = [1, 1]} : vector<8x32xbf16> to vector<8x8xbf16>
    %67 = vector.extract_strided_slice %28 {offsets = [0, 16], sizes = [8, 8], strides = [1, 1]} : vector<8x32xbf16> to vector<8x8xbf16>
    "tpu.trace_start"() <{level = 10 : i32, message = "qd,kd->qk"}> : () -> ()
    %cst_34 = arith.constant dense<0.000000e+00> : vector<8x8xf32>
    %68 = tpu.matmul %66, %67, %cst_34 {dimension_numbers = #tpu.dot_dimension_numbers<[1], [1], [0], [0], [0, 0, 1, 0], [], []>} : vector<8x8xbf16>, vector<8x8xbf16>, vector<8x8xf32> -> vector<8x8xf32>
    "tpu.trace_stop"() : () -> ()
    %69 = arith.addf %68, %5 : vector<8x8xf32>
    %cst_35 = arith.constant dense<0xFF800000> : vector<8xf32>
    %70 = vector.multi_reduction <maximumf>, %69, %cst_35 [1] : vector<8x8xf32> to vector<8xf32>
    %71 = vector.shape_cast %70 : vector<8xf32> to vector<8x1xf32>
    %72 = vector.broadcast %71 : vector<8x1xf32> to vector<8x8xf32>
    %73 = arith.subf %69, %72 : vector<8x8xf32>
    %74 = math.exp %73 : vector<8x8xf32>
    %cst_36 = arith.constant dense<0.000000e+00> : vector<8xf32>
    %75 = vector.multi_reduction <add>, %74, %cst_36 [1] : vector<8x8xf32> to vector<8xf32>
    %76 = vector.shape_cast %75 : vector<8xf32> to vector<8x1xf32>
    %77 = tpu.reciprocal %76 {approx = true} : vector<8x1xf32> -> vector<8x1xf32>
    %78 = vector.broadcast %77 : vector<8x1xf32> to vector<8x8xf32>
    %79 = arith.mulf %74, %78 : vector<8x8xf32>
    %80 = vector.extract_strided_slice %29 {offsets = [0, 16], sizes = [8, 8], strides = [1, 1]} : vector<8x32xbf16> to vector<8x8xbf16>
    %81 = arith.truncf %79 : vector<8x8xf32> to vector<8x8xbf16>
    %cst_37 = arith.constant dense<0.000000e+00> : vector<8x8xf32>
    %82 = tpu.matmul %81, %80, %cst_37 {dimension_numbers = #tpu.dot_dimension_numbers<[1], [0], [0], [1], [0, 0, 1, 1], [], []>} : vector<8x8xbf16>, vector<8x8xbf16>, vector<8x8xf32> -> vector<8x8xf32>
    %83 = arith.truncf %82 : vector<8x8xf32> to vector<8x8xbf16>
    %84 = vector.extract_strided_slice %27 {offsets = [0, 24], sizes = [8, 8], strides = [1, 1]} : vector<8x32xbf16> to vector<8x8xbf16>
    %85 = vector.extract_strided_slice %28 {offsets = [0, 24], sizes = [8, 8], strides = [1, 1]} : vector<8x32xbf16> to vector<8x8xbf16>
    "tpu.trace_start"() <{level = 10 : i32, message = "qd,kd->qk"}> : () -> ()
    %cst_38 = arith.constant dense<0.000000e+00> : vector<8x8xf32>
    %86 = tpu.matmul %84, %85, %cst_38 {dimension_numbers = #tpu.dot_dimension_numbers<[1], [1], [0], [0], [0, 0, 1, 0], [], []>} : vector<8x8xbf16>, vector<8x8xbf16>, vector<8x8xf32> -> vector<8x8xf32>
    "tpu.trace_stop"() : () -> ()
    %87 = arith.addf %86, %5 : vector<8x8xf32>
    %cst_39 = arith.constant dense<0xFF800000> : vector<8xf32>
    %88 = vector.multi_reduction <maximumf>, %87, %cst_39 [1] : vector<8x8xf32> to vector<8xf32>
    %89 = vector.shape_cast %88 : vector<8xf32> to vector<8x1xf32>
    %90 = vector.broadcast %89 : vector<8x1xf32> to vector<8x8xf32>
    %91 = arith.subf %87, %90 : vector<8x8xf32>
    %92 = math.exp %91 : vector<8x8xf32>
    %cst_40 = arith.constant dense<0.000000e+00> : vector<8xf32>
    %93 = vector.multi_reduction <add>, %92, %cst_40 [1] : vector<8x8xf32> to vector<8xf32>
    %94 = vector.shape_cast %93 : vector<8xf32> to vector<8x1xf32>
    %95 = tpu.reciprocal %94 {approx = true} : vector<8x1xf32> -> vector<8x1xf32>
    %96 = vector.broadcast %95 : vector<8x1xf32> to vector<8x8xf32>
    %97 = arith.mulf %92, %96 : vector<8x8xf32>
    %98 = vector.extract_strided_slice %29 {offsets = [0, 24], sizes = [8, 8], strides = [1, 1]} : vector<8x32xbf16> to vector<8x8xbf16>
    %99 = arith.truncf %97 : vector<8x8xf32> to vector<8x8xbf16>
    %cst_41 = arith.constant dense<0.000000e+00> : vector<8x8xf32>
    %100 = tpu.matmul %99, %98, %cst_41 {dimension_numbers = #tpu.dot_dimension_numbers<[1], [0], [0], [1], [0, 0, 1, 1], [], []>} : vector<8x8xbf16>, vector<8x8xbf16>, vector<8x8xf32> -> vector<8x8xf32>
    %101 = arith.truncf %100 : vector<8x8xf32> to vector<8x8xbf16>
    %102 = tpu.concatenate %47, %65, %83, %101 in 1 : vector<8x8xbf16>, vector<8x8xbf16>, vector<8x8xbf16>, vector<8x8xbf16> -> vector<8x32xbf16>
    %cst_42 = arith.constant dense<0.000000e+00> : vector<8x32xf32>
    %103 = tpu.matmul %102, %11, %cst_42 {dimension_numbers = #tpu.dot_dimension_numbers<[1], [0], [0], [1], [0, 0, 1, 1], [], []>} : vector<8x32xbf16>, vector<32x32xbf16>, vector<8x32xf32> -> vector<8x32xf32>
    %104 = vector.broadcast %12 : vector<1x32xf32> to vector<8x32xf32>
    %105 = arith.addf %103, %104 : vector<8x32xf32>
    %106 = arith.addf %0, %105 : vector<8x32xf32>
    %cst_43 = arith.constant dense<0.000000e+00> : vector<8xf32>
    %107 = vector.multi_reduction <add>, %106, %cst_43 [1] : vector<8x32xf32> to vector<8xf32>
    %108 = vector.shape_cast %107 : vector<8xf32> to vector<8x1xf32>
    %cst_44 = arith.constant 3.200000e+01 : f32
    %109 = vector.broadcast %cst_44 : f32 to vector<8x1xf32>
    %110 = arith.divf %108, %109 : vector<8x1xf32>
    %111 = vector.broadcast %110 : vector<8x1xf32> to vector<8x32xf32>
    %112 = arith.subf %106, %111 : vector<8x32xf32>
    %113 = arith.mulf %112, %112 : vector<8x32xf32>
    %cst_45 = arith.constant dense<0.000000e+00> : vector<8xf32>
    %114 = vector.multi_reduction <add>, %113, %cst_45 [1] : vector<8x32xf32> to vector<8xf32>
    %115 = vector.shape_cast %114 : vector<8xf32> to vector<8x1xf32>
    %cst_46 = arith.constant 3.200000e+01 : f32
    %116 = vector.broadcast %cst_46 : f32 to vector<8x1xf32>
    %117 = arith.divf %115, %116 : vector<8x1xf32>
    %118 = vector.broadcast %110 : vector<8x1xf32> to vector<8x32xf32>
    %119 = arith.subf %106, %118 : vector<8x32xf32>
    %cst_47 = arith.constant 9.99999974E-6 : f32
    %120 = vector.broadcast %cst_47 : f32 to vector<8x1xf32>
    %121 = arith.addf %117, %120 : vector<8x1xf32>
    %122 = math.rsqrt %121 : vector<8x1xf32>
    %123 = vector.broadcast %122 : vector<8x1xf32> to vector<8x32xf32>
    %124 = arith.mulf %119, %123 : vector<8x32xf32>
    %125 = vector.broadcast %13 : vector<1x32xf32> to vector<8x32xf32>
    %126 = arith.mulf %124, %125 : vector<8x32xf32>
    %127 = vector.broadcast %14 : vector<1x32xf32> to vector<8x32xf32>
    %128 = arith.addf %126, %127 : vector<8x32xf32>
    %c0_48 = arith.constant 0 : index
    %c0_49 = arith.constant 0 : index
    %129 = vector.load %arg14[%c0_48, %c0_49] : memref<32x64xbf16, #tpu.memory_space<vmem>>, vector<32x64xbf16>
    %c0_50 = arith.constant 0 : index
    %c0_51 = arith.constant 0 : index
    %130 = vector.load %arg15[%c0_50, %c0_51] : memref<1x64xf32, #tpu.memory_space<vmem>>, vector<1x64xf32>
    %c0_52 = arith.constant 0 : index
    %c0_53 = arith.constant 0 : index
    %131 = vector.load %arg16[%c0_52, %c0_53] : memref<64x32xbf16, #tpu.memory_space<vmem>>, vector<64x32xbf16>
    %c0_54 = arith.constant 0 : index
    %c0_55 = arith.constant 0 : index
    %132 = vector.load %arg17[%c0_54, %c0_55] : memref<1x32xf32, #tpu.memory_space<vmem>>, vector<1x32xf32>
    %c0_56 = arith.constant 0 : index
    %c0_57 = arith.constant 0 : index
    %133 = vector.load %arg18[%c0_56, %c0_57] : memref<1x32xf32, #tpu.memory_space<vmem>>, vector<1x32xf32>
    %c0_58 = arith.constant 0 : index
    %c0_59 = arith.constant 0 : index
    %134 = vector.load %arg19[%c0_58, %c0_59] : memref<1x32xf32, #tpu.memory_space<vmem>>, vector<1x32xf32>
    %135 = arith.truncf %128 : vector<8x32xf32> to vector<8x32xbf16>
    %cst_60 = arith.constant dense<0.000000e+00> : vector<8x64xf32>
    %136 = tpu.matmul %135, %129, %cst_60 {dimension_numbers = #tpu.dot_dimension_numbers<[1], [0], [0], [1], [0, 0, 1, 1], [], []>} : vector<8x32xbf16>, vector<32x64xbf16>, vector<8x64xf32> -> vector<8x64xf32>
    %137 = vector.broadcast %130 : vector<1x64xf32> to vector<8x64xf32>
    %138 = arith.addf %136, %137 : vector<8x64xf32>
    %cst_61 = arith.constant 0.000000e+00 : f32
    %139 = vector.broadcast %cst_61 : f32 to vector<8x64xf32>
    %140 = arith.maximumf %138, %139 : vector<8x64xf32>
    %141 = arith.truncf %140 : vector<8x64xf32> to vector<8x64xbf16>
    %cst_62 = arith.constant dense<0.000000e+00> : vector<8x32xf32>
    %142 = tpu.matmul %141, %131, %cst_62 {dimension_numbers = #tpu.dot_dimension_numbers<[1], [0], [0], [1], [0, 0, 1, 1], [], []>} : vector<8x64xbf16>, vector<64x32xbf16>, vector<8x32xf32> -> vector<8x32xf32>
    %143 = vector.broadcast %132 : vector<1x32xf32> to vector<8x32xf32>
    %144 = arith.addf %142, %143 : vector<8x32xf32>
    %145 = arith.addf %128, %144 : vector<8x32xf32>
    %cst_63 = arith.constant dense<0.000000e+00> : vector<8xf32>
    %146 = vector.multi_reduction <add>, %145, %cst_63 [1] : vector<8x32xf32> to vector<8xf32>
    %147 = vector.shape_cast %146 : vector<8xf32> to vector<8x1xf32>
    %cst_64 = arith.constant 3.200000e+01 : f32
    %148 = vector.broadcast %cst_64 : f32 to vector<8x1xf32>
    %149 = arith.divf %147, %148 : vector<8x1xf32>
    %150 = vector.broadcast %149 : vector<8x1xf32> to vector<8x32xf32>
    %151 = arith.subf %145, %150 : vector<8x32xf32>
    %152 = arith.mulf %151, %151 : vector<8x32xf32>
    %cst_65 = arith.constant dense<0.000000e+00> : vector<8xf32>
    %153 = vector.multi_reduction <add>, %152, %cst_65 [1] : vector<8x32xf32> to vector<8xf32>
    %154 = vector.shape_cast %153 : vector<8xf32> to vector<8x1xf32>
    %cst_66 = arith.constant 3.200000e+01 : f32
    %155 = vector.broadcast %cst_66 : f32 to vector<8x1xf32>
    %156 = arith.divf %154, %155 : vector<8x1xf32>
    %157 = vector.broadcast %149 : vector<8x1xf32> to vector<8x32xf32>
    %158 = arith.subf %145, %157 : vector<8x32xf32>
    %cst_67 = arith.constant 9.99999974E-6 : f32
    %159 = vector.broadcast %cst_67 : f32 to vector<8x1xf32>
    %160 = arith.addf %156, %159 : vector<8x1xf32>
    %161 = math.rsqrt %160 : vector<8x1xf32>
    %162 = vector.broadcast %161 : vector<8x1xf32> to vector<8x32xf32>
    %163 = arith.mulf %158, %162 : vector<8x32xf32>
    %164 = vector.broadcast %133 : vector<1x32xf32> to vector<8x32xf32>
    %165 = arith.mulf %163, %164 : vector<8x32xf32>
    %166 = vector.broadcast %134 : vector<1x32xf32> to vector<8x32xf32>
    %167 = arith.addf %165, %166 : vector<8x32xf32>
    %c0_68 = arith.constant 0 : index
    %c0_69 = arith.constant 0 : index
    %168 = vector.load %arg20[%c0_68, %c0_69] : memref<1x32xf32, #tpu.memory_space<vmem>>, vector<1x32xf32>
    %c0_70 = arith.constant 0 : index
    %c0_71 = arith.constant 0 : index
    %169 = vector.load %arg21[%c0_70, %c0_71] : memref<1x32xf32, #tpu.memory_space<vmem>>, vector<1x32xf32>
    %cst_72 = arith.constant dense<0.000000e+00> : vector<8xf32>
    %170 = vector.multi_reduction <add>, %167, %cst_72 [1] : vector<8x32xf32> to vector<8xf32>
    %171 = vector.shape_cast %170 : vector<8xf32> to vector<8x1xf32>
    %cst_73 = arith.constant 3.200000e+01 : f32
    %172 = vector.broadcast %cst_73 : f32 to vector<8x1xf32>
    %173 = arith.divf %171, %172 : vector<8x1xf32>
    %174 = vector.broadcast %173 : vector<8x1xf32> to vector<8x32xf32>
    %175 = arith.subf %167, %174 : vector<8x32xf32>
    %176 = arith.mulf %175, %175 : vector<8x32xf32>
    %cst_74 = arith.constant dense<0.000000e+00> : vector<8xf32>
    %177 = vector.multi_reduction <add>, %176, %cst_74 [1] : vector<8x32xf32> to vector<8xf32>
    %178 = vector.shape_cast %177 : vector<8xf32> to vector<8x1xf32>
    %cst_75 = arith.constant 3.200000e+01 : f32
    %179 = vector.broadcast %cst_75 : f32 to vector<8x1xf32>
    %180 = arith.divf %178, %179 : vector<8x1xf32>
    %181 = vector.broadcast %173 : vector<8x1xf32> to vector<8x32xf32>
    %182 = arith.subf %167, %181 : vector<8x32xf32>
    %cst_76 = arith.constant 9.99999974E-6 : f32
    %183 = vector.broadcast %cst_76 : f32 to vector<8x1xf32>
    %184 = arith.addf %180, %183 : vector<8x1xf32>
    %185 = math.rsqrt %184 : vector<8x1xf32>
    %186 = vector.broadcast %185 : vector<8x1xf32> to vector<8x32xf32>
    %187 = arith.mulf %182, %186 : vector<8x32xf32>
    %188 = vector.broadcast %168 : vector<1x32xf32> to vector<8x32xf32>
    %189 = arith.mulf %187, %188 : vector<8x32xf32>
    %190 = vector.broadcast %169 : vector<1x32xf32> to vector<8x32xf32>
    %191 = arith.addf %189, %190 : vector<8x32xf32>
    %c0_77 = arith.constant 0 : index
    %c0_78 = arith.constant 0 : index
    %192 = vector.load %arg22[%c0_77, %c0_78] : memref<8x32xf32, #tpu.memory_space<vmem>>, vector<8x32xf32>
    tpu.vector_store %arg22[%c0_77, %c0_78], %191 {strides = array<i32>} : memref<8x32xf32, #tpu.memory_space<vmem>>, vector<8x32xf32>,
    return
  }
  func.func @transform_0(%arg0: i32, %arg1: i32) -> (i32, i32) {
    %c1_i32 = arith.constant 1 : i32
    %0 = arith.muli %arg0, %c1_i32 : i32
    %1 = arith.addi %0, %arg1 : i32
    %c0_i32 = arith.constant 0 : i32
    %c0_i32_0 = arith.constant 0 : i32
    return %1, %c0_i32 : i32, i32
  }
  func.func @transform_1(%arg0: i32, %arg1: i32) -> (i32, i32) {
    %c0_i32 = arith.constant 0 : i32
    %c0_i32_0 = arith.constant 0 : i32
    return %arg0, %c0_i32 : i32, i32
  }
  func.func @transform_2(%arg0: i32, %arg1: i32) -> (i32, i32) {
    %c0_i32 = arith.constant 0 : i32
    %c0_i32_0 = arith.constant 0 : i32
    return %arg1, %c0_i32 : i32, i32
  }
  func.func @transform_3(%arg0: i32, %arg1: i32) -> (i32, i32, i32) {
    %c0_i32 = arith.constant 0 : i32
    %c0_i32_0 = arith.constant 0 : i32
    %c0_i32_1 = arith.constant 0 : i32
    return %arg0, %c0_i32, %c0_i32_0 : i32, i32, i32
  }
  func.func @transform_4(%arg0: i32, %arg1: i32) -> (i32, i32) {
    %c0_i32 = arith.constant 0 : i32
    %c0_i32_0 = arith.constant 0 : i32
    %c0_i32_1 = arith.constant 0 : i32
    return %c0_i32, %c0_i32_0 : i32, i32
  }
  func.func @transform_5(%arg0: i32, %arg1: i32) -> (i32, i32) {
    %c0_i32 = arith.constant 0 : i32
    %c0_i32_0 = arith.constant 0 : i32
    %c0_i32_1 = arith.constant 0 : i32
    return %c0_i32, %c0_i32_0 : i32, i32
  }
  func.func @transform_6(%arg0: i32, %arg1: i32) -> (i32, i32) {
    %c0_i32 = arith.constant 0 : i32
    %c0_i32_0 = arith.constant 0 : i32
    %c0_i32_1 = arith.constant 0 : i32
    return %c0_i32, %c0_i32_0 : i32, i32
  }
  func.func @transform_7(%arg0: i32, %arg1: i32) -> (i32, i32) {
    %c0_i32 = arith.constant 0 : i32
    %c0_i32_0 = arith.constant 0 : i32
    %c0_i32_1 = arith.constant 0 : i32
    return %c0_i32, %c0_i32_0 : i32, i32
  }
  func.func @transform_8(%arg0: i32, %arg1: i32) -> (i32, i32) {
    %c0_i32 = arith.constant 0 : i32
    %c0_i32_0 = arith.constant 0 : i32
    %c0_i32_1 = arith.constant 0 : i32
    return %c0_i32, %c0_i32_0 : i32, i32
  }
  func.func @transform_9(%arg0: i32, %arg1: i32) -> (i32, i32) {
    %c0_i32 = arith.constant 0 : i32
    %c0_i32_0 = arith.constant 0 : i32
    %c0_i32_1 = arith.constant 0 : i32
    return %c0_i32, %c0_i32_0 : i32, i32
  }
  func.func @transform_10(%arg0: i32, %arg1: i32) -> (i32, i32) {
    %c0_i32 = arith.constant 0 : i32
    %c0_i32_0 = arith.constant 0 : i32
    %c0_i32_1 = arith.constant 0 : i32
    return %c0_i32, %c0_i32_0 : i32, i32
  }
  func.func @transform_11(%arg0: i32, %arg1: i32) -> (i32, i32) {
    %c0_i32 = arith.constant 0 : i32
    %c0_i32_0 = arith.constant 0 : i32
    %c0_i32_1 = arith.constant 0 : i32
    return %c0_i32, %c0_i32_0 : i32, i32
  }
  func.func @transform_12(%arg0: i32, %arg1: i32) -> (i32, i32) {
    %c0_i32 = arith.constant 0 : i32
    %c0_i32_0 = arith.constant 0 : i32
    %c0_i32_1 = arith.constant 0 : i32
    return %c0_i32, %c0_i32_0 : i32, i32
  }
  func.func @transform_13(%arg0: i32, %arg1: i32) -> (i32, i32) {
    %c0_i32 = arith.constant 0 : i32
    %c0_i32_0 = arith.constant 0 : i32
    %c0_i32_1 = arith.constant 0 : i32
    return %c0_i32, %c0_i32_0 : i32, i32
  }
  func.func @transform_14(%arg0: i32, %arg1: i32) -> (i32, i32) {
    %c0_i32 = arith.constant 0 : i32
    %c0_i32_0 = arith.constant 0 : i32
    %c0_i32_1 = arith.constant 0 : i32
    return %c0_i32, %c0_i32_0 : i32, i32
  }
  func.func @transform_15(%arg0: i32, %arg1: i32) -> (i32, i32) {
    %c0_i32 = arith.constant 0 : i32
    %c0_i32_0 = arith.constant 0 : i32
    %c0_i32_1 = arith.constant 0 : i32
    return %c0_i32, %c0_i32_0 : i32, i32
  }
  func.func @transform_16(%arg0: i32, %arg1: i32) -> (i32, i32) {
    %c0_i32 = arith.constant 0 : i32
    %c0_i32_0 = arith.constant 0 : i32
    %c0_i32_1 = arith.constant 0 : i32
    return %c0_i32, %c0_i32_0 : i32, i32
  }
  func.func @transform_17(%arg0: i32, %arg1: i32) -> (i32, i32) {
    %c0_i32 = arith.constant 0 : i32
    %c0_i32_0 = arith.constant 0 : i32
    %c0_i32_1 = arith.constant 0 : i32
    return %c0_i32, %c0_i32_0 : i32, i32
  }
  func.func @transform_18(%arg0: i32, %arg1: i32) -> (i32, i32) {
    %c0_i32 = arith.constant 0 : i32
    %c0_i32_0 = arith.constant 0 : i32
    %c0_i32_1 = arith.constant 0 : i32
    return %c0_i32, %c0_i32_0 : i32, i32
  }
  func.func @transform_19(%arg0: i32, %arg1: i32) -> (i32, i32) {
    %c0_i32 = arith.constant 0 : i32
    %c0_i32_0 = arith.constant 0 : i32
    %c0_i32_1 = arith.constant 0 : i32
    return %c0_i32, %c0_i32_0 : i32, i32
  }
  func.func @transform_20(%arg0: i32, %arg1: i32) -> (i32, i32) {
    %c1_i32 = arith.constant 1 : i32
    %0 = arith.muli %arg0, %c1_i32 : i32
    %1 = arith.addi %0, %arg1 : i32
    %c0_i32 = arith.constant 0 : i32
    %c0_i32_0 = arith.constant 0 : i32
    return %1, %c0_i32 : i32, i32
  }
}

module attributes {stable_mosaic.version = 11 : i64} {
  func.func @_dec_layer_kernel(%arg0: i32, %arg1: i32, %arg2: memref<8x32xf32, #tpu.memory_space<vmem>>, %arg3: memref<8x32xf32, #tpu.memory_space<vmem>>, %arg4: memref<8x32xf32, #tpu.memory_space<vmem>>, %arg5: memref<8x8xf32, #tpu.memory_space<vmem>>, %arg6: memref<1x1x8xf32, #tpu.memory_space<vmem>>, %arg7: memref<1x1x8xf32, #tpu.memory_space<vmem>>, %arg8: memref<32x32xbf16, #tpu.memory_space<vmem>>, %arg9: memref<1x32xf32, #tpu.memory_space<vmem>>, %arg10: memref<32x64xbf16, #tpu.memory_space<vmem>>, %arg11: memref<1x64xf32, #tpu.memory_space<vmem>>, %arg12: memref<32x32xbf16, #tpu.memory_space<vmem>>, %arg13: memref<1x32xf32, #tpu.memory_space<vmem>>, %arg14: memref<1x32xf32, #tpu.memory_space<vmem>>, %arg15: memref<1x32xf32, #tpu.memory_space<vmem>>, %arg16: memref<32x32xbf16, #tpu.memory_space<vmem>>, %arg17: memref<1x32xf32, #tpu.memory_space<vmem>>, %arg18: memref<32x64xbf16, #tpu.memory_space<vmem>>, %arg19: memref<1x64xf32, #tpu.memory_space<vmem>>, %arg20: memref<32x32xbf16, #tpu.memory_space<vmem>>, %arg21: memref<1x32xf32, #tpu.memory_space<vmem>>, %arg22: memref<1x32xf32, #tpu.memory_space<vmem>>, %arg23: memref<1x32xf32, #tpu.memory_space<vmem>>, %arg24: memref<32x64xbf16, #tpu.memory_space<vmem>>, %arg25: memref<1x64xf32, #tpu.memory_space<vmem>>, %arg26: memref<64x32xbf16, #tpu.memory_space<vmem>>, %arg27: memref<1x32xf32, #tpu.memory_space<vmem>>, %arg28: memref<1x32xf32, #tpu.memory_space<vmem>>, %arg29: memref<1x32xf32, #tpu.memory_space<vmem>>, %arg30: memref<8x32xf32, #tpu.memory_space<vmem>>) attributes {dimension_semantics = [#tpu.dimension_semantics<parallel>, #tpu.dimension_semantics<parallel>], iteration_bounds = array<i64: 2, 1>, scalar_prefetch = 0 : i64, scratch_operands = 0 : i64, tpu.core_type = #tpu.core_type<tc>, window_params = [{transform_indices = @transform_0, window_bounds = array<i64: 8, 32>}, {transform_indices = @transform_1, window_bounds = array<i64: 8, 32>}, {transform_indices = @transform_2, window_bounds = array<i64: 8, 32>}, {transform_indices = @transform_3, window_bounds = array<i64: 8, 8>}, {transform_indices = @transform_4, window_bounds = array<i64: 1, 1, 8>}, {transform_indices = @transform_5, window_bounds = array<i64: 1, 1, 8>}, {pipeline_mode = #tpu.pipeline_mode<synchronous>, transform_indices = @transform_6, window_bounds = array<i64: 32, 32>}, {pipeline_mode = #tpu.pipeline_mode<synchronous>, transform_indices = @transform_7, window_bounds = array<i64: 1, 32>}, {pipeline_mode = #tpu.pipeline_mode<synchronous>, transform_indices = @transform_8, window_bounds = array<i64: 32, 64>}, {pipeline_mode = #tpu.pipeline_mode<synchronous>, transform_indices = @transform_9, window_bounds = array<i64: 1, 64>}, {pipeline_mode = #tpu.pipeline_mode<synchronous>, transform_indices = @transform_10, window_bounds = array<i64: 32, 32>}, {pipeline_mode = #tpu.pipeline_mode<synchronous>, transform_indices = @transform_11, window_bounds = array<i64: 1, 32>}, {pipeline_mode = #tpu.pipeline_mode<synchronous>, transform_indices = @transform_12, window_bounds = array<i64: 1, 32>}, {pipeline_mode = #tpu.pipeline_mode<synchronous>, transform_indices = @transform_13, window_bounds = array<i64: 1, 32>}, {pipeline_mode = #tpu.pipeline_mode<synchronous>, transform_indices = @transform_14, window_bounds = array<i64: 32, 32>}, {pipeline_mode = #tpu.pipeline_mode<synchronous>, transform_indices = @transform_15, window_bounds = array<i64: 1, 32>}, {pipeline_mode = #tpu.pipeline_mode<synchronous>, transform_indices = @transform_16, window_bounds = array<i64: 32, 64>}, {pipeline_mode = #tpu.pipeline_mode<synchronous>, transform_indices = @transform_17, window_bounds = array<i64: 1, 64>}, {pipeline_mode = #tpu.pipeline_mode<synchronous>, transform_indices = @transform_18, window_bounds = array<i64: 32, 32>}, {pipeline_mode = #tpu.pipeline_mode<synchronous>, transform_indices = @transform_19, window_bounds = array<i64: 1, 32>}, {pipeline_mode = #tpu.pipeline_mode<synchronous>, transform_indices = @transform_20, window_bounds = array<i64: 1, 32>}, {pipeline_mode = #tpu.pipeline_mode<synchronous>, transform_indices = @transform_21, window_bounds = array<i64: 1, 32>}, {pipeline_mode = #tpu.pipeline_mode<synchronous>, transform_indices = @transform_22, window_bounds = array<i64: 32, 64>}, {pipeline_mode = #tpu.pipeline_mode<synchronous>, transform_indices = @transform_23, window_bounds = array<i64: 1, 64>}, {pipeline_mode = #tpu.pipeline_mode<synchronous>, transform_indices = @transform_24, window_bounds = array<i64: 64, 32>}, {pipeline_mode = #tpu.pipeline_mode<synchronous>, transform_indices = @transform_25, window_bounds = array<i64: 1, 32>}, {pipeline_mode = #tpu.pipeline_mode<synchronous>, transform_indices = @transform_26, window_bounds = array<i64: 1, 32>}, {pipeline_mode = #tpu.pipeline_mode<synchronous>, transform_indices = @transform_27, window_bounds = array<i64: 1, 32>}, {transform_indices = @transform_28, window_bounds = array<i64: 8, 32>}]} {
    %c0 = arith.constant 0 : index
    %c0_0 = arith.constant 0 : index
    %0 = vector.load %arg2[%c0, %c0_0] : memref<8x32xf32, #tpu.memory_space<vmem>>, vector<8x32xf32>
    %c0_1 = arith.constant 0 : index
    %c0_2 = arith.constant 0 : index
    %1 = vector.load %arg5[%c0_1, %c0_2] : memref<8x8xf32, #tpu.memory_space<vmem>>, vector<8x8xf32>
    %c0_3 = arith.constant 0 : index
    %c0_4 = arith.constant 0 : index
    %c0_5 = arith.constant 0 : index
    %2 = vector.load %arg6[%c0_3, %c0_4, %c0_5] : memref<1x1x8xf32, #tpu.memory_space<vmem>>, vector<1x1x8xf32>
    %3 = vector.shape_cast %2 : vector<1x1x8xf32> to vector<1x8xf32>
    %4 = vector.broadcast %3 : vector<1x8xf32> to vector<8x8xf32>
    %5 = arith.addf %1, %4 : vector<8x8xf32>
    %c0_6 = arith.constant 0 : index
    %c0_7 = arith.constant 0 : index
    %6 = vector.load %arg3[%c0_6, %c0_7] : memref<8x32xf32, #tpu.memory_space<vmem>>, vector<8x32xf32>
    %c0_8 = arith.constant 0 : index
    %c0_9 = arith.constant 0 : index
    %7 = vector.load %arg8[%c0_8, %c0_9] : memref<32x32xbf16, #tpu.memory_space<vmem>>, vector<32x32xbf16>
    %c0_10 = arith.constant 0 : index
    %c0_11 = arith.constant 0 : index
    %8 = vector.load %arg9[%c0_10, %c0_11] : memref<1x32xf32, #tpu.memory_space<vmem>>, vector<1x32xf32>
    %c0_12 = arith.constant 0 : index
    %c0_13 = arith.constant 0 : index
    %9 = vector.load %arg10[%c0_12, %c0_13] : memref<32x64xbf16, #tpu.memory_space<vmem>>, vector<32x64xbf16>
    %c0_14 = arith.constant 0 : index
    %c0_15 = arith.constant 0 : index
    %10 = vector.load %arg11[%c0_14, %c0_15] : memref<1x64xf32, #tpu.memory_space<vmem>>, vector<1x64xf32>
    %c0_16 = arith.constant 0 : index
    %c0_17 = arith.constant 0 : index
    %11 = vector.load %arg12[%c0_16, %c0_17] : memref<32x32xbf16, #tpu.memory_space<vmem>>, vector<32x32xbf16>
    %c0_18 = arith.constant 0 : index
    %c0_19 = arith.constant 0 : index
    %12 = vector.load %arg13[%c0_18, %c0_19] : memref<1x32xf32, #tpu.memory_space<vmem>>, vector<1x32xf32>
    %c0_20 = arith.constant 0 : index
    %c0_21 = arith.constant 0 : index
    %13 = vector.load %arg14[%c0_20, %c0_21] : memref<1x32xf32, #tpu.memory_space<vmem>>, vector<1x32xf32>
    %c0_22 = arith.constant 0 : index
    %c0_23 = arith.constant 0 : index
    %14 = vector.load %arg15[%c0_22, %c0_23] : memref<1x32xf32, #tpu.memory_space<vmem>>, vector<1x32xf32>
    %15 = arith.truncf %0 : vector<8x32xf32> to vector<8x32xbf16>
    %cst = arith.constant dense<0.000000e+00> : vector<8x32xf32>
    %16 = tpu.matmul %15, %7, %cst {dimension_numbers = #tpu.dot_dimension_numbers<[1], [0], [0], [1], [0, 0, 1, 1], [], []>} : vector<8x32xbf16>, vector<32x32xbf16>, vector<8x32xf32> -> vector<8x32xf32>
    %17 = vector.broadcast %8 : vector<1x32xf32> to vector<8x32xf32>
    %18 = arith.addf %16, %17 : vector<8x32xf32>
    %19 = arith.truncf %6 : vector<8x32xf32> to vector<8x32xbf16>
    %cst_24 = arith.constant dense<0.000000e+00> : vector<8x64xf32>
    %20 = tpu.matmul %19, %9, %cst_24 {dimension_numbers = #tpu.dot_dimension_numbers<[1], [0], [0], [1], [0, 0, 1, 1], [], []>} : vector<8x32xbf16>, vector<32x64xbf16>, vector<8x64xf32> -> vector<8x64xf32>
    %21 = vector.broadcast %10 : vector<1x64xf32> to vector<8x64xf32>
    %22 = arith.addf %20, %21 : vector<8x64xf32>
    %23 = vector.extract_strided_slice %22 {offsets = [0, 0], sizes = [8, 32], strides = [1, 1]} : vector<8x64xf32> to vector<8x32xf32>
    %24 = vector.extract_strided_slice %22 {offsets = [0, 32], sizes = [8, 32], strides = [1, 1]} : vector<8x64xf32> to vector<8x32xf32>
    %cst_25 = arith.constant 0.353553385 : f32
    %25 = vector.broadcast %cst_25 : f32 to vector<8x32xf32>
    %26 = arith.mulf %18, %25 : vector<8x32xf32>
    %27 = arith.truncf %26 : vector<8x32xf32> to vector<8x32xbf16>
    %28 = arith.truncf %23 : vector<8x32xf32> to vector<8x32xbf16>
    %29 = arith.truncf %24 : vector<8x32xf32> to vector<8x32xbf16>
    %30 = vector.extract_strided_slice %27 {offsets = [0, 0], sizes = [8, 8], strides = [1, 1]} : vector<8x32xbf16> to vector<8x8xbf16>
    %31 = vector.extract_strided_slice %28 {offsets = [0, 0], sizes = [8, 8], strides = [1, 1]} : vector<8x32xbf16> to vector<8x8xbf16>
    "tpu.trace_start"() <{level = 10 : i32, message = "qd,kd->qk"}> : () -> ()
    %cst_26 = arith.constant dense<0.000000e+00> : vector<8x8xf32>
    %32 = tpu.matmul %30, %31, %cst_26 {dimension_numbers = #tpu.dot_dimension_numbers<[1], [1], [0], [0], [0, 0, 1, 0], [], []>} : vector<8x8xbf16>, vector<8x8xbf16>, vector<8x8xf32> -> vector<8x8xf32>
    "tpu.trace_stop"() : () -> ()
    %33 = arith.addf %32, %5 : vector<8x8xf32>
    %cst_27 = arith.constant dense<0xFF800000> : vector<8xf32>
    %34 = vector.multi_reduction <maximumf>, %33, %cst_27 [1] : vector<8x8xf32> to vector<8xf32>
    %35 = vector.shape_cast %34 : vector<8xf32> to vector<8x1xf32>
    %36 = vector.broadcast %35 : vector<8x1xf32> to vector<8x8xf32>
    %37 = arith.subf %33, %36 : vector<8x8xf32>
    %38 = math.exp %37 : vector<8x8xf32>
    %cst_28 = arith.constant dense<0.000000e+00> : vector<8xf32>
    %39 = vector.multi_reduction <add>, %38, %cst_28 [1] : vector<8x8xf32> to vector<8xf32>
    %40 = vector.shape_cast %39 : vector<8xf32> to vector<8x1xf32>
    %41 = tpu.reciprocal %40 {approx = true} : vector<8x1xf32> -> vector<8x1xf32>
    %42 = vector.broadcast %41 : vector<8x1xf32> to vector<8x8xf32>
    %43 = arith.mulf %38, %42 : vector<8x8xf32>
    %44 = vector.extract_strided_slice %29 {offsets = [0, 0], sizes = [8, 8], strides = [1, 1]} : vector<8x32xbf16> to vector<8x8xbf16>
    %45 = arith.truncf %43 : vector<8x8xf32> to vector<8x8xbf16>
    %cst_29 = arith.constant dense<0.000000e+00> : vector<8x8xf32>
    %46 = tpu.matmul %45, %44, %cst_29 {dimension_numbers = #tpu.dot_dimension_numbers<[1], [0], [0], [1], [0, 0, 1, 1], [], []>} : vector<8x8xbf16>, vector<8x8xbf16>, vector<8x8xf32> -> vector<8x8xf32>
    %47 = arith.truncf %46 : vector<8x8xf32> to vector<8x8xbf16>
    %48 = vector.extract_strided_slice %27 {offsets = [0, 8], sizes = [8, 8], strides = [1, 1]} : vector<8x32xbf16> to vector<8x8xbf16>
    %49 = vector.extract_strided_slice %28 {offsets = [0, 8], sizes = [8, 8], strides = [1, 1]} : vector<8x32xbf16> to vector<8x8xbf16>
    "tpu.trace_start"() <{level = 10 : i32, message = "qd,kd->qk"}> : () -> ()
    %cst_30 = arith.constant dense<0.000000e+00> : vector<8x8xf32>
    %50 = tpu.matmul %48, %49, %cst_30 {dimension_numbers = #tpu.dot_dimension_numbers<[1], [1], [0], [0], [0, 0, 1, 0], [], []>} : vector<8x8xbf16>, vector<8x8xbf16>, vector<8x8xf32> -> vector<8x8xf32>
    "tpu.trace_stop"() : () -> ()
    %51 = arith.addf %50, %5 : vector<8x8xf32>
    %cst_31 = arith.constant dense<0xFF800000> : vector<8xf32>
    %52 = vector.multi_reduction <maximumf>, %51, %cst_31 [1] : vector<8x8xf32> to vector<8xf32>
    %53 = vector.shape_cast %52 : vector<8xf32> to vector<8x1xf32>
    %54 = vector.broadcast %53 : vector<8x1xf32> to vector<8x8xf32>
    %55 = arith.subf %51, %54 : vector<8x8xf32>
    %56 = math.exp %55 : vector<8x8xf32>
    %cst_32 = arith.constant dense<0.000000e+00> : vector<8xf32>
    %57 = vector.multi_reduction <add>, %56, %cst_32 [1] : vector<8x8xf32> to vector<8xf32>
    %58 = vector.shape_cast %57 : vector<8xf32> to vector<8x1xf32>
    %59 = tpu.reciprocal %58 {approx = true} : vector<8x1xf32> -> vector<8x1xf32>
    %60 = vector.broadcast %59 : vector<8x1xf32> to vector<8x8xf32>
    %61 = arith.mulf %56, %60 : vector<8x8xf32>
    %62 = vector.extract_strided_slice %29 {offsets = [0, 8], sizes = [8, 8], strides = [1, 1]} : vector<8x32xbf16> to vector<8x8xbf16>
    %63 = arith.truncf %61 : vector<8x8xf32> to vector<8x8xbf16>
    %cst_33 = arith.constant dense<0.000000e+00> : vector<8x8xf32>
    %64 = tpu.matmul %63, %62, %cst_33 {dimension_numbers = #tpu.dot_dimension_numbers<[1], [0], [0], [1], [0, 0, 1, 1], [], []>} : vector<8x8xbf16>, vector<8x8xbf16>, vector<8x8xf32> -> vector<8x8xf32>
    %65 = arith.truncf %64 : vector<8x8xf32> to vector<8x8xbf16>
    %66 = vector.extract_strided_slice %27 {offsets = [0, 16], sizes = [8, 8], strides = [1, 1]} : vector<8x32xbf16> to vector<8x8xbf16>
    %67 = vector.extract_strided_slice %28 {offsets = [0, 16], sizes = [8, 8], strides = [1, 1]} : vector<8x32xbf16> to vector<8x8xbf16>
    "tpu.trace_start"() <{level = 10 : i32, message = "qd,kd->qk"}> : () -> ()
    %cst_34 = arith.constant dense<0.000000e+00> : vector<8x8xf32>
    %68 = tpu.matmul %66, %67, %cst_34 {dimension_numbers = #tpu.dot_dimension_numbers<[1], [1], [0], [0], [0, 0, 1, 0], [], []>} : vector<8x8xbf16>, vector<8x8xbf16>, vector<8x8xf32> -> vector<8x8xf32>
    "tpu.trace_stop"() : () -> ()
    %69 = arith.addf %68, %5 : vector<8x8xf32>
    %cst_35 = arith.constant dense<0xFF800000> : vector<8xf32>
    %70 = vector.multi_reduction <maximumf>, %69, %cst_35 [1] : vector<8x8xf32> to vector<8xf32>
    %71 = vector.shape_cast %70 : vector<8xf32> to vector<8x1xf32>
    %72 = vector.broadcast %71 : vector<8x1xf32> to vector<8x8xf32>
    %73 = arith.subf %69, %72 : vector<8x8xf32>
    %74 = math.exp %73 : vector<8x8xf32>
    %cst_36 = arith.constant dense<0.000000e+00> : vector<8xf32>
    %75 = vector.multi_reduction <add>, %74, %cst_36 [1] : vector<8x8xf32> to vector<8xf32>
    %76 = vector.shape_cast %75 : vector<8xf32> to vector<8x1xf32>
    %77 = tpu.reciprocal %76 {approx = true} : vector<8x1xf32> -> vector<8x1xf32>
    %78 = vector.broadcast %77 : vector<8x1xf32> to vector<8x8xf32>
    %79 = arith.mulf %74, %78 : vector<8x8xf32>
    %80 = vector.extract_strided_slice %29 {offsets = [0, 16], sizes = [8, 8], strides = [1, 1]} : vector<8x32xbf16> to vector<8x8xbf16>
    %81 = arith.truncf %79 : vector<8x8xf32> to vector<8x8xbf16>
    %cst_37 = arith.constant dense<0.000000e+00> : vector<8x8xf32>
    %82 = tpu.matmul %81, %80, %cst_37 {dimension_numbers = #tpu.dot_dimension_numbers<[1], [0], [0], [1], [0, 0, 1, 1], [], []>} : vector<8x8xbf16>, vector<8x8xbf16>, vector<8x8xf32> -> vector<8x8xf32>
    %83 = arith.truncf %82 : vector<8x8xf32> to vector<8x8xbf16>
    %84 = vector.extract_strided_slice %27 {offsets = [0, 24], sizes = [8, 8], strides = [1, 1]} : vector<8x32xbf16> to vector<8x8xbf16>
    %85 = vector.extract_strided_slice %28 {offsets = [0, 24], sizes = [8, 8], strides = [1, 1]} : vector<8x32xbf16> to vector<8x8xbf16>
    "tpu.trace_start"() <{level = 10 : i32, message = "qd,kd->qk"}> : () -> ()
    %cst_38 = arith.constant dense<0.000000e+00> : vector<8x8xf32>
    %86 = tpu.matmul %84, %85, %cst_38 {dimension_numbers = #tpu.dot_dimension_numbers<[1], [1], [0], [0], [0, 0, 1, 0], [], []>} : vector<8x8xbf16>, vector<8x8xbf16>, vector<8x8xf32> -> vector<8x8xf32>
    "tpu.trace_stop"() : () -> ()
    %87 = arith.addf %86, %5 : vector<8x8xf32>
    %cst_39 = arith.constant dense<0xFF800000> : vector<8xf32>
    %88 = vector.multi_reduction <maximumf>, %87, %cst_39 [1] : vector<8x8xf32> to vector<8xf32>
    %89 = vector.shape_cast %88 : vector<8xf32> to vector<8x1xf32>
    %90 = vector.broadcast %89 : vector<8x1xf32> to vector<8x8xf32>
    %91 = arith.subf %87, %90 : vector<8x8xf32>
    %92 = math.exp %91 : vector<8x8xf32>
    %cst_40 = arith.constant dense<0.000000e+00> : vector<8xf32>
    %93 = vector.multi_reduction <add>, %92, %cst_40 [1] : vector<8x8xf32> to vector<8xf32>
    %94 = vector.shape_cast %93 : vector<8xf32> to vector<8x1xf32>
    %95 = tpu.reciprocal %94 {approx = true} : vector<8x1xf32> -> vector<8x1xf32>
    %96 = vector.broadcast %95 : vector<8x1xf32> to vector<8x8xf32>
    %97 = arith.mulf %92, %96 : vector<8x8xf32>
    %98 = vector.extract_strided_slice %29 {offsets = [0, 24], sizes = [8, 8], strides = [1, 1]} : vector<8x32xbf16> to vector<8x8xbf16>
    %99 = arith.truncf %97 : vector<8x8xf32> to vector<8x8xbf16>
    %cst_41 = arith.constant dense<0.000000e+00> : vector<8x8xf32>
    %100 = tpu.matmul %99, %98, %cst_41 {dimension_numbers = #tpu.dot_dimension_numbers<[1], [0], [0], [1], [0, 0, 1, 1], [], []>} : vector<8x8xbf16>, vector<8x8xbf16>, vector<8x8xf32> -> vector<8x8xf32>
    %101 = arith.truncf %100 : vector<8x8xf32> to vector<8x8xbf16>
    %102 = tpu.concatenate %47, %65, %83, %101 in 1 : vector<8x8xbf16>, vector<8x8xbf16>, vector<8x8xbf16>, vector<8x8xbf16> -> vector<8x32xbf16>
    %cst_42 = arith.constant dense<0.000000e+00> : vector<8x32xf32>
    %103 = tpu.matmul %102, %11, %cst_42 {dimension_numbers = #tpu.dot_dimension_numbers<[1], [0], [0], [1], [0, 0, 1, 1], [], []>} : vector<8x32xbf16>, vector<32x32xbf16>, vector<8x32xf32> -> vector<8x32xf32>
    %104 = vector.broadcast %12 : vector<1x32xf32> to vector<8x32xf32>
    %105 = arith.addf %103, %104 : vector<8x32xf32>
    %106 = arith.addf %0, %105 : vector<8x32xf32>
    %cst_43 = arith.constant dense<0.000000e+00> : vector<8xf32>
    %107 = vector.multi_reduction <add>, %106, %cst_43 [1] : vector<8x32xf32> to vector<8xf32>
    %108 = vector.shape_cast %107 : vector<8xf32> to vector<8x1xf32>
    %cst_44 = arith.constant 3.200000e+01 : f32
    %109 = vector.broadcast %cst_44 : f32 to vector<8x1xf32>
    %110 = arith.divf %108, %109 : vector<8x1xf32>
    %111 = vector.broadcast %110 : vector<8x1xf32> to vector<8x32xf32>
    %112 = arith.subf %106, %111 : vector<8x32xf32>
    %113 = arith.mulf %112, %112 : vector<8x32xf32>
    %cst_45 = arith.constant dense<0.000000e+00> : vector<8xf32>
    %114 = vector.multi_reduction <add>, %113, %cst_45 [1] : vector<8x32xf32> to vector<8xf32>
    %115 = vector.shape_cast %114 : vector<8xf32> to vector<8x1xf32>
    %cst_46 = arith.constant 3.200000e+01 : f32
    %116 = vector.broadcast %cst_46 : f32 to vector<8x1xf32>
    %117 = arith.divf %115, %116 : vector<8x1xf32>
    %118 = vector.broadcast %110 : vector<8x1xf32> to vector<8x32xf32>
    %119 = arith.subf %106, %118 : vector<8x32xf32>
    %cst_47 = arith.constant 9.99999974E-6 : f32
    %120 = vector.broadcast %cst_47 : f32 to vector<8x1xf32>
    %121 = arith.addf %117, %120 : vector<8x1xf32>
    %122 = math.rsqrt %121 : vector<8x1xf32>
    %123 = vector.broadcast %122 : vector<8x1xf32> to vector<8x32xf32>
    %124 = arith.mulf %119, %123 : vector<8x32xf32>
    %125 = vector.broadcast %13 : vector<1x32xf32> to vector<8x32xf32>
    %126 = arith.mulf %124, %125 : vector<8x32xf32>
    %127 = vector.broadcast %14 : vector<1x32xf32> to vector<8x32xf32>
    %128 = arith.addf %126, %127 : vector<8x32xf32>
    %c0_48 = arith.constant 0 : index
    %c0_49 = arith.constant 0 : index
    %c0_50 = arith.constant 0 : index
    %129 = vector.load %arg7[%c0_48, %c0_49, %c0_50] : memref<1x1x8xf32, #tpu.memory_space<vmem>>, vector<1x1x8xf32>
    %130 = vector.shape_cast %129 : vector<1x1x8xf32> to vector<1x8xf32>
    %c0_51 = arith.constant 0 : index
    %c0_52 = arith.constant 0 : index
    %131 = vector.load %arg4[%c0_51, %c0_52] : memref<8x32xf32, #tpu.memory_space<vmem>>, vector<8x32xf32>
    %c0_53 = arith.constant 0 : index
    %c0_54 = arith.constant 0 : index
    %132 = vector.load %arg16[%c0_53, %c0_54] : memref<32x32xbf16, #tpu.memory_space<vmem>>, vector<32x32xbf16>
    %c0_55 = arith.constant 0 : index
    %c0_56 = arith.constant 0 : index
    %133 = vector.load %arg17[%c0_55, %c0_56] : memref<1x32xf32, #tpu.memory_space<vmem>>, vector<1x32xf32>
    %c0_57 = arith.constant 0 : index
    %c0_58 = arith.constant 0 : index
    %134 = vector.load %arg18[%c0_57, %c0_58] : memref<32x64xbf16, #tpu.memory_space<vmem>>, vector<32x64xbf16>
    %c0_59 = arith.constant 0 : index
    %c0_60 = arith.constant 0 : index
    %135 = vector.load %arg19[%c0_59, %c0_60] : memref<1x64xf32, #tpu.memory_space<vmem>>, vector<1x64xf32>
    %c0_61 = arith.constant 0 : index
    %c0_62 = arith.constant 0 : index
    %136 = vector.load %arg20[%c0_61, %c0_62] : memref<32x32xbf16, #tpu.memory_space<vmem>>, vector<32x32xbf16>
    %c0_63 = arith.constant 0 : index
    %c0_64 = arith.constant 0 : index
    %137 = vector.load %arg21[%c0_63, %c0_64] : memref<1x32xf32, #tpu.memory_space<vmem>>, vector<1x32xf32>
    %c0_65 = arith.constant 0 : index
    %c0_66 = arith.constant 0 : index
    %138 = vector.load %arg22[%c0_65, %c0_66] : memref<1x32xf32, #tpu.memory_space<vmem>>, vector<1x32xf32>
    %c0_67 = arith.constant 0 : index
    %c0_68 = arith.constant 0 : index
    %139 = vector.load %arg23[%c0_67, %c0_68] : memref<1x32xf32, #tpu.memory_space<vmem>>, vector<1x32xf32>
    %140 = arith.truncf %128 : vector<8x32xf32> to vector<8x32xbf16>
    %cst_69 = arith.constant dense<0.000000e+00> : vector<8x32xf32>
    %141 = tpu.matmul %140, %132, %cst_69 {dimension_numbers = #tpu.dot_dimension_numbers<[1], [0], [0], [1], [0, 0, 1, 1], [], []>} : vector<8x32xbf16>, vector<32x32xbf16>, vector<8x32xf32> -> vector<8x32xf32>
    %142 = vector.broadcast %133 : vector<1x32xf32> to vector<8x32xf32>
    %143 = arith.addf %141, %142 : vector<8x32xf32>
    %144 = arith.truncf %131 : vector<8x32xf32> to vector<8x32xbf16>
    %cst_70 = arith.constant dense<0.000000e+00> : vector<8x64xf32>
    %145 = tpu.matmul %144, %134, %cst_70 {dimension_numbers = #tpu.dot_dimension_numbers<[1], [0], [0], [1], [0, 0, 1, 1], [], []>} : vector<8x32xbf16>, vector<32x64xbf16>, vector<8x64xf32> -> vector<8x64xf32>
    %146 = vector.broadcast %135 : vector<1x64xf32> to vector<8x64xf32>
    %147 = arith.addf %145, %146 : vector<8x64xf32>
    %148 = vector.extract_strided_slice %147 {offsets = [0, 0], sizes = [8, 32], strides = [1, 1]} : vector<8x64xf32> to vector<8x32xf32>
    %149 = vector.extract_strided_slice %147 {offsets = [0, 32], sizes = [8, 32], strides = [1, 1]} : vector<8x64xf32> to vector<8x32xf32>
    %cst_71 = arith.constant 0.353553385 : f32
    %150 = vector.broadcast %cst_71 : f32 to vector<8x32xf32>
    %151 = arith.mulf %143, %150 : vector<8x32xf32>
    %152 = arith.truncf %151 : vector<8x32xf32> to vector<8x32xbf16>
    %153 = arith.truncf %148 : vector<8x32xf32> to vector<8x32xbf16>
    %154 = arith.truncf %149 : vector<8x32xf32> to vector<8x32xbf16>
    %155 = vector.extract_strided_slice %152 {offsets = [0, 0], sizes = [8, 8], strides = [1, 1]} : vector<8x32xbf16> to vector<8x8xbf16>
    %156 = vector.extract_strided_slice %153 {offsets = [0, 0], sizes = [8, 8], strides = [1, 1]} : vector<8x32xbf16> to vector<8x8xbf16>
    "tpu.trace_start"() <{level = 10 : i32, message = "qd,kd->qk"}> : () -> ()
    %cst_72 = arith.constant dense<0.000000e+00> : vector<8x8xf32>
    %157 = tpu.matmul %155, %156, %cst_72 {dimension_numbers = #tpu.dot_dimension_numbers<[1], [1], [0], [0], [0, 0, 1, 0], [], []>} : vector<8x8xbf16>, vector<8x8xbf16>, vector<8x8xf32> -> vector<8x8xf32>
    "tpu.trace_stop"() : () -> ()
    %158 = vector.broadcast %130 : vector<1x8xf32> to vector<8x8xf32>
    %159 = arith.addf %157, %158 : vector<8x8xf32>
    %cst_73 = arith.constant dense<0xFF800000> : vector<8xf32>
    %160 = vector.multi_reduction <maximumf>, %159, %cst_73 [1] : vector<8x8xf32> to vector<8xf32>
    %161 = vector.shape_cast %160 : vector<8xf32> to vector<8x1xf32>
    %162 = vector.broadcast %161 : vector<8x1xf32> to vector<8x8xf32>
    %163 = arith.subf %159, %162 : vector<8x8xf32>
    %164 = math.exp %163 : vector<8x8xf32>
    %cst_74 = arith.constant dense<0.000000e+00> : vector<8xf32>
    %165 = vector.multi_reduction <add>, %164, %cst_74 [1] : vector<8x8xf32> to vector<8xf32>
    %166 = vector.shape_cast %165 : vector<8xf32> to vector<8x1xf32>
    %167 = tpu.reciprocal %166 {approx = true} : vector<8x1xf32> -> vector<8x1xf32>
    %168 = vector.broadcast %167 : vector<8x1xf32> to vector<8x8xf32>
    %169 = arith.mulf %164, %168 : vector<8x8xf32>
    %170 = vector.extract_strided_slice %154 {offsets = [0, 0], sizes = [8, 8], strides = [1, 1]} : vector<8x32xbf16> to vector<8x8xbf16>
    %171 = arith.truncf %169 : vector<8x8xf32> to vector<8x8xbf16>
    %cst_75 = arith.constant dense<0.000000e+00> : vector<8x8xf32>
    %172 = tpu.matmul %171, %170, %cst_75 {dimension_numbers = #tpu.dot_dimension_numbers<[1], [0], [0], [1], [0, 0, 1, 1], [], []>} : vector<8x8xbf16>, vector<8x8xbf16>, vector<8x8xf32> -> vector<8x8xf32>
    %173 = arith.truncf %172 : vector<8x8xf32> to vector<8x8xbf16>
    %174 = vector.extract_strided_slice %152 {offsets = [0, 8], sizes = [8, 8], strides = [1, 1]} : vector<8x32xbf16> to vector<8x8xbf16>
    %175 = vector.extract_strided_slice %153 {offsets = [0, 8], sizes = [8, 8], strides = [1, 1]} : vector<8x32xbf16> to vector<8x8xbf16>
    "tpu.trace_start"() <{level = 10 : i32, message = "qd,kd->qk"}> : () -> ()
    %cst_76 = arith.constant dense<0.000000e+00> : vector<8x8xf32>
    %176 = tpu.matmul %174, %175, %cst_76 {dimension_numbers = #tpu.dot_dimension_numbers<[1], [1], [0], [0], [0, 0, 1, 0], [], []>} : vector<8x8xbf16>, vector<8x8xbf16>, vector<8x8xf32> -> vector<8x8xf32>
    "tpu.trace_stop"() : () -> ()
    %177 = vector.broadcast %130 : vector<1x8xf32> to vector<8x8xf32>
    %178 = arith.addf %176, %177 : vector<8x8xf32>
    %cst_77 = arith.constant dense<0xFF800000> : vector<8xf32>
    %179 = vector.multi_reduction <maximumf>, %178, %cst_77 [1] : vector<8x8xf32> to vector<8xf32>
    %180 = vector.shape_cast %179 : vector<8xf32> to vector<8x1xf32>
    %181 = vector.broadcast %180 : vector<8x1xf32> to vector<8x8xf32>
    %182 = arith.subf %178, %181 : vector<8x8xf32>
    %183 = math.exp %182 : vector<8x8xf32>
    %cst_78 = arith.constant dense<0.000000e+00> : vector<8xf32>
    %184 = vector.multi_reduction <add>, %183, %cst_78 [1] : vector<8x8xf32> to vector<8xf32>
    %185 = vector.shape_cast %184 : vector<8xf32> to vector<8x1xf32>
    %186 = tpu.reciprocal %185 {approx = true} : vector<8x1xf32> -> vector<8x1xf32>
    %187 = vector.broadcast %186 : vector<8x1xf32> to vector<8x8xf32>
    %188 = arith.mulf %183, %187 : vector<8x8xf32>
    %189 = vector.extract_strided_slice %154 {offsets = [0, 8], sizes = [8, 8], strides = [1, 1]} : vector<8x32xbf16> to vector<8x8xbf16>
    %190 = arith.truncf %188 : vector<8x8xf32> to vector<8x8xbf16>
    %cst_79 = arith.constant dense<0.000000e+00> : vector<8x8xf32>
    %191 = tpu.matmul %190, %189, %cst_79 {dimension_numbers = #tpu.dot_dimension_numbers<[1], [0], [0], [1], [0, 0, 1, 1], [], []>} : vector<8x8xbf16>, vector<8x8xbf16>, vector<8x8xf32> -> vector<8x8xf32>
    %192 = arith.truncf %191 : vector<8x8xf32> to vector<8x8xbf16>
    %193 = vector.extract_strided_slice %152 {offsets = [0, 16], sizes = [8, 8], strides = [1, 1]} : vector<8x32xbf16> to vector<8x8xbf16>
    %194 = vector.extract_strided_slice %153 {offsets = [0, 16], sizes = [8, 8], strides = [1, 1]} : vector<8x32xbf16> to vector<8x8xbf16>
    "tpu.trace_start"() <{level = 10 : i32, message = "qd,kd->qk"}> : () -> ()
    %cst_80 = arith.constant dense<0.000000e+00> : vector<8x8xf32>
    %195 = tpu.matmul %193, %194, %cst_80 {dimension_numbers = #tpu.dot_dimension_numbers<[1], [1], [0], [0], [0, 0, 1, 0], [], []>} : vector<8x8xbf16>, vector<8x8xbf16>, vector<8x8xf32> -> vector<8x8xf32>
    "tpu.trace_stop"() : () -> ()
    %196 = vector.broadcast %130 : vector<1x8xf32> to vector<8x8xf32>
    %197 = arith.addf %195, %196 : vector<8x8xf32>
    %cst_81 = arith.constant dense<0xFF800000> : vector<8xf32>
    %198 = vector.multi_reduction <maximumf>, %197, %cst_81 [1] : vector<8x8xf32> to vector<8xf32>
    %199 = vector.shape_cast %198 : vector<8xf32> to vector<8x1xf32>
    %200 = vector.broadcast %199 : vector<8x1xf32> to vector<8x8xf32>
    %201 = arith.subf %197, %200 : vector<8x8xf32>
    %202 = math.exp %201 : vector<8x8xf32>
    %cst_82 = arith.constant dense<0.000000e+00> : vector<8xf32>
    %203 = vector.multi_reduction <add>, %202, %cst_82 [1] : vector<8x8xf32> to vector<8xf32>
    %204 = vector.shape_cast %203 : vector<8xf32> to vector<8x1xf32>
    %205 = tpu.reciprocal %204 {approx = true} : vector<8x1xf32> -> vector<8x1xf32>
    %206 = vector.broadcast %205 : vector<8x1xf32> to vector<8x8xf32>
    %207 = arith.mulf %202, %206 : vector<8x8xf32>
    %208 = vector.extract_strided_slice %154 {offsets = [0, 16], sizes = [8, 8], strides = [1, 1]} : vector<8x32xbf16> to vector<8x8xbf16>
    %209 = arith.truncf %207 : vector<8x8xf32> to vector<8x8xbf16>
    %cst_83 = arith.constant dense<0.000000e+00> : vector<8x8xf32>
    %210 = tpu.matmul %209, %208, %cst_83 {dimension_numbers = #tpu.dot_dimension_numbers<[1], [0], [0], [1], [0, 0, 1, 1], [], []>} : vector<8x8xbf16>, vector<8x8xbf16>, vector<8x8xf32> -> vector<8x8xf32>
    %211 = arith.truncf %210 : vector<8x8xf32> to vector<8x8xbf16>
    %212 = vector.extract_strided_slice %152 {offsets = [0, 24], sizes = [8, 8], strides = [1, 1]} : vector<8x32xbf16> to vector<8x8xbf16>
    %213 = vector.extract_strided_slice %153 {offsets = [0, 24], sizes = [8, 8], strides = [1, 1]} : vector<8x32xbf16> to vector<8x8xbf16>
    "tpu.trace_start"() <{level = 10 : i32, message = "qd,kd->qk"}> : () -> ()
    %cst_84 = arith.constant dense<0.000000e+00> : vector<8x8xf32>
    %214 = tpu.matmul %212, %213, %cst_84 {dimension_numbers = #tpu.dot_dimension_numbers<[1], [1], [0], [0], [0, 0, 1, 0], [], []>} : vector<8x8xbf16>, vector<8x8xbf16>, vector<8x8xf32> -> vector<8x8xf32>
    "tpu.trace_stop"() : () -> ()
    %215 = vector.broadcast %130 : vector<1x8xf32> to vector<8x8xf32>
    %216 = arith.addf %214, %215 : vector<8x8xf32>
    %cst_85 = arith.constant dense<0xFF800000> : vector<8xf32>
    %217 = vector.multi_reduction <maximumf>, %216, %cst_85 [1] : vector<8x8xf32> to vector<8xf32>
    %218 = vector.shape_cast %217 : vector<8xf32> to vector<8x1xf32>
    %219 = vector.broadcast %218 : vector<8x1xf32> to vector<8x8xf32>
    %220 = arith.subf %216, %219 : vector<8x8xf32>
    %221 = math.exp %220 : vector<8x8xf32>
    %cst_86 = arith.constant dense<0.000000e+00> : vector<8xf32>
    %222 = vector.multi_reduction <add>, %221, %cst_86 [1] : vector<8x8xf32> to vector<8xf32>
    %223 = vector.shape_cast %222 : vector<8xf32> to vector<8x1xf32>
    %224 = tpu.reciprocal %223 {approx = true} : vector<8x1xf32> -> vector<8x1xf32>
    %225 = vector.broadcast %224 : vector<8x1xf32> to vector<8x8xf32>
    %226 = arith.mulf %221, %225 : vector<8x8xf32>
    %227 = vector.extract_strided_slice %154 {offsets = [0, 24], sizes = [8, 8], strides = [1, 1]} : vector<8x32xbf16> to vector<8x8xbf16>
    %228 = arith.truncf %226 : vector<8x8xf32> to vector<8x8xbf16>
    %cst_87 = arith.constant dense<0.000000e+00> : vector<8x8xf32>
    %229 = tpu.matmul %228, %227, %cst_87 {dimension_numbers = #tpu.dot_dimension_numbers<[1], [0], [0], [1], [0, 0, 1, 1], [], []>} : vector<8x8xbf16>, vector<8x8xbf16>, vector<8x8xf32> -> vector<8x8xf32>
    %230 = arith.truncf %229 : vector<8x8xf32> to vector<8x8xbf16>
    %231 = tpu.concatenate %173, %192, %211, %230 in 1 : vector<8x8xbf16>, vector<8x8xbf16>, vector<8x8xbf16>, vector<8x8xbf16> -> vector<8x32xbf16>
    %cst_88 = arith.constant dense<0.000000e+00> : vector<8x32xf32>
    %232 = tpu.matmul %231, %136, %cst_88 {dimension_numbers = #tpu.dot_dimension_numbers<[1], [0], [0], [1], [0, 0, 1, 1], [], []>} : vector<8x32xbf16>, vector<32x32xbf16>, vector<8x32xf32> -> vector<8x32xf32>
    %233 = vector.broadcast %137 : vector<1x32xf32> to vector<8x32xf32>
    %234 = arith.addf %232, %233 : vector<8x32xf32>
    %235 = arith.addf %128, %234 : vector<8x32xf32>
    %cst_89 = arith.constant dense<0.000000e+00> : vector<8xf32>
    %236 = vector.multi_reduction <add>, %235, %cst_89 [1] : vector<8x32xf32> to vector<8xf32>
    %237 = vector.shape_cast %236 : vector<8xf32> to vector<8x1xf32>
    %cst_90 = arith.constant 3.200000e+01 : f32
    %238 = vector.broadcast %cst_90 : f32 to vector<8x1xf32>
    %239 = arith.divf %237, %238 : vector<8x1xf32>
    %240 = vector.broadcast %239 : vector<8x1xf32> to vector<8x32xf32>
    %241 = arith.subf %235, %240 : vector<8x32xf32>
    %242 = arith.mulf %241, %241 : vector<8x32xf32>
    %cst_91 = arith.constant dense<0.000000e+00> : vector<8xf32>
    %243 = vector.multi_reduction <add>, %242, %cst_91 [1] : vector<8x32xf32> to vector<8xf32>
    %244 = vector.shape_cast %243 : vector<8xf32> to vector<8x1xf32>
    %cst_92 = arith.constant 3.200000e+01 : f32
    %245 = vector.broadcast %cst_92 : f32 to vector<8x1xf32>
    %246 = arith.divf %244, %245 : vector<8x1xf32>
    %247 = vector.broadcast %239 : vector<8x1xf32> to vector<8x32xf32>
    %248 = arith.subf %235, %247 : vector<8x32xf32>
    %cst_93 = arith.constant 9.99999974E-6 : f32
    %249 = vector.broadcast %cst_93 : f32 to vector<8x1xf32>
    %250 = arith.addf %246, %249 : vector<8x1xf32>
    %251 = math.rsqrt %250 : vector<8x1xf32>
    %252 = vector.broadcast %251 : vector<8x1xf32> to vector<8x32xf32>
    %253 = arith.mulf %248, %252 : vector<8x32xf32>
    %254 = vector.broadcast %138 : vector<1x32xf32> to vector<8x32xf32>
    %255 = arith.mulf %253, %254 : vector<8x32xf32>
    %256 = vector.broadcast %139 : vector<1x32xf32> to vector<8x32xf32>
    %257 = arith.addf %255, %256 : vector<8x32xf32>
    %c0_94 = arith.constant 0 : index
    %c0_95 = arith.constant 0 : index
    %258 = vector.load %arg24[%c0_94, %c0_95] : memref<32x64xbf16, #tpu.memory_space<vmem>>, vector<32x64xbf16>
    %c0_96 = arith.constant 0 : index
    %c0_97 = arith.constant 0 : index
    %259 = vector.load %arg25[%c0_96, %c0_97] : memref<1x64xf32, #tpu.memory_space<vmem>>, vector<1x64xf32>
    %c0_98 = arith.constant 0 : index
    %c0_99 = arith.constant 0 : index
    %260 = vector.load %arg26[%c0_98, %c0_99] : memref<64x32xbf16, #tpu.memory_space<vmem>>, vector<64x32xbf16>
    %c0_100 = arith.constant 0 : index
    %c0_101 = arith.constant 0 : index
    %261 = vector.load %arg27[%c0_100, %c0_101] : memref<1x32xf32, #tpu.memory_space<vmem>>, vector<1x32xf32>
    %c0_102 = arith.constant 0 : index
    %c0_103 = arith.constant 0 : index
    %262 = vector.load %arg28[%c0_102, %c0_103] : memref<1x32xf32, #tpu.memory_space<vmem>>, vector<1x32xf32>
    %c0_104 = arith.constant 0 : index
    %c0_105 = arith.constant 0 : index
    %263 = vector.load %arg29[%c0_104, %c0_105] : memref<1x32xf32, #tpu.memory_space<vmem>>, vector<1x32xf32>
    %264 = arith.truncf %257 : vector<8x32xf32> to vector<8x32xbf16>
    %cst_106 = arith.constant dense<0.000000e+00> : vector<8x64xf32>
    %265 = tpu.matmul %264, %258, %cst_106 {dimension_numbers = #tpu.dot_dimension_numbers<[1], [0], [0], [1], [0, 0, 1, 1], [], []>} : vector<8x32xbf16>, vector<32x64xbf16>, vector<8x64xf32> -> vector<8x64xf32>
    %266 = vector.broadcast %259 : vector<1x64xf32> to vector<8x64xf32>
    %267 = arith.addf %265, %266 : vector<8x64xf32>
    %cst_107 = arith.constant 0.000000e+00 : f32
    %268 = vector.broadcast %cst_107 : f32 to vector<8x64xf32>
    %269 = arith.maximumf %267, %268 : vector<8x64xf32>
    %270 = arith.truncf %269 : vector<8x64xf32> to vector<8x64xbf16>
    %cst_108 = arith.constant dense<0.000000e+00> : vector<8x32xf32>
    %271 = tpu.matmul %270, %260, %cst_108 {dimension_numbers = #tpu.dot_dimension_numbers<[1], [0], [0], [1], [0, 0, 1, 1], [], []>} : vector<8x64xbf16>, vector<64x32xbf16>, vector<8x32xf32> -> vector<8x32xf32>
    %272 = vector.broadcast %261 : vector<1x32xf32> to vector<8x32xf32>
    %273 = arith.addf %271, %272 : vector<8x32xf32>
    %274 = arith.addf %257, %273 : vector<8x32xf32>
    %cst_109 = arith.constant dense<0.000000e+00> : vector<8xf32>
    %275 = vector.multi_reduction <add>, %274, %cst_109 [1] : vector<8x32xf32> to vector<8xf32>
    %276 = vector.shape_cast %275 : vector<8xf32> to vector<8x1xf32>
    %cst_110 = arith.constant 3.200000e+01 : f32
    %277 = vector.broadcast %cst_110 : f32 to vector<8x1xf32>
    %278 = arith.divf %276, %277 : vector<8x1xf32>
    %279 = vector.broadcast %278 : vector<8x1xf32> to vector<8x32xf32>
    %280 = arith.subf %274, %279 : vector<8x32xf32>
    %281 = arith.mulf %280, %280 : vector<8x32xf32>
    %cst_111 = arith.constant dense<0.000000e+00> : vector<8xf32>
    %282 = vector.multi_reduction <add>, %281, %cst_111 [1] : vector<8x32xf32> to vector<8xf32>
    %283 = vector.shape_cast %282 : vector<8xf32> to vector<8x1xf32>
    %cst_112 = arith.constant 3.200000e+01 : f32
    %284 = vector.broadcast %cst_112 : f32 to vector<8x1xf32>
    %285 = arith.divf %283, %284 : vector<8x1xf32>
    %286 = vector.broadcast %278 : vector<8x1xf32> to vector<8x32xf32>
    %287 = arith.subf %274, %286 : vector<8x32xf32>
    %cst_113 = arith.constant 9.99999974E-6 : f32
    %288 = vector.broadcast %cst_113 : f32 to vector<8x1xf32>
    %289 = arith.addf %285, %288 : vector<8x1xf32>
    %290 = math.rsqrt %289 : vector<8x1xf32>
    %291 = vector.broadcast %290 : vector<8x1xf32> to vector<8x32xf32>
    %292 = arith.mulf %287, %291 : vector<8x32xf32>
    %293 = vector.broadcast %262 : vector<1x32xf32> to vector<8x32xf32>
    %294 = arith.mulf %292, %293 : vector<8x32xf32>
    %295 = vector.broadcast %263 : vector<1x32xf32> to vector<8x32xf32>
    %296 = arith.addf %294, %295 : vector<8x32xf32>
    %c0_114 = arith.constant 0 : index
    %c0_115 = arith.constant 0 : index
    %297 = vector.load %arg30[%c0_114, %c0_115] : memref<8x32xf32, #tpu.memory_space<vmem>>, vector<8x32xf32>
    tpu.vector_store %arg30[%c0_114, %c0_115], %296 {strides = array<i32>} : memref<8x32xf32, #tpu.memory_space<vmem>>, vector<8x32xf32>,
    return
  }
  func.func @transform_0(%arg0: i32, %arg1: i32) -> (i32, i32) {
    %c1_i32 = arith.constant 1 : i32
    %0 = arith.muli %arg0, %c1_i32 : i32
    %1 = arith.addi %0, %arg1 : i32
    %c0_i32 = arith.constant 0 : i32
    %c0_i32_0 = arith.constant 0 : i32
    return %1, %c0_i32 : i32, i32
  }
  func.func @transform_1(%arg0: i32, %arg1: i32) -> (i32, i32) {
    %c0_i32 = arith.constant 0 : i32
    %c0_i32_0 = arith.constant 0 : i32
    return %arg0, %c0_i32 : i32, i32
  }
  func.func @transform_2(%arg0: i32, %arg1: i32) -> (i32, i32) {
    %c0_i32 = arith.constant 0 : i32
    %c0_i32_0 = arith.constant 0 : i32
    return %arg0, %c0_i32 : i32, i32
  }
  func.func @transform_3(%arg0: i32, %arg1: i32) -> (i32, i32) {
    %c0_i32 = arith.constant 0 : i32
    %c0_i32_0 = arith.constant 0 : i32
    return %arg1, %c0_i32 : i32, i32
  }
  func.func @transform_4(%arg0: i32, %arg1: i32) -> (i32, i32, i32) {
    %c0_i32 = arith.constant 0 : i32
    %c0_i32_0 = arith.constant 0 : i32
    %c0_i32_1 = arith.constant 0 : i32
    return %arg0, %c0_i32, %c0_i32_0 : i32, i32, i32
  }
  func.func @transform_5(%arg0: i32, %arg1: i32) -> (i32, i32, i32) {
    %c0_i32 = arith.constant 0 : i32
    %c0_i32_0 = arith.constant 0 : i32
    %c0_i32_1 = arith.constant 0 : i32
    return %arg0, %c0_i32, %c0_i32_0 : i32, i32, i32
  }
  func.func @transform_6(%arg0: i32, %arg1: i32) -> (i32, i32) {
    %c0_i32 = arith.constant 0 : i32
    %c0_i32_0 = arith.constant 0 : i32
    %c0_i32_1 = arith.constant 0 : i32
    return %c0_i32, %c0_i32_0 : i32, i32
  }
  func.func @transform_7(%arg0: i32, %arg1: i32) -> (i32, i32) {
    %c0_i32 = arith.constant 0 : i32
    %c0_i32_0 = arith.constant 0 : i32
    %c0_i32_1 = arith.constant 0 : i32
    return %c0_i32, %c0_i32_0 : i32, i32
  }
  func.func @transform_8(%arg0: i32, %arg1: i32) -> (i32, i32) {
    %c0_i32 = arith.constant 0 : i32
    %c0_i32_0 = arith.constant 0 : i32
    %c0_i32_1 = arith.constant 0 : i32
    return %c0_i32, %c0_i32_0 : i32, i32
  }
  func.func @transform_9(%arg0: i32, %arg1: i32) -> (i32, i32) {
    %c0_i32 = arith.constant 0 : i32
    %c0_i32_0 = arith.constant 0 : i32
    %c0_i32_1 = arith.constant 0 : i32
    return %c0_i32, %c0_i32_0 : i32, i32
  }
  func.func @transform_10(%arg0: i32, %arg1: i32) -> (i32, i32) {
    %c0_i32 = arith.constant 0 : i32
    %c0_i32_0 = arith.constant 0 : i32
    %c0_i32_1 = arith.constant 0 : i32
    return %c0_i32, %c0_i32_0 : i32, i32
  }
  func.func @transform_11(%arg0: i32, %arg1: i32) -> (i32, i32) {
    %c0_i32 = arith.constant 0 : i32
    %c0_i32_0 = arith.constant 0 : i32
    %c0_i32_1 = arith.constant 0 : i32
    return %c0_i32, %c0_i32_0 : i32, i32
  }
  func.func @transform_12(%arg0: i32, %arg1: i32) -> (i32, i32) {
    %c0_i32 = arith.constant 0 : i32
    %c0_i32_0 = arith.constant 0 : i32
    %c0_i32_1 = arith.constant 0 : i32
    return %c0_i32, %c0_i32_0 : i32, i32
  }
  func.func @transform_13(%arg0: i32, %arg1: i32) -> (i32, i32) {
    %c0_i32 = arith.constant 0 : i32
    %c0_i32_0 = arith.constant 0 : i32
    %c0_i32_1 = arith.constant 0 : i32
    return %c0_i32, %c0_i32_0 : i32, i32
  }
  func.func @transform_14(%arg0: i32, %arg1: i32) -> (i32, i32) {
    %c0_i32 = arith.constant 0 : i32
    %c0_i32_0 = arith.constant 0 : i32
    %c0_i32_1 = arith.constant 0 : i32
    return %c0_i32, %c0_i32_0 : i32, i32
  }
  func.func @transform_15(%arg0: i32, %arg1: i32) -> (i32, i32) {
    %c0_i32 = arith.constant 0 : i32
    %c0_i32_0 = arith.constant 0 : i32
    %c0_i32_1 = arith.constant 0 : i32
    return %c0_i32, %c0_i32_0 : i32, i32
  }
  func.func @transform_16(%arg0: i32, %arg1: i32) -> (i32, i32) {
    %c0_i32 = arith.constant 0 : i32
    %c0_i32_0 = arith.constant 0 : i32
    %c0_i32_1 = arith.constant 0 : i32
    return %c0_i32, %c0_i32_0 : i32, i32
  }
  func.func @transform_17(%arg0: i32, %arg1: i32) -> (i32, i32) {
    %c0_i32 = arith.constant 0 : i32
    %c0_i32_0 = arith.constant 0 : i32
    %c0_i32_1 = arith.constant 0 : i32
    return %c0_i32, %c0_i32_0 : i32, i32
  }
  func.func @transform_18(%arg0: i32, %arg1: i32) -> (i32, i32) {
    %c0_i32 = arith.constant 0 : i32
    %c0_i32_0 = arith.constant 0 : i32
    %c0_i32_1 = arith.constant 0 : i32
    return %c0_i32, %c0_i32_0 : i32, i32
  }
  func.func @transform_19(%arg0: i32, %arg1: i32) -> (i32, i32) {
    %c0_i32 = arith.constant 0 : i32
    %c0_i32_0 = arith.constant 0 : i32
    %c0_i32_1 = arith.constant 0 : i32
    return %c0_i32, %c0_i32_0 : i32, i32
  }
  func.func @transform_20(%arg0: i32, %arg1: i32) -> (i32, i32) {
    %c0_i32 = arith.constant 0 : i32
    %c0_i32_0 = arith.constant 0 : i32
    %c0_i32_1 = arith.constant 0 : i32
    return %c0_i32, %c0_i32_0 : i32, i32
  }
  func.func @transform_21(%arg0: i32, %arg1: i32) -> (i32, i32) {
    %c0_i32 = arith.constant 0 : i32
    %c0_i32_0 = arith.constant 0 : i32
    %c0_i32_1 = arith.constant 0 : i32
    return %c0_i32, %c0_i32_0 : i32, i32
  }
  func.func @transform_22(%arg0: i32, %arg1: i32) -> (i32, i32) {
    %c0_i32 = arith.constant 0 : i32
    %c0_i32_0 = arith.constant 0 : i32
    %c0_i32_1 = arith.constant 0 : i32
    return %c0_i32, %c0_i32_0 : i32, i32
  }
  func.func @transform_23(%arg0: i32, %arg1: i32) -> (i32, i32) {
    %c0_i32 = arith.constant 0 : i32
    %c0_i32_0 = arith.constant 0 : i32
    %c0_i32_1 = arith.constant 0 : i32
    return %c0_i32, %c0_i32_0 : i32, i32
  }
  func.func @transform_24(%arg0: i32, %arg1: i32) -> (i32, i32) {
    %c0_i32 = arith.constant 0 : i32
    %c0_i32_0 = arith.constant 0 : i32
    %c0_i32_1 = arith.constant 0 : i32
    return %c0_i32, %c0_i32_0 : i32, i32
  }
  func.func @transform_25(%arg0: i32, %arg1: i32) -> (i32, i32) {
    %c0_i32 = arith.constant 0 : i32
    %c0_i32_0 = arith.constant 0 : i32
    %c0_i32_1 = arith.constant 0 : i32
    return %c0_i32, %c0_i32_0 : i32, i32
  }
  func.func @transform_26(%arg0: i32, %arg1: i32) -> (i32, i32) {
    %c0_i32 = arith.constant 0 : i32
    %c0_i32_0 = arith.constant 0 : i32
    %c0_i32_1 = arith.constant 0 : i32
    return %c0_i32, %c0_i32_0 : i32, i32
  }
  func.func @transform_27(%arg0: i32, %arg1: i32) -> (i32, i32) {
    %c0_i32 = arith.constant 0 : i32
    %c0_i32_0 = arith.constant 0 : i32
    %c0_i32_1 = arith.constant 0 : i32
    return %c0_i32, %c0_i32_0 : i32, i32
  }
  func.func @transform_28(%arg0: i32, %arg1: i32) -> (i32, i32) {
    %c1_i32 = arith.constant 1 : i32
    %0 = arith.muli %arg0, %c1_i32 : i32
    %1 = arith.addi %0, %arg1 : i32
    %c0_i32 = arith.constant 0 : i32
    %c0_i32_0 = arith.constant 0 : i32
    return %1, %c0_i32 : i32, i32
  }
}

module attributes {stable_mosaic.version = 11 : i64} {
  func.func @_dec_layer_kernel(%arg0: i32, %arg1: i32, %arg2: memref<8x32xf32, #tpu.memory_space<vmem>>, %arg3: memref<8x32xf32, #tpu.memory_space<vmem>>, %arg4: memref<8x32xf32, #tpu.memory_space<vmem>>, %arg5: memref<8x8xf32, #tpu.memory_space<vmem>>, %arg6: memref<1x1x8xf32, #tpu.memory_space<vmem>>, %arg7: memref<1x1x8xf32, #tpu.memory_space<vmem>>, %arg8: memref<32x32xbf16, #tpu.memory_space<vmem>>, %arg9: memref<1x32xf32, #tpu.memory_space<vmem>>, %arg10: memref<32x64xbf16, #tpu.memory_space<vmem>>, %arg11: memref<1x64xf32, #tpu.memory_space<vmem>>, %arg12: memref<32x32xbf16, #tpu.memory_space<vmem>>, %arg13: memref<1x32xf32, #tpu.memory_space<vmem>>, %arg14: memref<1x32xf32, #tpu.memory_space<vmem>>, %arg15: memref<1x32xf32, #tpu.memory_space<vmem>>, %arg16: memref<32x32xbf16, #tpu.memory_space<vmem>>, %arg17: memref<1x32xf32, #tpu.memory_space<vmem>>, %arg18: memref<32x64xbf16, #tpu.memory_space<vmem>>, %arg19: memref<1x64xf32, #tpu.memory_space<vmem>>, %arg20: memref<32x32xbf16, #tpu.memory_space<vmem>>, %arg21: memref<1x32xf32, #tpu.memory_space<vmem>>, %arg22: memref<1x32xf32, #tpu.memory_space<vmem>>, %arg23: memref<1x32xf32, #tpu.memory_space<vmem>>, %arg24: memref<32x64xbf16, #tpu.memory_space<vmem>>, %arg25: memref<1x64xf32, #tpu.memory_space<vmem>>, %arg26: memref<64x32xbf16, #tpu.memory_space<vmem>>, %arg27: memref<1x32xf32, #tpu.memory_space<vmem>>, %arg28: memref<1x32xf32, #tpu.memory_space<vmem>>, %arg29: memref<1x32xf32, #tpu.memory_space<vmem>>, %arg30: memref<1x32xf32, #tpu.memory_space<vmem>>, %arg31: memref<1x32xf32, #tpu.memory_space<vmem>>, %arg32: memref<8x32xf32, #tpu.memory_space<vmem>>) attributes {dimension_semantics = [#tpu.dimension_semantics<parallel>, #tpu.dimension_semantics<parallel>], iteration_bounds = array<i64: 2, 1>, scalar_prefetch = 0 : i64, scratch_operands = 0 : i64, tpu.core_type = #tpu.core_type<tc>, window_params = [{transform_indices = @transform_0, window_bounds = array<i64: 8, 32>}, {transform_indices = @transform_1, window_bounds = array<i64: 8, 32>}, {transform_indices = @transform_2, window_bounds = array<i64: 8, 32>}, {transform_indices = @transform_3, window_bounds = array<i64: 8, 8>}, {transform_indices = @transform_4, window_bounds = array<i64: 1, 1, 8>}, {transform_indices = @transform_5, window_bounds = array<i64: 1, 1, 8>}, {pipeline_mode = #tpu.pipeline_mode<synchronous>, transform_indices = @transform_6, window_bounds = array<i64: 32, 32>}, {pipeline_mode = #tpu.pipeline_mode<synchronous>, transform_indices = @transform_7, window_bounds = array<i64: 1, 32>}, {pipeline_mode = #tpu.pipeline_mode<synchronous>, transform_indices = @transform_8, window_bounds = array<i64: 32, 64>}, {pipeline_mode = #tpu.pipeline_mode<synchronous>, transform_indices = @transform_9, window_bounds = array<i64: 1, 64>}, {pipeline_mode = #tpu.pipeline_mode<synchronous>, transform_indices = @transform_10, window_bounds = array<i64: 32, 32>}, {pipeline_mode = #tpu.pipeline_mode<synchronous>, transform_indices = @transform_11, window_bounds = array<i64: 1, 32>}, {pipeline_mode = #tpu.pipeline_mode<synchronous>, transform_indices = @transform_12, window_bounds = array<i64: 1, 32>}, {pipeline_mode = #tpu.pipeline_mode<synchronous>, transform_indices = @transform_13, window_bounds = array<i64: 1, 32>}, {pipeline_mode = #tpu.pipeline_mode<synchronous>, transform_indices = @transform_14, window_bounds = array<i64: 32, 32>}, {pipeline_mode = #tpu.pipeline_mode<synchronous>, transform_indices = @transform_15, window_bounds = array<i64: 1, 32>}, {pipeline_mode = #tpu.pipeline_mode<synchronous>, transform_indices = @transform_16, window_bounds = array<i64: 32, 64>}, {pipeline_mode = #tpu.pipeline_mode<synchronous>, transform_indices = @transform_17, window_bounds = array<i64: 1, 64>}, {pipeline_mode = #tpu.pipeline_mode<synchronous>, transform_indices = @transform_18, window_bounds = array<i64: 32, 32>}, {pipeline_mode = #tpu.pipeline_mode<synchronous>, transform_indices = @transform_19, window_bounds = array<i64: 1, 32>}, {pipeline_mode = #tpu.pipeline_mode<synchronous>, transform_indices = @transform_20, window_bounds = array<i64: 1, 32>}, {pipeline_mode = #tpu.pipeline_mode<synchronous>, transform_indices = @transform_21, window_bounds = array<i64: 1, 32>}, {pipeline_mode = #tpu.pipeline_mode<synchronous>, transform_indices = @transform_22, window_bounds = array<i64: 32, 64>}, {pipeline_mode = #tpu.pipeline_mode<synchronous>, transform_indices = @transform_23, window_bounds = array<i64: 1, 64>}, {pipeline_mode = #tpu.pipeline_mode<synchronous>, transform_indices = @transform_24, window_bounds = array<i64: 64, 32>}, {pipeline_mode = #tpu.pipeline_mode<synchronous>, transform_indices = @transform_25, window_bounds = array<i64: 1, 32>}, {pipeline_mode = #tpu.pipeline_mode<synchronous>, transform_indices = @transform_26, window_bounds = array<i64: 1, 32>}, {pipeline_mode = #tpu.pipeline_mode<synchronous>, transform_indices = @transform_27, window_bounds = array<i64: 1, 32>}, {pipeline_mode = #tpu.pipeline_mode<synchronous>, transform_indices = @transform_28, window_bounds = array<i64: 1, 32>}, {pipeline_mode = #tpu.pipeline_mode<synchronous>, transform_indices = @transform_29, window_bounds = array<i64: 1, 32>}, {transform_indices = @transform_30, window_bounds = array<i64: 8, 32>}]} {
    %c0 = arith.constant 0 : index
    %c0_0 = arith.constant 0 : index
    %0 = vector.load %arg2[%c0, %c0_0] : memref<8x32xf32, #tpu.memory_space<vmem>>, vector<8x32xf32>
    %c0_1 = arith.constant 0 : index
    %c0_2 = arith.constant 0 : index
    %1 = vector.load %arg5[%c0_1, %c0_2] : memref<8x8xf32, #tpu.memory_space<vmem>>, vector<8x8xf32>
    %c0_3 = arith.constant 0 : index
    %c0_4 = arith.constant 0 : index
    %c0_5 = arith.constant 0 : index
    %2 = vector.load %arg6[%c0_3, %c0_4, %c0_5] : memref<1x1x8xf32, #tpu.memory_space<vmem>>, vector<1x1x8xf32>
    %3 = vector.shape_cast %2 : vector<1x1x8xf32> to vector<1x8xf32>
    %4 = vector.broadcast %3 : vector<1x8xf32> to vector<8x8xf32>
    %5 = arith.addf %1, %4 : vector<8x8xf32>
    %c0_6 = arith.constant 0 : index
    %c0_7 = arith.constant 0 : index
    %6 = vector.load %arg3[%c0_6, %c0_7] : memref<8x32xf32, #tpu.memory_space<vmem>>, vector<8x32xf32>
    %c0_8 = arith.constant 0 : index
    %c0_9 = arith.constant 0 : index
    %7 = vector.load %arg8[%c0_8, %c0_9] : memref<32x32xbf16, #tpu.memory_space<vmem>>, vector<32x32xbf16>
    %c0_10 = arith.constant 0 : index
    %c0_11 = arith.constant 0 : index
    %8 = vector.load %arg9[%c0_10, %c0_11] : memref<1x32xf32, #tpu.memory_space<vmem>>, vector<1x32xf32>
    %c0_12 = arith.constant 0 : index
    %c0_13 = arith.constant 0 : index
    %9 = vector.load %arg10[%c0_12, %c0_13] : memref<32x64xbf16, #tpu.memory_space<vmem>>, vector<32x64xbf16>
    %c0_14 = arith.constant 0 : index
    %c0_15 = arith.constant 0 : index
    %10 = vector.load %arg11[%c0_14, %c0_15] : memref<1x64xf32, #tpu.memory_space<vmem>>, vector<1x64xf32>
    %c0_16 = arith.constant 0 : index
    %c0_17 = arith.constant 0 : index
    %11 = vector.load %arg12[%c0_16, %c0_17] : memref<32x32xbf16, #tpu.memory_space<vmem>>, vector<32x32xbf16>
    %c0_18 = arith.constant 0 : index
    %c0_19 = arith.constant 0 : index
    %12 = vector.load %arg13[%c0_18, %c0_19] : memref<1x32xf32, #tpu.memory_space<vmem>>, vector<1x32xf32>
    %c0_20 = arith.constant 0 : index
    %c0_21 = arith.constant 0 : index
    %13 = vector.load %arg14[%c0_20, %c0_21] : memref<1x32xf32, #tpu.memory_space<vmem>>, vector<1x32xf32>
    %c0_22 = arith.constant 0 : index
    %c0_23 = arith.constant 0 : index
    %14 = vector.load %arg15[%c0_22, %c0_23] : memref<1x32xf32, #tpu.memory_space<vmem>>, vector<1x32xf32>
    %15 = arith.truncf %0 : vector<8x32xf32> to vector<8x32xbf16>
    %cst = arith.constant dense<0.000000e+00> : vector<8x32xf32>
    %16 = tpu.matmul %15, %7, %cst {dimension_numbers = #tpu.dot_dimension_numbers<[1], [0], [0], [1], [0, 0, 1, 1], [], []>} : vector<8x32xbf16>, vector<32x32xbf16>, vector<8x32xf32> -> vector<8x32xf32>
    %17 = vector.broadcast %8 : vector<1x32xf32> to vector<8x32xf32>
    %18 = arith.addf %16, %17 : vector<8x32xf32>
    %19 = arith.truncf %6 : vector<8x32xf32> to vector<8x32xbf16>
    %cst_24 = arith.constant dense<0.000000e+00> : vector<8x64xf32>
    %20 = tpu.matmul %19, %9, %cst_24 {dimension_numbers = #tpu.dot_dimension_numbers<[1], [0], [0], [1], [0, 0, 1, 1], [], []>} : vector<8x32xbf16>, vector<32x64xbf16>, vector<8x64xf32> -> vector<8x64xf32>
    %21 = vector.broadcast %10 : vector<1x64xf32> to vector<8x64xf32>
    %22 = arith.addf %20, %21 : vector<8x64xf32>
    %23 = vector.extract_strided_slice %22 {offsets = [0, 0], sizes = [8, 32], strides = [1, 1]} : vector<8x64xf32> to vector<8x32xf32>
    %24 = vector.extract_strided_slice %22 {offsets = [0, 32], sizes = [8, 32], strides = [1, 1]} : vector<8x64xf32> to vector<8x32xf32>
    %cst_25 = arith.constant 0.353553385 : f32
    %25 = vector.broadcast %cst_25 : f32 to vector<8x32xf32>
    %26 = arith.mulf %18, %25 : vector<8x32xf32>
    %27 = arith.truncf %26 : vector<8x32xf32> to vector<8x32xbf16>
    %28 = arith.truncf %23 : vector<8x32xf32> to vector<8x32xbf16>
    %29 = arith.truncf %24 : vector<8x32xf32> to vector<8x32xbf16>
    %30 = vector.extract_strided_slice %27 {offsets = [0, 0], sizes = [8, 8], strides = [1, 1]} : vector<8x32xbf16> to vector<8x8xbf16>
    %31 = vector.extract_strided_slice %28 {offsets = [0, 0], sizes = [8, 8], strides = [1, 1]} : vector<8x32xbf16> to vector<8x8xbf16>
    "tpu.trace_start"() <{level = 10 : i32, message = "qd,kd->qk"}> : () -> ()
    %cst_26 = arith.constant dense<0.000000e+00> : vector<8x8xf32>
    %32 = tpu.matmul %30, %31, %cst_26 {dimension_numbers = #tpu.dot_dimension_numbers<[1], [1], [0], [0], [0, 0, 1, 0], [], []>} : vector<8x8xbf16>, vector<8x8xbf16>, vector<8x8xf32> -> vector<8x8xf32>
    "tpu.trace_stop"() : () -> ()
    %33 = arith.addf %32, %5 : vector<8x8xf32>
    %cst_27 = arith.constant dense<0xFF800000> : vector<8xf32>
    %34 = vector.multi_reduction <maximumf>, %33, %cst_27 [1] : vector<8x8xf32> to vector<8xf32>
    %35 = vector.shape_cast %34 : vector<8xf32> to vector<8x1xf32>
    %36 = vector.broadcast %35 : vector<8x1xf32> to vector<8x8xf32>
    %37 = arith.subf %33, %36 : vector<8x8xf32>
    %38 = math.exp %37 : vector<8x8xf32>
    %cst_28 = arith.constant dense<0.000000e+00> : vector<8xf32>
    %39 = vector.multi_reduction <add>, %38, %cst_28 [1] : vector<8x8xf32> to vector<8xf32>
    %40 = vector.shape_cast %39 : vector<8xf32> to vector<8x1xf32>
    %41 = tpu.reciprocal %40 {approx = true} : vector<8x1xf32> -> vector<8x1xf32>
    %42 = vector.broadcast %41 : vector<8x1xf32> to vector<8x8xf32>
    %43 = arith.mulf %38, %42 : vector<8x8xf32>
    %44 = vector.extract_strided_slice %29 {offsets = [0, 0], sizes = [8, 8], strides = [1, 1]} : vector<8x32xbf16> to vector<8x8xbf16>
    %45 = arith.truncf %43 : vector<8x8xf32> to vector<8x8xbf16>
    %cst_29 = arith.constant dense<0.000000e+00> : vector<8x8xf32>
    %46 = tpu.matmul %45, %44, %cst_29 {dimension_numbers = #tpu.dot_dimension_numbers<[1], [0], [0], [1], [0, 0, 1, 1], [], []>} : vector<8x8xbf16>, vector<8x8xbf16>, vector<8x8xf32> -> vector<8x8xf32>
    %47 = arith.truncf %46 : vector<8x8xf32> to vector<8x8xbf16>
    %48 = vector.extract_strided_slice %27 {offsets = [0, 8], sizes = [8, 8], strides = [1, 1]} : vector<8x32xbf16> to vector<8x8xbf16>
    %49 = vector.extract_strided_slice %28 {offsets = [0, 8], sizes = [8, 8], strides = [1, 1]} : vector<8x32xbf16> to vector<8x8xbf16>
    "tpu.trace_start"() <{level = 10 : i32, message = "qd,kd->qk"}> : () -> ()
    %cst_30 = arith.constant dense<0.000000e+00> : vector<8x8xf32>
    %50 = tpu.matmul %48, %49, %cst_30 {dimension_numbers = #tpu.dot_dimension_numbers<[1], [1], [0], [0], [0, 0, 1, 0], [], []>} : vector<8x8xbf16>, vector<8x8xbf16>, vector<8x8xf32> -> vector<8x8xf32>
    "tpu.trace_stop"() : () -> ()
    %51 = arith.addf %50, %5 : vector<8x8xf32>
    %cst_31 = arith.constant dense<0xFF800000> : vector<8xf32>
    %52 = vector.multi_reduction <maximumf>, %51, %cst_31 [1] : vector<8x8xf32> to vector<8xf32>
    %53 = vector.shape_cast %52 : vector<8xf32> to vector<8x1xf32>
    %54 = vector.broadcast %53 : vector<8x1xf32> to vector<8x8xf32>
    %55 = arith.subf %51, %54 : vector<8x8xf32>
    %56 = math.exp %55 : vector<8x8xf32>
    %cst_32 = arith.constant dense<0.000000e+00> : vector<8xf32>
    %57 = vector.multi_reduction <add>, %56, %cst_32 [1] : vector<8x8xf32> to vector<8xf32>
    %58 = vector.shape_cast %57 : vector<8xf32> to vector<8x1xf32>
    %59 = tpu.reciprocal %58 {approx = true} : vector<8x1xf32> -> vector<8x1xf32>
    %60 = vector.broadcast %59 : vector<8x1xf32> to vector<8x8xf32>
    %61 = arith.mulf %56, %60 : vector<8x8xf32>
    %62 = vector.extract_strided_slice %29 {offsets = [0, 8], sizes = [8, 8], strides = [1, 1]} : vector<8x32xbf16> to vector<8x8xbf16>
    %63 = arith.truncf %61 : vector<8x8xf32> to vector<8x8xbf16>
    %cst_33 = arith.constant dense<0.000000e+00> : vector<8x8xf32>
    %64 = tpu.matmul %63, %62, %cst_33 {dimension_numbers = #tpu.dot_dimension_numbers<[1], [0], [0], [1], [0, 0, 1, 1], [], []>} : vector<8x8xbf16>, vector<8x8xbf16>, vector<8x8xf32> -> vector<8x8xf32>
    %65 = arith.truncf %64 : vector<8x8xf32> to vector<8x8xbf16>
    %66 = vector.extract_strided_slice %27 {offsets = [0, 16], sizes = [8, 8], strides = [1, 1]} : vector<8x32xbf16> to vector<8x8xbf16>
    %67 = vector.extract_strided_slice %28 {offsets = [0, 16], sizes = [8, 8], strides = [1, 1]} : vector<8x32xbf16> to vector<8x8xbf16>
    "tpu.trace_start"() <{level = 10 : i32, message = "qd,kd->qk"}> : () -> ()
    %cst_34 = arith.constant dense<0.000000e+00> : vector<8x8xf32>
    %68 = tpu.matmul %66, %67, %cst_34 {dimension_numbers = #tpu.dot_dimension_numbers<[1], [1], [0], [0], [0, 0, 1, 0], [], []>} : vector<8x8xbf16>, vector<8x8xbf16>, vector<8x8xf32> -> vector<8x8xf32>
    "tpu.trace_stop"() : () -> ()
    %69 = arith.addf %68, %5 : vector<8x8xf32>
    %cst_35 = arith.constant dense<0xFF800000> : vector<8xf32>
    %70 = vector.multi_reduction <maximumf>, %69, %cst_35 [1] : vector<8x8xf32> to vector<8xf32>
    %71 = vector.shape_cast %70 : vector<8xf32> to vector<8x1xf32>
    %72 = vector.broadcast %71 : vector<8x1xf32> to vector<8x8xf32>
    %73 = arith.subf %69, %72 : vector<8x8xf32>
    %74 = math.exp %73 : vector<8x8xf32>
    %cst_36 = arith.constant dense<0.000000e+00> : vector<8xf32>
    %75 = vector.multi_reduction <add>, %74, %cst_36 [1] : vector<8x8xf32> to vector<8xf32>
    %76 = vector.shape_cast %75 : vector<8xf32> to vector<8x1xf32>
    %77 = tpu.reciprocal %76 {approx = true} : vector<8x1xf32> -> vector<8x1xf32>
    %78 = vector.broadcast %77 : vector<8x1xf32> to vector<8x8xf32>
    %79 = arith.mulf %74, %78 : vector<8x8xf32>
    %80 = vector.extract_strided_slice %29 {offsets = [0, 16], sizes = [8, 8], strides = [1, 1]} : vector<8x32xbf16> to vector<8x8xbf16>
    %81 = arith.truncf %79 : vector<8x8xf32> to vector<8x8xbf16>
    %cst_37 = arith.constant dense<0.000000e+00> : vector<8x8xf32>
    %82 = tpu.matmul %81, %80, %cst_37 {dimension_numbers = #tpu.dot_dimension_numbers<[1], [0], [0], [1], [0, 0, 1, 1], [], []>} : vector<8x8xbf16>, vector<8x8xbf16>, vector<8x8xf32> -> vector<8x8xf32>
    %83 = arith.truncf %82 : vector<8x8xf32> to vector<8x8xbf16>
    %84 = vector.extract_strided_slice %27 {offsets = [0, 24], sizes = [8, 8], strides = [1, 1]} : vector<8x32xbf16> to vector<8x8xbf16>
    %85 = vector.extract_strided_slice %28 {offsets = [0, 24], sizes = [8, 8], strides = [1, 1]} : vector<8x32xbf16> to vector<8x8xbf16>
    "tpu.trace_start"() <{level = 10 : i32, message = "qd,kd->qk"}> : () -> ()
    %cst_38 = arith.constant dense<0.000000e+00> : vector<8x8xf32>
    %86 = tpu.matmul %84, %85, %cst_38 {dimension_numbers = #tpu.dot_dimension_numbers<[1], [1], [0], [0], [0, 0, 1, 0], [], []>} : vector<8x8xbf16>, vector<8x8xbf16>, vector<8x8xf32> -> vector<8x8xf32>
    "tpu.trace_stop"() : () -> ()
    %87 = arith.addf %86, %5 : vector<8x8xf32>
    %cst_39 = arith.constant dense<0xFF800000> : vector<8xf32>
    %88 = vector.multi_reduction <maximumf>, %87, %cst_39 [1] : vector<8x8xf32> to vector<8xf32>
    %89 = vector.shape_cast %88 : vector<8xf32> to vector<8x1xf32>
    %90 = vector.broadcast %89 : vector<8x1xf32> to vector<8x8xf32>
    %91 = arith.subf %87, %90 : vector<8x8xf32>
    %92 = math.exp %91 : vector<8x8xf32>
    %cst_40 = arith.constant dense<0.000000e+00> : vector<8xf32>
    %93 = vector.multi_reduction <add>, %92, %cst_40 [1] : vector<8x8xf32> to vector<8xf32>
    %94 = vector.shape_cast %93 : vector<8xf32> to vector<8x1xf32>
    %95 = tpu.reciprocal %94 {approx = true} : vector<8x1xf32> -> vector<8x1xf32>
    %96 = vector.broadcast %95 : vector<8x1xf32> to vector<8x8xf32>
    %97 = arith.mulf %92, %96 : vector<8x8xf32>
    %98 = vector.extract_strided_slice %29 {offsets = [0, 24], sizes = [8, 8], strides = [1, 1]} : vector<8x32xbf16> to vector<8x8xbf16>
    %99 = arith.truncf %97 : vector<8x8xf32> to vector<8x8xbf16>
    %cst_41 = arith.constant dense<0.000000e+00> : vector<8x8xf32>
    %100 = tpu.matmul %99, %98, %cst_41 {dimension_numbers = #tpu.dot_dimension_numbers<[1], [0], [0], [1], [0, 0, 1, 1], [], []>} : vector<8x8xbf16>, vector<8x8xbf16>, vector<8x8xf32> -> vector<8x8xf32>
    %101 = arith.truncf %100 : vector<8x8xf32> to vector<8x8xbf16>
    %102 = tpu.concatenate %47, %65, %83, %101 in 1 : vector<8x8xbf16>, vector<8x8xbf16>, vector<8x8xbf16>, vector<8x8xbf16> -> vector<8x32xbf16>
    %cst_42 = arith.constant dense<0.000000e+00> : vector<8x32xf32>
    %103 = tpu.matmul %102, %11, %cst_42 {dimension_numbers = #tpu.dot_dimension_numbers<[1], [0], [0], [1], [0, 0, 1, 1], [], []>} : vector<8x32xbf16>, vector<32x32xbf16>, vector<8x32xf32> -> vector<8x32xf32>
    %104 = vector.broadcast %12 : vector<1x32xf32> to vector<8x32xf32>
    %105 = arith.addf %103, %104 : vector<8x32xf32>
    %106 = arith.addf %0, %105 : vector<8x32xf32>
    %cst_43 = arith.constant dense<0.000000e+00> : vector<8xf32>
    %107 = vector.multi_reduction <add>, %106, %cst_43 [1] : vector<8x32xf32> to vector<8xf32>
    %108 = vector.shape_cast %107 : vector<8xf32> to vector<8x1xf32>
    %cst_44 = arith.constant 3.200000e+01 : f32
    %109 = vector.broadcast %cst_44 : f32 to vector<8x1xf32>
    %110 = arith.divf %108, %109 : vector<8x1xf32>
    %111 = vector.broadcast %110 : vector<8x1xf32> to vector<8x32xf32>
    %112 = arith.subf %106, %111 : vector<8x32xf32>
    %113 = arith.mulf %112, %112 : vector<8x32xf32>
    %cst_45 = arith.constant dense<0.000000e+00> : vector<8xf32>
    %114 = vector.multi_reduction <add>, %113, %cst_45 [1] : vector<8x32xf32> to vector<8xf32>
    %115 = vector.shape_cast %114 : vector<8xf32> to vector<8x1xf32>
    %cst_46 = arith.constant 3.200000e+01 : f32
    %116 = vector.broadcast %cst_46 : f32 to vector<8x1xf32>
    %117 = arith.divf %115, %116 : vector<8x1xf32>
    %118 = vector.broadcast %110 : vector<8x1xf32> to vector<8x32xf32>
    %119 = arith.subf %106, %118 : vector<8x32xf32>
    %cst_47 = arith.constant 9.99999974E-6 : f32
    %120 = vector.broadcast %cst_47 : f32 to vector<8x1xf32>
    %121 = arith.addf %117, %120 : vector<8x1xf32>
    %122 = math.rsqrt %121 : vector<8x1xf32>
    %123 = vector.broadcast %122 : vector<8x1xf32> to vector<8x32xf32>
    %124 = arith.mulf %119, %123 : vector<8x32xf32>
    %125 = vector.broadcast %13 : vector<1x32xf32> to vector<8x32xf32>
    %126 = arith.mulf %124, %125 : vector<8x32xf32>
    %127 = vector.broadcast %14 : vector<1x32xf32> to vector<8x32xf32>
    %128 = arith.addf %126, %127 : vector<8x32xf32>
    %c0_48 = arith.constant 0 : index
    %c0_49 = arith.constant 0 : index
    %c0_50 = arith.constant 0 : index
    %129 = vector.load %arg7[%c0_48, %c0_49, %c0_50] : memref<1x1x8xf32, #tpu.memory_space<vmem>>, vector<1x1x8xf32>
    %130 = vector.shape_cast %129 : vector<1x1x8xf32> to vector<1x8xf32>
    %c0_51 = arith.constant 0 : index
    %c0_52 = arith.constant 0 : index
    %131 = vector.load %arg4[%c0_51, %c0_52] : memref<8x32xf32, #tpu.memory_space<vmem>>, vector<8x32xf32>
    %c0_53 = arith.constant 0 : index
    %c0_54 = arith.constant 0 : index
    %132 = vector.load %arg16[%c0_53, %c0_54] : memref<32x32xbf16, #tpu.memory_space<vmem>>, vector<32x32xbf16>
    %c0_55 = arith.constant 0 : index
    %c0_56 = arith.constant 0 : index
    %133 = vector.load %arg17[%c0_55, %c0_56] : memref<1x32xf32, #tpu.memory_space<vmem>>, vector<1x32xf32>
    %c0_57 = arith.constant 0 : index
    %c0_58 = arith.constant 0 : index
    %134 = vector.load %arg18[%c0_57, %c0_58] : memref<32x64xbf16, #tpu.memory_space<vmem>>, vector<32x64xbf16>
    %c0_59 = arith.constant 0 : index
    %c0_60 = arith.constant 0 : index
    %135 = vector.load %arg19[%c0_59, %c0_60] : memref<1x64xf32, #tpu.memory_space<vmem>>, vector<1x64xf32>
    %c0_61 = arith.constant 0 : index
    %c0_62 = arith.constant 0 : index
    %136 = vector.load %arg20[%c0_61, %c0_62] : memref<32x32xbf16, #tpu.memory_space<vmem>>, vector<32x32xbf16>
    %c0_63 = arith.constant 0 : index
    %c0_64 = arith.constant 0 : index
    %137 = vector.load %arg21[%c0_63, %c0_64] : memref<1x32xf32, #tpu.memory_space<vmem>>, vector<1x32xf32>
    %c0_65 = arith.constant 0 : index
    %c0_66 = arith.constant 0 : index
    %138 = vector.load %arg22[%c0_65, %c0_66] : memref<1x32xf32, #tpu.memory_space<vmem>>, vector<1x32xf32>
    %c0_67 = arith.constant 0 : index
    %c0_68 = arith.constant 0 : index
    %139 = vector.load %arg23[%c0_67, %c0_68] : memref<1x32xf32, #tpu.memory_space<vmem>>, vector<1x32xf32>
    %140 = arith.truncf %128 : vector<8x32xf32> to vector<8x32xbf16>
    %cst_69 = arith.constant dense<0.000000e+00> : vector<8x32xf32>
    %141 = tpu.matmul %140, %132, %cst_69 {dimension_numbers = #tpu.dot_dimension_numbers<[1], [0], [0], [1], [0, 0, 1, 1], [], []>} : vector<8x32xbf16>, vector<32x32xbf16>, vector<8x32xf32> -> vector<8x32xf32>
    %142 = vector.broadcast %133 : vector<1x32xf32> to vector<8x32xf32>
    %143 = arith.addf %141, %142 : vector<8x32xf32>
    %144 = arith.truncf %131 : vector<8x32xf32> to vector<8x32xbf16>
    %cst_70 = arith.constant dense<0.000000e+00> : vector<8x64xf32>
    %145 = tpu.matmul %144, %134, %cst_70 {dimension_numbers = #tpu.dot_dimension_numbers<[1], [0], [0], [1], [0, 0, 1, 1], [], []>} : vector<8x32xbf16>, vector<32x64xbf16>, vector<8x64xf32> -> vector<8x64xf32>
    %146 = vector.broadcast %135 : vector<1x64xf32> to vector<8x64xf32>
    %147 = arith.addf %145, %146 : vector<8x64xf32>
    %148 = vector.extract_strided_slice %147 {offsets = [0, 0], sizes = [8, 32], strides = [1, 1]} : vector<8x64xf32> to vector<8x32xf32>
    %149 = vector.extract_strided_slice %147 {offsets = [0, 32], sizes = [8, 32], strides = [1, 1]} : vector<8x64xf32> to vector<8x32xf32>
    %cst_71 = arith.constant 0.353553385 : f32
    %150 = vector.broadcast %cst_71 : f32 to vector<8x32xf32>
    %151 = arith.mulf %143, %150 : vector<8x32xf32>
    %152 = arith.truncf %151 : vector<8x32xf32> to vector<8x32xbf16>
    %153 = arith.truncf %148 : vector<8x32xf32> to vector<8x32xbf16>
    %154 = arith.truncf %149 : vector<8x32xf32> to vector<8x32xbf16>
    %155 = vector.extract_strided_slice %152 {offsets = [0, 0], sizes = [8, 8], strides = [1, 1]} : vector<8x32xbf16> to vector<8x8xbf16>
    %156 = vector.extract_strided_slice %153 {offsets = [0, 0], sizes = [8, 8], strides = [1, 1]} : vector<8x32xbf16> to vector<8x8xbf16>
    "tpu.trace_start"() <{level = 10 : i32, message = "qd,kd->qk"}> : () -> ()
    %cst_72 = arith.constant dense<0.000000e+00> : vector<8x8xf32>
    %157 = tpu.matmul %155, %156, %cst_72 {dimension_numbers = #tpu.dot_dimension_numbers<[1], [1], [0], [0], [0, 0, 1, 0], [], []>} : vector<8x8xbf16>, vector<8x8xbf16>, vector<8x8xf32> -> vector<8x8xf32>
    "tpu.trace_stop"() : () -> ()
    %158 = vector.broadcast %130 : vector<1x8xf32> to vector<8x8xf32>
    %159 = arith.addf %157, %158 : vector<8x8xf32>
    %cst_73 = arith.constant dense<0xFF800000> : vector<8xf32>
    %160 = vector.multi_reduction <maximumf>, %159, %cst_73 [1] : vector<8x8xf32> to vector<8xf32>
    %161 = vector.shape_cast %160 : vector<8xf32> to vector<8x1xf32>
    %162 = vector.broadcast %161 : vector<8x1xf32> to vector<8x8xf32>
    %163 = arith.subf %159, %162 : vector<8x8xf32>
    %164 = math.exp %163 : vector<8x8xf32>
    %cst_74 = arith.constant dense<0.000000e+00> : vector<8xf32>
    %165 = vector.multi_reduction <add>, %164, %cst_74 [1] : vector<8x8xf32> to vector<8xf32>
    %166 = vector.shape_cast %165 : vector<8xf32> to vector<8x1xf32>
    %167 = tpu.reciprocal %166 {approx = true} : vector<8x1xf32> -> vector<8x1xf32>
    %168 = vector.broadcast %167 : vector<8x1xf32> to vector<8x8xf32>
    %169 = arith.mulf %164, %168 : vector<8x8xf32>
    %170 = vector.extract_strided_slice %154 {offsets = [0, 0], sizes = [8, 8], strides = [1, 1]} : vector<8x32xbf16> to vector<8x8xbf16>
    %171 = arith.truncf %169 : vector<8x8xf32> to vector<8x8xbf16>
    %cst_75 = arith.constant dense<0.000000e+00> : vector<8x8xf32>
    %172 = tpu.matmul %171, %170, %cst_75 {dimension_numbers = #tpu.dot_dimension_numbers<[1], [0], [0], [1], [0, 0, 1, 1], [], []>} : vector<8x8xbf16>, vector<8x8xbf16>, vector<8x8xf32> -> vector<8x8xf32>
    %173 = arith.truncf %172 : vector<8x8xf32> to vector<8x8xbf16>
    %174 = vector.extract_strided_slice %152 {offsets = [0, 8], sizes = [8, 8], strides = [1, 1]} : vector<8x32xbf16> to vector<8x8xbf16>
    %175 = vector.extract_strided_slice %153 {offsets = [0, 8], sizes = [8, 8], strides = [1, 1]} : vector<8x32xbf16> to vector<8x8xbf16>
    "tpu.trace_start"() <{level = 10 : i32, message = "qd,kd->qk"}> : () -> ()
    %cst_76 = arith.constant dense<0.000000e+00> : vector<8x8xf32>
    %176 = tpu.matmul %174, %175, %cst_76 {dimension_numbers = #tpu.dot_dimension_numbers<[1], [1], [0], [0], [0, 0, 1, 0], [], []>} : vector<8x8xbf16>, vector<8x8xbf16>, vector<8x8xf32> -> vector<8x8xf32>
    "tpu.trace_stop"() : () -> ()
    %177 = vector.broadcast %130 : vector<1x8xf32> to vector<8x8xf32>
    %178 = arith.addf %176, %177 : vector<8x8xf32>
    %cst_77 = arith.constant dense<0xFF800000> : vector<8xf32>
    %179 = vector.multi_reduction <maximumf>, %178, %cst_77 [1] : vector<8x8xf32> to vector<8xf32>
    %180 = vector.shape_cast %179 : vector<8xf32> to vector<8x1xf32>
    %181 = vector.broadcast %180 : vector<8x1xf32> to vector<8x8xf32>
    %182 = arith.subf %178, %181 : vector<8x8xf32>
    %183 = math.exp %182 : vector<8x8xf32>
    %cst_78 = arith.constant dense<0.000000e+00> : vector<8xf32>
    %184 = vector.multi_reduction <add>, %183, %cst_78 [1] : vector<8x8xf32> to vector<8xf32>
    %185 = vector.shape_cast %184 : vector<8xf32> to vector<8x1xf32>
    %186 = tpu.reciprocal %185 {approx = true} : vector<8x1xf32> -> vector<8x1xf32>
    %187 = vector.broadcast %186 : vector<8x1xf32> to vector<8x8xf32>
    %188 = arith.mulf %183, %187 : vector<8x8xf32>
    %189 = vector.extract_strided_slice %154 {offsets = [0, 8], sizes = [8, 8], strides = [1, 1]} : vector<8x32xbf16> to vector<8x8xbf16>
    %190 = arith.truncf %188 : vector<8x8xf32> to vector<8x8xbf16>
    %cst_79 = arith.constant dense<0.000000e+00> : vector<8x8xf32>
    %191 = tpu.matmul %190, %189, %cst_79 {dimension_numbers = #tpu.dot_dimension_numbers<[1], [0], [0], [1], [0, 0, 1, 1], [], []>} : vector<8x8xbf16>, vector<8x8xbf16>, vector<8x8xf32> -> vector<8x8xf32>
    %192 = arith.truncf %191 : vector<8x8xf32> to vector<8x8xbf16>
    %193 = vector.extract_strided_slice %152 {offsets = [0, 16], sizes = [8, 8], strides = [1, 1]} : vector<8x32xbf16> to vector<8x8xbf16>
    %194 = vector.extract_strided_slice %153 {offsets = [0, 16], sizes = [8, 8], strides = [1, 1]} : vector<8x32xbf16> to vector<8x8xbf16>
    "tpu.trace_start"() <{level = 10 : i32, message = "qd,kd->qk"}> : () -> ()
    %cst_80 = arith.constant dense<0.000000e+00> : vector<8x8xf32>
    %195 = tpu.matmul %193, %194, %cst_80 {dimension_numbers = #tpu.dot_dimension_numbers<[1], [1], [0], [0], [0, 0, 1, 0], [], []>} : vector<8x8xbf16>, vector<8x8xbf16>, vector<8x8xf32> -> vector<8x8xf32>
    "tpu.trace_stop"() : () -> ()
    %196 = vector.broadcast %130 : vector<1x8xf32> to vector<8x8xf32>
    %197 = arith.addf %195, %196 : vector<8x8xf32>
    %cst_81 = arith.constant dense<0xFF800000> : vector<8xf32>
    %198 = vector.multi_reduction <maximumf>, %197, %cst_81 [1] : vector<8x8xf32> to vector<8xf32>
    %199 = vector.shape_cast %198 : vector<8xf32> to vector<8x1xf32>
    %200 = vector.broadcast %199 : vector<8x1xf32> to vector<8x8xf32>
    %201 = arith.subf %197, %200 : vector<8x8xf32>
    %202 = math.exp %201 : vector<8x8xf32>
    %cst_82 = arith.constant dense<0.000000e+00> : vector<8xf32>
    %203 = vector.multi_reduction <add>, %202, %cst_82 [1] : vector<8x8xf32> to vector<8xf32>
    %204 = vector.shape_cast %203 : vector<8xf32> to vector<8x1xf32>
    %205 = tpu.reciprocal %204 {approx = true} : vector<8x1xf32> -> vector<8x1xf32>
    %206 = vector.broadcast %205 : vector<8x1xf32> to vector<8x8xf32>
    %207 = arith.mulf %202, %206 : vector<8x8xf32>
    %208 = vector.extract_strided_slice %154 {offsets = [0, 16], sizes = [8, 8], strides = [1, 1]} : vector<8x32xbf16> to vector<8x8xbf16>
    %209 = arith.truncf %207 : vector<8x8xf32> to vector<8x8xbf16>
    %cst_83 = arith.constant dense<0.000000e+00> : vector<8x8xf32>
    %210 = tpu.matmul %209, %208, %cst_83 {dimension_numbers = #tpu.dot_dimension_numbers<[1], [0], [0], [1], [0, 0, 1, 1], [], []>} : vector<8x8xbf16>, vector<8x8xbf16>, vector<8x8xf32> -> vector<8x8xf32>
    %211 = arith.truncf %210 : vector<8x8xf32> to vector<8x8xbf16>
    %212 = vector.extract_strided_slice %152 {offsets = [0, 24], sizes = [8, 8], strides = [1, 1]} : vector<8x32xbf16> to vector<8x8xbf16>
    %213 = vector.extract_strided_slice %153 {offsets = [0, 24], sizes = [8, 8], strides = [1, 1]} : vector<8x32xbf16> to vector<8x8xbf16>
    "tpu.trace_start"() <{level = 10 : i32, message = "qd,kd->qk"}> : () -> ()
    %cst_84 = arith.constant dense<0.000000e+00> : vector<8x8xf32>
    %214 = tpu.matmul %212, %213, %cst_84 {dimension_numbers = #tpu.dot_dimension_numbers<[1], [1], [0], [0], [0, 0, 1, 0], [], []>} : vector<8x8xbf16>, vector<8x8xbf16>, vector<8x8xf32> -> vector<8x8xf32>
    "tpu.trace_stop"() : () -> ()
    %215 = vector.broadcast %130 : vector<1x8xf32> to vector<8x8xf32>
    %216 = arith.addf %214, %215 : vector<8x8xf32>
    %cst_85 = arith.constant dense<0xFF800000> : vector<8xf32>
    %217 = vector.multi_reduction <maximumf>, %216, %cst_85 [1] : vector<8x8xf32> to vector<8xf32>
    %218 = vector.shape_cast %217 : vector<8xf32> to vector<8x1xf32>
    %219 = vector.broadcast %218 : vector<8x1xf32> to vector<8x8xf32>
    %220 = arith.subf %216, %219 : vector<8x8xf32>
    %221 = math.exp %220 : vector<8x8xf32>
    %cst_86 = arith.constant dense<0.000000e+00> : vector<8xf32>
    %222 = vector.multi_reduction <add>, %221, %cst_86 [1] : vector<8x8xf32> to vector<8xf32>
    %223 = vector.shape_cast %222 : vector<8xf32> to vector<8x1xf32>
    %224 = tpu.reciprocal %223 {approx = true} : vector<8x1xf32> -> vector<8x1xf32>
    %225 = vector.broadcast %224 : vector<8x1xf32> to vector<8x8xf32>
    %226 = arith.mulf %221, %225 : vector<8x8xf32>
    %227 = vector.extract_strided_slice %154 {offsets = [0, 24], sizes = [8, 8], strides = [1, 1]} : vector<8x32xbf16> to vector<8x8xbf16>
    %228 = arith.truncf %226 : vector<8x8xf32> to vector<8x8xbf16>
    %cst_87 = arith.constant dense<0.000000e+00> : vector<8x8xf32>
    %229 = tpu.matmul %228, %227, %cst_87 {dimension_numbers = #tpu.dot_dimension_numbers<[1], [0], [0], [1], [0, 0, 1, 1], [], []>} : vector<8x8xbf16>, vector<8x8xbf16>, vector<8x8xf32> -> vector<8x8xf32>
    %230 = arith.truncf %229 : vector<8x8xf32> to vector<8x8xbf16>
    %231 = tpu.concatenate %173, %192, %211, %230 in 1 : vector<8x8xbf16>, vector<8x8xbf16>, vector<8x8xbf16>, vector<8x8xbf16> -> vector<8x32xbf16>
    %cst_88 = arith.constant dense<0.000000e+00> : vector<8x32xf32>
    %232 = tpu.matmul %231, %136, %cst_88 {dimension_numbers = #tpu.dot_dimension_numbers<[1], [0], [0], [1], [0, 0, 1, 1], [], []>} : vector<8x32xbf16>, vector<32x32xbf16>, vector<8x32xf32> -> vector<8x32xf32>
    %233 = vector.broadcast %137 : vector<1x32xf32> to vector<8x32xf32>
    %234 = arith.addf %232, %233 : vector<8x32xf32>
    %235 = arith.addf %128, %234 : vector<8x32xf32>
    %cst_89 = arith.constant dense<0.000000e+00> : vector<8xf32>
    %236 = vector.multi_reduction <add>, %235, %cst_89 [1] : vector<8x32xf32> to vector<8xf32>
    %237 = vector.shape_cast %236 : vector<8xf32> to vector<8x1xf32>
    %cst_90 = arith.constant 3.200000e+01 : f32
    %238 = vector.broadcast %cst_90 : f32 to vector<8x1xf32>
    %239 = arith.divf %237, %238 : vector<8x1xf32>
    %240 = vector.broadcast %239 : vector<8x1xf32> to vector<8x32xf32>
    %241 = arith.subf %235, %240 : vector<8x32xf32>
    %242 = arith.mulf %241, %241 : vector<8x32xf32>
    %cst_91 = arith.constant dense<0.000000e+00> : vector<8xf32>
    %243 = vector.multi_reduction <add>, %242, %cst_91 [1] : vector<8x32xf32> to vector<8xf32>
    %244 = vector.shape_cast %243 : vector<8xf32> to vector<8x1xf32>
    %cst_92 = arith.constant 3.200000e+01 : f32
    %245 = vector.broadcast %cst_92 : f32 to vector<8x1xf32>
    %246 = arith.divf %244, %245 : vector<8x1xf32>
    %247 = vector.broadcast %239 : vector<8x1xf32> to vector<8x32xf32>
    %248 = arith.subf %235, %247 : vector<8x32xf32>
    %cst_93 = arith.constant 9.99999974E-6 : f32
    %249 = vector.broadcast %cst_93 : f32 to vector<8x1xf32>
    %250 = arith.addf %246, %249 : vector<8x1xf32>
    %251 = math.rsqrt %250 : vector<8x1xf32>
    %252 = vector.broadcast %251 : vector<8x1xf32> to vector<8x32xf32>
    %253 = arith.mulf %248, %252 : vector<8x32xf32>
    %254 = vector.broadcast %138 : vector<1x32xf32> to vector<8x32xf32>
    %255 = arith.mulf %253, %254 : vector<8x32xf32>
    %256 = vector.broadcast %139 : vector<1x32xf32> to vector<8x32xf32>
    %257 = arith.addf %255, %256 : vector<8x32xf32>
    %c0_94 = arith.constant 0 : index
    %c0_95 = arith.constant 0 : index
    %258 = vector.load %arg24[%c0_94, %c0_95] : memref<32x64xbf16, #tpu.memory_space<vmem>>, vector<32x64xbf16>
    %c0_96 = arith.constant 0 : index
    %c0_97 = arith.constant 0 : index
    %259 = vector.load %arg25[%c0_96, %c0_97] : memref<1x64xf32, #tpu.memory_space<vmem>>, vector<1x64xf32>
    %c0_98 = arith.constant 0 : index
    %c0_99 = arith.constant 0 : index
    %260 = vector.load %arg26[%c0_98, %c0_99] : memref<64x32xbf16, #tpu.memory_space<vmem>>, vector<64x32xbf16>
    %c0_100 = arith.constant 0 : index
    %c0_101 = arith.constant 0 : index
    %261 = vector.load %arg27[%c0_100, %c0_101] : memref<1x32xf32, #tpu.memory_space<vmem>>, vector<1x32xf32>
    %c0_102 = arith.constant 0 : index
    %c0_103 = arith.constant 0 : index
    %262 = vector.load %arg28[%c0_102, %c0_103] : memref<1x32xf32, #tpu.memory_space<vmem>>, vector<1x32xf32>
    %c0_104 = arith.constant 0 : index
    %c0_105 = arith.constant 0 : index
    %263 = vector.load %arg29[%c0_104, %c0_105] : memref<1x32xf32, #tpu.memory_space<vmem>>, vector<1x32xf32>
    %264 = arith.truncf %257 : vector<8x32xf32> to vector<8x32xbf16>
    %cst_106 = arith.constant dense<0.000000e+00> : vector<8x64xf32>
    %265 = tpu.matmul %264, %258, %cst_106 {dimension_numbers = #tpu.dot_dimension_numbers<[1], [0], [0], [1], [0, 0, 1, 1], [], []>} : vector<8x32xbf16>, vector<32x64xbf16>, vector<8x64xf32> -> vector<8x64xf32>
    %266 = vector.broadcast %259 : vector<1x64xf32> to vector<8x64xf32>
    %267 = arith.addf %265, %266 : vector<8x64xf32>
    %cst_107 = arith.constant 0.000000e+00 : f32
    %268 = vector.broadcast %cst_107 : f32 to vector<8x64xf32>
    %269 = arith.maximumf %267, %268 : vector<8x64xf32>
    %270 = arith.truncf %269 : vector<8x64xf32> to vector<8x64xbf16>
    %cst_108 = arith.constant dense<0.000000e+00> : vector<8x32xf32>
    %271 = tpu.matmul %270, %260, %cst_108 {dimension_numbers = #tpu.dot_dimension_numbers<[1], [0], [0], [1], [0, 0, 1, 1], [], []>} : vector<8x64xbf16>, vector<64x32xbf16>, vector<8x32xf32> -> vector<8x32xf32>
    %272 = vector.broadcast %261 : vector<1x32xf32> to vector<8x32xf32>
    %273 = arith.addf %271, %272 : vector<8x32xf32>
    %274 = arith.addf %257, %273 : vector<8x32xf32>
    %cst_109 = arith.constant dense<0.000000e+00> : vector<8xf32>
    %275 = vector.multi_reduction <add>, %274, %cst_109 [1] : vector<8x32xf32> to vector<8xf32>
    %276 = vector.shape_cast %275 : vector<8xf32> to vector<8x1xf32>
    %cst_110 = arith.constant 3.200000e+01 : f32
    %277 = vector.broadcast %cst_110 : f32 to vector<8x1xf32>
    %278 = arith.divf %276, %277 : vector<8x1xf32>
    %279 = vector.broadcast %278 : vector<8x1xf32> to vector<8x32xf32>
    %280 = arith.subf %274, %279 : vector<8x32xf32>
    %281 = arith.mulf %280, %280 : vector<8x32xf32>
    %cst_111 = arith.constant dense<0.000000e+00> : vector<8xf32>
    %282 = vector.multi_reduction <add>, %281, %cst_111 [1] : vector<8x32xf32> to vector<8xf32>
    %283 = vector.shape_cast %282 : vector<8xf32> to vector<8x1xf32>
    %cst_112 = arith.constant 3.200000e+01 : f32
    %284 = vector.broadcast %cst_112 : f32 to vector<8x1xf32>
    %285 = arith.divf %283, %284 : vector<8x1xf32>
    %286 = vector.broadcast %278 : vector<8x1xf32> to vector<8x32xf32>
    %287 = arith.subf %274, %286 : vector<8x32xf32>
    %cst_113 = arith.constant 9.99999974E-6 : f32
    %288 = vector.broadcast %cst_113 : f32 to vector<8x1xf32>
    %289 = arith.addf %285, %288 : vector<8x1xf32>
    %290 = math.rsqrt %289 : vector<8x1xf32>
    %291 = vector.broadcast %290 : vector<8x1xf32> to vector<8x32xf32>
    %292 = arith.mulf %287, %291 : vector<8x32xf32>
    %293 = vector.broadcast %262 : vector<1x32xf32> to vector<8x32xf32>
    %294 = arith.mulf %292, %293 : vector<8x32xf32>
    %295 = vector.broadcast %263 : vector<1x32xf32> to vector<8x32xf32>
    %296 = arith.addf %294, %295 : vector<8x32xf32>
    %c0_114 = arith.constant 0 : index
    %c0_115 = arith.constant 0 : index
    %297 = vector.load %arg30[%c0_114, %c0_115] : memref<1x32xf32, #tpu.memory_space<vmem>>, vector<1x32xf32>
    %c0_116 = arith.constant 0 : index
    %c0_117 = arith.constant 0 : index
    %298 = vector.load %arg31[%c0_116, %c0_117] : memref<1x32xf32, #tpu.memory_space<vmem>>, vector<1x32xf32>
    %cst_118 = arith.constant dense<0.000000e+00> : vector<8xf32>
    %299 = vector.multi_reduction <add>, %296, %cst_118 [1] : vector<8x32xf32> to vector<8xf32>
    %300 = vector.shape_cast %299 : vector<8xf32> to vector<8x1xf32>
    %cst_119 = arith.constant 3.200000e+01 : f32
    %301 = vector.broadcast %cst_119 : f32 to vector<8x1xf32>
    %302 = arith.divf %300, %301 : vector<8x1xf32>
    %303 = vector.broadcast %302 : vector<8x1xf32> to vector<8x32xf32>
    %304 = arith.subf %296, %303 : vector<8x32xf32>
    %305 = arith.mulf %304, %304 : vector<8x32xf32>
    %cst_120 = arith.constant dense<0.000000e+00> : vector<8xf32>
    %306 = vector.multi_reduction <add>, %305, %cst_120 [1] : vector<8x32xf32> to vector<8xf32>
    %307 = vector.shape_cast %306 : vector<8xf32> to vector<8x1xf32>
    %cst_121 = arith.constant 3.200000e+01 : f32
    %308 = vector.broadcast %cst_121 : f32 to vector<8x1xf32>
    %309 = arith.divf %307, %308 : vector<8x1xf32>
    %310 = vector.broadcast %302 : vector<8x1xf32> to vector<8x32xf32>
    %311 = arith.subf %296, %310 : vector<8x32xf32>
    %cst_122 = arith.constant 9.99999974E-6 : f32
    %312 = vector.broadcast %cst_122 : f32 to vector<8x1xf32>
    %313 = arith.addf %309, %312 : vector<8x1xf32>
    %314 = math.rsqrt %313 : vector<8x1xf32>
    %315 = vector.broadcast %314 : vector<8x1xf32> to vector<8x32xf32>
    %316 = arith.mulf %311, %315 : vector<8x32xf32>
    %317 = vector.broadcast %297 : vector<1x32xf32> to vector<8x32xf32>
    %318 = arith.mulf %316, %317 : vector<8x32xf32>
    %319 = vector.broadcast %298 : vector<1x32xf32> to vector<8x32xf32>
    %320 = arith.addf %318, %319 : vector<8x32xf32>
    %c0_123 = arith.constant 0 : index
    %c0_124 = arith.constant 0 : index
    %321 = vector.load %arg32[%c0_123, %c0_124] : memref<8x32xf32, #tpu.memory_space<vmem>>, vector<8x32xf32>
    tpu.vector_store %arg32[%c0_123, %c0_124], %320 {strides = array<i32>} : memref<8x32xf32, #tpu.memory_space<vmem>>, vector<8x32xf32>,
    return
  }
  func.func @transform_0(%arg0: i32, %arg1: i32) -> (i32, i32) {
    %c1_i32 = arith.constant 1 : i32
    %0 = arith.muli %arg0, %c1_i32 : i32
    %1 = arith.addi %0, %arg1 : i32
    %c0_i32 = arith.constant 0 : i32
    %c0_i32_0 = arith.constant 0 : i32
    return %1, %c0_i32 : i32, i32
  }
  func.func @transform_1(%arg0: i32, %arg1: i32) -> (i32, i32) {
    %c0_i32 = arith.constant 0 : i32
    %c0_i32_0 = arith.constant 0 : i32
    return %arg0, %c0_i32 : i32, i32
  }
  func.func @transform_2(%arg0: i32, %arg1: i32) -> (i32, i32) {
    %c0_i32 = arith.constant 0 : i32
    %c0_i32_0 = arith.constant 0 : i32
    return %arg0, %c0_i32 : i32, i32
  }
  func.func @transform_3(%arg0: i32, %arg1: i32) -> (i32, i32) {
    %c0_i32 = arith.constant 0 : i32
    %c0_i32_0 = arith.constant 0 : i32
    return %arg1, %c0_i32 : i32, i32
  }
  func.func @transform_4(%arg0: i32, %arg1: i32) -> (i32, i32, i32) {
    %c0_i32 = arith.constant 0 : i32
    %c0_i32_0 = arith.constant 0 : i32
    %c0_i32_1 = arith.constant 0 : i32
    return %arg0, %c0_i32, %c0_i32_0 : i32, i32, i32
  }
  func.func @transform_5(%arg0: i32, %arg1: i32) -> (i32, i32, i32) {
    %c0_i32 = arith.constant 0 : i32
    %c0_i32_0 = arith.constant 0 : i32
    %c0_i32_1 = arith.constant 0 : i32
    return %arg0, %c0_i32, %c0_i32_0 : i32, i32, i32
  }
  func.func @transform_6(%arg0: i32, %arg1: i32) -> (i32, i32) {
    %c0_i32 = arith.constant 0 : i32
    %c0_i32_0 = arith.constant 0 : i32
    %c0_i32_1 = arith.constant 0 : i32
    return %c0_i32, %c0_i32_0 : i32, i32
  }
  func.func @transform_7(%arg0: i32, %arg1: i32) -> (i32, i32) {
    %c0_i32 = arith.constant 0 : i32
    %c0_i32_0 = arith.constant 0 : i32
    %c0_i32_1 = arith.constant 0 : i32
    return %c0_i32, %c0_i32_0 : i32, i32
  }
  func.func @transform_8(%arg0: i32, %arg1: i32) -> (i32, i32) {
    %c0_i32 = arith.constant 0 : i32
    %c0_i32_0 = arith.constant 0 : i32
    %c0_i32_1 = arith.constant 0 : i32
    return %c0_i32, %c0_i32_0 : i32, i32
  }
  func.func @transform_9(%arg0: i32, %arg1: i32) -> (i32, i32) {
    %c0_i32 = arith.constant 0 : i32
    %c0_i32_0 = arith.constant 0 : i32
    %c0_i32_1 = arith.constant 0 : i32
    return %c0_i32, %c0_i32_0 : i32, i32
  }
  func.func @transform_10(%arg0: i32, %arg1: i32) -> (i32, i32) {
    %c0_i32 = arith.constant 0 : i32
    %c0_i32_0 = arith.constant 0 : i32
    %c0_i32_1 = arith.constant 0 : i32
    return %c0_i32, %c0_i32_0 : i32, i32
  }
  func.func @transform_11(%arg0: i32, %arg1: i32) -> (i32, i32) {
    %c0_i32 = arith.constant 0 : i32
    %c0_i32_0 = arith.constant 0 : i32
    %c0_i32_1 = arith.constant 0 : i32
    return %c0_i32, %c0_i32_0 : i32, i32
  }
  func.func @transform_12(%arg0: i32, %arg1: i32) -> (i32, i32) {
    %c0_i32 = arith.constant 0 : i32
    %c0_i32_0 = arith.constant 0 : i32
    %c0_i32_1 = arith.constant 0 : i32
    return %c0_i32, %c0_i32_0 : i32, i32
  }
  func.func @transform_13(%arg0: i32, %arg1: i32) -> (i32, i32) {
    %c0_i32 = arith.constant 0 : i32
    %c0_i32_0 = arith.constant 0 : i32
    %c0_i32_1 = arith.constant 0 : i32
    return %c0_i32, %c0_i32_0 : i32, i32
  }
  func.func @transform_14(%arg0: i32, %arg1: i32) -> (i32, i32) {
    %c0_i32 = arith.constant 0 : i32
    %c0_i32_0 = arith.constant 0 : i32
    %c0_i32_1 = arith.constant 0 : i32
    return %c0_i32, %c0_i32_0 : i32, i32
  }
  func.func @transform_15(%arg0: i32, %arg1: i32) -> (i32, i32) {
    %c0_i32 = arith.constant 0 : i32
    %c0_i32_0 = arith.constant 0 : i32
    %c0_i32_1 = arith.constant 0 : i32
    return %c0_i32, %c0_i32_0 : i32, i32
  }
  func.func @transform_16(%arg0: i32, %arg1: i32) -> (i32, i32) {
    %c0_i32 = arith.constant 0 : i32
    %c0_i32_0 = arith.constant 0 : i32
    %c0_i32_1 = arith.constant 0 : i32
    return %c0_i32, %c0_i32_0 : i32, i32
  }
  func.func @transform_17(%arg0: i32, %arg1: i32) -> (i32, i32) {
    %c0_i32 = arith.constant 0 : i32
    %c0_i32_0 = arith.constant 0 : i32
    %c0_i32_1 = arith.constant 0 : i32
    return %c0_i32, %c0_i32_0 : i32, i32
  }
  func.func @transform_18(%arg0: i32, %arg1: i32) -> (i32, i32) {
    %c0_i32 = arith.constant 0 : i32
    %c0_i32_0 = arith.constant 0 : i32
    %c0_i32_1 = arith.constant 0 : i32
    return %c0_i32, %c0_i32_0 : i32, i32
  }
  func.func @transform_19(%arg0: i32, %arg1: i32) -> (i32, i32) {
    %c0_i32 = arith.constant 0 : i32
    %c0_i32_0 = arith.constant 0 : i32
    %c0_i32_1 = arith.constant 0 : i32
    return %c0_i32, %c0_i32_0 : i32, i32
  }
  func.func @transform_20(%arg0: i32, %arg1: i32) -> (i32, i32) {
    %c0_i32 = arith.constant 0 : i32
    %c0_i32_0 = arith.constant 0 : i32
    %c0_i32_1 = arith.constant 0 : i32
    return %c0_i32, %c0_i32_0 : i32, i32
  }
  func.func @transform_21(%arg0: i32, %arg1: i32) -> (i32, i32) {
    %c0_i32 = arith.constant 0 : i32
    %c0_i32_0 = arith.constant 0 : i32
    %c0_i32_1 = arith.constant 0 : i32
    return %c0_i32, %c0_i32_0 : i32, i32
  }
  func.func @transform_22(%arg0: i32, %arg1: i32) -> (i32, i32) {
    %c0_i32 = arith.constant 0 : i32
    %c0_i32_0 = arith.constant 0 : i32
    %c0_i32_1 = arith.constant 0 : i32
    return %c0_i32, %c0_i32_0 : i32, i32
  }
  func.func @transform_23(%arg0: i32, %arg1: i32) -> (i32, i32) {
    %c0_i32 = arith.constant 0 : i32
    %c0_i32_0 = arith.constant 0 : i32
    %c0_i32_1 = arith.constant 0 : i32
    return %c0_i32, %c0_i32_0 : i32, i32
  }
  func.func @transform_24(%arg0: i32, %arg1: i32) -> (i32, i32) {
    %c0_i32 = arith.constant 0 : i32
    %c0_i32_0 = arith.constant 0 : i32
    %c0_i32_1 = arith.constant 0 : i32
    return %c0_i32, %c0_i32_0 : i32, i32
  }
  func.func @transform_25(%arg0: i32, %arg1: i32) -> (i32, i32) {
    %c0_i32 = arith.constant 0 : i32
    %c0_i32_0 = arith.constant 0 : i32
    %c0_i32_1 = arith.constant 0 : i32
    return %c0_i32, %c0_i32_0 : i32, i32
  }
  func.func @transform_26(%arg0: i32, %arg1: i32) -> (i32, i32) {
    %c0_i32 = arith.constant 0 : i32
    %c0_i32_0 = arith.constant 0 : i32
    %c0_i32_1 = arith.constant 0 : i32
    return %c0_i32, %c0_i32_0 : i32, i32
  }
  func.func @transform_27(%arg0: i32, %arg1: i32) -> (i32, i32) {
    %c0_i32 = arith.constant 0 : i32
    %c0_i32_0 = arith.constant 0 : i32
    %c0_i32_1 = arith.constant 0 : i32
    return %c0_i32, %c0_i32_0 : i32, i32
  }
  func.func @transform_28(%arg0: i32, %arg1: i32) -> (i32, i32) {
    %c0_i32 = arith.constant 0 : i32
    %c0_i32_0 = arith.constant 0 : i32
    %c0_i32_1 = arith.constant 0 : i32
    return %c0_i32, %c0_i32_0 : i32, i32
  }
  func.func @transform_29(%arg0: i32, %arg1: i32) -> (i32, i32) {
    %c0_i32 = arith.constant 0 : i32
    %c0_i32_0 = arith.constant 0 : i32
    %c0_i32_1 = arith.constant 0 : i32
    return %c0_i32, %c0_i32_0 : i32, i32
  }
  func.func @transform_30(%arg0: i32, %arg1: i32) -> (i32, i32) {
    %c1_i32 = arith.constant 1 : i32
    %0 = arith.muli %arg0, %c1_i32 : i32
    %1 = arith.addi %0, %arg1 : i32
    %c0_i32 = arith.constant 0 : i32
    %c0_i32_0 = arith.constant 0 : i32
    return %1, %c0_i32 : i32, i32
  }
}

module attributes {stable_mosaic.version = 11 : i64} {
  func.func @_linear_kernel(%arg0: i32, %arg1: i32, %arg2: memref<8x32xf32, #tpu.memory_space<vmem>>, %arg3: memref<32x50xbf16, #tpu.memory_space<vmem>>, %arg4: memref<1x50xf32, #tpu.memory_space<vmem>>, %arg5: memref<8x50xf32, #tpu.memory_space<vmem>>) attributes {dimension_semantics = [#tpu.dimension_semantics<parallel>, #tpu.dimension_semantics<parallel>], iteration_bounds = array<i64: 2, 1>, scalar_prefetch = 0 : i64, scratch_operands = 0 : i64, tpu.core_type = #tpu.core_type<tc>, window_params = [{transform_indices = @transform_0, window_bounds = array<i64: 8, 32>}, {transform_indices = @transform_1, window_bounds = array<i64: 32, 50>}, {transform_indices = @transform_2, window_bounds = array<i64: 1, 50>}, {transform_indices = @transform_3, window_bounds = array<i64: 8, 50>}]} {
    %c0 = arith.constant 0 : index
    %c0_0 = arith.constant 0 : index
    %0 = vector.load %arg2[%c0, %c0_0] : memref<8x32xf32, #tpu.memory_space<vmem>>, vector<8x32xf32>
    %c0_1 = arith.constant 0 : index
    %c0_2 = arith.constant 0 : index
    %1 = vector.load %arg3[%c0_1, %c0_2] : memref<32x50xbf16, #tpu.memory_space<vmem>>, vector<32x50xbf16>
    %2 = arith.truncf %0 : vector<8x32xf32> to vector<8x32xbf16>
    %cst = arith.constant dense<0.000000e+00> : vector<8x50xf32>
    %3 = tpu.matmul %2, %1, %cst {dimension_numbers = #tpu.dot_dimension_numbers<[1], [0], [0], [1], [0, 0, 1, 1], [], []>} : vector<8x32xbf16>, vector<32x50xbf16>, vector<8x50xf32> -> vector<8x50xf32>
    %c0_3 = arith.constant 0 : index
    %c0_4 = arith.constant 0 : index
    %4 = vector.load %arg4[%c0_3, %c0_4] : memref<1x50xf32, #tpu.memory_space<vmem>>, vector<1x50xf32>
    %5 = vector.broadcast %4 : vector<1x50xf32> to vector<8x50xf32>
    %6 = arith.addf %3, %5 : vector<8x50xf32>
    %c0_5 = arith.constant 0 : index
    %c0_6 = arith.constant 0 : index
    %7 = vector.load %arg5[%c0_5, %c0_6] : memref<8x50xf32, #tpu.memory_space<vmem>>, vector<8x50xf32>
    tpu.vector_store %arg5[%c0_5, %c0_6], %6 {strides = array<i32>} : memref<8x50xf32, #tpu.memory_space<vmem>>, vector<8x50xf32>,
    return
  }
  func.func @transform_0(%arg0: i32, %arg1: i32) -> (i32, i32) {
    %c0_i32 = arith.constant 0 : i32
    %c0_i32_0 = arith.constant 0 : i32
    return %arg0, %c0_i32 : i32, i32
  }
  func.func @transform_1(%arg0: i32, %arg1: i32) -> (i32, i32) {
    %c0_i32 = arith.constant 0 : i32
    %c0_i32_0 = arith.constant 0 : i32
    return %c0_i32, %arg1 : i32, i32
  }
  func.func @transform_2(%arg0: i32, %arg1: i32) -> (i32, i32) {
    %c0_i32 = arith.constant 0 : i32
    %c0_i32_0 = arith.constant 0 : i32
    return %c0_i32, %arg1 : i32, i32
  }
  func.func @transform_3(%arg0: i32, %arg1: i32) -> (i32, i32) {
    %c0_i32 = arith.constant 0 : i32
    return %arg0, %arg1 : i32, i32
  }
}

</mosaic_0001>

<bundles_post_ra>
// kernel: translator_forward.7
= control target key start
LH: loop header
LB: loop body
LE: loop exit
PB: predicated region body
PF: predicated region fallthrough
CT: control target
= control target key end

     0   :  { %s3756_s0 = inlined_call_operand.vmem [shape: f32[16,32], index: 0, kind: input, shape index: {}, may-alias: {0,1}]   ;;  %s3757_s1 = inlined_call_operand.vmem [shape: f32[16,32], index: 1, kind: input, shape index: {}, may-alias: {0,1}]   ;;  %s3758_s2 = inlined_call_operand.vmem [shape: f32[16,32], index: 2, kind: input, shape index: {}]   ;;  %s3759_s3 = inlined_call_operand.vmem [shape: f32[8,8], index: 3, kind: input, shape index: {}]   ;;  %s3760_s4 = inlined_call_operand.vmem [shape: f32[2,1,8], index: 4, kind: input, shape index: {}]   ;;  %s3761_s5 = inlined_call_operand.vmem [shape: f32[2,1,8], index: 5, kind: input, shape index: {}]   ;;  %s3762_s6 = inlined_call_operand.vmem [shape: bf16[32,32], index: 6, kind: input, shape index: {}]   ;;  %s3763_s7 = inlined_call_operand.hbm [shape: f32[1,32], index: 7, kind: input, shape index: {}]   ;;  %s3764_s8 = inlined_call_operand.vmem [shape: bf16[32,64], index: 8, kind: input, shape index: {}]   ;;  %s3765_s9 = inlined_call_operand.hbm [shape: f32[1,64], index: 9, kind: input, shape index: {}]   ;;  %s3766_s10 = inlined_call_operand.vmem [shape: bf16[32,32], index: 10, kind: input, shape index: {}]   ;;  %s3767_s11 = inlined_call_operand.hbm [shape: f32[1,32], index: 11, kind: input, shape index: {}]   ;;  %s3768_s12 = inlined_call_operand.hbm [shape: f32[1,32], index: 12, kind: input, shape index: {}]   ;;  %s3769_s13 = inlined_call_operand.hbm [shape: f32[1,32], index: 13, kind: input, shape index: {}]   ;;  %s3770_s14 = inlined_call_operand.vmem [shape: bf16[32,32], index: 14, kind: input, shape index: {}]   ;;  %s3771_s15 = inlined_call_operand.hbm [shape: f32[1,32], index: 15, kind: input, shape index: {}]   ;;  %s3772_s16 = inlined_call_operand.vmem [shape: bf16[32,64], index: 16, kind: input, shape index: {}]   ;;  %s3773_s17 = inlined_call_operand.hbm [shape: f32[1,64], index: 17, kind: input, shape index: {}]   ;;  %s3774_s18 = inlined_call_operand.vmem [shape: bf16[32,32], index: 18, kind: input, shape index: {}]   ;;  %s3775_s19 = inlined_call_operand.hbm [shape: f32[1,32], index: 19, kind: input, shape index: {}]   ;;  %s3776_s20 = inlined_call_operand.hbm [shape: f32[1,32], index: 20, kind: input, shape index: {}]   ;;  %s3777_s21 = inlined_call_operand.hbm [shape: f32[1,32], index: 21, kind: input, shape index: {}]   ;;  %s3778_s22 = inlined_call_operand.vmem [shape: bf16[32,64], index: 22, kind: input, shape index: {}]   ;;  %s3779_s23 = inlined_call_operand.hbm [shape: f32[1,64], index: 23, kind: input, shape index: {}]   ;;  %s3780_s24 = inlined_call_operand.vmem [shape: bf16[64,32], index: 24, kind: input, shape index: {}]   ;;  %s3781_s25 = inlined_call_operand.hbm [shape: f32[1,32], index: 25, kind: input, shape index: {}]   ;;  %s3782_s26 = inlined_call_operand.hbm [shape: f32[1,32], index: 26, kind: input, shape index: {}]   ;;  %s3783_s27 = inlined_call_operand.hbm [shape: f32[1,32], index: 27, kind: input, shape index: {}]   ;;  %s3784_s28 = inlined_call_operand.vmem [shape: f32[16,32], index: 28, kind: output, shape index: {}]  }
   0x1   :  { %3796 = sst [smem:[#allocation33_spill]] %s3756_s0 }
   0x2   :  { %3797 = sst [smem:[#allocation34_spill]] %s3757_s1 }
   0x3   :  { %3798 = sst [smem:[#allocation35_spill]] %s3758_s2 }
   0x4   :  { %3799 = sst [smem:[#allocation36_spill]] %s3759_s3 }
   0x5   :  { %3800 = sst [smem:[#allocation37_spill]] %s3760_s4 }
   0x6   :  { %3801 = sst [smem:[#allocation38_spill]] %s3761_s5 }
   0x7   :  { %3802 = sst [smem:[#allocation39_spill]] %s3762_s6 }
   0x8   :  { %3803 = sst [smem:[#allocation40_spill]] %s3763_s7 }
   0x9   :  { %3804 = sst [smem:[#allocation41_spill]] %s3764_s8 }
   0xa   :  { %3805 = sst [smem:[#allocation42_spill]] %s3765_s9 }
   0xb   :  { %3806 = sst [smem:[#allocation43_spill]] %s3766_s10 }
   0xc   :  { %3807 = sst [smem:[#allocation44_spill]] %s3767_s11 }
   0xd   :  { %3808 = sst [smem:[#allocation45_spill]] %s3768_s12 }
   0xe   :  { %3809 = sst [smem:[#allocation46_spill]] %s3769_s13 }
   0xf   :  { %3810 = sst [smem:[#allocation47_spill]] %s3771_s15 }
  0x10   :  { %3811 = sst [smem:[#allocation48_spill]] %s3773_s17 }
  0x11   :  { %3812 = sst [smem:[#allocation49_spill]] %s3775_s19 }
  0x12   :  { %3813 = sst [smem:[#allocation50_spill]] %s3780_s24 }
  0x13   :  { %3814 = sst [smem:[#allocation51_spill]] %s3784_s28 }
  0x14   :  { %33 = vsyncpa [#allocation3], 0 }
  0x15   :  { %34 = vsyncpa [#allocation5], 0 }
  0x16   :  { %35 = vsyncpa [#allocation8], 0 }
  0x17   :  { %36 = vsyncpa [#allocation11], 0 }
  0x18   :  { %37 = vsyncpa [#allocation14], 0 }
  0x19   :  { %38 = vsyncpa [#allocation17], 0 }
  0x1a   :  { %39 = vsyncpa [#allocation20], 0 }
  0x1b   :  { %40 = vsyncpa [#allocation23], 0  ;;  %s3384_s8 = smov 0   ;;  %s3386_s5 = smov 0  }
  0x1c   :  { %s3388_s9 = smov 0  }
  0x1d LB: > { %3815 = sst [smem:[#allocation32_spill]] %s3212_s9  ;;  %s2352_s0 = sadd.s32 4294967295, %s3212_s9   ;;  %s3212_s9 = sphi %s3388_s9, %s46_s9   ;;  %s3208_s5 = sphi %s3386_s5, %s3846_s5   ;;  %s3204_s8 = sphi %s3384_s8, %s3845_s8  }
  0x1e   : > { %s3816_s6 = sld [smem:[#allocation42_spill]]  ;;  %p2354_p0 = scmp.ge.s32.totalorder %s3212_s9, 1 }
  0x1f   : > { %p711_p1 = scmp.lt.s32.totalorder %s3212_s9, 3  ;;  %p3405_p2 = scmp.eq.s32.totalorder %s2352_s0, 0 }
  0x20   : > { %s3214_s2 = smov [#allocation4]   ;;  %s3819_s4 = sld [smem:[#allocation45_spill]] }
  0x21   : > { %p3409_p3 = pnand %p2354_p0, %p711_p1  ;;  %s750_s7 = sshll.u32 %s3214_s2, 4  ;;  %s751_s7 = int_to_ptr.vmem [resolvable:$true] %s750_s7 }
  0x22   : > { %s3820_s15 = sld [smem:[#allocation47_spill]]  ;;  %s3215_s2 = smov [#allocation7]  }
  0x23   : > { %p2562_p4 = pneg %p3409_p3  ;;  %s777_s28 = sshll.u32 %s3215_s2, 4  ;;  %s778_s28 = int_to_ptr.vmem [resolvable:$true] %s777_s28 }
  0x24   : > { %s748_s10 = sshll.u32 %s3816_s6, 4  ;;  %s3216_s12 = smov [#allocation10]   ;;  %s749_s10 = int_to_ptr.hbm [resolvable:$true] %s748_s10 }
  0x25   : > { %p3423_p5 = pnand %p3405_p2, %p2562_p4  ;;  %s804_s1 = sshll.u32 %s3216_s12, 4  ;;  %s805_s1 = int_to_ptr.vmem [resolvable:$true] %s804_s1 }
  0x26   : > { %s775_s30 = sshll.u32 %s3819_s4, 4  ;;  %s3822_s19 = sld [smem:[#allocation49_spill]]  ;;  %s776_s30 = int_to_ptr.hbm [resolvable:$true] %s775_s30 }
  0x27   : > { %2568 = dma.hbm_to_vmem [thread:$0]  (!%p3423_p5), %s749_s10, 16, %s751_s7, [#allocation5]  }
  0x28   : > { %s802_s0 = sshll.u32 %s3820_s15, 4  ;;  %s856_s24 = sshll.u32 %s3777_s21, 4  ;;  %s803_s0 = int_to_ptr.hbm [resolvable:$true] %s802_s0  ;;  %s857_s24 = int_to_ptr.hbm [resolvable:$true] %s856_s24 }
  0x29   : > { %2574 = dma.hbm_to_vmem [thread:$0]  (!%p3423_p5), %s776_s30, 16, %s778_s28, [#allocation8]  }
  0x2a   : > { %2580 = dma.hbm_to_vmem [thread:$0]  (!%p3423_p5), %s803_s0, 16, %s805_s1, [#allocation11]  }
  0x2b   : > { %s3217_s10 = smov [#allocation13]   ;;  %s3218_s28 = smov [#allocation16]  }
  0x2c   : > { %s832_s6 = sshll.u32 %s3822_s19, 4  ;;  %s834_s7 = sshll.u32 %s3217_s10, 4  ;;  %s833_s6 = int_to_ptr.hbm [resolvable:$true] %s832_s6  ;;  %s835_s7 = int_to_ptr.vmem [resolvable:$true] %s834_s7 }
  0x2d   : > { %2586 = dma.hbm_to_vmem [thread:$0]  (!%p3423_p5), %s833_s6, 16, %s835_s7, [#allocation14]  }
  0x2e   : > { %s858_s30 = sshll.u32 %s3218_s28, 4  ;;  %s886_s3 = sshll.u32 %s3781_s25, 4  ;;  %s859_s30 = int_to_ptr.vmem [resolvable:$true] %s858_s30  ;;  %s887_s3 = int_to_ptr.hbm [resolvable:$true] %s886_s3 }
  0x2f   : > { %2592 = dma.hbm_to_vmem [thread:$0]  (!%p3423_p5), %s857_s24, 16, %s859_s30, [#allocation17]  }
  0x30   : > { %s3219_s15 = smov [#allocation19]   ;;  %s58_s1 = sadd.s32 1, %s3208_s5 }
  0x31   : > { %s888_s0 = sshll.u32 %s3219_s15, 4  ;;  %p60_p6 = scmp.ge.s32.totalorder %s58_s1, 2  ;;  %s889_s0 = int_to_ptr.vmem [resolvable:$true] %s888_s0 }
  0x32   : > { %2598 = dma.hbm_to_vmem [thread:$0]  (!%p3423_p5), %s887_s3, 16, %s889_s0, [#allocation20]  }
  0x33   : > { %s3823_s10 = sld [smem:[#allocation40_spill]]  ;;  %s3848_s1 = smov (%p60_p6, %s58_s1), 0 }
  0x34   : > { %s3220_s28 = smov [#allocation2]   ;;  %s3824_s24 = sld [smem:[#allocation44_spill]] }
  0x35   : > { %s735_s12 = sshll.u32 %s3220_s28, 4  ;;  %s3825_s13 = sld [smem:[#allocation46_spill]]  ;;  %s736_s12 = int_to_ptr.vmem [resolvable:$true] %s735_s12 }
  0x36   : > { %s3221_s6 = smov [#allocation6]   ;;  %s3826_s17 = sld [smem:[#allocation48_spill]] }
  0x37   : > { %s765_s2 = sshll.u32 %s3221_s6, 4  ;;  %s844_s3 = sshll.u32 %s3776_s20, 4  ;;  %s766_s2 = int_to_ptr.vmem [resolvable:$true] %s765_s2  ;;  %s845_s3 = int_to_ptr.hbm [resolvable:$true] %s844_s3 }
  0x38   : > { %s3223_s15 = smov [#allocation12]   ;;  %s871_s4 = sshll.u32 %s3779_s23, 4  ;;  %s872_s4 = int_to_ptr.hbm [resolvable:$true] %s871_s4 }
  0x39   : > { %s733_s7 = sshll.u32 %s3823_s10, 4  ;;  %s3222_s10 = smov [#allocation9]   ;;  %s734_s7 = int_to_ptr.hbm [resolvable:$true] %s733_s7 }
  0x3a   : > { %s763_s30 = sshll.u32 %s3824_s24, 4  ;;  %s789_s28 = sshll.u32 %s3222_s10, 4  ;;  %s764_s30 = int_to_ptr.hbm [resolvable:$true] %s763_s30  ;;  %s790_s28 = int_to_ptr.vmem [resolvable:$true] %s789_s28 }
  0x3b   : > { %2565 = dma.hbm_to_vmem [thread:$0]  (!%p3423_p5), %s734_s7, 16, %s736_s12, [#allocation3]  }
  0x3c   : > { %s787_s0 = sshll.u32 %s3825_s13, 4  ;;  %s817_s24 = sshll.u32 %s3826_s17, 4  ;;  %s788_s0 = int_to_ptr.hbm [resolvable:$true] %s787_s0  ;;  %s818_s24 = int_to_ptr.hbm [resolvable:$true] %s817_s24 }
  0x3d   : > { %2571 = dma.hbm_to_vmem [thread:$0]  (!%p3423_p5), %s764_s30, 16, %s766_s2, [#allocation5]  }
  0x3e   : > { %2577 = dma.hbm_to_vmem [thread:$0]  (!%p3423_p5), %s788_s0, 16, %s790_s28, [#allocation8]  }
  0x3f   : > { %s819_s6 = sshll.u32 %s3223_s15, 4  ;;  %s3224_s30 = smov [#allocation15]   ;;  %s820_s6 = int_to_ptr.vmem [resolvable:$true] %s819_s6 }
  0x40   : > { %2583 = dma.hbm_to_vmem [thread:$0]  (!%p3423_p5), %s818_s24, 16, %s820_s6, [#allocation11]  }
  0x41   : > { %s846_s2 = sshll.u32 %s3224_s30, 4  ;;  %s898_s7 = sshll.u32 %s3782_s26, 4  ;;  %s847_s2 = int_to_ptr.vmem [resolvable:$true] %s846_s2  ;;  %s899_s7 = int_to_ptr.hbm [resolvable:$true] %s898_s7 }
  0x42   : > { %2589 = dma.hbm_to_vmem [thread:$0]  (!%p3423_p5), %s845_s3, 16, %s847_s2, [#allocation14]  }
  0x43   : > { %s3225_s12 = smov [#allocation18]   ;;  %s3226_s24 = smov [#allocation21]  }
  0x44   : > { %s873_s15 = sshll.u32 %s3225_s12, 4  ;;  %s900_s6 = sshll.u32 %s3226_s24, 4  ;;  %s874_s15 = int_to_ptr.vmem [resolvable:$true] %s873_s15  ;;  %s901_s6 = int_to_ptr.vmem [resolvable:$true] %s900_s6 }
  0x45   : > { %2595 = dma.hbm_to_vmem [thread:$0]  (!%p3423_p5), %s872_s4, 16, %s874_s15, [#allocation17]  }
  0x46   : > { %s910_s19 = sshll.u32 %s3783_s27, 4  ;;  %s3227_s3 = smov [#allocation22]   ;;  %s911_s19 = int_to_ptr.hbm [resolvable:$true] %s910_s19 }
  0x47   : > { %2601 = dma.hbm_to_vmem [thread:$0]  (!%p3423_p5), %s899_s7, 16, %s901_s6, [#allocation20]  }
  0x48   : > { %s912_s2 = sshll.u32 %s3227_s3, 4  ;;  %960 = sbr.rel (%p3409_p3) target bundleno = 3568 (0xdf0), region = 132  ;;  %s913_s2 = int_to_ptr.vmem [resolvable:$true] %s912_s2 }
  0x49   : > { %2604 = dma.hbm_to_vmem [thread:$0]  (!%p3423_p5), %s911_s19, 16, %s913_s2, [#allocation23]  }
  0x4d   : > { %3171 = dma.done.wait (%p3405_p2), [#allocation3], 16  }
  0x4e   : > { %3173 = vsyncadd (%p3405_p2), [#allocation3], 4294967280 }
  0x4f   : > { %3175 = dma.done.wait (%p3405_p2), [#allocation5], 32  }
  0x50   : > { %3177 = vsyncadd (%p3405_p2), [#allocation5], 4294967264 }
  0x51   : > { %3179 = dma.done.wait (%p3405_p2), [#allocation8], 32  }
  0x52   : > { %3181 = vsyncadd (%p3405_p2), [#allocation8], 4294967264 }
  0x53   : > { %3183 = dma.done.wait (%p3405_p2), [#allocation11], 32  }
  0x54   : > { %3185 = vsyncadd (%p3405_p2), [#allocation11], 4294967264 }
  0x55   : > { %3187 = dma.done.wait (%p3405_p2), [#allocation14], 32  }
  0x56   : > { %3189 = vsyncadd (%p3405_p2), [#allocation14], 4294967264 }
  0x57   : > { %3191 = dma.done.wait (%p3405_p2), [#allocation17], 32  }
  0x58   : > { %3193 = vsyncadd (%p3405_p2), [#allocation17], 4294967264 }
  0x59   : > { %3195 = dma.done.wait (%p3405_p2), [#allocation20], 32  }
  0x5a   : > { %3197 = vsyncadd (%p3405_p2), [#allocation20], 4294967264 }
  0x5b   : > { %3199 = dma.done.wait (%p3405_p2), [#allocation23], 16  }
  0x5c   : > { %3201 = vsyncadd (%p3405_p2), [#allocation23], 4294967280  ;;  %p1119_p7 = scmp.lt.s32.totalorder %s3204_s8, 1  ;;  %s3827_s0 = sld [smem:[#allocation33_spill]]  ;;  %vm1190_vm0 = vcmask 261120   ;;  %vm1242_vm1 = vcmask 64512  }
  0x5d   : > { %s3828_s15 = sld [smem:[#allocation34_spill]]  ;;  %v2682_v8 = vld [vmem:[#allocation2] ss:$0 sm:$0xff]  ;;  %v2683_v9 = vld [vmem:[#allocation4] ss:$0 sm:$0xff]  ;;  %s3228_s13 = smov 96  }
  0x5e   : > { %s3850_s8 = smov (!%p1119_p7, %s3204_s8), 1  ;;  %s3829_s30 = sld [smem:[#allocation39_spill]]  ;;  %vm1282_vm2 = vcmask 1043456   ;;  %vm1492_vm3 = vcmask 130048   ;;  %vm1495_vm4 = vcmask 195584   ;;  %vm2045_vm12 = vcmask 523264  }
  0x5f   : > { %s3530_s9 = sshll.u32 %s3850_s8, 3  ;;  %s3830_s3 = sld [smem:[#allocation41_spill]] }
  0x60   : > { %s3229_s17 = smov 120   ;;  %s3230_s12 = smov 112  }
  0x61   : > { %s3832_s6 = sld [smem:[#allocation36_spill]]  ;;  %s3794_s10 = smov 88  }
  0x62   : > { %s1122_s28 = scalar_lea.vmem %s3827_s0, %s3530_s9  ;;  %s3795_s19 = smov 80  }
  0x63   : > { %s1127_s24 = scalar_lea.vmem %s3828_s15, %s3530_s9  ;;  %v3552_v4 = vld [vmem:[%s1122_s28] sm:$0xff]  ;;  %s3831_s28 = sld [smem:[#allocation37_spill]] }
  0x64   : > { %v2489_v0 = vld [vmem:[%s3829_s30 + $0x8] sm:$0xff]  ;;  %v2488_v2 = vld [vmem:[%s3829_s30] sm:$0xff]  ;;  %v1174_v6 = vpack.c.bf16 %v3552_v4, %v3552_v4  ;;  %s3231_s15 = smov 104   ;;  %s3793_s2 = smov 72  }
  0x65   : > { %v2491_v1 = vld [vmem:[%s3830_s3 + $0x8] sm:$0xff]  ;;  %v2490_v3 = vld [vmem:[%s3830_s3] sm:$0xff]  ;;  %1200 = vmatpush.bf16.msra.mxu0 %v2489_v0  ;;  %s3792_s29 = smov 8   ;;  %s3791_s4 = smov 16  }
  0x66   : > { %1232 = vmatpush.bf16.msra.mxu1 %v2491_v1  ;;  %v1156_v5 = vld [vmem:[%s1127_s24] sm:$0xff]  ;;  %s3790_s0 = smov 24   ;;  %s3833_s24 = sld [smem:[#allocation43_spill]] }
  0x67   : > { %v1207_v7 = vpack.c.bf16 %v1156_v5, %v1156_v5  ;;  %v1150_v32 = vld [vmem:[%s3832_s6] sm:$0xff] }
  0x69   : > { %1201 = vmatpush.bf16.msra.mxu0 %v2488_v2  ;;  %s1138_s7 = scalar_lea.vmem %s3831_s28, %s3850_s8 }
  0x6a   : > { %1233 = vmatpush.bf16.msra.mxu1 %v2490_v3  ;;  %v2684_v31 = vld [vmem:[%s1138_s7] ss:$0 sm:$0xff]  ;;  %s3843_s7 = sld [smem:[#allocation51_spill]] }
  0x6b   : > { %v1155_v34 = vadd.f32 %v2684_v31, %v1150_v32 }
  0x6c   : > { %2398 = vmatmul.msk.bf16.vlgmr.msra.gmra.mxu0 %vm1190_vm0, %v1174_v6 }
  0x6d   : > { %2407 = vmatmul.msk.bf16.vlgmr.msra.gmra.mxu1 %vm1190_vm0, %v1207_v7 }
  0xe9   : > { %v1203_v10 = vpop.f32.mrf.mxu0 }
  0xea   : > { %v1235_v11 = vpop.f32.mrf.mxu1  ;;  %v1204_v12 = vadd.f32 %v2682_v8, %v1203_v10 }
  0xeb   : > { %v1236_v13 = vadd.f32 %v2683_v9, %v1235_v11 }
  0xec   : > { %v1239_v14 = vmul.f32 0.35355338, %v1204_v12 }
  0xed   : > { %v1241_v15 = vpack.c.bf16 %v1236_v13, %v1236_v13 }
  0xee   : > { %v1240_v16 = vpack.c.bf16 %v1239_v14, %v1239_v14 }
  0xef   : > { %v1275_v17 = vunpack.c.l.b16 %v1241_v15  ;;  %v1247_v18 = vsel %vm1242_vm1, %v1241_v15, 0 }
  0xf0   : > { %1256 = vmatpush.bf16.xpose.msra.mxu2 %v1247_v18  ;;  %v1301_v19 = vunpack.c.l.b16 %v1240_v16 }
  0xf1   : > { %v3559_v20 = vpack.c.b16 %v1275_v17, %v1275_v17  ;;  %v1205_v21 = vpop.f32.mrf.mxu0 }
  0xf2   : > { %v1237_v22 = vpop.f32.mrf.mxu1  ;;  %v1302_v23 = vpack.c.b16 %v1301_v19, %v1301_v19 }
  0xf3   : > { %1277 = vrot.lane.b32.xlu1 %v3559_v20, %s3228_s13 }
  0xf4   : > { %1303 = vrot.lane.b32.xlu2 %v1302_v23, %s3229_s17 }
  0xf7   : > { %2408 = vmatmul.msk.bf16.vlgmr.msra.gmra.mxu2 %vm1242_vm1, %v1240_v16 }
  0xfb   : > { %1305 = vrot.lane.b32.xlu1 %v3559_v20, %s3229_s17 }
  0xfc   : > { %1362 = vrot.lane.b32.xlu2 %v3559_v20, %s3230_s12 }
 0x103   : > { %1360 = vrot.lane.b32.xlu1 %v1302_v23, %s3230_s12 }
 0x104   : > { %1417 = vrot.lane.b32.xlu2 %v1302_v23, %s3231_s15 }
 0x14e   : > { %v1304_v24 = vpop.permute.xlu2 %1303 }
 0x156   : > { %v1363_v25 = vpop.permute.xlu2 %1362 }
 0x157   : > { %v1368_v26 = vsel %vm1242_vm1, %v1363_v25, 0 }
 0x158   : > { %1377 = vmatpush.bf16.xpose.msrb.mxu1 %v1368_v26 }
 0x15e   : > { %v1418_v48 = vpop.permute.xlu2 %1417 }
 0x165   : > { %v1278_v27 = vpop.permute.xlu1 %1277 }
 0x166   : > { %v1284_v28 = vsel %vm1282_vm2, %v1278_v27, 0 }
 0x167   : > { %1293 = vmatpush.bf16.msra.mxu3 %v1284_v28 }
 0x16d   : > { %v1306_v29 = vpop.permute.xlu1 %1305 }
 0x16e   : > { %v1311_v30 = vsel %vm1242_vm1, %v1306_v29, 0 }
 0x16f   : > { %1320 = vmatpush.bf16.xpose.msrb.mxu3 %v1311_v30 }
 0x175   : > { %v1361_v33 = vpop.permute.xlu1 %1360 }
 0x176   : > { %2412 = vmatmul.msk.bf16.vlgmr.msrb.gmra.mxu1 %vm1242_vm1, %v1361_v33 }
 0x17a   : > { %v1258_v35 = vpop.f32.mrf.mxu2 }
 0x17b   : > { %v1259_v36 = vadd.f32 %v1258_v35, %v1155_v34 }
 0x17d   : > { %v1262_v37 = vsel %vm1242_vm1, %v1259_v36, -inf }
 0x17e   : > { %1263 = vmax.xlane.f32.xlu0 %v1262_v37 }
 0x182   : > { %v1260_v38 = vpop.f32.mrf.mxu2 }
 0x1f1   : > { %v1264_v39 = vpop.xlane.xlu0 %1263 }
 0x1f2   : > { %v1265_v40 = vsub.f32 %v1259_v36, %v1264_v39 }
 0x1f3   : > { %v1379_v41 = vpop.f32.mrf.mxu1 }
 0x1f4   : > { %v1266_v42 = vmul.f32 1.442695, %v1265_v40  ;;  %v1380_v43 = vadd.f32 %v1379_v41, %v1155_v34 }
 0x1f6   : > { %2698 = vpow2.f32 %v1266_v42  ;;  %v1383_v44 = vsel %vm1242_vm1, %v1380_v43, -inf }
 0x1f7   : > { %1384 = vmax.xlane.f32.xlu2 %v1383_v44 }
 0x1fb   : > { %v1381_v45 = vpop.f32.mrf.mxu1 }
 0x1fc   : > { %v2699_v46 = vpop.eup %2698 }
 0x1fd   : > { %v1268_v47 = vsel %vm1242_vm1, %v2699_v46, 0.0 }
 0x1fe   : > { %1269 = vadd.xlane.f32.xlu0 %v1268_v47 }
 0x212   : > { %1419 = vrot.lane.b32.xlu0 %v3559_v20, %s3231_s15 }
 0x26a   : > { %v1385_v49 = vpop.xlane.xlu2 %1384 }
 0x26b   : > { %v1386_v50 = vsub.f32 %v1380_v43, %v1385_v49 }
 0x26d   : > { %v1387_v51 = vmul.f32 1.442695, %v1386_v50  ;;  %v2493_v50 = vld [vmem:[%s3833_s24 + $0x8] sm:$0xff] }
 0x26e   : > { %1521 = vmatpush.bf16.msra.mxu1 %v2493_v50 }
 0x26f   : > { %2700 = vpow2.f32 %v1387_v51  ;;  %v2492_v51 = vld [vmem:[%s3833_s24] sm:$0xff] }
 0x271   : > { %v1270_v52 = vpop.xlane.xlu0 %1269 }
 0x272   : > { %2702 = vrcp.f32 %v1270_v52  ;;  %1522 = vmatpush.bf16.msra.mxu1 %v2492_v51 }
 0x275   : > { %v2701_v53 = vpop.eup %2700 }
 0x276   : > { %v1389_v54 = vsel %vm1242_vm1, %v2701_v53, 0.0 }
 0x277   : > { %1390 = vadd.xlane.f32.xlu2 %v1389_v54 }
 0x278   : > { %v2703_v55 = vpop.eup %2702 }
 0x279   : > { %v1272_v56 = vmul.f32 %v2703_v55, %v2699_v46 }
 0x27b   : > { %v1273_v57 = vpack.c.bf16 %v1272_v56, %v1272_v56 }
 0x27d   : > { %2409 = vmatmul.msk.bf16.vlgmr.msra.gmra.mxu3 %vm1242_vm1, %v1273_v57 }
 0x284   : > { %v1420_v58 = vpop.permute.xlu0 %1419 }
 0x285   : > { %v1425_v59 = vsel %vm1242_vm1, %v1420_v58, 0 }
 0x286   : > { %1434 = vmatpush.bf16.xpose.msra.mxu3 %v1425_v59  ;;  %v2685_v59 = vld [vmem:[#allocation6] ss:$0 sm:$0xff] }
 0x28d   : > { %2410 = vmatmul.msk.bf16.vlgmr.msrb.gmra.mxu3 %vm1242_vm1, %v1304_v24 }
 0x29d   : > { %2414 = vmatmul.msk.bf16.vlgmr.msra.gmra.mxu3 %vm1242_vm1, %v1418_v48 }
 0x2ea   : > { %v1391_v19 = vpop.xlane.xlu2 %1390 }
 0x300   : > { %v3592_v60 = vpop.f32.mrf.mxu3 }
 0x308   : > { %v1297_v61 = vpop.f32.mrf.mxu3 }
 0x310   : > { %v1322_v62 = vpop.f32.mrf.mxu3 }
 0x311   : > { %v1323_v63 = vadd.f32 %v1322_v62, %v1155_v34 }
 0x313   : > { %v1326_v0 = vsel %vm1242_vm1, %v1323_v63, -inf }
 0x314   : > { %1327 = vmax.xlane.f32.xlu1 %v1326_v0 }
 0x318   : > { %v1324_v1 = vpop.f32.mrf.mxu3 }
 0x319   : > { %v3238_v1 = vmov 32.0  }
 0x320   : > { %v1436_v2 = vpop.f32.mrf.mxu3 }
 0x321   : > { %v1437_v3 = vadd.f32 %v1436_v2, %v1155_v34 }
 0x323   : > { %v1440_v5 = vsel %vm1242_vm1, %v1437_v3, -inf }
 0x324   : > { %1441 = vmax.xlane.f32.xlu0 %v1440_v5 }
 0x328   : > { %v1438_v6 = vpop.f32.mrf.mxu3 }
 0x32d   : > { %1338 = vrot.lane.b32.xlu1 %v3559_v20, %s3794_s10  ;;  %s1146_s10 = scalar_lea.vmem %s3843_s7, %s3530_s9 }
 0x387   : > { %v1328_v7 = vpop.xlane.xlu1 %1327 }
 0x388   : > { %v1329_v8 = vsub.f32 %v1323_v63, %v1328_v7 }
 0x38a   : > { %v1330_v9 = vmul.f32 1.442695, %v1329_v8 }
 0x38c   : > { %2704 = vpow2.f32 %v1330_v9 }
 0x392   : > { %v2705_v10 = vpop.eup %2704 }
 0x393   : > { %v1332_v11 = vsel %vm1242_vm1, %v2705_v10, 0.0 }
 0x394   : > { %1333 = vadd.xlane.f32.xlu2 %v1332_v11 }
 0x397   : > { %v1442_v12 = vpop.xlane.xlu0 %1441 }
 0x398   : > { %v1443_v13 = vsub.f32 %v1437_v3, %v1442_v12 }
 0x39a   : > { %v1444_v14 = vmul.f32 1.442695, %v1443_v13  ;;  %v2497_v13 = vld [vmem:[%s3772_s16 + $0x8] sm:$0xff] }
 0x39b   : > { %1642 = vmatpush.bf16.msrb.mxu3 %v2497_v13 }
 0x39c   : > { %2706 = vpow2.f32 %v1444_v14  ;;  %v2496_v14 = vld [vmem:[%s3772_s16] sm:$0xff] }
 0x39d   : > { %2708 = vrcp.f32 %v1391_v19 }
 0x39f   : > { %v1339_v15 = vpop.permute.xlu1 %1338  ;;  %1643 = vmatpush.bf16.msrb.mxu3 %v2496_v14 }
 0x3a0   : > { %v1344_v16 = vsel %vm1282_vm2, %v1339_v15, 0 }
 0x3a1   : > { %1353 = vmatpush.bf16.msrb.mxu0 %v1344_v16 }
 0x3a2   : > { %v2707_v17 = vpop.eup %2706 }
 0x3a3   : > { %v1446_v18 = vsel %vm1242_vm1, %v2707_v17, 0.0  ;;  %v2709_v22 = vpop.eup %2708 }
 0x3a4   : > { %1447 = vadd.xlane.f32.xlu0 %v1446_v18  ;;  %v1393_v24 = vmul.f32 %v2709_v22, %v2701_v53  ;;  %v1299_v53 = vpack.c.bf16 %v3592_v60, %v3592_v60  ;;  %v2494_v18 = vld [vmem:[%s3770_s14] sm:$0xff] }
 0x3a6   : > { %v1394_v29 = vpack.c.bf16 %v1393_v24, %v1393_v24 }
 0x3ac   : > { %1395 = vrot.lane.b32.xlu2 %v3559_v20, %s3795_s19 }
 0x3b8   : > { %1452 = vrot.lane.b32.xlu0 %v3559_v20, %s3793_s2  ;;  %s3835_s2 = sld [smem:[#allocation38_spill]] }
 0x407   : > { %v1334_v21 = vpop.xlane.xlu2 %1333 }
 0x408   : > { %2710 = vrcp.f32 %v1334_v21 }
 0x40e   : > { %v2711_v23 = vpop.eup %2710 }
 0x40f   : > { %v1336_v25 = vmul.f32 %v2711_v23, %v2705_v10  ;;  %v1396_v26 = vpop.permute.xlu2 %1395 }
 0x410   : > { %v1401_v27 = vsel %vm1282_vm2, %v1396_v26, 0 }
 0x411   : > { %1410 = vmatpush.bf16.msrb.mxu2 %v1401_v27  ;;  %v1337_v28 = vpack.c.bf16 %v1336_v25, %v1336_v25 }
 0x413   : > { %2411 = vmatmul.msk.bf16.vlgmr.msrb.gmra.mxu0 %vm1242_vm1, %v1337_v28 }
 0x414   : > { %2413 = vmatmul.msk.bf16.vlgmr.msrb.gmra.mxu2 %vm1242_vm1, %v1394_v29  ;;  %v2686_v29 = vld [vmem:[#allocation7] ss:$0 sm:$0xff] }
 0x417   : > { %v1448_v30 = vpop.xlane.xlu0 %1447 }
 0x418   : > { %2712 = vrcp.f32 %v1448_v30 }
 0x419   : > { %2714 = vrcp.f32 %v3238_v1 }
 0x41e   : > { %v2713_v20 = vpop.eup %2712 }
 0x41f   : > { %v1450_v31 = vmul.f32 %v2713_v20, %v2707_v17  ;;  %v2715_v2 = vpop.eup %2714  ;;  %v2495_v17 = vld [vmem:[%s3770_s14 + $0x8] sm:$0xff] }
 0x420   : > { %v1533_v3 = vmul.f32 32.0, %v2715_v2  ;;  %vm1537_vm5 = vweird.f32 %v2715_v2  ;;  %1610 = vmatpush.bf16.msra.mxu2 %v2495_v17  ;;  %v2687_v20 = vld [vmem:[#allocation9] ss:$0 sm:$0xff] }
 0x421   : > { %v1451_v34 = vpack.c.bf16 %v1450_v31, %v1450_v31 }
 0x422   : > { %v1534_v5 = vsub.f32 1.0, %v1533_v3 }
 0x424   : > { %v1535_v6 = vmul.f32 %v2715_v2, %v1534_v5  ;;  %1611 = vmatpush.bf16.msra.mxu2 %v2494_v18 }
 0x426   : > { %v1536_v7 = vadd.f32 %v2715_v2, %v1535_v6 }
 0x428   : > { %v3627_v8 = vsel %vm1537_vm5, %v2715_v2, %v1536_v7 }
 0x42a   : > { %v1453_v32 = vpop.permute.xlu0 %1452 }
 0x42b   : > { %v1458_v33 = vsel %vm1282_vm2, %v1453_v32, 0 }
 0x42c   : > { %1467 = vmatpush.bf16.msra.mxu0 %v1458_v33 }
 0x42f   : > { %2415 = vmatmul.msk.bf16.vlgmr.msra.gmra.mxu0 %vm1242_vm1, %v1451_v34 }
 0x490   : > { %v1355_v35 = vpop.f32.mrf.mxu0 }
 0x491   : > { %v1359_v36 = vpack.c.bf16 %v1355_v35, %v1355_v35  ;;  %v2688_v35 = vld [vmem:[#allocation12] ss:$0 sm:$0xff] }
 0x493   : > { %v1475_v37 = vunpack.c.l.b16 %v1359_v36 }
 0x495   : > { %v1476_v38 = vpack.c.b16 %v1475_v37, %v1475_v37 }
 0x497   : > { %v1412_v39 = vpop.f32.mrf.mxu2  ;;  %1477 = vrot.lane.b32.xlu1 %v1476_v38, %s3792_s29  ;;  %s1141_s29 = scalar_lea.vmem %s3835_s2, %s3850_s8  ;;  %s3836_s8 = smov 80  }
 0x498   : > { %v1416_v40 = vpack.c.bf16 %v1412_v39, %v1412_v39  ;;  %v1357_v41 = vpop.f32.mrf.mxu0 }
 0x49a   : > { %v1480_v42 = vunpack.c.l.b16 %v1416_v40 }
 0x49c   : > { %v1481_v43 = vpack.c.b16 %v1480_v42, %v1480_v42 }
 0x49f   : > { %v1414_v44 = vpop.f32.mrf.mxu2  ;;  %1482 = vrot.lane.b32.xlu1 %v1481_v43, %s3791_s4  ;;  %v2689_v43 = vld [vmem:[#allocation10] ss:$0 sm:$0xff] }
 0x4ac   : > { %v1469_v45 = vpop.f32.mrf.mxu0 }
 0x4ad   : > { %v1473_v46 = vpack.c.bf16 %v1469_v45, %v1469_v45 }
 0x4af   : > { %v1485_v47 = vunpack.c.l.b16 %v1473_v46 }
 0x4b1   : > { %v1486_v48 = vpack.c.b16 %v1485_v47, %v1485_v47 }
 0x4b3   : > { %1487 = vrot.lane.b32.xlu2 %v1486_v48, %s3790_s0  ;;  %s3834_s0 = sld [smem:[#allocation35_spill]] }
 0x4b4   : > { %v1471_v49 = vpop.f32.mrf.mxu0 }
 0x4b9   : > { %s1131_s4 = scalar_lea.vmem %s3834_s0, %s3530_s9 }
 0x4ba   : > { %v1567_v15 = vld [vmem:[%s1131_s4] sm:$0xff]  ;;  %s3841_s4 = smov 24  }
 0x4bb   : > { %v1617_v16 = vpack.c.bf16 %v1567_v15, %v1567_v15 }
 0x4bd   : > { %2442 = vmatmul.msk.bf16.vlgmr.msrb.gmra.mxu3 %vm1190_vm0, %v1617_v16 }
 0x509   : > { %v1478_v52 = vpop.permute.xlu1 %1477 }
 0x50a   : > { %v1491_v54 = vsel %vm1242_vm1, %v1299_v53, %v1478_v52 }
 0x50d   : > { %v1488_v56 = vpop.permute.xlu2 %1487 }
 0x511   : > { %v1483_v55 = vpop.permute.xlu1 %1482 }
 0x512   : > { %v1494_v57 = vsel %vm1492_vm3, %v1491_v54, %v1483_v55 }
 0x513   : > { %v1497_v58 = vsel %vm1495_vm4, %v1494_v57, %v1488_v56 }
 0x514   : > { %2424 = vmatmul.msk.bf16.vlgmr.msra.gmra.mxu1 %vm1190_vm0, %v1497_v58 }
 0x540   : > { %v1645_v36 = vpop.f32.mrf.mxu3 }
 0x541   : > { %v1646_v37 = vadd.f32 %v2688_v35, %v1645_v36 }
 0x543   : > { %v1651_v38 = vpack.c.bf16 %v1646_v37, %v1646_v37 }
 0x545   : > { %v1659_v39 = vsel %vm1242_vm1, %v1651_v38, 0  ;;  %v1687_v40 = vunpack.c.l.b16 %v1651_v38 }
 0x546   : > { %1668 = vmatpush.bf16.xpose.msrb.mxu0 %v1659_v39 }
 0x547   : > { %v3655_v41 = vpack.c.b16 %v1687_v40, %v1687_v40 }
 0x548   : > { %v1647_v42 = vpop.f32.mrf.mxu3 }
 0x549   : > { %1716 = vrot.lane.b32.xlu2 %v3655_v41, %s3229_s17 }
 0x591   : > { %v1524_v61 = vpop.f32.mrf.mxu1 }
 0x592   : > { %v1525_v62 = vadd.f32 %v2685_v59, %v1524_v61  ;;  %v2690_v59 = vld [vmem:[%s1141_s29] ss:$0 sm:$0xff] }
 0x594   : > { %v1528_v63 = vadd.f32 %v1525_v62, %v3552_v4 }
 0x596   : > { %v1529_v0 = vsel %vm1190_vm0, %v1528_v63, 0.0 }
 0x597   : > { %1530 = vadd.xlane.f32.xlu0 %v1529_v0 }
 0x599   : > { %v1526_v60 = vpop.f32.mrf.mxu1 }
 0x5a3   : > { %v1717_v51 = vpop.permute.xlu2 %1716 }
 0x5a4   : > { %v1722_v52 = vsel %vm1242_vm1, %v1717_v51, 0 }
 0x5a5   : > { %1731 = vmatpush.bf16.xpose.msrb.mxu2 %v1722_v52 }
 0x60a   : > { %v1531_v9 = vpop.xlane.xlu0 %1530 }
 0x60b   : > { %v1539_v10 = vmul.f32 %v3627_v8, %v1531_v9 }
 0x60d   : > { %v1540_v11 = vsub.f32 %v1528_v63, %v1539_v10 }
 0x60f   : > { %v1541_v4 = vmul.f32 %v1540_v11, %v1540_v11 }
 0x611   : > { %v1542_v12 = vsel %vm1190_vm0, %v1541_v4, 0.0 }
 0x612   : > { %1543 = vadd.xlane.f32.xlu1 %v1542_v12 }
 0x685   : > { %v1544_v19 = vpop.xlane.xlu1 %1543 }
 0x686   : > { %v1545_v21 = vmul.f32 %v1544_v19, %v3627_v8 }
 0x688   : > { %v1546_v22 = vadd.f32 1e-05, %v1545_v21 }
 0x68a   : > { %2716 = vrsqrt.f32 %v1546_v22  ;;  %vm1553_vm7 = vweird.f32 %v1546_v22 }
 0x690   : > { %v2717_v23 = vpop.eup %2716 }
 0x691   : > { %v1548_v24 = vmul.f32 %v2717_v23, %v1546_v22  ;;  %vm1554_vm6 = vweird.f32 %v2717_v23 }
 0x692   : > { %vm1555_vm8 = vmor %vm1553_vm7, %vm1554_vm6 }
 0x693   : > { %v1549_v25 = vmul.f32 %v2717_v23, %v1548_v24 }
 0x695   : > { %v1550_v26 = vmul.f32 0.5, %v1549_v25 }
 0x697   : > { %v1551_v27 = vsub.f32 1.5, %v1550_v26 }
 0x699   : > { %v1552_v28 = vmul.f32 %v2717_v23, %v1551_v27 }
 0x69b   : > { %v1556_v30 = vsel %vm1555_vm8, %v2717_v23, %v1552_v28 }
 0x69c   : > { %v1557_v31 = vmul.f32 %v1556_v30, %v1540_v11 }
 0x69e   : > { %v1561_v32 = vmul.f32 %v2686_v29, %v1557_v31 }
 0x6a0   : > { %v3649_v33 = vadd.f32 %v2687_v20, %v1561_v32 }
 0x6a2   : > { %v1585_v34 = vpack.c.bf16 %v3649_v33, %v3649_v33 }
 0x6a4   : > { %2433 = vmatmul.msk.bf16.vlgmr.msra.gmra.mxu2 %vm1190_vm0, %v1585_v34 }
 0x727   : > { %v1613_v44 = vpop.f32.mrf.mxu2 }
 0x728   : > { %v1614_v45 = vadd.f32 %v2689_v43, %v1613_v44 }
 0x72a   : > { %v1649_v46 = vmul.f32 0.35355338, %v1614_v45 }
 0x72c   : > { %v1650_v47 = vpack.c.bf16 %v1649_v46, %v1649_v46 }
 0x72e   : > { %v1712_v48 = vunpack.c.l.b16 %v1650_v47  ;;  %2443 = vmatmul.msk.bf16.vlgmr.msrb.gmra.mxu0 %vm1242_vm1, %v1650_v47 }
 0x72f   : > { %v1615_v49 = vpop.f32.mrf.mxu2 }
 0x730   : > { %v1713_v50 = vpack.c.b16 %v1712_v48, %v1712_v48 }
 0x732   : > { %1771 = vrot.lane.b32.xlu0 %v1713_v50, %s3230_s12  ;;  %1714 = vrot.lane.b32.xlu2 %v1713_v50, %s3229_s17  ;;  %s3838_s17 = smov 72  }
 0x73a   : > { %1830 = vrot.lane.b32.xlu2 %v3655_v41, %s3231_s15 }
 0x742   : > { %1828 = vrot.lane.b32.xlu2 %v1713_v50, %s3231_s15  ;;  %s3840_s15 = smov 16  }
 0x74a   : > { %1773 = vrot.lane.b32.xlu2 %v3655_v41, %s3230_s12  ;;  %s3839_s12 = smov 8  }
 0x78c   : > { %v1715_v53 = vpop.permute.xlu2 %1714 }
 0x78d   : > { %2445 = vmatmul.msk.bf16.vlgmr.msrb.gmra.mxu2 %vm1242_vm1, %v1715_v53 }
 0x794   : > { %v1831_v54 = vpop.permute.xlu2 %1830 }
 0x795   : > { %v1836_v55 = vsel %vm1242_vm1, %v1831_v54, 0 }
 0x796   : > { %1845 = vmatpush.bf16.xpose.msra.mxu2 %v1836_v55 }
 0x79c   : > { %v1829_v56 = vpop.permute.xlu2 %1828 }
 0x79d   : > { %2449 = vmatmul.msk.bf16.vlgmr.msra.gmra.mxu2 %vm1242_vm1, %v1829_v56 }
 0x7a4   : > { %v1774_v57 = vpop.permute.xlu2 %1773  ;;  %v1772_v62 = vpop.permute.xlu0 %1771 }
 0x7a5   : > { %v1779_v58 = vsel %vm1242_vm1, %v1774_v57, 0 }
 0x7a6   : > { %1788 = vmatpush.bf16.xpose.msra.mxu0 %v1779_v58 }
 0x7ab   : > { %v1670_v61 = vpop.f32.mrf.mxu0 }
 0x7ac   : > { %v1671_v63 = vadd.f32 %v2690_v59, %v1670_v61 }
 0x7ad   : > { %2447 = vmatmul.msk.bf16.vlgmr.msra.gmra.mxu0 %vm1242_vm1, %v1772_v62 }
 0x7ae   : > { %v1674_v0 = vsel %vm1242_vm1, %v1671_v63, -inf }
 0x7af   : > { %1675 = vmax.xlane.f32.xlu2 %v1674_v0 }
 0x7b3   : > { %v1672_v60 = vpop.f32.mrf.mxu0 }
 0x7c7   : > { %1689 = vrot.lane.b32.xlu2 %v3655_v41, %s3228_s13  ;;  %s3837_s13 = smov 88  }
 0x7cf   : > { %1806 = vrot.lane.b32.xlu2 %v3655_v41, %s3836_s8 }
 0x810   : > { %v1733_v1 = vpop.f32.mrf.mxu2 }
 0x811   : > { %v1734_v14 = vadd.f32 %v2690_v59, %v1733_v1 }
 0x813   : > { %v1737_v18 = vsel %vm1242_vm1, %v1734_v14, -inf }
 0x818   : > { %v1735_v2 = vpop.f32.mrf.mxu2 }
 0x820   : > { %v1847_v3 = vpop.f32.mrf.mxu2 }
 0x821   : > { %v1848_v22 = vadd.f32 %v2690_v59, %v1847_v3 }
 0x822   : > { %v1676_v5 = vpop.xlane.xlu2 %1675 }
 0x823   : > { %v1677_v4 = vsub.f32 %v1671_v63, %v1676_v5  ;;  %v1851_v23 = vsel %vm1242_vm1, %v1848_v22, -inf }
 0x825   : > { %v1678_v13 = vmul.f32 1.442695, %v1677_v4 }
 0x827   : > { %2718 = vpow2.f32 %v1678_v13  ;;  %v2499_v13 = vld [vmem:[%s3774_s18 + $0x8] sm:$0xff] }
 0x828   : > { %v1849_v6 = vpop.f32.mrf.mxu2  ;;  %1930 = vmatpush.bf16.msrb.mxu0 %v2499_v13 }
 0x82a   : > { %v1790_v7 = vpop.f32.mrf.mxu0  ;;  %v1690_v9 = vpop.permute.xlu2 %1689 }
 0x82b   : > { %v1791_v10 = vadd.f32 %v2690_v59, %v1790_v7  ;;  %v1695_v11 = vsel %vm1282_vm2, %v1690_v9, 0 }
 0x82c   : > { %1704 = vmatpush.bf16.msrb.mxu1 %v1695_v11 }
 0x82d   : > { %v1794_v12 = vsel %vm1242_vm1, %v1791_v10, -inf  ;;  %v2719_v19 = vpop.eup %2718 }
 0x82e   : > { %1795 = vmax.xlane.f32.xlu1 %v1794_v12  ;;  %v1680_v21 = vsel %vm1242_vm1, %v2719_v19, 0.0 }
 0x832   : > { %v1792_v15 = vpop.f32.mrf.mxu0  ;;  %v1807_v16 = vpop.permute.xlu2 %1806 }
 0x833   : > { %v1812_v17 = vsel %vm1282_vm2, %v1807_v16, 0 }
 0x834   : > { %1821 = vmatpush.bf16.msra.mxu1 %v1812_v17 }
 0x836   : > { %1738 = vmax.xlane.f32.xlu1 %v1737_v18 }
 0x83e   : > { %1681 = vadd.xlane.f32.xlu1 %v1680_v21 }
 0x846   : > { %1852 = vmax.xlane.f32.xlu1 %v1851_v23  ;;  %v2691_v23 = vld [vmem:[#allocation13] ss:$0 sm:$0xff] }
 0x85f   : > { %1749 = vrot.lane.b32.xlu1 %v3655_v41, %s3837_s13  ;;  %s3842_s13 = sld [smem:[#allocation50_spill]] }
 0x8a1   : > { %v1796_v24 = vpop.xlane.xlu1 %1795 }
 0x8a2   : > { %v1797_v27 = vsub.f32 %v1791_v10, %v1796_v24 }
 0x8a4   : > { %v1798_v29 = vmul.f32 1.442695, %v1797_v27 }
 0x8a9   : > { %v1739_v25 = vpop.xlane.xlu1 %1738 }
 0x8aa   : > { %v1740_v26 = vsub.f32 %v1734_v14, %v1739_v25  ;;  %v2498_v14 = vld [vmem:[%s3774_s18] sm:$0xff] }
 0x8ab   : > { %1931 = vmatpush.bf16.msrb.mxu0 %v2498_v14 }
 0x8ac   : > { %v1741_v28 = vmul.f32 1.442695, %v1740_v26 }
 0x8ae   : > { %2720 = vpow2.f32 %v1741_v28 }
 0x8b1   : > { %v1682_v30 = vpop.xlane.xlu1 %1681 }
 0x8b2   : > { %2722 = vrcp.f32 %v1682_v30 }
 0x8b3   : > { %2724 = vpow2.f32 %v1798_v29 }
 0x8b4   : > { %v2721_v20 = vpop.eup %2720 }
 0x8b5   : > { %v1743_v31 = vsel %vm1242_vm1, %v2721_v20, 0.0 }
 0x8b6   : > { %1744 = vadd.xlane.f32.xlu0 %v1743_v31 }
 0x8b8   : > { %v2723_v32 = vpop.eup %2722 }
 0x8b9   : > { %v1684_v34 = vmul.f32 %v2723_v32, %v2719_v19  ;;  %v1853_v35 = vpop.xlane.xlu1 %1852  ;;  %v2725_v36 = vpop.eup %2724 }
 0x8ba   : > { %v1854_v37 = vsub.f32 %v1848_v22, %v1853_v35  ;;  %v1800_v40 = vsel %vm1242_vm1, %v2725_v36, 0.0  ;;  %v2505_v35 = vld [vmem:[%s3842_s13 + $0x18] sm:$0xff] }
 0x8bb   : > { %v1685_v38 = vpack.c.bf16 %v1684_v34, %v1684_v34  ;;  %v2501_v34 = vld [vmem:[%s3778_s22 + $0x8] sm:$0xff]  ;;  %2053 = vmatpush.bf16.msrb.mxu2 %v2505_v35 }
 0x8bc   : > { %v1855_v39 = vmul.f32 1.442695, %v1854_v37 }
 0x8bd   : > { %2444 = vmatmul.msk.bf16.vlgmr.msrb.gmra.mxu1 %vm1242_vm1, %v1685_v38  ;;  %v2504_v38 = vld [vmem:[%s3842_s13 + $0x10] sm:$0xff] }
 0x8be   : > { %2726 = vpow2.f32 %v1855_v39  ;;  %1801 = vadd.xlane.f32.xlu0 %v1800_v40  ;;  %2009 = vmatpush.bf16.msrb.mxu1 %v2501_v34 }
 0x8bf   : > { %2054 = vmatpush.bf16.msrb.mxu2 %v2504_v38 }
 0x8c4   : > { %v2727_v42 = vpop.eup %2726 }
 0x8c5   : > { %v1857_v43 = vsel %vm1242_vm1, %v2727_v42, 0.0 }
 0x8c6   : > { %1858 = vadd.xlane.f32.xlu1 %v1857_v43 }
 0x8d1   : > { %v1750_v44 = vpop.permute.xlu1 %1749 }
 0x8d2   : > { %v1755_v45 = vsel %vm1282_vm2, %v1750_v44, 0  ;;  %1863 = vrot.lane.b32.xlu0 %v3655_v41, %s3838_s17 }
 0x8d3   : > { %1764 = vmatpush.bf16.msra.mxu3 %v1755_v45 }
 0x929   : > { %v1745_v46 = vpop.xlane.xlu0 %1744 }
 0x92a   : > { %2728 = vrcp.f32 %v1745_v46 }
 0x930   : > { %v2729_v47 = vpop.eup %2728 }
 0x931   : > { %v1747_v48 = vmul.f32 %v2729_v47, %v2721_v20  ;;  %v1802_v49 = vpop.xlane.xlu0 %1801  ;;  %v2692_v47 = vld [vmem:[#allocation15] ss:$0 sm:$0xff] }
 0x932   : > { %2730 = vrcp.f32 %v1802_v49  ;;  %v2693_v49 = vld [vmem:[#allocation16] ss:$0 sm:$0xff] }
 0x933   : > { %v1748_v50 = vpack.c.bf16 %v1747_v48, %v1747_v48 }
 0x935   : > { %2446 = vmatmul.msk.bf16.vlgmr.msra.gmra.mxu3 %vm1242_vm1, %v1748_v50 }
 0x938   : > { %v2731_v51 = vpop.eup %2730 }
 0x939   : > { %v1804_v52 = vmul.f32 %v2731_v51, %v2725_v36  ;;  %v1859_v53 = vpop.xlane.xlu1 %1858 }
 0x93a   : > { %2732 = vrcp.f32 %v1859_v53  ;;  %v1706_v54 = vpop.f32.mrf.mxu1 }
 0x93b   : > { %v1805_v55 = vpack.c.bf16 %v1804_v52, %v1804_v52  ;;  %v1710_v16 = vpack.c.bf16 %v1706_v54, %v1706_v54  ;;  %v2503_v54 = vld [vmem:[%s3842_s13 + $0x8] sm:$0xff] }
 0x93c   : > { %2055 = vmatpush.bf16.msrb.mxu2 %v2503_v54 }
 0x93d   : > { %2448 = vmatmul.msk.bf16.vlgmr.msra.gmra.mxu1 %vm1242_vm1, %v1805_v55  ;;  %v2502_v55 = vld [vmem:[%s3842_s13] sm:$0xff] }
 0x940   : > { %v2733_v56 = vpop.eup %2732  ;;  %2056 = vmatpush.bf16.msrb.mxu2 %v2502_v55 }
 0x941   : > { %v1861_v57 = vmul.f32 %v2733_v56, %v2727_v42  ;;  %v2694_v56 = vld [vmem:[#allocation18] ss:$0 sm:$0xff] }
 0x942   : > { %v1708_v41 = vpop.f32.mrf.mxu1 }
 0x943   : > { %v1862_v61 = vpack.c.bf16 %v1861_v57, %v1861_v57 }
 0x944   : > { %v1864_v58 = vpop.permute.xlu0 %1863 }
 0x945   : > { %v1869_v59 = vsel %vm1282_vm2, %v1864_v58, 0 }
 0x946   : > { %1878 = vmatpush.bf16.msrb.mxu3 %v1869_v59 }
 0x949   : > { %2450 = vmatmul.msk.bf16.vlgmr.msrb.gmra.mxu3 %vm1242_vm1, %v1862_v61 }
 0x9b8   : > { %v1766_v62 = vpop.f32.mrf.mxu3 }
 0x9b9   : > { %v1770_v63 = vpack.c.bf16 %v1766_v62, %v1766_v62  ;;  %v2695_v62 = vld [vmem:[#allocation19] ss:$0 sm:$0xff] }
 0x9ba   : > { %v1823_v0 = vpop.f32.mrf.mxu1 }
 0x9bb   : > { %v1886_v60 = vunpack.c.l.b16 %v1770_v63  ;;  %v1827_v2 = vpack.c.bf16 %v1823_v0, %v1823_v0 }
 0x9bd   : > { %v1887_v1 = vpack.c.b16 %v1886_v60, %v1886_v60  ;;  %v1891_v5 = vunpack.c.l.b16 %v1827_v2 }
 0x9bf   : > { %1888 = vrot.lane.b32.xlu2 %v1887_v1, %s3839_s12  ;;  %v1892_v7 = vpack.c.b16 %v1891_v5, %v1891_v5 }
 0x9c0   : > { %v1768_v3 = vpop.f32.mrf.mxu3 }
 0x9c2   : > { %v1825_v6 = vpop.f32.mrf.mxu1 }
 0x9c7   : > { %1893 = vrot.lane.b32.xlu2 %v1892_v7, %s3840_s15 }
 0x9cc   : > { %v1880_v9 = vpop.f32.mrf.mxu3 }
 0x9cd   : > { %v1884_v10 = vpack.c.bf16 %v1880_v9, %v1880_v9 }
 0x9cf   : > { %v1896_v11 = vunpack.c.l.b16 %v1884_v10 }
 0x9d1   : > { %v1897_v4 = vpack.c.b16 %v1896_v11, %v1896_v11 }
 0x9d3   : > { %1898 = vrot.lane.b32.xlu0 %v1897_v4, %s3841_s4 }
 0x9d4   : > { %v1882_v12 = vpop.f32.mrf.mxu3 }
 0xa19   : > { %v1889_v15 = vpop.permute.xlu2 %1888 }
 0xa1a   : > { %v1902_v18 = vsel %vm1242_vm1, %v1710_v16, %v1889_v15 }
 0xa21   : > { %v1894_v17 = vpop.permute.xlu2 %1893 }
 0xa22   : > { %v1904_v19 = vsel %vm1492_vm3, %v1902_v18, %v1894_v17  ;;  %v2696_v18 = vld [vmem:[#allocation21] ss:$0 sm:$0xff] }
 0xa45   : > { %v1899_v21 = vpop.permute.xlu0 %1898 }
 0xa46   : > { %v1906_v22 = vsel %vm1495_vm4, %v1904_v19, %v1899_v21  ;;  %v2697_v21 = vld [vmem:[#allocation22] ss:$0 sm:$0xff] }
 0xa47   : > { %2459 = vmatmul.msk.bf16.vlgmr.msrb.gmra.mxu0 %vm1190_vm0, %v1906_v22 }
 0xac4   : > { %v1933_v24 = vpop.f32.mrf.mxu0 }
 0xac5   : > { %v1934_v25 = vadd.f32 %v2691_v23, %v1933_v24 }
 0xac7   : > { %v1937_v26 = vadd.f32 %v1934_v25, %v3649_v33  ;;  %v2500_v33 = vld [vmem:[%s3778_s22] sm:$0xff] }
 0xac8   : > { %2010 = vmatpush.bf16.msrb.mxu1 %v2500_v33 }
 0xac9   : > { %v1938_v27 = vsel %vm1190_vm0, %v1937_v26, 0.0 }
 0xaca   : > { %1939 = vadd.xlane.f32.xlu2 %v1938_v27 }
 0xacc   : > { %v1935_v28 = vpop.f32.mrf.mxu0 }
 0xb3d   : > { %v1940_v29 = vpop.xlane.xlu2 %1939 }
 0xb3e   : > { %v1941_v30 = vmul.f32 %v1940_v29, %v3627_v8 }
 0xb40   : > { %v1942_v20 = vsub.f32 %v1937_v26, %v1941_v30 }
 0xb42   : > { %v1943_v31 = vmul.f32 %v1942_v20, %v1942_v20 }
 0xb44   : > { %v1944_v32 = vsel %vm1190_vm0, %v1943_v31, 0.0 }
 0xb45   : > { %1945 = vadd.xlane.f32.xlu0 %v1944_v32 }
 0xbb8   : > { %v1946_v36 = vpop.xlane.xlu0 %1945 }
 0xbb9   : > { %v1947_v37 = vmul.f32 %v1946_v36, %v3627_v8 }
 0xbbb   : > { %v1948_v39 = vadd.f32 1e-05, %v1947_v37 }
 0xbbd   : > { %2734 = vrsqrt.f32 %v1948_v39  ;;  %vm1955_vm10 = vweird.f32 %v1948_v39 }
 0xbc3   : > { %v2735_v40 = vpop.eup %2734 }
 0xbc4   : > { %v1950_v42 = vmul.f32 %v2735_v40, %v1948_v39  ;;  %vm1956_vm9 = vweird.f32 %v2735_v40 }
 0xbc5   : > { %vm1957_vm11 = vmor %vm1955_vm10, %vm1956_vm9 }
 0xbc6   : > { %v1951_v43 = vmul.f32 %v2735_v40, %v1950_v42 }
 0xbc8   : > { %v1952_v44 = vmul.f32 0.5, %v1951_v43 }
 0xbca   : > { %v1953_v45 = vsub.f32 1.5, %v1952_v44 }
 0xbcc   : > { %v1954_v46 = vmul.f32 %v2735_v40, %v1953_v45 }
 0xbce   : > { %v1958_v48 = vsel %vm1957_vm11, %v2735_v40, %v1954_v46 }
 0xbcf   : > { %v1959_v50 = vmul.f32 %v1958_v48, %v1942_v20 }
 0xbd1   : > { %v1963_v51 = vmul.f32 %v2692_v47, %v1959_v50 }
 0xbd3   : > { %v1967_v52 = vadd.f32 %v2693_v49, %v1963_v51 }
 0xbd5   : > { %v1984_v53 = vpack.c.bf16 %v1967_v52, %v1967_v52 }
 0xbd7   : > { %2468 = vmatmul.msk.bf16.vlgmr.msrb.gmra.mxu1 %vm1190_vm0, %v1984_v53 }
 0xc54   : > { %v2012_v41 = vpop.f32.mrf.mxu1 }
 0xc55   : > { %v2013_v57 = vadd.f32 %v2694_v56, %v2012_v41 }
 0xc57   : > { %v2016_v58 = vmax.f32 %v2013_v57, 0.0 }
 0xc59   : > { %v2017_v59 = vpack.c.bf16 %v2016_v58, %v2016_v58 }
 0xc5b   : > { %2485 = vmatmul.msk.bf16.vlgmr.msrb.gmra.mxu2 %vm2045_vm12, %v2017_v59 }
 0xc5c   : > { %v2014_v61 = vpop.f32.mrf.mxu1 }
 0xcde   : > { %v2058_v63 = vpop.f32.mrf.mxu2 }
 0xcdf   : > { %v2059_v0 = vadd.f32 %v2695_v62, %v2058_v63 }
 0xce1   : > { %v2062_v60 = vadd.f32 %v2059_v0, %v1967_v52 }
 0xce3   : > { %v2063_v1 = vsel %vm1190_vm0, %v2062_v60, 0.0 }
 0xce4   : > { %2064 = vadd.xlane.f32.xlu1 %v2063_v1 }
 0xce6   : > { %v2060_v2 = vpop.f32.mrf.mxu2 }
 0xd57   : > { %v2065_v3 = vpop.xlane.xlu1 %2064 }
 0xd58   : > { %v2066_v5 = vmul.f32 %v2065_v3, %v3627_v8 }
 0xd5a   : > { %v2067_v6 = vsub.f32 %v2062_v60, %v2066_v5 }
 0xd5c   : > { %v2068_v7 = vmul.f32 %v2067_v6, %v2067_v6 }
 0xd5e   : > { %v2069_v9 = vsel %vm1190_vm0, %v2068_v7, 0.0 }
 0xd5f   : > { %2070 = vadd.xlane.f32.xlu1 %v2069_v9 }
 0xdd2   : > { %v2071_v10 = vpop.xlane.xlu1 %2070 }
 0xdd3   : > { %v2072_v11 = vmul.f32 %v2071_v10, %v3627_v8 }
 0xdd5   : > { %v2073_v4 = vadd.f32 1e-05, %v2072_v11 }
 0xdd7   : > { %2736 = vrsqrt.f32 %v2073_v4  ;;  %vm2080_vm14 = vweird.f32 %v2073_v4 }
 0xddd   : > { %v2737_v12 = vpop.eup %2736 }
 0xdde   : > { %v2075_v13 = vmul.f32 %v2737_v12, %v2073_v4  ;;  %vm2081_vm13 = vweird.f32 %v2737_v12 }
 0xddf   : > { %vm2082_vm15 = vmor %vm2080_vm14, %vm2081_vm13 }
 0xde0   : > { %v2076_v14 = vmul.f32 %v2737_v12, %v2075_v13 }
 0xde2   : > { %v2077_v15 = vmul.f32 0.5, %v2076_v14 }
 0xde4   : > { %v2078_v16 = vsub.f32 1.5, %v2077_v15 }
 0xde6   : > { %v2079_v17 = vmul.f32 %v2737_v12, %v2078_v16 }
 0xde8   : > { %v2083_v19 = vsel %vm2082_vm15, %v2737_v12, %v2079_v17 }
 0xde9   : > { %v2084_v22 = vmul.f32 %v2083_v19, %v2067_v6 }
 0xdeb   : > { %v2088_v23 = vmul.f32 %v2696_v18, %v2084_v22 }
 0xded   : > { %v2092_v8 = vadd.f32 %v2697_v21, %v2088_v23 }
 0xdef   : > { %2093 = vst.msk [vmem:[%s1146_s10] sm:$0xff] %vm1190_vm0, %v2092_v8 }
 0xdf0 PF: > { %s3844_s19 = sld [smem:[#allocation32_spill]]  ;;  %s3845_s8 = smov %s3208_s5 }
 0xdf1   : > { %s3846_s5 = smov %s3848_s1 }
 0xdf6   : > { %s46_s9 = sadd.s32 1, %s3844_s19  }
 0xdf7   : > { %p43_p8 = scmp.ge.s32.totalorder %s46_s9, 4  }
 0xdf9   :  { %45 = sbr.rel (!%p43_p8) target bundleno = 29 (0x1d), region = 234 }
 0xdfe   :  { %2116 = vsyncpa [#allocation3], 1 }
 0xdff   :  { %2118 = vsyncpa [#allocation3 + $0x1], 1 }
 0xe00   :  { %2119 = vsyncpa [#allocation5], 1 }
 0xe01   :  { %2120 = vsyncpa [#allocation8], 1 }
 0xe02   :  { %2121 = vsyncpa [#allocation11], 1 }
 0xe03   :  { %2122 = vsyncpa [#allocation14], 1 }
 0xe04   :  { %2123 = vsyncpa [#allocation17], 1 }
 0xe05   :  { %2124 = vsyncpa [#allocation20], 1 }
 0xe06   :  { %2125 = vsyncpa [#allocation23], 1 }

// kernel: translator_forward.8
= control target key start
LH: loop header
LB: loop body
LE: loop exit
PB: predicated region body
PF: predicated region fallthrough
CT: control target
= control target key end

     0   :  { %s3531_s6 = smov 1   ;;  %s3532_s10 = smov 2   ;;  %s4185_s0 = inlined_call_operand.smem [shape: u32[31], index: -1, kind: input, shape index: {}] }
   0x1   :  { %s3596_s5 = sld [smem:[%s4185_s0]]   ;;  %s3533_s14 = smov 3  }
   0x2   :  { %s3601_s9 = sld [smem:[%s4185_s0 + %s3531_s6]]   ;;  %s3534_s18 = smov 4  }
   0x3   :  { %s3606_s13 = sld [smem:[%s4185_s0 + %s3532_s10]]   ;;  %s3535_s22 = smov 5  }
   0x4   :  { %s3611_s17 = sld [smem:[%s4185_s0 + %s3533_s14]]   ;;  %s3536_s26 = smov 6  }
   0x5   :  { %s3616_s21 = sld [smem:[%s4185_s0 + %s3534_s18]]   ;;  %s3537_s30 = smov 7  }
   0x6   :  { %s3621_s25 = sld [smem:[%s4185_s0 + %s3535_s22]]   ;;  %s3538_s4 = smov 8  }
   0x7   :  { %4202 = sst [smem:[#allocation36_spill]] %s3596_s5  ;;  %s3539_s10 = smov 9  }
   0x8   :  { %4203 = sst [smem:[#allocation37_spill]] %s3601_s9  ;;  %s3540_s15 = smov 10  }
   0x9   :  { %4204 = sst [smem:[#allocation38_spill]] %s3606_s13  ;;  %s3541_s20 = smov 11  }
   0xa   :  { %4205 = sst [smem:[#allocation39_spill]] %s3611_s17  ;;  %s3543_s1 = smov 13  }
   0xb   :  { %4206 = sst [smem:[#allocation40_spill]] %s3616_s21  ;;  %s3544_s7 = smov 14  }
   0xc   :  { %4207 = sst [smem:[#allocation41_spill]] %s3621_s25  ;;  %s3546_s22 = smov 16  }
   0xd   :  { %s3626_s29 = sld [smem:[%s4185_s0 + %s3536_s26]]   ;;  %s3542_s26 = smov 12  }
   0xe   :  { %s3631_s3 = sld [smem:[%s4185_s0 + %s3537_s30]]   ;;  %s3547_s28 = smov 17  }
   0xf   :  { %s3636_s8 = sld [smem:[%s4185_s0 + %s3538_s4]]  }
  0x10   :  { %s3641_s14 = sld [smem:[%s4185_s0 + %s3539_s10]]  }
  0x11   :  { %s3646_s19 = sld [smem:[%s4185_s0 + %s3540_s15]]   ;;  %s3545_s15 = smov 15  }
  0x12   :  { %s3651_s24 = sld [smem:[%s4185_s0 + %s3541_s20]]  }
  0x13   :  { %4208 = sst [smem:[#allocation42_spill]] %s3626_s29 }
  0x14   :  { %s3656_s30 = sld [smem:[%s4185_s0 + %s3542_s26]]  }
  0x15   :  { %4209 = sst [smem:[#allocation43_spill]] %s3636_s8 }
  0x16   :  { %s3661_s6 = sld [smem:[%s4185_s0 + %s3543_s1]]  }
  0x17   :  { %4210 = sst [smem:[#allocation44_spill]] %s3646_s19 }
  0x18   :  { %s3666_s12 = sld [smem:[%s4185_s0 + %s3544_s7]]   ;;  %s3548_s7 = smov 18  }
  0x19   :  { %s3671_s20 = sld [smem:[%s4185_s0 + %s3545_s15]]   ;;  %s3549_s15 = smov 19  }
  0x1a   :  { %s3676_s27 = sld [smem:[%s4185_s0 + %s3546_s22]]   ;;  %s3550_s22 = smov 20  }
  0x1b   :  { %s3681_s4 = sld [smem:[%s4185_s0 + %s3547_s28]]   ;;  %s3551_s28 = smov 21  }
  0x1c   :  { %s3686_s25 = sld [smem:[%s4185_s0 + %s3548_s7]]   ;;  %s3552_s7 = smov 22  }
  0x1d   :  { %s3696_s13 = sld [smem:[%s4185_s0 + %s3550_s22]]   ;;  %s3554_s22 = smov 24  }
  0x1e   :  { %4211 = sst [smem:[#allocation45_spill]] %s3666_s12 }
  0x1f   :  { %s3691_s12 = sld [smem:[%s4185_s0 + %s3549_s15]]   ;;  %s3553_s15 = smov 23  }
  0x20   :  { %4212 = sst [smem:[#allocation46_spill]] %s3676_s27 }
  0x21   :  { %s3701_s27 = sld [smem:[%s4185_s0 + %s3551_s28]]   ;;  %s3555_s28 = smov 25  }
  0x22   :  { %4213 = sst [smem:[#allocation47_spill]] %s3686_s25 }
  0x23   :  { %s3706_s25 = sld [smem:[%s4185_s0 + %s3552_s7]]   ;;  %s3556_s7 = smov 26  }
  0x24   :  { %s3711_s19 = sld [smem:[%s4185_s0 + %s3553_s15]]   ;;  %s3557_s15 = smov 27  }
  0x25   :  { %s3716_s17 = sld [smem:[%s4185_s0 + %s3554_s22]]   ;;  %s3558_s22 = smov 28  }
  0x26   :  { %s3721_s21 = sld [smem:[%s4185_s0 + %s3555_s28]]   ;;  %s3559_s28 = smov 29  }
  0x27   :  { %s3731_s8 = sld [smem:[%s4185_s0 + %s3557_s15]]  }
  0x28   :  { %s3741_s29 = sld [smem:[%s4185_s0 + %s3559_s28]]  }
  0x29   :  { %4214 = sst [smem:[#allocation48_spill]] %s3706_s25 }
  0x2a   :  { %s3726_s25 = sld [smem:[%s4185_s0 + %s3556_s7]]   ;;  %s3560_s7 = smov 30  }
  0x2b   :  { %4215 = sst [smem:[#allocation49_spill]] %s3716_s17 }
  0x2c   :  { %s3736_s17 = sld [smem:[%s4185_s0 + %s3558_s22]]  }
  0x2d   :  { %4216 = sst [smem:[#allocation50_spill]] %s3731_s8 }
  0x2e   :  { %s3746_s9 = sld [smem:[%s4185_s0 + %s3560_s7]]  }
  0x34   :  { %4217 = sst [smem:[#allocation51_spill]] %s3746_s9 }
  0x35   :  { %66 = vsyncpa [#allocation3], 0 }
  0x36   :  { %67 = vsyncpa [#allocation5], 0 }
  0x37   :  { %68 = vsyncpa [#allocation8], 0 }
  0x38   :  { %69 = vsyncpa [#allocation11], 0 }
  0x39   :  { %70 = vsyncpa [#allocation14], 0 }
  0x3a   :  { %71 = vsyncpa [#allocation17], 0 }
  0x3b   :  { %72 = vsyncpa [#allocation20], 0 }
  0x3c   :  { %73 = vsyncpa [#allocation23], 0 }
  0x3d   :  { %74 = vsyncpa [#allocation26], 0  ;;  %s3748_s15 = smov 0   ;;  %s3750_s16 = smov 0  }
  0x3e   :  { %s3752_s18 = smov 0  }
  0x3f LB: > { %s4218_s8 = sld [smem:[#allocation50_spill]]  ;;  %s824_s0 = sshll.u32 %s3641_s14, 4  ;;  %s3521_s15 = sphi %s3748_s15, %s4247_s15   ;;  %s3529_s18 = sphi %s3752_s18, %s80_s18   ;;  %s3525_s16 = sphi %s3750_s16, %s4248_s16   ;;  %s3764_s0 = int_to_ptr.hbm [resolvable:$true] %s824_s0 }
  0x40   : > { %4219 = sst [smem:[#allocation52_spill]] %s3521_s15  ;;  %s2547_s22 = sadd.s32 4294967295, %s3529_s18  }
  0x41   : > { %4220 = sst [smem:[#allocation53_spill]] %s3529_s18  ;;  %p2549_p0 = scmp.ge.s32.totalorder %s3529_s18, 1 }
  0x42   : > { %p787_p1 = scmp.lt.s32.totalorder %s3529_s18, 3  ;;  %p3769_p2 = scmp.eq.s32.totalorder %s2547_s22, 0 }
  0x43   : > { %s3561_s28 = smov [#allocation4]   ;;  %s851_s2 = sshll.u32 %s3656_s30, 4  ;;  %s3780_s2 = int_to_ptr.hbm [resolvable:$true] %s851_s2 }
  0x44   : > { %p3773_p3 = pnand %p2549_p0, %p787_p1  ;;  %s826_s1 = sshll.u32 %s3561_s28, 4  ;;  %s827_s1 = int_to_ptr.vmem [resolvable:$true] %s826_s1 }
  0x45   : > { %s878_s7 = sshll.u32 %s3671_s20, 4  ;;  %s3562_s11 = smov [#allocation7]   ;;  %s3792_s7 = int_to_ptr.hbm [resolvable:$true] %s878_s7 }
  0x46   : > { %p2769_p4 = pneg %p3773_p3  ;;  %s3789_s22 = sshll.u32 %s3562_s11, 4  ;;  %s854_s22 = int_to_ptr.vmem [resolvable:$true] %s3789_s22 }
  0x47   : > { %s2991_s28 = sshra.s32 %s3764_s0, 4  ;;  %s2998_s5 = scalar_lea.hbm %s3641_s14, 1  ;;  %s2992_s28 = int_to_ptr.hbm [resolvable:$true] %s2991_s28 }
  0x48   : > { %p3785_p5 = pnand %p3769_p2, %p2769_p4  ;;  %s2993_s18 = scalar_lea.hbm %s2992_s28, 1 }
  0x49   : > { %p2994_p6 = scmp.ne.s32.totalorder %s2992_s28, %s2993_s18  ;;  %p2999_p10 = scmp.lt.s32.totalorder %s2992_s28, %s3641_s14 }
  0x4a   : > { %p3797_p7 = pneg %p3785_p5  ;;  %p3000_p11 = scmp.lt.s32.totalorder %s2998_s5, %s2993_s18 }
  0x4c   : > { %p2996_p8 = pnand %p3797_p7, %p2994_p6  ;;  %p3001_p12 = por %p3000_p11, %p2999_p10 }
  0x4e   : > { %p2997_p9 = pneg %p2996_p8 }
  0x50   : > { %p3002_p13 = pnand %p3001_p12, %p2997_p9 }
  0x52   : > { %3005 = shalt.err (!%p3002_p13)
}
  0x53   : > { %2775 = dma.hbm_to_vmem [thread:$0]  (!%p3785_p5), %s3764_s0, 16, %s827_s1, [#allocation5]  }
  0x54   : > { %s3021_s11 = sshra.s32 %s3780_s2, 4  ;;  %s3028_s28 = scalar_lea.hbm %s3656_s30, 1  ;;  %s3022_s11 = int_to_ptr.hbm [resolvable:$true] %s3021_s11 }
  0x55   : > { %s3023_s15 = scalar_lea.hbm %s3022_s11, 1  ;;  %p3029_p6 = scmp.lt.s32.totalorder %s3022_s11, %s3656_s30 }
  0x56   : > { %p3024_p0 = scmp.ne.s32.totalorder %s3022_s11, %s3023_s15  ;;  %p3030_p8 = scmp.lt.s32.totalorder %s3028_s28, %s3023_s15 }
  0x58   : > { %p3026_p1 = pnand %p3024_p0, %p3797_p7  ;;  %p3031_p9 = por %p3030_p8, %p3029_p6 }
  0x5a   : > { %p3027_p4 = pneg %p3026_p1 }
  0x5c   : > { %p3032_p10 = pnand %p3031_p9, %p3027_p4 }
  0x5e   : > { %3035 = shalt.err (!%p3032_p10)
}
  0x5f   : > { %2781 = dma.hbm_to_vmem [thread:$0]  (!%p3785_p5), %s3780_s2, 16, %s854_s22, [#allocation8]  }
  0x60   : > { %s3563_s5 = smov [#allocation10]   ;;  %s908_s0 = sshll.u32 %s3691_s12, 4  ;;  %s3817_s0 = int_to_ptr.hbm [resolvable:$true] %s908_s0 }
  0x61   : > { %s880_s18 = sshll.u32 %s3563_s5, 4  ;;  %s3051_s1 = sshra.s32 %s3792_s7, 4  ;;  %s881_s18 = int_to_ptr.vmem [resolvable:$true] %s880_s18  ;;  %s3052_s1 = int_to_ptr.hbm [resolvable:$true] %s3051_s1 }
  0x62   : > { %s3053_s15 = scalar_lea.hbm %s3052_s1, 1  ;;  %s3058_s11 = scalar_lea.hbm %s3671_s20, 1 }
  0x63   : > { %p3054_p11 = scmp.ne.s32.totalorder %s3052_s1, %s3053_s15  ;;  %p3059_p0 = scmp.lt.s32.totalorder %s3052_s1, %s3671_s20 }
  0x64   : > { %p3060_p1 = scmp.lt.s32.totalorder %s3058_s11, %s3053_s15 }
  0x65   : > { %p3056_p12 = pnand %p3054_p11, %p3797_p7 }
  0x66   : > { %p3061_p4 = por %p3060_p1, %p3059_p0 }
  0x67   : > { %p3057_p13 = pneg %p3056_p12 }
  0x69   : > { %p3062_p6 = pnand %p3061_p4, %p3057_p13 }
  0x6b   : > { %3065 = shalt.err (!%p3062_p6)
}
  0x6c   : > { %2787 = dma.hbm_to_vmem [thread:$0]  (!%p3785_p5), %s3792_s7, 16, %s881_s18, [#allocation11]  }
  0x6d   : > { %s932_s2 = sshll.u32 %s3701_s27, 4  ;;  %s3564_s22 = smov [#allocation13]   ;;  %s3828_s2 = int_to_ptr.hbm [resolvable:$true] %s932_s2 }
  0x6e   : > { %s910_s28 = sshll.u32 %s3564_s22, 4  ;;  %s3081_s5 = sshra.s32 %s3817_s0, 4  ;;  %s911_s28 = int_to_ptr.vmem [resolvable:$true] %s910_s28  ;;  %s3082_s5 = int_to_ptr.hbm [resolvable:$true] %s3081_s5 }
  0x6f   : > { %s3083_s1 = scalar_lea.hbm %s3082_s5, 1  ;;  %s3088_s15 = scalar_lea.hbm %s3691_s12, 1 }
  0x70   : > { %p3084_p8 = scmp.ne.s32.totalorder %s3082_s5, %s3083_s1  ;;  %p3089_p11 = scmp.lt.s32.totalorder %s3082_s5, %s3691_s12 }
  0x71   : > { %p3090_p12 = scmp.lt.s32.totalorder %s3088_s15, %s3083_s1 }
  0x72   : > { %p3086_p9 = pnand %p3084_p8, %p3797_p7 }
  0x73   : > { %p3091_p13 = por %p3090_p12, %p3089_p11 }
  0x74   : > { %p3087_p10 = pneg %p3086_p9 }
  0x76   : > { %p3092_p0 = pnand %p3091_p13, %p3087_p10 }
  0x78   : > { %3095 = shalt.err (!%p3092_p0)
}
  0x79   : > { %2793 = dma.hbm_to_vmem [thread:$0]  (!%p3785_p5), %s3817_s0, 16, %s911_s28, [#allocation14]  }
  0x7a   : > { %s3565_s7 = smov [#allocation16]   ;;  %s962_s11 = sshll.u32 %s3721_s21, 4  ;;  %s3839_s11 = int_to_ptr.hbm [resolvable:$true] %s962_s11 }
  0x7b   : > { %s934_s18 = sshll.u32 %s3565_s7, 4  ;;  %s3111_s22 = sshra.s32 %s3828_s2, 4  ;;  %s935_s18 = int_to_ptr.vmem [resolvable:$true] %s934_s18  ;;  %s3112_s22 = int_to_ptr.hbm [resolvable:$true] %s3111_s22 }
  0x7c   : > { %s3113_s5 = scalar_lea.hbm %s3112_s22, 1  ;;  %s3118_s1 = scalar_lea.hbm %s3701_s27, 1 }
  0x7d   : > { %p3114_p1 = scmp.ne.s32.totalorder %s3112_s22, %s3113_s5  ;;  %p3119_p8 = scmp.lt.s32.totalorder %s3112_s22, %s3701_s27 }
  0x7e   : > { %p3120_p9 = scmp.lt.s32.totalorder %s3118_s1, %s3113_s5 }
  0x7f   : > { %p3116_p4 = pnand %p3114_p1, %p3797_p7 }
  0x80   : > { %p3121_p10 = por %p3120_p9, %p3119_p8 }
  0x81   : > { %p3117_p6 = pneg %p3116_p4 }
  0x83   : > { %p3122_p11 = pnand %p3121_p10, %p3117_p6 }
  0x85   : > { %3125 = shalt.err (!%p3122_p11)
}
  0x86   : > { %2799 = dma.hbm_to_vmem [thread:$0]  (!%p3785_p5), %s3828_s2, 16, %s935_s18, [#allocation17]  }
  0x87   : > { %s986_s0 = sshll.u32 %s4218_s8, 4  ;;  %s3566_s28 = smov [#allocation19]   ;;  %s3850_s0 = int_to_ptr.hbm [resolvable:$true] %s986_s0 }
  0x88   : > { %s964_s15 = sshll.u32 %s3566_s28, 4  ;;  %s3141_s7 = sshra.s32 %s3839_s11, 4  ;;  %s965_s15 = int_to_ptr.vmem [resolvable:$true] %s964_s15  ;;  %s3142_s7 = int_to_ptr.hbm [resolvable:$true] %s3141_s7 }
  0x89   : > { %s3143_s22 = scalar_lea.hbm %s3142_s7, 1  ;;  %s3148_s5 = scalar_lea.hbm %s3721_s21, 1 }
  0x8a   : > { %p3144_p12 = scmp.ne.s32.totalorder %s3142_s7, %s3143_s22  ;;  %p3149_p1 = scmp.lt.s32.totalorder %s3142_s7, %s3721_s21 }
  0x8b   : > { %p3150_p4 = scmp.lt.s32.totalorder %s3148_s5, %s3143_s22 }
  0x8c   : > { %p3146_p13 = pnand %p3144_p12, %p3797_p7 }
  0x8d   : > { %p3151_p6 = por %p3150_p4, %p3149_p1 }
  0x8e   : > { %p3147_p0 = pneg %p3146_p13 }
  0x90   : > { %p3152_p8 = pnand %p3151_p6, %p3147_p0 }
  0x92   : > { %3155 = shalt.err (!%p3152_p8)
}
  0x93   : > { %2805 = dma.hbm_to_vmem [thread:$0]  (!%p3785_p5), %s3839_s11, 16, %s965_s15, [#allocation20]  }
  0x94   : > { %s3567_s2 = smov [#allocation22]   ;;  %s3171_s1 = sshra.s32 %s3850_s0, 4  ;;  %s3172_s1 = int_to_ptr.hbm [resolvable:$true] %s3171_s1 }
  0x95   : > { %s988_s18 = sshll.u32 %s3567_s2, 4  ;;  %s3173_s28 = scalar_lea.hbm %s3172_s1, 1  ;;  %s989_s18 = int_to_ptr.vmem [resolvable:$true] %s988_s18 }
  0x96   : > { %p3174_p9 = scmp.ne.s32.totalorder %s3172_s1, %s3173_s28  ;;  %s3178_s7 = scalar_lea.hbm %s4218_s8, 1 }
  0x97   : > { %p3179_p12 = scmp.lt.s32.totalorder %s3172_s1, %s4218_s8  ;;  %p3180_p13 = scmp.lt.s32.totalorder %s3178_s7, %s3173_s28 }
  0x98   : > { %p3176_p10 = pnand %p3174_p9, %p3797_p7 }
  0x99   : > { %p3181_p0 = por %p3180_p13, %p3179_p12 }
  0x9a   : > { %p3177_p11 = pneg %p3176_p10 }
  0x9c   : > { %p3182_p1 = pnand %p3181_p0, %p3177_p11 }
  0x9e   : > { %3185 = shalt.err (!%p3182_p1)
}
  0x9f   : > { %2811 = dma.hbm_to_vmem [thread:$0]  (!%p3785_p5), %s3850_s0, 16, %s989_s18, [#allocation23]  }
  0xa0   : > { %s92_s11 = sadd.s32 1, %s3525_s16  ;;  %s809_s15 = sshll.u32 %s3631_s3, 4  ;;  %s810_s15 = int_to_ptr.hbm [resolvable:$true] %s809_s15 }
  0xa1   : > { %p94_p4 = scmp.ge.s32.totalorder %s92_s11, 2  ;;  %s839_s22 = sshll.u32 %s3651_s24, 4  ;;  %s3873_s22 = int_to_ptr.hbm [resolvable:$true] %s839_s22 }
  0xa2   : > { %s3568_s5 = smov [#allocation2]   ;;  %s3201_s1 = sshra.s32 %s810_s15, 4  ;;  %s3202_s1 = int_to_ptr.hbm [resolvable:$true] %s3201_s1 }
  0xa3   : > { %s4250_s11 = smov (%p94_p4, %s92_s11), 0  ;;  %s811_s2 = sshll.u32 %s3568_s5, 4  ;;  %s812_s2 = int_to_ptr.vmem [resolvable:$true] %s811_s2 }
  0xa4   : > { %s3203_s28 = scalar_lea.hbm %s3202_s1, 1  ;;  %s3208_s0 = scalar_lea.hbm %s3631_s3, 1 }
  0xa5   : > { %p3204_p6 = scmp.ne.s32.totalorder %s3202_s1, %s3203_s28  ;;  %p3209_p10 = scmp.lt.s32.totalorder %s3202_s1, %s3631_s3 }
  0xa6   : > { %p3210_p11 = scmp.lt.s32.totalorder %s3208_s0, %s3203_s28 }
  0xa7   : > { %p3206_p8 = pnand %p3204_p6, %p3797_p7 }
  0xa8   : > { %p3211_p12 = por %p3210_p11, %p3209_p10 }
  0xa9   : > { %p3207_p9 = pneg %p3206_p8 }
  0xab   : > { %p3212_p13 = pnand %p3211_p12, %p3207_p9 }
  0xad   : > { %3215 = shalt.err (!%p3212_p13)
}
  0xae   : > { %2772 = dma.hbm_to_vmem [thread:$0]  (!%p3785_p5), %s810_s15, 16, %s812_s2, [#allocation3]  }
  0xaf   : > { %s3569_s18 = smov [#allocation6]   ;;  %s863_s5 = sshll.u32 %s3661_s6, 4  ;;  %s3882_s5 = int_to_ptr.hbm [resolvable:$true] %s863_s5 }
  0xb0   : > { %s841_s7 = sshll.u32 %s3569_s18, 4  ;;  %s3231_s8 = sshra.s32 %s3873_s22, 4  ;;  %s842_s7 = int_to_ptr.vmem [resolvable:$true] %s841_s7  ;;  %s3232_s8 = int_to_ptr.hbm [resolvable:$true] %s3231_s8 }
  0xb1   : > { %s3233_s1 = scalar_lea.hbm %s3232_s8, 1  ;;  %s3238_s28 = scalar_lea.hbm %s3651_s24, 1 }
  0xb2   : > { %p3234_p0 = scmp.ne.s32.totalorder %s3232_s8, %s3233_s1  ;;  %p3239_p6 = scmp.lt.s32.totalorder %s3232_s8, %s3651_s24 }
  0xb3   : > { %p3240_p8 = scmp.lt.s32.totalorder %s3238_s28, %s3233_s1 }
  0xb4   : > { %p3236_p1 = pnand %p3234_p0, %p3797_p7 }
  0xb5   : > { %p3241_p9 = por %p3240_p8, %p3239_p6 }
  0xb6   : > { %p3237_p4 = pneg %p3236_p1 }
  0xb8   : > { %p3242_p10 = pnand %p3241_p9, %p3237_p4 }
  0xba   : > { %3245 = shalt.err (!%p3242_p10)
}
  0xbb   : > { %2778 = dma.hbm_to_vmem [thread:$0]  (!%p3785_p5), %s3873_s22, 16, %s842_s7, [#allocation5]  }
  0xbc   : > { %s893_s15 = sshll.u32 %s3681_s4, 4  ;;  %s3570_s2 = smov [#allocation9]   ;;  %s3893_s15 = int_to_ptr.hbm [resolvable:$true] %s893_s15 }
  0xbd   : > { %s865_s0 = sshll.u32 %s3570_s2, 4  ;;  %s3261_s8 = sshra.s32 %s3882_s5, 4  ;;  %s866_s0 = int_to_ptr.vmem [resolvable:$true] %s865_s0  ;;  %s3262_s8 = int_to_ptr.hbm [resolvable:$true] %s3261_s8 }
  0xbe   : > { %s3263_s18 = scalar_lea.hbm %s3262_s8, 1  ;;  %s3268_s1 = scalar_lea.hbm %s3661_s6, 1 }
  0xbf   : > { %p3264_p11 = scmp.ne.s32.totalorder %s3262_s8, %s3263_s18  ;;  %p3269_p0 = scmp.lt.s32.totalorder %s3262_s8, %s3661_s6 }
  0xc0   : > { %p3270_p1 = scmp.lt.s32.totalorder %s3268_s1, %s3263_s18 }
  0xc1   : > { %p3266_p12 = pnand %p3264_p11, %p3797_p7 }
  0xc2   : > { %p3271_p4 = por %p3270_p1, %p3269_p0 }
  0xc3   : > { %p3267_p13 = pneg %p3266_p12 }
  0xc5   : > { %p3272_p6 = pnand %p3271_p4, %p3267_p13 }
  0xc7   : > { %3275 = shalt.err (!%p3272_p6)
}
  0xc8   : > { %2784 = dma.hbm_to_vmem [thread:$0]  (!%p3785_p5), %s3882_s5, 16, %s866_s0, [#allocation8]  }
  0xc9   : > { %s3571_s22 = smov [#allocation12]   ;;  %s920_s28 = sshll.u32 %s3696_s13, 4  ;;  %s3904_s28 = int_to_ptr.hbm [resolvable:$true] %s920_s28 }
  0xca   : > { %s895_s7 = sshll.u32 %s3571_s22, 4  ;;  %s3291_s2 = sshra.s32 %s3893_s15, 4  ;;  %s896_s7 = int_to_ptr.vmem [resolvable:$true] %s895_s7  ;;  %s3292_s2 = int_to_ptr.hbm [resolvable:$true] %s3291_s2 }
  0xcb   : > { %s3293_s8 = scalar_lea.hbm %s3292_s2, 1  ;;  %s3298_s18 = scalar_lea.hbm %s3681_s4, 1 }
  0xcc   : > { %p3294_p8 = scmp.ne.s32.totalorder %s3292_s2, %s3293_s8  ;;  %p3299_p11 = scmp.lt.s32.totalorder %s3292_s2, %s3681_s4 }
  0xcd   : > { %p3300_p12 = scmp.lt.s32.totalorder %s3298_s18, %s3293_s8 }
  0xce   : > { %p3296_p9 = pnand %p3294_p8, %p3797_p7 }
  0xcf   : > { %p3301_p13 = por %p3300_p12, %p3299_p11 }
  0xd0   : > { %p3297_p10 = pneg %p3296_p9 }
  0xd2   : > { %p3302_p0 = pnand %p3301_p13, %p3297_p10 }
  0xd4   : > { %3305 = shalt.err (!%p3302_p0)
}
  0xd5   : > { %2790 = dma.hbm_to_vmem [thread:$0]  (!%p3785_p5), %s3893_s15, 16, %s896_s7, [#allocation11]  }
  0xd6   : > { %s947_s5 = sshll.u32 %s3711_s19, 4  ;;  %s3572_s0 = smov [#allocation15]   ;;  %s3915_s5 = int_to_ptr.hbm [resolvable:$true] %s947_s5 }
  0xd7   : > { %s922_s1 = sshll.u32 %s3572_s0, 4  ;;  %s3321_s22 = sshra.s32 %s3904_s28, 4  ;;  %s923_s1 = int_to_ptr.vmem [resolvable:$true] %s922_s1  ;;  %s3322_s22 = int_to_ptr.hbm [resolvable:$true] %s3321_s22 }
  0xd8   : > { %s3323_s2 = scalar_lea.hbm %s3322_s22, 1  ;;  %s3328_s8 = scalar_lea.hbm %s3696_s13, 1 }
  0xd9   : > { %p3324_p1 = scmp.ne.s32.totalorder %s3322_s22, %s3323_s2  ;;  %p3329_p8 = scmp.lt.s32.totalorder %s3322_s22, %s3696_s13 }
  0xda   : > { %p3330_p9 = scmp.lt.s32.totalorder %s3328_s8, %s3323_s2 }
  0xdb   : > { %p3326_p4 = pnand %p3324_p1, %p3797_p7 }
  0xdc   : > { %p3331_p10 = por %p3330_p9, %p3329_p8 }
  0xdd   : > { %p3327_p6 = pneg %p3326_p4 }
  0xdf   : > { %p3332_p11 = pnand %p3331_p10, %p3327_p6 }
  0xe1   : > { %3335 = shalt.err (!%p3332_p11)
}
  0xe2   : > { %2796 = dma.hbm_to_vmem [thread:$0]  (!%p3785_p5), %s3904_s28, 16, %s923_s1, [#allocation14]  }
  0xe3   : > { %s3573_s15 = smov [#allocation18]   ;;  %s974_s18 = sshll.u32 %s3726_s25, 4  ;;  %s3926_s18 = int_to_ptr.hbm [resolvable:$true] %s974_s18 }
  0xe4   : > { %s949_s7 = sshll.u32 %s3573_s15, 4  ;;  %s3351_s0 = sshra.s32 %s3915_s5, 4  ;;  %s950_s7 = int_to_ptr.vmem [resolvable:$true] %s949_s7  ;;  %s3352_s0 = int_to_ptr.hbm [resolvable:$true] %s3351_s0 }
  0xe5   : > { %s3353_s22 = scalar_lea.hbm %s3352_s0, 1  ;;  %s3358_s2 = scalar_lea.hbm %s3711_s19, 1 }
  0xe6   : > { %p3354_p12 = scmp.ne.s32.totalorder %s3352_s0, %s3353_s22  ;;  %p3359_p1 = scmp.lt.s32.totalorder %s3352_s0, %s3711_s19 }
  0xe7   : > { %p3360_p4 = scmp.lt.s32.totalorder %s3358_s2, %s3353_s22 }
  0xe8   : > { %p3356_p13 = pnand %p3354_p12, %p3797_p7 }
  0xe9   : > { %p3361_p6 = por %p3360_p4, %p3359_p1 }
  0xea   : > { %p3357_p0 = pneg %p3356_p13 }
  0xec   : > { %p3362_p8 = pnand %p3361_p6, %p3357_p0 }
  0xee   : > { %3365 = shalt.err (!%p3362_p8)
}
  0xef   : > { %2802 = dma.hbm_to_vmem [thread:$0]  (!%p3785_p5), %s3915_s5, 16, %s950_s7, [#allocation17]  }
  0xf0   : > { %s998_s28 = sshll.u32 %s3736_s17, 4  ;;  %s3574_s1 = smov [#allocation21]   ;;  %s3937_s28 = int_to_ptr.hbm [resolvable:$true] %s998_s28 }
  0xf1   : > { %s976_s8 = sshll.u32 %s3574_s1, 4  ;;  %s3381_s15 = sshra.s32 %s3926_s18, 4  ;;  %s977_s8 = int_to_ptr.vmem [resolvable:$true] %s976_s8  ;;  %s3382_s15 = int_to_ptr.hbm [resolvable:$true] %s3381_s15 }
  0xf2   : > { %s3383_s0 = scalar_lea.hbm %s3382_s15, 1  ;;  %s3388_s22 = scalar_lea.hbm %s3726_s25, 1 }
  0xf3   : > { %p3384_p9 = scmp.ne.s32.totalorder %s3382_s15, %s3383_s0  ;;  %p3389_p12 = scmp.lt.s32.totalorder %s3382_s15, %s3726_s25 }
  0xf4   : > { %p3390_p13 = scmp.lt.s32.totalorder %s3388_s22, %s3383_s0 }
  0xf5   : > { %p3386_p10 = pnand %p3384_p9, %p3797_p7 }
  0xf6   : > { %p3391_p0 = por %p3390_p13, %p3389_p12 }
  0xf7   : > { %p3387_p11 = pneg %p3386_p10 }
  0xf9   : > { %p3392_p1 = pnand %p3391_p0, %p3387_p11 }
  0xfb   : > { %3395 = shalt.err (!%p3392_p1)
}
  0xfc   : > { %2808 = dma.hbm_to_vmem [thread:$0]  (!%p3785_p5), %s3926_s18, 16, %s977_s8, [#allocation20]  }
  0xfd   : > { %s3575_s5 = smov [#allocation24]   ;;  %s1010_s2 = sshll.u32 %s3741_s29, 4  ;;  %s1011_s2 = int_to_ptr.hbm [resolvable:$true] %s1010_s2 }
  0xfe   : > { %s1000_s7 = sshll.u32 %s3575_s5, 4  ;;  %s3411_s1 = sshra.s32 %s3937_s28, 4  ;;  %s1001_s7 = int_to_ptr.vmem [resolvable:$true] %s1000_s7  ;;  %s3412_s1 = int_to_ptr.hbm [resolvable:$true] %s3411_s1 }
  0xff   : > { %s3413_s15 = scalar_lea.hbm %s3412_s1, 1  ;;  %s3418_s0 = scalar_lea.hbm %s3736_s17, 1 }
 0x100   : > { %p3414_p4 = scmp.ne.s32.totalorder %s3412_s1, %s3413_s15  ;;  %p3419_p9 = scmp.lt.s32.totalorder %s3412_s1, %s3736_s17 }
 0x101   : > { %p3420_p10 = scmp.lt.s32.totalorder %s3418_s0, %s3413_s15 }
 0x102   : > { %p3416_p6 = pnand %p3414_p4, %p3797_p7 }
 0x103   : > { %p3421_p11 = por %p3420_p10, %p3419_p9 }
 0x104   : > { %p3417_p8 = pneg %p3416_p6 }
 0x106   : > { %p3422_p12 = pnand %p3421_p11, %p3417_p8 }
 0x108   : > { %3425 = shalt.err (!%p3422_p12)
}
 0x109   : > { %2814 = dma.hbm_to_vmem [thread:$0]  (!%p3785_p5), %s3937_s28, 16, %s1001_s7, [#allocation23]  }
 0x10a   : > { %s3576_s18 = smov [#allocation25]   ;;  %s3441_s22 = sshra.s32 %s1011_s2, 4  ;;  %s3442_s22 = int_to_ptr.hbm [resolvable:$true] %s3441_s22 }
 0x10b   : > { %s1012_s8 = sshll.u32 %s3576_s18, 4  ;;  %s3443_s5 = scalar_lea.hbm %s3442_s22, 1  ;;  %s1013_s8 = int_to_ptr.vmem [resolvable:$true] %s1012_s8 }
 0x10c   : > { %p3444_p13 = scmp.ne.s32.totalorder %s3442_s22, %s3443_s5  ;;  %s3448_s1 = scalar_lea.hbm %s3741_s29, 1 }
 0x10d   : > { %p3449_p4 = scmp.lt.s32.totalorder %s3442_s22, %s3741_s29  ;;  %p3450_p6 = scmp.lt.s32.totalorder %s3448_s1, %s3443_s5 }
 0x10e   : > { %p3446_p0 = pnand %p3444_p13, %p3797_p7 }
 0x10f   : > { %p3451_p8 = por %p3450_p6, %p3449_p4 }
 0x110   : > { %p3447_p1 = pneg %p3446_p0 }
 0x112   : > { %p3452_p9 = pnand %p3451_p8, %p3447_p1 }
 0x114   : > { %3455 = shalt.err (!%p3452_p9)
}
 0x115   : > { %2817 = dma.hbm_to_vmem [thread:$0]  (!%p3785_p5), %s1011_s2, 16, %s1013_s8, [#allocation26]  }
 0x116   : > { %1060 = sbr.rel (%p3773_p3) target bundleno = 4045 (0xfcd), region = 140 }
 0x11b   : > { %3484 = dma.done.wait (%p3769_p2), [#allocation3], 16  }
 0x11c   : > { %3486 = vsyncadd (%p3769_p2), [#allocation3], 4294967280 }
 0x11d   : > { %3488 = dma.done.wait (%p3769_p2), [#allocation5], 32  }
 0x11e   : > { %3490 = vsyncadd (%p3769_p2), [#allocation5], 4294967264 }
 0x11f   : > { %3492 = dma.done.wait (%p3769_p2), [#allocation8], 32  }
 0x120   : > { %3494 = vsyncadd (%p3769_p2), [#allocation8], 4294967264 }
 0x121   : > { %3496 = dma.done.wait (%p3769_p2), [#allocation11], 32  }
 0x122   : > { %3498 = vsyncadd (%p3769_p2), [#allocation11], 4294967264 }
 0x123   : > { %3500 = dma.done.wait (%p3769_p2), [#allocation14], 32  }
 0x124   : > { %3502 = vsyncadd (%p3769_p2), [#allocation14], 4294967264 }
 0x125   : > { %3504 = dma.done.wait (%p3769_p2), [#allocation17], 32  }
 0x126   : > { %3506 = vsyncadd (%p3769_p2), [#allocation17], 4294967264 }
 0x127   : > { %3508 = dma.done.wait (%p3769_p2), [#allocation20], 32  }
 0x128   : > { %3510 = vsyncadd (%p3769_p2), [#allocation20], 4294967264 }
 0x129   : > { %3512 = dma.done.wait (%p3769_p2), [#allocation23], 32  }
 0x12a   : > { %3514 = vsyncadd (%p3769_p2), [#allocation23], 4294967264 }
 0x12b   : > { %3516 = dma.done.wait (%p3769_p2), [#allocation26], 16  }
 0x12c   : > { %3518 = vsyncadd (%p3769_p2), [#allocation26], 4294967280  ;;  %s4225_s9 = sld [smem:[#allocation52_spill]]  ;;  %vm1304_vm0 = vcmask 261120   ;;  %v2931_v8 = vld [vmem:[#allocation2] ss:$0 sm:$0xff] }
 0x12d   : > { %s4226_s26 = sld [smem:[#allocation36_spill]]  ;;  %v2932_v9 = vld [vmem:[#allocation4] ss:$0 sm:$0xff]  ;;  %vm1356_vm1 = vcmask 64512   ;;  %s3577_s18 = smov 96   ;;  %vm1396_vm2 = vcmask 1043456  }
 0x12e   : > { %s4227_s10 = sld [smem:[#allocation37_spill]]  ;;  %s3578_s8 = smov 120   ;;  %vm1606_vm3 = vcmask 130048   ;;  %vm1609_vm4 = vcmask 195584   ;;  %vm2159_vm12 = vcmask 523264  }
 0x12f   : > { %s4228_s28 = sld [smem:[#allocation42_spill]]  ;;  %s3579_s5 = smov 112  }
 0x130   : > { %s4229_s7 = sld [smem:[#allocation43_spill]] }
 0x131   : > { %s4230_s23 = sld [smem:[#allocation40_spill]] }
 0x132   : > { %p1233_p3 = scmp.lt.s32.totalorder %s4225_s9, 1  ;;  %s4231_s1 = sld [smem:[#allocation39_spill]] }
 0x134   : > { %s4252_s9 = smov (!%p1233_p3, %s4225_s9), 1 }
 0x135   : > { %s4005_s2 = sshll.u32 %s4252_s9, 3  ;;  %v2688_v0 = vld [vmem:[%s4228_s28 + $0x8] sm:$0xff]  ;;  %v2687_v2 = vld [vmem:[%s4228_s28] sm:$0xff] }
 0x136   : > { %s1236_s15 = scalar_lea.vmem %s4226_s26, %s4005_s2  ;;  %s1241_s0 = scalar_lea.vmem %s4227_s10, %s4005_s2  ;;  %v2690_v1 = vld [vmem:[%s4229_s7 + $0x8] sm:$0xff]  ;;  %v2689_v3 = vld [vmem:[%s4229_s7] sm:$0xff]  ;;  %1314 = vmatpush.bf16.msra.mxu0 %v2688_v0 }
 0x137   : > { %v4015_v4 = vld [vmem:[%s1236_s15] sm:$0xff]  ;;  %1346 = vmatpush.bf16.msra.mxu1 %v2690_v1  ;;  %s1252_s22 = scalar_lea.vmem %s4230_s23, %s4252_s9  ;;  %s3580_s26 = smov 104  }
 0x138   : > { %v1270_v5 = vld [vmem:[%s1241_s0] sm:$0xff]  ;;  %v1288_v6 = vpack.c.bf16 %v4015_v4, %v4015_v4  ;;  %s4201_s10 = smov 88   ;;  %s3582_s15 = smov 80  }
 0x139   : > { %v1321_v7 = vpack.c.bf16 %v1270_v5, %v1270_v5  ;;  %v2933_v31 = vld [vmem:[%s1252_s22] ss:$0 sm:$0xff]  ;;  %s4197_s0 = smov 72   ;;  %s4200_s23 = smov 8  }
 0x13a   : > { %1315 = vmatpush.bf16.msra.mxu0 %v2687_v2  ;;  %v1264_v32 = vld [vmem:[%s4231_s1] sm:$0xff]  ;;  %s4232_s22 = sld [smem:[#allocation44_spill]]  ;;  %s4199_s1 = smov 16  }
 0x13b   : > { %1347 = vmatpush.bf16.msra.mxu1 %v2689_v3  ;;  %v1269_v34 = vadd.f32 %v2933_v31, %v1264_v32 }
 0x13d   : > { %2597 = vmatmul.msk.bf16.vlgmr.msra.gmra.mxu0 %vm1304_vm0, %v1288_v6 }
 0x13e   : > { %2606 = vmatmul.msk.bf16.vlgmr.msra.gmra.mxu1 %vm1304_vm0, %v1321_v7 }
 0x1ba   : > { %v1317_v10 = vpop.f32.mrf.mxu0 }
 0x1bb   : > { %v1349_v11 = vpop.f32.mrf.mxu1  ;;  %v1318_v12 = vadd.f32 %v2931_v8, %v1317_v10 }
 0x1bc   : > { %v1350_v13 = vadd.f32 %v2932_v9, %v1349_v11 }
 0x1bd   : > { %v1353_v14 = vmul.f32 0.35355338, %v1318_v12 }
 0x1be   : > { %v1355_v15 = vpack.c.bf16 %v1350_v13, %v1350_v13 }
 0x1bf   : > { %v1354_v16 = vpack.c.bf16 %v1353_v14, %v1353_v14 }
 0x1c0   : > { %v1389_v17 = vunpack.c.l.b16 %v1355_v15  ;;  %v1361_v18 = vsel %vm1356_vm1, %v1355_v15, 0 }
 0x1c1   : > { %1370 = vmatpush.bf16.xpose.msra.mxu2 %v1361_v18  ;;  %v1415_v19 = vunpack.c.l.b16 %v1354_v16 }
 0x1c2   : > { %v4022_v20 = vpack.c.b16 %v1389_v17, %v1389_v17  ;;  %v1319_v21 = vpop.f32.mrf.mxu0 }
 0x1c3   : > { %v1351_v22 = vpop.f32.mrf.mxu1  ;;  %v1416_v23 = vpack.c.b16 %v1415_v19, %v1415_v19 }
 0x1c4   : > { %1391 = vrot.lane.b32.xlu1 %v4022_v20, %s3577_s18 }
 0x1c5   : > { %1417 = vrot.lane.b32.xlu2 %v1416_v23, %s3578_s8 }
 0x1c8   : > { %2607 = vmatmul.msk.bf16.vlgmr.msra.gmra.mxu2 %vm1356_vm1, %v1354_v16 }
 0x1cc   : > { %1419 = vrot.lane.b32.xlu1 %v4022_v20, %s3578_s8 }
 0x1cd   : > { %1476 = vrot.lane.b32.xlu2 %v4022_v20, %s3579_s5 }
 0x1d4   : > { %1474 = vrot.lane.b32.xlu1 %v1416_v23, %s3579_s5 }
 0x1d5   : > { %1531 = vrot.lane.b32.xlu2 %v1416_v23, %s3580_s26 }
 0x21f   : > { %v1418_v24 = vpop.permute.xlu2 %1417 }
 0x227   : > { %v1477_v25 = vpop.permute.xlu2 %1476 }
 0x228   : > { %v1482_v26 = vsel %vm1356_vm1, %v1477_v25, 0 }
 0x229   : > { %1491 = vmatpush.bf16.xpose.msrb.mxu1 %v1482_v26 }
 0x22f   : > { %v1532_v48 = vpop.permute.xlu2 %1531 }
 0x236   : > { %v1392_v27 = vpop.permute.xlu1 %1391 }
 0x237   : > { %v1398_v28 = vsel %vm1396_vm2, %v1392_v27, 0 }
 0x238   : > { %1407 = vmatpush.bf16.msra.mxu3 %v1398_v28 }
 0x23e   : > { %v1420_v29 = vpop.permute.xlu1 %1419 }
 0x23f   : > { %v1425_v30 = vsel %vm1356_vm1, %v1420_v29, 0 }
 0x240   : > { %1434 = vmatpush.bf16.xpose.msrb.mxu3 %v1425_v30 }
 0x246   : > { %v1475_v33 = vpop.permute.xlu1 %1474 }
 0x247   : > { %2611 = vmatmul.msk.bf16.vlgmr.msrb.gmra.mxu1 %vm1356_vm1, %v1475_v33 }
 0x24b   : > { %v1372_v35 = vpop.f32.mrf.mxu2 }
 0x24c   : > { %v1373_v36 = vadd.f32 %v1372_v35, %v1269_v34 }
 0x24e   : > { %v1376_v37 = vsel %vm1356_vm1, %v1373_v36, -inf }
 0x24f   : > { %1377 = vmax.xlane.f32.xlu0 %v1376_v37 }
 0x253   : > { %v1374_v38 = vpop.f32.mrf.mxu2 }
 0x2c2   : > { %v1378_v39 = vpop.xlane.xlu0 %1377 }
 0x2c3   : > { %v1379_v40 = vsub.f32 %v1373_v36, %v1378_v39 }
 0x2c4   : > { %v1493_v41 = vpop.f32.mrf.mxu1 }
 0x2c5   : > { %v1380_v42 = vmul.f32 1.442695, %v1379_v40  ;;  %v1494_v43 = vadd.f32 %v1493_v41, %v1269_v34 }
 0x2c7   : > { %2949 = vpow2.f32 %v1380_v42  ;;  %v1497_v44 = vsel %vm1356_vm1, %v1494_v43, -inf }
 0x2c8   : > { %1498 = vmax.xlane.f32.xlu2 %v1497_v44 }
 0x2cc   : > { %v1495_v45 = vpop.f32.mrf.mxu1 }
 0x2cd   : > { %v2950_v46 = vpop.eup %2949 }
 0x2ce   : > { %v1382_v47 = vsel %vm1356_vm1, %v2950_v46, 0.0 }
 0x2cf   : > { %1383 = vadd.xlane.f32.xlu0 %v1382_v47 }
 0x2e3   : > { %1533 = vrot.lane.b32.xlu0 %v4022_v20, %s3580_s26 }
 0x33b   : > { %v1499_v49 = vpop.xlane.xlu2 %1498 }
 0x33c   : > { %v1500_v50 = vsub.f32 %v1494_v43, %v1499_v49 }
 0x33e   : > { %v1501_v51 = vmul.f32 1.442695, %v1500_v50  ;;  %v2692_v50 = vld [vmem:[%s4232_s22 + $0x8] sm:$0xff] }
 0x33f   : > { %1635 = vmatpush.bf16.msra.mxu1 %v2692_v50 }
 0x340   : > { %2951 = vpow2.f32 %v1501_v51  ;;  %v2691_v51 = vld [vmem:[%s4232_s22] sm:$0xff] }
 0x342   : > { %v1384_v52 = vpop.xlane.xlu0 %1383 }
 0x343   : > { %2953 = vrcp.f32 %v1384_v52  ;;  %1636 = vmatpush.bf16.msra.mxu1 %v2691_v51 }
 0x346   : > { %v2952_v53 = vpop.eup %2951 }
 0x347   : > { %v1503_v54 = vsel %vm1356_vm1, %v2952_v53, 0.0 }
 0x348   : > { %1504 = vadd.xlane.f32.xlu2 %v1503_v54 }
 0x349   : > { %v2954_v55 = vpop.eup %2953 }
 0x34a   : > { %v1386_v56 = vmul.f32 %v2954_v55, %v2950_v46 }
 0x34c   : > { %v1387_v57 = vpack.c.bf16 %v1386_v56, %v1386_v56 }
 0x34e   : > { %2608 = vmatmul.msk.bf16.vlgmr.msra.gmra.mxu3 %vm1356_vm1, %v1387_v57 }
 0x355   : > { %v1534_v58 = vpop.permute.xlu0 %1533 }
 0x356   : > { %v1539_v59 = vsel %vm1356_vm1, %v1534_v58, 0 }
 0x357   : > { %1548 = vmatpush.bf16.xpose.msra.mxu3 %v1539_v59  ;;  %v2934_v59 = vld [vmem:[#allocation6] ss:$0 sm:$0xff] }
 0x35e   : > { %2609 = vmatmul.msk.bf16.vlgmr.msrb.gmra.mxu3 %vm1356_vm1, %v1418_v24 }
 0x36e   : > { %2613 = vmatmul.msk.bf16.vlgmr.msra.gmra.mxu3 %vm1356_vm1, %v1532_v48 }
 0x3bb   : > { %v1505_v19 = vpop.xlane.xlu2 %1504 }
 0x3d1   : > { %v4051_v60 = vpop.f32.mrf.mxu3 }
 0x3d9   : > { %v1411_v61 = vpop.f32.mrf.mxu3 }
 0x3e1   : > { %v1436_v62 = vpop.f32.mrf.mxu3 }
 0x3e2   : > { %v1437_v63 = vadd.f32 %v1436_v62, %v1269_v34 }
 0x3e4   : > { %v1440_v0 = vsel %vm1356_vm1, %v1437_v63, -inf }
 0x3e5   : > { %1441 = vmax.xlane.f32.xlu1 %v1440_v0 }
 0x3e9   : > { %v1438_v1 = vpop.f32.mrf.mxu3 }
 0x3ea   : > { %v3587_v1 = vmov 32.0  }
 0x3f1   : > { %v1550_v2 = vpop.f32.mrf.mxu3 }
 0x3f2   : > { %v1551_v3 = vadd.f32 %v1550_v2, %v1269_v34 }
 0x3f4   : > { %v1554_v5 = vsel %vm1356_vm1, %v1551_v3, -inf }
 0x3f5   : > { %1555 = vmax.xlane.f32.xlu0 %v1554_v5 }
 0x3f9   : > { %v1552_v6 = vpop.f32.mrf.mxu3 }
 0x3fe   : > { %1452 = vrot.lane.b32.xlu1 %v4022_v20, %s4201_s10 }
 0x458   : > { %v1442_v7 = vpop.xlane.xlu1 %1441 }
 0x459   : > { %v1443_v8 = vsub.f32 %v1437_v63, %v1442_v7 }
 0x45b   : > { %v1444_v9 = vmul.f32 1.442695, %v1443_v8 }
 0x45d   : > { %2955 = vpow2.f32 %v1444_v9 }
 0x463   : > { %v2956_v10 = vpop.eup %2955 }
 0x464   : > { %v1446_v11 = vsel %vm1356_vm1, %v2956_v10, 0.0 }
 0x465   : > { %1447 = vadd.xlane.f32.xlu2 %v1446_v11 }
 0x468   : > { %v1556_v12 = vpop.xlane.xlu0 %1555 }
 0x469   : > { %v1557_v13 = vsub.f32 %v1551_v3, %v1556_v12 }
 0x46b   : > { %v1558_v14 = vmul.f32 1.442695, %v1557_v13 }
 0x46d   : > { %2957 = vpow2.f32 %v1558_v14 }
 0x46e   : > { %2959 = vrcp.f32 %v1505_v19 }
 0x470   : > { %v1453_v15 = vpop.permute.xlu1 %1452 }
 0x471   : > { %v1458_v16 = vsel %vm1396_vm2, %v1453_v15, 0 }
 0x472   : > { %1467 = vmatpush.bf16.msrb.mxu0 %v1458_v16 }
 0x473   : > { %v2958_v17 = vpop.eup %2957 }
 0x474   : > { %v1560_v18 = vsel %vm1356_vm1, %v2958_v17, 0.0  ;;  %v2960_v22 = vpop.eup %2959 }
 0x475   : > { %1561 = vadd.xlane.f32.xlu0 %v1560_v18  ;;  %v1507_v24 = vmul.f32 %v2960_v22, %v2952_v53  ;;  %v1413_v53 = vpack.c.bf16 %v4051_v60, %v4051_v60 }
 0x477   : > { %v1508_v29 = vpack.c.bf16 %v1507_v24, %v1507_v24 }
 0x47d   : > { %1509 = vrot.lane.b32.xlu2 %v4022_v20, %s3582_s15 }
 0x489   : > { %1566 = vrot.lane.b32.xlu0 %v4022_v20, %s4197_s0  ;;  %s4198_s0 = smov 24  }
 0x4d8   : > { %v1448_v21 = vpop.xlane.xlu2 %1447 }
 0x4d9   : > { %2961 = vrcp.f32 %v1448_v21 }
 0x4df   : > { %v2962_v23 = vpop.eup %2961 }
 0x4e0   : > { %v1450_v25 = vmul.f32 %v2962_v23, %v2956_v10  ;;  %v1510_v26 = vpop.permute.xlu2 %1509 }
 0x4e1   : > { %v1515_v27 = vsel %vm1396_vm2, %v1510_v26, 0 }
 0x4e2   : > { %1524 = vmatpush.bf16.msrb.mxu2 %v1515_v27  ;;  %v1451_v28 = vpack.c.bf16 %v1450_v25, %v1450_v25 }
 0x4e4   : > { %2610 = vmatmul.msk.bf16.vlgmr.msrb.gmra.mxu0 %vm1356_vm1, %v1451_v28 }
 0x4e5   : > { %2612 = vmatmul.msk.bf16.vlgmr.msrb.gmra.mxu2 %vm1356_vm1, %v1508_v29  ;;  %v2935_v29 = vld [vmem:[#allocation7] ss:$0 sm:$0xff] }
 0x4e8   : > { %v1562_v30 = vpop.xlane.xlu0 %1561 }
 0x4e9   : > { %2963 = vrcp.f32 %v1562_v30 }
 0x4ea   : > { %2965 = vrcp.f32 %v3587_v1 }
 0x4ef   : > { %v2964_v20 = vpop.eup %2963 }
 0x4f0   : > { %v1564_v31 = vmul.f32 %v2964_v20, %v2958_v17  ;;  %v2966_v2 = vpop.eup %2965  ;;  %v2936_v20 = vld [vmem:[#allocation9] ss:$0 sm:$0xff] }
 0x4f1   : > { %v1647_v3 = vmul.f32 32.0, %v2966_v2  ;;  %vm1651_vm5 = vweird.f32 %v2966_v2 }
 0x4f2   : > { %v1565_v34 = vpack.c.bf16 %v1564_v31, %v1564_v31 }
 0x4f3   : > { %v1648_v5 = vsub.f32 1.0, %v1647_v3 }
 0x4f5   : > { %v1649_v6 = vmul.f32 %v2966_v2, %v1648_v5 }
 0x4f7   : > { %v1650_v7 = vadd.f32 %v2966_v2, %v1649_v6 }
 0x4f9   : > { %v4082_v8 = vsel %vm1651_vm5, %v2966_v2, %v1650_v7 }
 0x4fb   : > { %v1567_v32 = vpop.permute.xlu0 %1566 }
 0x4fc   : > { %v1572_v33 = vsel %vm1396_vm2, %v1567_v32, 0 }
 0x4fd   : > { %1581 = vmatpush.bf16.msra.mxu0 %v1572_v33 }
 0x500   : > { %2614 = vmatmul.msk.bf16.vlgmr.msra.gmra.mxu0 %vm1356_vm1, %v1565_v34 }
 0x561   : > { %v1469_v35 = vpop.f32.mrf.mxu0 }
 0x562   : > { %v1473_v36 = vpack.c.bf16 %v1469_v35, %v1469_v35  ;;  %v2937_v35 = vld [vmem:[#allocation12] ss:$0 sm:$0xff] }
 0x564   : > { %v1589_v37 = vunpack.c.l.b16 %v1473_v36 }
 0x566   : > { %v1590_v38 = vpack.c.b16 %v1589_v37, %v1589_v37 }
 0x568   : > { %v1526_v39 = vpop.f32.mrf.mxu2  ;;  %1591 = vrot.lane.b32.xlu1 %v1590_v38, %s4200_s23  ;;  %s4235_s23 = sld [smem:[#allocation45_spill]] }
 0x569   : > { %v1530_v40 = vpack.c.bf16 %v1526_v39, %v1526_v39  ;;  %v1471_v41 = vpop.f32.mrf.mxu0 }
 0x56b   : > { %v1594_v42 = vunpack.c.l.b16 %v1530_v40 }
 0x56d   : > { %v1595_v43 = vpack.c.b16 %v1594_v42, %v1594_v42 }
 0x56e   : > { %v2694_v17 = vld [vmem:[%s4235_s23 + $0x8] sm:$0xff]  ;;  %v2693_v18 = vld [vmem:[%s4235_s23] sm:$0xff] }
 0x56f   : > { %1724 = vmatpush.bf16.msra.mxu2 %v2694_v17 }
 0x570   : > { %v1528_v44 = vpop.f32.mrf.mxu2  ;;  %1596 = vrot.lane.b32.xlu1 %v1595_v43, %s4199_s1  ;;  %s4234_s1 = sld [smem:[#allocation38_spill]]  ;;  %v2938_v43 = vld [vmem:[#allocation10] ss:$0 sm:$0xff] }
 0x573   : > { %1725 = vmatpush.bf16.msra.mxu2 %v2693_v18 }
 0x576   : > { %s1245_s10 = scalar_lea.vmem %s4234_s1, %s4005_s2 }
 0x577   : > { %v1681_v15 = vld [vmem:[%s1245_s10] sm:$0xff]  ;;  %s4236_s10 = sld [smem:[#allocation41_spill]] }
 0x578   : > { %v1731_v16 = vpack.c.bf16 %v1681_v15, %v1681_v15 }
 0x57d   : > { %v1583_v45 = vpop.f32.mrf.mxu0  ;;  %s1255_s1 = scalar_lea.vmem %s4236_s10, %s4252_s9  ;;  %s4237_s9 = smov 88  }
 0x57e   : > { %v1587_v46 = vpack.c.bf16 %v1583_v45, %v1583_v45  ;;  %s4243_s10 = sld [smem:[#allocation48_spill]] }
 0x580   : > { %v1599_v47 = vunpack.c.l.b16 %v1587_v46 }
 0x582   : > { %v1600_v48 = vpack.c.b16 %v1599_v47, %v1599_v47 }
 0x584   : > { %1601 = vrot.lane.b32.xlu2 %v1600_v48, %s4198_s0  ;;  %s4233_s0 = sld [smem:[#allocation46_spill]] }
 0x585   : > { %v1585_v49 = vpop.f32.mrf.mxu0 }
 0x58a   : > { %v2696_v13 = vld [vmem:[%s4233_s0 + $0x8] sm:$0xff]  ;;  %v2695_v14 = vld [vmem:[%s4233_s0] sm:$0xff] }
 0x58b   : > { %1756 = vmatpush.bf16.msrb.mxu3 %v2696_v13 }
 0x58f   : > { %1757 = vmatpush.bf16.msrb.mxu3 %v2695_v14 }
 0x592   : > { %2641 = vmatmul.msk.bf16.vlgmr.msrb.gmra.mxu3 %vm1304_vm0, %v1731_v16 }
 0x5da   : > { %v1592_v52 = vpop.permute.xlu1 %1591 }
 0x5db   : > { %v1605_v54 = vsel %vm1356_vm1, %v1413_v53, %v1592_v52 }
 0x5de   : > { %v1602_v56 = vpop.permute.xlu2 %1601 }
 0x5e2   : > { %v1597_v55 = vpop.permute.xlu1 %1596 }
 0x5e3   : > { %v1608_v57 = vsel %vm1606_vm3, %v1605_v54, %v1597_v55 }
 0x5e4   : > { %v1611_v58 = vsel %vm1609_vm4, %v1608_v57, %v1602_v56 }
 0x5e5   : > { %2623 = vmatmul.msk.bf16.vlgmr.msra.gmra.mxu1 %vm1304_vm0, %v1611_v58 }
 0x615   : > { %v1759_v36 = vpop.f32.mrf.mxu3 }
 0x616   : > { %v1760_v37 = vadd.f32 %v2937_v35, %v1759_v36 }
 0x618   : > { %v1765_v38 = vpack.c.bf16 %v1760_v37, %v1760_v37 }
 0x61a   : > { %v1773_v39 = vsel %vm1356_vm1, %v1765_v38, 0  ;;  %v1801_v40 = vunpack.c.l.b16 %v1765_v38 }
 0x61b   : > { %1782 = vmatpush.bf16.xpose.msrb.mxu0 %v1773_v39 }
 0x61c   : > { %v4100_v41 = vpack.c.b16 %v1801_v40, %v1801_v40 }
 0x61d   : > { %v1761_v42 = vpop.f32.mrf.mxu3 }
 0x61e   : > { %1830 = vrot.lane.b32.xlu2 %v4100_v41, %s3578_s8 }
 0x662   : > { %v1638_v61 = vpop.f32.mrf.mxu1 }
 0x663   : > { %v1639_v62 = vadd.f32 %v2934_v59, %v1638_v61  ;;  %v2939_v59 = vld [vmem:[%s1255_s1] ss:$0 sm:$0xff]  ;;  %s4244_s1 = sld [smem:[#allocation49_spill]] }
 0x665   : > { %v1642_v63 = vadd.f32 %v1639_v62, %v4015_v4 }
 0x667   : > { %v1643_v0 = vsel %vm1304_vm0, %v1642_v63, 0.0 }
 0x668   : > { %1644 = vadd.xlane.f32.xlu0 %v1643_v0 }
 0x66a   : > { %v1640_v60 = vpop.f32.mrf.mxu1 }
 0x678   : > { %v1831_v51 = vpop.permute.xlu2 %1830 }
 0x679   : > { %v1836_v52 = vsel %vm1356_vm1, %v1831_v51, 0 }
 0x67a   : > { %1845 = vmatpush.bf16.xpose.msrb.mxu2 %v1836_v52 }
 0x6db   : > { %v1645_v4 = vpop.xlane.xlu0 %1644 }
 0x6dc   : > { %v1653_v9 = vmul.f32 %v4082_v8, %v1645_v4 }
 0x6de   : > { %v1654_v10 = vsub.f32 %v1642_v63, %v1653_v9 }
 0x6e0   : > { %v1655_v11 = vmul.f32 %v1654_v10, %v1654_v10 }
 0x6e2   : > { %v1656_v12 = vsel %vm1304_vm0, %v1655_v11, 0.0 }
 0x6e3   : > { %1657 = vadd.xlane.f32.xlu1 %v1656_v12 }
 0x756   : > { %v1658_v19 = vpop.xlane.xlu1 %1657 }
 0x757   : > { %v1659_v21 = vmul.f32 %v1658_v19, %v4082_v8 }
 0x759   : > { %v1660_v22 = vadd.f32 1e-05, %v1659_v21 }
 0x75b   : > { %2967 = vrsqrt.f32 %v1660_v22  ;;  %vm1667_vm7 = vweird.f32 %v1660_v22 }
 0x761   : > { %v2968_v23 = vpop.eup %2967 }
 0x762   : > { %v1662_v24 = vmul.f32 %v2968_v23, %v1660_v22  ;;  %vm1668_vm6 = vweird.f32 %v2968_v23 }
 0x763   : > { %vm1669_vm8 = vmor %vm1667_vm7, %vm1668_vm6 }
 0x764   : > { %v1663_v25 = vmul.f32 %v2968_v23, %v1662_v24 }
 0x766   : > { %v1664_v26 = vmul.f32 0.5, %v1663_v25 }
 0x768   : > { %v1665_v27 = vsub.f32 1.5, %v1664_v26 }
 0x76a   : > { %v1666_v28 = vmul.f32 %v2968_v23, %v1665_v27 }
 0x76c   : > { %v1670_v30 = vsel %vm1669_vm8, %v2968_v23, %v1666_v28 }
 0x76d   : > { %v1671_v31 = vmul.f32 %v1670_v30, %v1654_v10 }
 0x76f   : > { %v1675_v32 = vmul.f32 %v2935_v29, %v1671_v31 }
 0x771   : > { %v4094_v33 = vadd.f32 %v2936_v20, %v1675_v32 }
 0x773   : > { %v1699_v34 = vpack.c.bf16 %v4094_v33, %v4094_v33 }
 0x775   : > { %2632 = vmatmul.msk.bf16.vlgmr.msra.gmra.mxu2 %vm1304_vm0, %v1699_v34 }
 0x7f8   : > { %v1727_v44 = vpop.f32.mrf.mxu2 }
 0x7f9   : > { %v1728_v45 = vadd.f32 %v2938_v43, %v1727_v44 }
 0x7fb   : > { %v1763_v46 = vmul.f32 0.35355338, %v1728_v45 }
 0x7fd   : > { %v1764_v47 = vpack.c.bf16 %v1763_v46, %v1763_v46 }
 0x7ff   : > { %v1826_v48 = vunpack.c.l.b16 %v1764_v47  ;;  %2642 = vmatmul.msk.bf16.vlgmr.msrb.gmra.mxu0 %vm1356_vm1, %v1764_v47 }
 0x800   : > { %v1729_v49 = vpop.f32.mrf.mxu2 }
 0x801   : > { %v1827_v50 = vpack.c.b16 %v1826_v48, %v1826_v48 }
 0x803   : > { %1885 = vrot.lane.b32.xlu0 %v1827_v50, %s3579_s5  ;;  %1828 = vrot.lane.b32.xlu2 %v1827_v50, %s3578_s8  ;;  %s4239_s8 = sld [smem:[#allocation47_spill]] }
 0x80b   : > { %1944 = vrot.lane.b32.xlu2 %v4100_v41, %s3580_s26 }
 0x813   : > { %1942 = vrot.lane.b32.xlu2 %v1827_v50, %s3580_s26  ;;  %s4241_s26 = smov 16  }
 0x81b   : > { %1887 = vrot.lane.b32.xlu2 %v4100_v41, %s3579_s5  ;;  %s4240_s5 = smov 8  }
 0x85d   : > { %v1829_v53 = vpop.permute.xlu2 %1828 }
 0x85e   : > { %2644 = vmatmul.msk.bf16.vlgmr.msrb.gmra.mxu2 %vm1356_vm1, %v1829_v53 }
 0x865   : > { %v1945_v54 = vpop.permute.xlu2 %1944 }
 0x866   : > { %v1950_v55 = vsel %vm1356_vm1, %v1945_v54, 0 }
 0x867   : > { %1959 = vmatpush.bf16.xpose.msra.mxu2 %v1950_v55 }
 0x86d   : > { %v1943_v56 = vpop.permute.xlu2 %1942 }
 0x86e   : > { %2648 = vmatmul.msk.bf16.vlgmr.msra.gmra.mxu2 %vm1356_vm1, %v1943_v56 }
 0x875   : > { %v1888_v57 = vpop.permute.xlu2 %1887  ;;  %v1886_v62 = vpop.permute.xlu0 %1885 }
 0x876   : > { %v1893_v58 = vsel %vm1356_vm1, %v1888_v57, 0 }
 0x877   : > { %1902 = vmatpush.bf16.xpose.msra.mxu0 %v1893_v58 }
 0x87c   : > { %v1784_v61 = vpop.f32.mrf.mxu0 }
 0x87d   : > { %v1785_v63 = vadd.f32 %v2939_v59, %v1784_v61 }
 0x87e   : > { %2646 = vmatmul.msk.bf16.vlgmr.msra.gmra.mxu0 %vm1356_vm1, %v1886_v62 }
 0x87f   : > { %v1788_v0 = vsel %vm1356_vm1, %v1785_v63, -inf }
 0x880   : > { %1789 = vmax.xlane.f32.xlu2 %v1788_v0 }
 0x884   : > { %v1786_v60 = vpop.f32.mrf.mxu0 }
 0x898   : > { %1803 = vrot.lane.b32.xlu2 %v4100_v41, %s3577_s18  ;;  %s4238_s18 = smov 72  }
 0x8a0   : > { %1920 = vrot.lane.b32.xlu2 %v4100_v41, %s3582_s15  ;;  %s4242_s15 = smov 24  }
 0x8e1   : > { %v1847_v1 = vpop.f32.mrf.mxu2 }
 0x8e2   : > { %v1848_v14 = vadd.f32 %v2939_v59, %v1847_v1 }
 0x8e4   : > { %v1851_v18 = vsel %vm1356_vm1, %v1848_v14, -inf }
 0x8e9   : > { %v1849_v2 = vpop.f32.mrf.mxu2 }
 0x8f1   : > { %v1961_v3 = vpop.f32.mrf.mxu2 }
 0x8f2   : > { %v1962_v22 = vadd.f32 %v2939_v59, %v1961_v3 }
 0x8f3   : > { %v1790_v5 = vpop.xlane.xlu2 %1789 }
 0x8f4   : > { %v1791_v11 = vsub.f32 %v1785_v63, %v1790_v5  ;;  %v1965_v23 = vsel %vm1356_vm1, %v1962_v22, -inf }
 0x8f6   : > { %v1792_v13 = vmul.f32 1.442695, %v1791_v11 }
 0x8f8   : > { %2969 = vpow2.f32 %v1792_v13  ;;  %v2698_v13 = vld [vmem:[%s4239_s8 + $0x8] sm:$0xff] }
 0x8f9   : > { %v1963_v6 = vpop.f32.mrf.mxu2  ;;  %2044 = vmatpush.bf16.msrb.mxu0 %v2698_v13 }
 0x8fb   : > { %v1904_v7 = vpop.f32.mrf.mxu0  ;;  %v1804_v4 = vpop.permute.xlu2 %1803 }
 0x8fc   : > { %v1905_v9 = vadd.f32 %v2939_v59, %v1904_v7  ;;  %v1809_v10 = vsel %vm1396_vm2, %v1804_v4, 0 }
 0x8fd   : > { %1818 = vmatpush.bf16.msrb.mxu1 %v1809_v10 }
 0x8fe   : > { %v1908_v12 = vsel %vm1356_vm1, %v1905_v9, -inf  ;;  %v2970_v19 = vpop.eup %2969 }
 0x8ff   : > { %1909 = vmax.xlane.f32.xlu1 %v1908_v12  ;;  %v1794_v21 = vsel %vm1356_vm1, %v2970_v19, 0.0 }
 0x903   : > { %v1906_v15 = vpop.f32.mrf.mxu0  ;;  %v1921_v16 = vpop.permute.xlu2 %1920 }
 0x904   : > { %v1926_v17 = vsel %vm1396_vm2, %v1921_v16, 0 }
 0x905   : > { %1935 = vmatpush.bf16.msra.mxu1 %v1926_v17 }
 0x907   : > { %1852 = vmax.xlane.f32.xlu1 %v1851_v18 }
 0x90f   : > { %1795 = vadd.xlane.f32.xlu1 %v1794_v21 }
 0x917   : > { %1966 = vmax.xlane.f32.xlu1 %v1965_v23  ;;  %v2940_v23 = vld [vmem:[#allocation13] ss:$0 sm:$0xff] }
 0x930   : > { %1863 = vrot.lane.b32.xlu1 %v4100_v41, %s4237_s9  ;;  %s4245_s9 = sld [smem:[#allocation51_spill]] }
 0x972   : > { %v1910_v24 = vpop.xlane.xlu1 %1909 }
 0x973   : > { %v1911_v27 = vsub.f32 %v1905_v9, %v1910_v24 }
 0x975   : > { %v1912_v29 = vmul.f32 1.442695, %v1911_v27 }
 0x97a   : > { %v1853_v25 = vpop.xlane.xlu1 %1852 }
 0x97b   : > { %v1854_v26 = vsub.f32 %v1848_v14, %v1853_v25  ;;  %v2697_v14 = vld [vmem:[%s4239_s8] sm:$0xff] }
 0x97c   : > { %2045 = vmatpush.bf16.msrb.mxu0 %v2697_v14 }
 0x97d   : > { %v1855_v28 = vmul.f32 1.442695, %v1854_v26 }
 0x97f   : > { %2971 = vpow2.f32 %v1855_v28 }
 0x982   : > { %v1796_v30 = vpop.xlane.xlu1 %1795 }
 0x983   : > { %2973 = vrcp.f32 %v1796_v30 }
 0x984   : > { %2975 = vpow2.f32 %v1912_v29 }
 0x985   : > { %v2972_v20 = vpop.eup %2971 }
 0x986   : > { %v1857_v31 = vsel %vm1356_vm1, %v2972_v20, 0.0 }
 0x987   : > { %1858 = vadd.xlane.f32.xlu0 %v1857_v31 }
 0x989   : > { %v2974_v32 = vpop.eup %2973 }
 0x98a   : > { %v1798_v34 = vmul.f32 %v2974_v32, %v2970_v19  ;;  %v1967_v35 = vpop.xlane.xlu1 %1966  ;;  %v2976_v36 = vpop.eup %2975 }
 0x98b   : > { %v1968_v37 = vsub.f32 %v1962_v22, %v1967_v35  ;;  %v1914_v40 = vsel %vm1356_vm1, %v2976_v36, 0.0  ;;  %v2699_v35 = vld [vmem:[%s4243_s10] sm:$0xff] }
 0x98c   : > { %v1799_v38 = vpack.c.bf16 %v1798_v34, %v1798_v34  ;;  %v2700_v34 = vld [vmem:[%s4243_s10 + $0x8] sm:$0xff] }
 0x98d   : > { %v1969_v39 = vmul.f32 1.442695, %v1968_v37 }
 0x98e   : > { %2643 = vmatmul.msk.bf16.vlgmr.msrb.gmra.mxu1 %vm1356_vm1, %v1799_v38  ;;  %v2703_v38 = vld [vmem:[%s4244_s1 + $0x10] sm:$0xff] }
 0x98f   : > { %2977 = vpow2.f32 %v1969_v39  ;;  %1915 = vadd.xlane.f32.xlu0 %v1914_v40  ;;  %2123 = vmatpush.bf16.msrb.mxu1 %v2700_v34 }
 0x993   : > { %2124 = vmatpush.bf16.msrb.mxu1 %v2699_v35 }
 0x995   : > { %v2978_v42 = vpop.eup %2977 }
 0x996   : > { %v1971_v43 = vsel %vm1356_vm1, %v2978_v42, 0.0 }
 0x997   : > { %1972 = vadd.xlane.f32.xlu1 %v1971_v43 }
 0x9a2   : > { %v1864_v44 = vpop.permute.xlu1 %1863 }
 0x9a3   : > { %v1869_v45 = vsel %vm1396_vm2, %v1864_v44, 0  ;;  %1977 = vrot.lane.b32.xlu0 %v4100_v41, %s4238_s18  ;;  %s1260_s18 = scalar_lea.vmem %s4245_s9, %s4005_s2 }
 0x9a4   : > { %1878 = vmatpush.bf16.msra.mxu3 %v1869_v45 }
 0x9fa   : > { %v1859_v46 = vpop.xlane.xlu0 %1858 }
 0x9fb   : > { %2979 = vrcp.f32 %v1859_v46 }
 0xa01   : > { %v2980_v47 = vpop.eup %2979 }
 0xa02   : > { %v1861_v48 = vmul.f32 %v2980_v47, %v2972_v20  ;;  %v1916_v49 = vpop.xlane.xlu0 %1915  ;;  %v2941_v47 = vld [vmem:[#allocation15] ss:$0 sm:$0xff] }
 0xa03   : > { %2981 = vrcp.f32 %v1916_v49  ;;  %v2942_v49 = vld [vmem:[#allocation16] ss:$0 sm:$0xff] }
 0xa04   : > { %v1862_v50 = vpack.c.bf16 %v1861_v48, %v1861_v48 }
 0xa06   : > { %2645 = vmatmul.msk.bf16.vlgmr.msra.gmra.mxu3 %vm1356_vm1, %v1862_v50 }
 0xa09   : > { %v2982_v51 = vpop.eup %2981 }
 0xa0a   : > { %v1918_v52 = vmul.f32 %v2982_v51, %v2976_v36  ;;  %v1973_v53 = vpop.xlane.xlu1 %1972  ;;  %v2704_v36 = vld [vmem:[%s4244_s1 + $0x18] sm:$0xff] }
 0xa0b   : > { %2983 = vrcp.f32 %v1973_v53  ;;  %v1820_v54 = vpop.f32.mrf.mxu1  ;;  %2167 = vmatpush.bf16.msrb.mxu2 %v2704_v36 }
 0xa0c   : > { %v1919_v55 = vpack.c.bf16 %v1918_v52, %v1918_v52  ;;  %v1824_v16 = vpack.c.bf16 %v1820_v54, %v1820_v54  ;;  %v2702_v54 = vld [vmem:[%s4244_s1 + $0x8] sm:$0xff] }
 0xa0e   : > { %2647 = vmatmul.msk.bf16.vlgmr.msra.gmra.mxu1 %vm1356_vm1, %v1919_v55  ;;  %v2701_v55 = vld [vmem:[%s4244_s1] sm:$0xff] }
 0xa0f   : > { %2168 = vmatpush.bf16.msrb.mxu2 %v2703_v38 }
 0xa11   : > { %v2984_v56 = vpop.eup %2983 }
 0xa12   : > { %v1975_v57 = vmul.f32 %v2984_v56, %v2978_v42  ;;  %v2943_v56 = vld [vmem:[#allocation18] ss:$0 sm:$0xff] }
 0xa13   : > { %v1822_v41 = vpop.f32.mrf.mxu1  ;;  %2169 = vmatpush.bf16.msrb.mxu2 %v2702_v54 }
 0xa14   : > { %v1976_v61 = vpack.c.bf16 %v1975_v57, %v1975_v57 }
 0xa15   : > { %v1978_v58 = vpop.permute.xlu0 %1977 }
 0xa16   : > { %v1983_v59 = vsel %vm1396_vm2, %v1978_v58, 0 }
 0xa17   : > { %1992 = vmatpush.bf16.msrb.mxu3 %v1983_v59  ;;  %2170 = vmatpush.bf16.msrb.mxu2 %v2701_v55 }
 0xa1a   : > { %2649 = vmatmul.msk.bf16.vlgmr.msrb.gmra.mxu3 %vm1356_vm1, %v1976_v61 }
 0xa89   : > { %v1880_v62 = vpop.f32.mrf.mxu3 }
 0xa8a   : > { %v1884_v63 = vpack.c.bf16 %v1880_v62, %v1880_v62  ;;  %v2944_v62 = vld [vmem:[#allocation19] ss:$0 sm:$0xff] }
 0xa8b   : > { %v1937_v0 = vpop.f32.mrf.mxu1 }
 0xa8c   : > { %v2000_v60 = vunpack.c.l.b16 %v1884_v63  ;;  %v1941_v2 = vpack.c.bf16 %v1937_v0, %v1937_v0 }
 0xa8e   : > { %v2001_v1 = vpack.c.b16 %v2000_v60, %v2000_v60  ;;  %v2005_v5 = vunpack.c.l.b16 %v1941_v2 }
 0xa90   : > { %2002 = vrot.lane.b32.xlu2 %v2001_v1, %s4240_s5  ;;  %v2006_v7 = vpack.c.b16 %v2005_v5, %v2005_v5 }
 0xa91   : > { %v1882_v3 = vpop.f32.mrf.mxu3 }
 0xa93   : > { %v1939_v6 = vpop.f32.mrf.mxu1 }
 0xa98   : > { %2007 = vrot.lane.b32.xlu2 %v2006_v7, %s4241_s26 }
 0xa9d   : > { %v1994_v4 = vpop.f32.mrf.mxu3 }
 0xa9e   : > { %v1998_v9 = vpack.c.bf16 %v1994_v4, %v1994_v4 }
 0xaa0   : > { %v2010_v10 = vunpack.c.l.b16 %v1998_v9 }
 0xaa2   : > { %v2011_v11 = vpack.c.b16 %v2010_v10, %v2010_v10 }
 0xaa4   : > { %2012 = vrot.lane.b32.xlu0 %v2011_v11, %s4242_s15 }
 0xaa5   : > { %v1996_v12 = vpop.f32.mrf.mxu3 }
 0xaea   : > { %v2003_v15 = vpop.permute.xlu2 %2002 }
 0xaeb   : > { %v2016_v18 = vsel %vm1356_vm1, %v1824_v16, %v2003_v15 }
 0xaf2   : > { %v2008_v17 = vpop.permute.xlu2 %2007 }
 0xaf3   : > { %v2018_v19 = vsel %vm1606_vm3, %v2016_v18, %v2008_v17  ;;  %v2945_v18 = vld [vmem:[#allocation21] ss:$0 sm:$0xff] }
 0xb16   : > { %v2013_v21 = vpop.permute.xlu0 %2012 }
 0xb17   : > { %v2020_v22 = vsel %vm1609_vm4, %v2018_v19, %v2013_v21 }
 0xb18   : > { %2658 = vmatmul.msk.bf16.vlgmr.msrb.gmra.mxu0 %vm1304_vm0, %v2020_v22  ;;  %v2946_v22 = vld [vmem:[#allocation22] ss:$0 sm:$0xff] }
 0xb95   : > { %v2047_v24 = vpop.f32.mrf.mxu0 }
 0xb96   : > { %v2048_v25 = vadd.f32 %v2940_v23, %v2047_v24 }
 0xb98   : > { %v2051_v26 = vadd.f32 %v2048_v25, %v4094_v33 }
 0xb9a   : > { %v2052_v27 = vsel %vm1304_vm0, %v2051_v26, 0.0 }
 0xb9b   : > { %2053 = vadd.xlane.f32.xlu2 %v2052_v27 }
 0xb9d   : > { %v2049_v28 = vpop.f32.mrf.mxu0 }
 0xc0e   : > { %v2054_v29 = vpop.xlane.xlu2 %2053 }
 0xc0f   : > { %v2055_v30 = vmul.f32 %v2054_v29, %v4082_v8 }
 0xc11   : > { %v2056_v20 = vsub.f32 %v2051_v26, %v2055_v30 }
 0xc13   : > { %v2057_v31 = vmul.f32 %v2056_v20, %v2056_v20 }
 0xc15   : > { %v2058_v32 = vsel %vm1304_vm0, %v2057_v31, 0.0 }
 0xc16   : > { %2059 = vadd.xlane.f32.xlu0 %v2058_v32 }
 0xc89   : > { %v2060_v37 = vpop.xlane.xlu0 %2059 }
 0xc8a   : > { %v2061_v33 = vmul.f32 %v2060_v37, %v4082_v8 }
 0xc8c   : > { %v2062_v39 = vadd.f32 1e-05, %v2061_v33 }
 0xc8e   : > { %2985 = vrsqrt.f32 %v2062_v39  ;;  %vm2069_vm10 = vweird.f32 %v2062_v39 }
 0xc94   : > { %v2986_v40 = vpop.eup %2985 }
 0xc95   : > { %v2064_v42 = vmul.f32 %v2986_v40, %v2062_v39  ;;  %vm2070_vm9 = vweird.f32 %v2986_v40  ;;  %v2947_v39 = vld [vmem:[#allocation24] ss:$0 sm:$0xff] }
 0xc96   : > { %vm2071_vm11 = vmor %vm2069_vm10, %vm2070_vm9 }
 0xc97   : > { %v2065_v43 = vmul.f32 %v2986_v40, %v2064_v42  ;;  %v2948_v42 = vld [vmem:[#allocation25] ss:$0 sm:$0xff] }
 0xc99   : > { %v2066_v44 = vmul.f32 0.5, %v2065_v43 }
 0xc9b   : > { %v2067_v45 = vsub.f32 1.5, %v2066_v44 }
 0xc9d   : > { %v2068_v46 = vmul.f32 %v2986_v40, %v2067_v45 }
 0xc9f   : > { %v2072_v48 = vsel %vm2071_vm11, %v2986_v40, %v2068_v46 }
 0xca0   : > { %v2073_v50 = vmul.f32 %v2072_v48, %v2056_v20 }
 0xca2   : > { %v2077_v51 = vmul.f32 %v2941_v47, %v2073_v50 }
 0xca4   : > { %v2081_v52 = vadd.f32 %v2942_v49, %v2077_v51 }
 0xca6   : > { %v2098_v53 = vpack.c.bf16 %v2081_v52, %v2081_v52 }
 0xca8   : > { %2667 = vmatmul.msk.bf16.vlgmr.msrb.gmra.mxu1 %vm1304_vm0, %v2098_v53 }
 0xd25   : > { %v2126_v41 = vpop.f32.mrf.mxu1 }
 0xd26   : > { %v2127_v57 = vadd.f32 %v2943_v56, %v2126_v41 }
 0xd28   : > { %v2130_v58 = vmax.f32 %v2127_v57, 0.0 }
 0xd2a   : > { %v2131_v59 = vpack.c.bf16 %v2130_v58, %v2130_v58 }
 0xd2c   : > { %2684 = vmatmul.msk.bf16.vlgmr.msrb.gmra.mxu2 %vm2159_vm12, %v2131_v59 }
 0xd2d   : > { %v2128_v61 = vpop.f32.mrf.mxu1 }
 0xdaf   : > { %v2172_v63 = vpop.f32.mrf.mxu2 }
 0xdb0   : > { %v2173_v0 = vadd.f32 %v2944_v62, %v2172_v63 }
 0xdb2   : > { %v2176_v60 = vadd.f32 %v2173_v0, %v2081_v52 }
 0xdb4   : > { %v2177_v1 = vsel %vm1304_vm0, %v2176_v60, 0.0 }
 0xdb5   : > { %2178 = vadd.xlane.f32.xlu1 %v2177_v1 }
 0xdb7   : > { %v2174_v2 = vpop.f32.mrf.mxu2 }
 0xe28   : > { %v2179_v3 = vpop.xlane.xlu1 %2178 }
 0xe29   : > { %v2180_v5 = vmul.f32 %v2179_v3, %v4082_v8 }
 0xe2b   : > { %v2181_v6 = vsub.f32 %v2176_v60, %v2180_v5 }
 0xe2d   : > { %v2182_v7 = vmul.f32 %v2181_v6, %v2181_v6 }
 0xe2f   : > { %v2183_v4 = vsel %vm1304_vm0, %v2182_v7, 0.0 }
 0xe30   : > { %2184 = vadd.xlane.f32.xlu1 %v2183_v4 }
 0xea3   : > { %v2185_v9 = vpop.xlane.xlu1 %2184 }
 0xea4   : > { %v2186_v10 = vmul.f32 %v2185_v9, %v4082_v8 }
 0xea6   : > { %v2187_v11 = vadd.f32 1e-05, %v2186_v10 }
 0xea8   : > { %2987 = vrsqrt.f32 %v2187_v11  ;;  %vm2194_vm14 = vweird.f32 %v2187_v11 }
 0xeae   : > { %v2988_v12 = vpop.eup %2987 }
 0xeaf   : > { %v2189_v13 = vmul.f32 %v2988_v12, %v2187_v11  ;;  %vm2195_vm13 = vweird.f32 %v2988_v12 }
 0xeb0   : > { %vm2196_vm15 = vmor %vm2194_vm14, %vm2195_vm13 }
 0xeb1   : > { %v2190_v14 = vmul.f32 %v2988_v12, %v2189_v13 }
 0xeb3   : > { %v2191_v15 = vmul.f32 0.5, %v2190_v14 }
 0xeb5   : > { %v2192_v16 = vsub.f32 1.5, %v2191_v15 }
 0xeb7   : > { %v2193_v17 = vmul.f32 %v2988_v12, %v2192_v16 }
 0xeb9   : > { %v2197_v19 = vsel %vm2196_vm15, %v2988_v12, %v2193_v17 }
 0xeba   : > { %v2198_v21 = vmul.f32 %v2197_v19, %v2181_v6 }
 0xebc   : > { %v2202_v23 = vmul.f32 %v2945_v18, %v2198_v21 }
 0xebe   : > { %v2206_v24 = vadd.f32 %v2946_v22, %v2202_v23 }
 0xec0   : > { %v2209_v25 = vsel %vm1304_vm0, %v2206_v24, 0.0 }
 0xec1   : > { %2210 = vadd.xlane.f32.xlu1 %v2209_v25 }
 0xf34   : > { %v2211_v26 = vpop.xlane.xlu1 %2210 }
 0xf35   : > { %v2212_v27 = vmul.f32 %v2211_v26, %v4082_v8 }
 0xf37   : > { %v2213_v28 = vsub.f32 %v2206_v24, %v2212_v27 }
 0xf39   : > { %v2214_v29 = vmul.f32 %v2213_v28, %v2213_v28 }
 0xf3b   : > { %v2215_v30 = vsel %vm1304_vm0, %v2214_v29, 0.0 }
 0xf3c   : > { %2216 = vadd.xlane.f32.xlu1 %v2215_v30 }
 0xfaf   : > { %v2217_v20 = vpop.xlane.xlu1 %2216 }
 0xfb0   : > { %v2218_v31 = vmul.f32 %v2217_v20, %v4082_v8 }
 0xfb2   : > { %v2219_v32 = vadd.f32 1e-05, %v2218_v31 }
 0xfb4   : > { %2989 = vrsqrt.f32 %v2219_v32  ;;  %vm2226_vm2 = vweird.f32 %v2219_v32 }
 0xfba   : > { %v2990_v34 = vpop.eup %2989 }
 0xfbb   : > { %v2221_v35 = vmul.f32 %v2990_v34, %v2219_v32  ;;  %vm2227_vm1 = vweird.f32 %v2990_v34 }
 0xfbc   : > { %vm2228_vm3 = vmor %vm2226_vm2, %vm2227_vm1 }
 0xfbd   : > { %v2222_v36 = vmul.f32 %v2990_v34, %v2221_v35 }
 0xfbf   : > { %v2223_v37 = vmul.f32 0.5, %v2222_v36 }
 0xfc1   : > { %v2224_v33 = vsub.f32 1.5, %v2223_v37 }
 0xfc3   : > { %v2225_v38 = vmul.f32 %v2990_v34, %v2224_v33 }
 0xfc5   : > { %v2229_v40 = vsel %vm2228_vm3, %v2990_v34, %v2225_v38 }
 0xfc6   : > { %v2230_v43 = vmul.f32 %v2229_v40, %v2213_v28 }
 0xfc8   : > { %v2234_v44 = vmul.f32 %v2947_v39, %v2230_v43 }
 0xfca   : > { %v2238_v8 = vadd.f32 %v2948_v42, %v2234_v44 }
 0xfcc   : > { %2239 = vst.msk [vmem:[%s1260_s18] sm:$0xff] %vm1304_vm0, %v2238_v8 }
 0xfcd PF: > { %s4246_s5 = sld [smem:[#allocation53_spill]]  ;;  %s4247_s15 = smov %s3525_s16 }
 0xfce   : > { %s4248_s16 = smov %s4250_s11 }
 0xfd3   : > { %s80_s18 = sadd.s32 1, %s4246_s5  }
 0xfd4   : > { %p77_p2 = scmp.ge.s32.totalorder %s80_s18, 4  }
 0xfd6   :  { %79 = sbr.rel (!%p77_p2) target bundleno = 63 (0x3f), region = 280 }
 0xfdb   :  { %2262 = vsyncpa [#allocation3], 1 }
 0xfdc   :  { %2264 = vsyncpa [#allocation3 + $0x1], 1 }
 0xfdd   :  { %2265 = vsyncpa [#allocation5], 1 }
 0xfde   :  { %2266 = vsyncpa [#allocation8], 1 }
 0xfdf   :  { %2267 = vsyncpa [#allocation11], 1 }
 0xfe0   :  { %2268 = vsyncpa [#allocation14], 1 }
 0xfe1   :  { %2269 = vsyncpa [#allocation17], 1 }
 0xfe2   :  { %2270 = vsyncpa [#allocation20], 1 }
 0xfe3   :  { %2271 = vsyncpa [#allocation23], 1 }
 0xfe4   :  { %2272 = vsyncpa [#allocation26], 1 }

// kernel: translator_forward.5
= control target key start
LH: loop header
LB: loop body
LE: loop exit
PB: predicated region body
PF: predicated region fallthrough
CT: control target
= control target key end

     0   :  { %s1569_s27 = smov 0   ;;  %s1571_s28 = smov 0   ;;  %s1737_s0 = inlined_call_operand.vmem [shape: f32[16,32], index: 0, kind: input, shape index: {}, may-alias: {0,1}]   ;;  %s1738_s1 = inlined_call_operand.vmem [shape: f32[16,32], index: 1, kind: input, shape index: {}, may-alias: {0,1}]   ;;  %s1739_s2 = inlined_call_operand.vmem [shape: f32[8,8], index: 2, kind: input, shape index: {}]   ;;  %s1740_s3 = inlined_call_operand.vmem [shape: f32[2,1,8], index: 3, kind: input, shape index: {}]   ;;  %s1741_s4 = inlined_call_operand.vmem [shape: bf16[32,32], index: 4, kind: input, shape index: {}]   ;;  %s1742_s5 = inlined_call_operand.vmem [shape: f32[1,32], index: 5, kind: input, shape index: {}]   ;;  %s1743_s6 = inlined_call_operand.vmem [shape: bf16[32,64], index: 6, kind: input, shape index: {}]   ;;  %s1744_s7 = inlined_call_operand.vmem [shape: f32[1,64], index: 7, kind: input, shape index: {}]   ;;  %s1745_s8 = inlined_call_operand.vmem [shape: bf16[32,32], index: 8, kind: input, shape index: {}]   ;;  %s1746_s9 = inlined_call_operand.vmem [shape: f32[1,32], index: 9, kind: input, shape index: {}]   ;;  %s1747_s10 = inlined_call_operand.vmem [shape: f32[1,32], index: 10, kind: input, shape index: {}]   ;;  %s1748_s11 = inlined_call_operand.vmem [shape: f32[1,32], index: 11, kind: input, shape index: {}]   ;;  %s1749_s12 = inlined_call_operand.vmem [shape: bf16[32,64], index: 12, kind: input, shape index: {}]   ;;  %s1750_s13 = inlined_call_operand.vmem [shape: f32[1,64], index: 13, kind: input, shape index: {}]   ;;  %s1751_s14 = inlined_call_operand.vmem [shape: bf16[64,32], index: 14, kind: input, shape index: {}]   ;;  %s1752_s15 = inlined_call_operand.vmem [shape: f32[1,32], index: 15, kind: input, shape index: {}]   ;;  %s1753_s16 = inlined_call_operand.vmem [shape: f32[1,32], index: 16, kind: input, shape index: {}]   ;;  %s1754_s17 = inlined_call_operand.vmem [shape: f32[1,32], index: 17, kind: input, shape index: {}]   ;;  %s1755_s18 = inlined_call_operand.vmem [shape: f32[16,32], index: 18, kind: output, shape index: {}]  }
   0x1   :  { %1756 = sst [smem:[#allocation2_spill]] %s1737_s0  ;;  %s1573_s29 = smov 0  }
   0x2   :  { %1757 = sst [smem:[#allocation3_spill]] %s1738_s1 }
   0x3   :  { %1758 = sst [smem:[#allocation4_spill]] %s1739_s2 }
   0x4 LB: > { %s40_s30 = sadd.s32 1, %s1457_s28  ;;  %p1293_p0 = scmp.ge.s32.totalorder %s1461_s29, 1  ;;  %s1461_s29 = sphi %s1573_s29, %s28_s29   ;;  %s1457_s28 = sphi %s1571_s28, %s1763_s28   ;;  %s1453_s27 = sphi %s1569_s27, %s1762_s27  }
   0x5   : > { %p42_p1 = scmp.ge.s32.totalorder %s40_s30, 2  ;;  %p555_p2 = scmp.lt.s32.totalorder %s1461_s29, 3 }
   0x7   : > { %s1765_s30 = smov (%p42_p1, %s40_s30), 0  ;;  %p556_p3 = pnand %p1293_p0, %p555_p2 }
   0x8   : > { %p621_p4 = scmp.lt.s32.totalorder (!%p556_p3), %s1453_s27, 1  ;;  %s1759_s0 = sld [smem:[#allocation2_spill]] (!%p556_p3) }
   0x9   : > { %559 = sbr.rel (%p556_p3) target bundleno = 2157 (0x86d), region = 92  ;;  %s1760_s21 = sld [smem:[#allocation3_spill]] (!%p556_p3) }
   0xa   : > { %s1466_s2 = smov (!%p556_p3), 104   ;;  %s1761_s25 = sld [smem:[#allocation4_spill]] (!%p556_p3) }
   0xb   : > { %s1467_s26 = smov (!%p556_p3), 88   ;;  %s1470_s1 = smov (!%p556_p3), 8  }
   0xc   : > { %s1471_s20 = smov (!%p556_p3), 16  }
   0xe   : > { %v1361_v0 = vld [vmem:[%s1741_s4 + $0x8] sm:$0xff]  ;;  %v1360_v2 = vld [vmem:[%s1741_s4] sm:$0xff]  ;;  %s1767_s27 = smov (!%p621_p4, %s1453_s27), 1  ;;  %vm685_vm0 = vcmask 261120   ;;  %vm737_vm1 = vcmask 64512   ;;  %vm777_vm2 = vcmask 1043456  }
   0xf   : > { %v1363_v1 = vld [vmem:[%s1743_s6 + $0x8] sm:$0xff]  ;;  %695 = vmatpush.bf16.msra.mxu0 %v1361_v0  ;;  %v1362_v3 = vld [vmem:[%s1743_s6] sm:$0xff]  ;;  %s1602_s24 = sshll.u32 %s1767_s27, 3  ;;  %vm987_vm3 = vcmask 130048   ;;  %vm990_vm4 = vcmask 195584   ;;  %vm1138_vm9 = vcmask 523264  }
  0x10   : > { %727 = vmatpush.bf16.msra.mxu1 %v1363_v1  ;;  %s624_s19 = scalar_lea.vmem %s1759_s0, %s1602_s24  ;;  %s629_s22 = scalar_lea.vmem %s1760_s21, %s1602_s24  ;;  %v1407_v8 = vld [vmem:[%s1742_s5] ss:$0 sm:$0xff] }
  0x11   : > { %v1608_v4 = vld [vmem:[%s624_s19] sm:$0xff]  ;;  %s1463_s0 = smov 96   ;;  %s1464_s19 = smov 120  }
  0x12   : > { %v669_v5 = vpack.c.bf16 %v1608_v4, %v1608_v4  ;;  %v651_v6 = vld [vmem:[%s629_s22] sm:$0xff]  ;;  %s636_s21 = scalar_lea.vmem %s1740_s3, %s1767_s27  ;;  %s1465_s22 = smov 112  }
  0x13   : > { %696 = vmatpush.bf16.msra.mxu0 %v1360_v2  ;;  %v702_v7 = vpack.c.bf16 %v651_v6, %v651_v6  ;;  %v1408_v9 = vld [vmem:[%s1744_s7] ss:$0 sm:$0xff] }
  0x14   : > { %728 = vmatpush.bf16.msra.mxu1 %v1362_v3  ;;  %v1409_v31 = vld [vmem:[%s636_s21] ss:$0 sm:$0xff]  ;;  %s1472_s21 = smov 24  }
  0x15   : > { %v645_v32 = vld [vmem:[%s1761_s25] sm:$0xff] }
  0x16   : > { %1305 = vmatmul.msk.bf16.vlgmr.msra.gmra.mxu0 %vm685_vm0, %v669_v5  ;;  %v650_v34 = vadd.f32 %v1409_v31, %v645_v32 }
  0x17   : > { %1314 = vmatmul.msk.bf16.vlgmr.msra.gmra.mxu1 %vm685_vm0, %v702_v7 }
  0x93   : > { %v698_v10 = vpop.f32.mrf.mxu0 }
  0x94   : > { %v699_v11 = vadd.f32 %v1407_v8, %v698_v10  ;;  %v730_v12 = vpop.f32.mrf.mxu1 }
  0x95   : > { %v731_v13 = vadd.f32 %v1408_v9, %v730_v12 }
  0x96   : > { %v734_v14 = vmul.f32 0.35355338, %v699_v11 }
  0x97   : > { %v736_v15 = vpack.c.bf16 %v731_v13, %v731_v13 }
  0x98   : > { %v735_v16 = vpack.c.bf16 %v734_v14, %v734_v14 }
  0x99   : > { %v770_v17 = vunpack.c.l.b16 %v736_v15  ;;  %v742_v18 = vsel %vm737_vm1, %v736_v15, 0 }
  0x9a   : > { %v796_v19 = vunpack.c.l.b16 %v735_v16  ;;  %751 = vmatpush.bf16.xpose.msra.mxu2 %v742_v18 }
  0x9b   : > { %v1625_v20 = vpack.c.b16 %v770_v17, %v770_v17  ;;  %v700_v21 = vpop.f32.mrf.mxu0 }
  0x9c   : > { %v732_v22 = vpop.f32.mrf.mxu1  ;;  %v797_v23 = vpack.c.b16 %v796_v19, %v796_v19 }
  0x9d   : > { %772 = vrot.lane.b32.xlu1 %v1625_v20, %s1463_s0  ;;  %s1468_s0 = smov 80  }
  0x9e   : > { %798 = vrot.lane.b32.xlu2 %v797_v23, %s1464_s19 }
  0xa1   : > { %1315 = vmatmul.msk.bf16.vlgmr.msra.gmra.mxu2 %vm737_vm1, %v735_v16 }
  0xa5   : > { %800 = vrot.lane.b32.xlu1 %v1625_v20, %s1464_s19  ;;  %s1469_s19 = smov 72  }
  0xa6   : > { %857 = vrot.lane.b32.xlu2 %v1625_v20, %s1465_s22 }
  0xad   : > { %855 = vrot.lane.b32.xlu1 %v797_v23, %s1465_s22 }
  0xae   : > { %912 = vrot.lane.b32.xlu2 %v797_v23, %s1466_s2 }
  0xf8   : > { %v799_v24 = vpop.permute.xlu2 %798 }
 0x100   : > { %v858_v25 = vpop.permute.xlu2 %857 }
 0x101   : > { %v863_v26 = vsel %vm737_vm1, %v858_v25, 0 }
 0x102   : > { %872 = vmatpush.bf16.xpose.msrb.mxu1 %v863_v26 }
 0x108   : > { %v913_v48 = vpop.permute.xlu2 %912 }
 0x10f   : > { %v773_v27 = vpop.permute.xlu1 %772 }
 0x110   : > { %v779_v28 = vsel %vm777_vm2, %v773_v27, 0 }
 0x111   : > { %788 = vmatpush.bf16.msra.mxu3 %v779_v28 }
 0x117   : > { %v801_v29 = vpop.permute.xlu1 %800 }
 0x118   : > { %v806_v30 = vsel %vm737_vm1, %v801_v29, 0 }
 0x119   : > { %815 = vmatpush.bf16.xpose.msrb.mxu3 %v806_v30 }
 0x11f   : > { %v856_v33 = vpop.permute.xlu1 %855 }
 0x120   : > { %1319 = vmatmul.msk.bf16.vlgmr.msrb.gmra.mxu1 %vm737_vm1, %v856_v33 }
 0x124   : > { %v753_v35 = vpop.f32.mrf.mxu2 }
 0x125   : > { %v754_v36 = vadd.f32 %v753_v35, %v650_v34 }
 0x127   : > { %v757_v37 = vsel %vm737_vm1, %v754_v36, -inf }
 0x128   : > { %758 = vmax.xlane.f32.xlu0 %v757_v37 }
 0x12c   : > { %v755_v38 = vpop.f32.mrf.mxu2 }
 0x19b   : > { %v759_v39 = vpop.xlane.xlu0 %758 }
 0x19c   : > { %v760_v40 = vsub.f32 %v754_v36, %v759_v39 }
 0x19d   : > { %v874_v41 = vpop.f32.mrf.mxu1 }
 0x19e   : > { %v761_v42 = vmul.f32 1.442695, %v760_v40  ;;  %v875_v43 = vadd.f32 %v874_v41, %v650_v34 }
 0x1a0   : > { %1417 = vpow2.f32 %v761_v42  ;;  %v878_v44 = vsel %vm737_vm1, %v875_v43, -inf }
 0x1a1   : > { %879 = vmax.xlane.f32.xlu2 %v878_v44 }
 0x1a5   : > { %v876_v45 = vpop.f32.mrf.mxu1 }
 0x1a6   : > { %v1418_v46 = vpop.eup %1417 }
 0x1a7   : > { %v763_v47 = vsel %vm737_vm1, %v1418_v46, 0.0 }
 0x1a8   : > { %764 = vadd.xlane.f32.xlu0 %v763_v47 }
 0x1bc   : > { %914 = vrot.lane.b32.xlu0 %v1625_v20, %s1466_s2 }
 0x214   : > { %v880_v49 = vpop.xlane.xlu2 %879 }
 0x215   : > { %v881_v50 = vsub.f32 %v875_v43, %v880_v49 }
 0x217   : > { %v882_v51 = vmul.f32 1.442695, %v881_v50  ;;  %v1365_v50 = vld [vmem:[%s1745_s8 + $0x8] sm:$0xff] }
 0x218   : > { %1016 = vmatpush.bf16.msra.mxu1 %v1365_v50 }
 0x219   : > { %1419 = vpow2.f32 %v882_v51  ;;  %v1364_v51 = vld [vmem:[%s1745_s8] sm:$0xff] }
 0x21b   : > { %v765_v52 = vpop.xlane.xlu0 %764 }
 0x21c   : > { %1421 = vrcp.f32 %v765_v52  ;;  %1017 = vmatpush.bf16.msra.mxu1 %v1364_v51 }
 0x21f   : > { %v1420_v53 = vpop.eup %1419 }
 0x220   : > { %v884_v54 = vsel %vm737_vm1, %v1420_v53, 0.0 }
 0x221   : > { %885 = vadd.xlane.f32.xlu2 %v884_v54 }
 0x222   : > { %v1422_v55 = vpop.eup %1421 }
 0x223   : > { %v767_v56 = vmul.f32 %v1422_v55, %v1418_v46 }
 0x225   : > { %v768_v57 = vpack.c.bf16 %v767_v56, %v767_v56 }
 0x227   : > { %1316 = vmatmul.msk.bf16.vlgmr.msra.gmra.mxu3 %vm737_vm1, %v768_v57 }
 0x22e   : > { %v915_v58 = vpop.permute.xlu0 %914 }
 0x22f   : > { %v920_v59 = vsel %vm737_vm1, %v915_v58, 0 }
 0x230   : > { %929 = vmatpush.bf16.xpose.msra.mxu3 %v920_v59  ;;  %v1410_v59 = vld [vmem:[%s1746_s9] ss:$0 sm:$0xff] }
 0x237   : > { %1317 = vmatmul.msk.bf16.vlgmr.msrb.gmra.mxu3 %vm737_vm1, %v799_v24 }
 0x247   : > { %1321 = vmatmul.msk.bf16.vlgmr.msra.gmra.mxu3 %vm737_vm1, %v913_v48 }
 0x294   : > { %v886_v19 = vpop.xlane.xlu2 %885 }
 0x2aa   : > { %v1653_v60 = vpop.f32.mrf.mxu3 }
 0x2b2   : > { %v792_v61 = vpop.f32.mrf.mxu3 }
 0x2ba   : > { %v817_v62 = vpop.f32.mrf.mxu3 }
 0x2bb   : > { %v818_v63 = vadd.f32 %v817_v62, %v650_v34 }
 0x2bd   : > { %v821_v0 = vsel %vm737_vm1, %v818_v63, -inf }
 0x2be   : > { %822 = vmax.xlane.f32.xlu1 %v821_v0 }
 0x2c2   : > { %v819_v1 = vpop.f32.mrf.mxu3 }
 0x2c3   : > { %v1473_v1 = vmov 32.0  }
 0x2ca   : > { %v931_v2 = vpop.f32.mrf.mxu3 }
 0x2cb   : > { %v932_v3 = vadd.f32 %v931_v2, %v650_v34 }
 0x2cd   : > { %v935_v5 = vsel %vm737_vm1, %v932_v3, -inf }
 0x2ce   : > { %936 = vmax.xlane.f32.xlu0 %v935_v5 }
 0x2d2   : > { %v933_v6 = vpop.f32.mrf.mxu3 }
 0x2d7   : > { %833 = vrot.lane.b32.xlu1 %v1625_v20, %s1467_s26 }
 0x331   : > { %v823_v7 = vpop.xlane.xlu1 %822 }
 0x332   : > { %v824_v8 = vsub.f32 %v818_v63, %v823_v7 }
 0x334   : > { %v825_v9 = vmul.f32 1.442695, %v824_v8 }
 0x336   : > { %1423 = vpow2.f32 %v825_v9 }
 0x33c   : > { %v1424_v10 = vpop.eup %1423 }
 0x33d   : > { %v827_v11 = vsel %vm737_vm1, %v1424_v10, 0.0 }
 0x33e   : > { %828 = vadd.xlane.f32.xlu2 %v827_v11 }
 0x341   : > { %v937_v12 = vpop.xlane.xlu0 %936 }
 0x342   : > { %v938_v13 = vsub.f32 %v932_v3, %v937_v12 }
 0x344   : > { %v939_v14 = vmul.f32 1.442695, %v938_v13 }
 0x346   : > { %1425 = vpow2.f32 %v939_v14  ;;  %v1366_v14 = vld [vmem:[%s1749_s12] sm:$0xff] }
 0x347   : > { %1427 = vrcp.f32 %v886_v19 }
 0x349   : > { %v834_v15 = vpop.permute.xlu1 %833 }
 0x34a   : > { %v839_v16 = vsel %vm777_vm2, %v834_v15, 0  ;;  %v1371_v15 = vld [vmem:[%s1751_s14 + $0x18] sm:$0xff] }
 0x34b   : > { %848 = vmatpush.bf16.msrb.mxu0 %v839_v16  ;;  %1146 = vmatpush.bf16.msrb.mxu3 %v1371_v15 }
 0x34c   : > { %v1426_v17 = vpop.eup %1425 }
 0x34d   : > { %v941_v18 = vsel %vm737_vm1, %v1426_v17, 0.0  ;;  %v1428_v22 = vpop.eup %1427 }
 0x34e   : > { %942 = vadd.xlane.f32.xlu0 %v941_v18  ;;  %v888_v24 = vmul.f32 %v1428_v22, %v1420_v53  ;;  %v794_v53 = vpack.c.bf16 %v1653_v60, %v1653_v60  ;;  %v1370_v18 = vld [vmem:[%s1751_s14 + $0x10] sm:$0xff] }
 0x34f   : > { %1147 = vmatpush.bf16.msrb.mxu3 %v1370_v18 }
 0x350   : > { %v889_v29 = vpack.c.bf16 %v888_v24, %v888_v24 }
 0x356   : > { %890 = vrot.lane.b32.xlu2 %v1625_v20, %s1468_s0 }
 0x362   : > { %947 = vrot.lane.b32.xlu0 %v1625_v20, %s1469_s19 }
 0x3b1   : > { %v829_v21 = vpop.xlane.xlu2 %828 }
 0x3b2   : > { %1429 = vrcp.f32 %v829_v21 }
 0x3b8   : > { %v1430_v23 = vpop.eup %1429 }
 0x3b9   : > { %v831_v25 = vmul.f32 %v1430_v23, %v1424_v10  ;;  %v891_v26 = vpop.permute.xlu2 %890 }
 0x3ba   : > { %v896_v27 = vsel %vm777_vm2, %v891_v26, 0 }
 0x3bb   : > { %905 = vmatpush.bf16.msrb.mxu2 %v896_v27  ;;  %v832_v28 = vpack.c.bf16 %v831_v25, %v831_v25  ;;  %v1411_v27 = vld [vmem:[%s1747_s10] ss:$0 sm:$0xff] }
 0x3bd   : > { %1318 = vmatmul.msk.bf16.vlgmr.msrb.gmra.mxu0 %vm737_vm1, %v832_v28 }
 0x3be   : > { %1320 = vmatmul.msk.bf16.vlgmr.msrb.gmra.mxu2 %vm737_vm1, %v889_v29  ;;  %v1412_v29 = vld [vmem:[%s1748_s11] ss:$0 sm:$0xff] }
 0x3c1   : > { %v943_v30 = vpop.xlane.xlu0 %942 }
 0x3c2   : > { %1431 = vrcp.f32 %v943_v30 }
 0x3c3   : > { %1433 = vrcp.f32 %v1473_v1 }
 0x3c8   : > { %v1432_v20 = vpop.eup %1431 }
 0x3c9   : > { %v945_v31 = vmul.f32 %v1432_v20, %v1426_v17  ;;  %v1434_v2 = vpop.eup %1433 }
 0x3ca   : > { %v1028_v3 = vmul.f32 32.0, %v1434_v2  ;;  %vm1032_vm5 = vweird.f32 %v1434_v2 }
 0x3cb   : > { %v946_v34 = vpack.c.bf16 %v945_v31, %v945_v31 }
 0x3cc   : > { %v1029_v5 = vsub.f32 1.0, %v1028_v3 }
 0x3ce   : > { %v1030_v6 = vmul.f32 %v1434_v2, %v1029_v5 }
 0x3d0   : > { %v1031_v7 = vadd.f32 %v1434_v2, %v1030_v6 }
 0x3d2   : > { %v1033_v8 = vsel %vm1032_vm5, %v1434_v2, %v1031_v7 }
 0x3d4   : > { %v948_v32 = vpop.permute.xlu0 %947 }
 0x3d5   : > { %v953_v33 = vsel %vm777_vm2, %v948_v32, 0 }
 0x3d6   : > { %962 = vmatpush.bf16.msra.mxu0 %v953_v33  ;;  %v1369_v33 = vld [vmem:[%s1751_s14 + $0x8] sm:$0xff] }
 0x3d7   : > { %1148 = vmatpush.bf16.msrb.mxu3 %v1369_v33 }
 0x3d9   : > { %1322 = vmatmul.msk.bf16.vlgmr.msra.gmra.mxu0 %vm737_vm1, %v946_v34  ;;  %v1368_v34 = vld [vmem:[%s1751_s14] sm:$0xff] }
 0x3db   : > { %1149 = vmatpush.bf16.msrb.mxu3 %v1368_v34 }
 0x43a   : > { %v850_v35 = vpop.f32.mrf.mxu0 }
 0x43b   : > { %v854_v36 = vpack.c.bf16 %v850_v35, %v850_v35  ;;  %v1413_v35 = vld [vmem:[%s1750_s13] ss:$0 sm:$0xff] }
 0x43d   : > { %v970_v37 = vunpack.c.l.b16 %v854_v36 }
 0x43f   : > { %v971_v38 = vpack.c.b16 %v970_v37, %v970_v37 }
 0x441   : > { %v907_v39 = vpop.f32.mrf.mxu2  ;;  %972 = vrot.lane.b32.xlu1 %v971_v38, %s1470_s1 }
 0x442   : > { %v911_v40 = vpack.c.bf16 %v907_v39, %v907_v39  ;;  %v852_v41 = vpop.f32.mrf.mxu0 }
 0x443   : > { %v1414_v41 = vld [vmem:[%s1752_s15] ss:$0 sm:$0xff] }
 0x444   : > { %v975_v42 = vunpack.c.l.b16 %v911_v40 }
 0x446   : > { %v976_v43 = vpack.c.b16 %v975_v42, %v975_v42 }
 0x449   : > { %v909_v44 = vpop.f32.mrf.mxu2  ;;  %977 = vrot.lane.b32.xlu1 %v976_v43, %s1471_s20 }
 0x456   : > { %v964_v45 = vpop.f32.mrf.mxu0 }
 0x457   : > { %v968_v46 = vpack.c.bf16 %v964_v45, %v964_v45 }
 0x459   : > { %v980_v47 = vunpack.c.l.b16 %v968_v46 }
 0x45b   : > { %v981_v48 = vpack.c.b16 %v980_v47, %v980_v47 }
 0x45d   : > { %982 = vrot.lane.b32.xlu2 %v981_v48, %s1472_s21  ;;  %s641_s21 = scalar_lea.vmem %s1755_s18, %s1602_s24 }
 0x45e   : > { %v966_v49 = vpop.f32.mrf.mxu0 }
 0x4b3   : > { %v973_v52 = vpop.permute.xlu1 %972 }
 0x4b4   : > { %v986_v54 = vsel %vm737_vm1, %v794_v53, %v973_v52 }
 0x4b7   : > { %v983_v56 = vpop.permute.xlu2 %982 }
 0x4bb   : > { %v978_v55 = vpop.permute.xlu1 %977 }
 0x4bc   : > { %v989_v57 = vsel %vm987_vm3, %v986_v54, %v978_v55 }
 0x4bd   : > { %v992_v58 = vsel %vm990_vm4, %v989_v57, %v983_v56 }
 0x4be   : > { %1331 = vmatmul.msk.bf16.vlgmr.msra.gmra.mxu1 %vm685_vm0, %v992_v58 }
 0x53b   : > { %v1019_v61 = vpop.f32.mrf.mxu1 }
 0x53c   : > { %v1020_v62 = vadd.f32 %v1410_v59, %v1019_v61 }
 0x53e   : > { %v1023_v63 = vadd.f32 %v1020_v62, %v1608_v4  ;;  %v1367_v4 = vld [vmem:[%s1749_s12 + $0x8] sm:$0xff]  ;;  %v1415_v62 = vld [vmem:[%s1753_s16] ss:$0 sm:$0xff] }
 0x53f   : > { %1102 = vmatpush.bf16.msra.mxu2 %v1367_v4 }
 0x540   : > { %v1024_v60 = vsel %vm685_vm0, %v1023_v63, 0.0 }
 0x541   : > { %1025 = vadd.xlane.f32.xlu0 %v1024_v60  ;;  %v1416_v60 = vld [vmem:[%s1754_s17] ss:$0 sm:$0xff] }
 0x543   : > { %v1021_v0 = vpop.f32.mrf.mxu1  ;;  %1103 = vmatpush.bf16.msra.mxu2 %v1366_v14 }
 0x5b4   : > { %v1026_v9 = vpop.xlane.xlu0 %1025 }
 0x5b5   : > { %v1034_v10 = vmul.f32 %v1033_v8, %v1026_v9 }
 0x5b7   : > { %v1035_v11 = vsub.f32 %v1023_v63, %v1034_v10 }
 0x5b9   : > { %v1036_v12 = vmul.f32 %v1035_v11, %v1035_v11 }
 0x5bb   : > { %v1037_v13 = vsel %vm685_vm0, %v1036_v12, 0.0 }
 0x5bc   : > { %1038 = vadd.xlane.f32.xlu1 %v1037_v13 }
 0x62f   : > { %v1039_v16 = vpop.xlane.xlu1 %1038 }
 0x630   : > { %v1040_v17 = vmul.f32 %v1039_v16, %v1033_v8 }
 0x632   : > { %v1041_v19 = vadd.f32 1e-05, %v1040_v17 }
 0x634   : > { %1435 = vrsqrt.f32 %v1041_v19  ;;  %vm1048_vm7 = vweird.f32 %v1041_v19 }
 0x63a   : > { %v1436_v21 = vpop.eup %1435 }
 0x63b   : > { %v1043_v22 = vmul.f32 %v1436_v21, %v1041_v19  ;;  %vm1049_vm6 = vweird.f32 %v1436_v21 }
 0x63c   : > { %vm1050_vm8 = vmor %vm1048_vm7, %vm1049_vm6 }
 0x63d   : > { %v1044_v23 = vmul.f32 %v1436_v21, %v1043_v22 }
 0x63f   : > { %v1045_v24 = vmul.f32 0.5, %v1044_v23 }
 0x641   : > { %v1046_v25 = vsub.f32 1.5, %v1045_v24 }
 0x643   : > { %v1047_v26 = vmul.f32 %v1436_v21, %v1046_v25 }
 0x645   : > { %v1051_v28 = vsel %vm1050_vm8, %v1436_v21, %v1047_v26 }
 0x646   : > { %v1052_v30 = vmul.f32 %v1051_v28, %v1035_v11 }
 0x648   : > { %v1056_v20 = vmul.f32 %v1411_v27, %v1052_v30 }
 0x64a   : > { %v1060_v31 = vadd.f32 %v1412_v29, %v1056_v20 }
 0x64c   : > { %v1077_v32 = vpack.c.bf16 %v1060_v31, %v1060_v31 }
 0x64e   : > { %1340 = vmatmul.msk.bf16.vlgmr.msra.gmra.mxu2 %vm685_vm0, %v1077_v32 }
 0x6d1   : > { %v1105_v36 = vpop.f32.mrf.mxu2 }
 0x6d2   : > { %v1106_v37 = vadd.f32 %v1413_v35, %v1105_v36 }
 0x6d4   : > { %v1109_v38 = vmax.f32 %v1106_v37, 0.0 }
 0x6d6   : > { %v1110_v39 = vpack.c.bf16 %v1109_v38, %v1109_v38 }
 0x6d8   : > { %1357 = vmatmul.msk.bf16.vlgmr.msrb.gmra.mxu3 %vm1138_vm9, %v1110_v39 }
 0x6d9   : > { %v1107_v40 = vpop.f32.mrf.mxu2 }
 0x75b   : > { %v1151_v42 = vpop.f32.mrf.mxu3 }
 0x75c   : > { %v1152_v43 = vadd.f32 %v1414_v41, %v1151_v42 }
 0x75e   : > { %v1155_v44 = vadd.f32 %v1152_v43, %v1060_v31 }
 0x760   : > { %v1156_v45 = vsel %vm685_vm0, %v1155_v44, 0.0 }
 0x761   : > { %1157 = vadd.xlane.f32.xlu2 %v1156_v45 }
 0x763   : > { %v1153_v46 = vpop.f32.mrf.mxu3 }
 0x7d4   : > { %v1158_v47 = vpop.xlane.xlu2 %1157 }
 0x7d5   : > { %v1159_v48 = vmul.f32 %v1158_v47, %v1033_v8 }
 0x7d7   : > { %v1160_v49 = vsub.f32 %v1155_v44, %v1159_v48 }
 0x7d9   : > { %v1161_v50 = vmul.f32 %v1160_v49, %v1160_v49 }
 0x7db   : > { %v1162_v51 = vsel %vm685_vm0, %v1161_v50, 0.0 }
 0x7dc   : > { %1163 = vadd.xlane.f32.xlu0 %v1162_v51 }
 0x84f   : > { %v1164_v52 = vpop.xlane.xlu0 %1163 }
 0x850   : > { %v1165_v53 = vmul.f32 %v1164_v52, %v1033_v8 }
 0x852   : > { %v1166_v54 = vadd.f32 1e-05, %v1165_v53 }
 0x854   : > { %1437 = vrsqrt.f32 %v1166_v54  ;;  %vm1173_vm11 = vweird.f32 %v1166_v54 }
 0x85a   : > { %v1438_v55 = vpop.eup %1437 }
 0x85b   : > { %v1168_v56 = vmul.f32 %v1438_v55, %v1166_v54  ;;  %vm1174_vm10 = vweird.f32 %v1438_v55 }
 0x85c   : > { %vm1175_vm12 = vmor %vm1173_vm11, %vm1174_vm10 }
 0x85d   : > { %v1169_v57 = vmul.f32 %v1438_v55, %v1168_v56 }
 0x85f   : > { %v1170_v58 = vmul.f32 0.5, %v1169_v57 }
 0x861   : > { %v1171_v59 = vsub.f32 1.5, %v1170_v58 }
 0x863   : > { %v1172_v61 = vmul.f32 %v1438_v55, %v1171_v59 }
 0x865   : > { %v1176_v63 = vsel %vm1175_vm12, %v1438_v55, %v1172_v61 }
 0x866   : > { %v1177_v0 = vmul.f32 %v1176_v63, %v1160_v49 }
 0x868   : > { %v1181_v1 = vmul.f32 %v1415_v62, %v1177_v0 }
 0x86a   : > { %v1185_v2 = vadd.f32 %v1416_v60, %v1181_v1 }
 0x86c   : > { %1186 = vst.msk [vmem:[%s641_s21] sm:$0xff] %vm685_vm0, %v1185_v2 }
 0x86d PF: > { %s28_s29 = sadd.s32 1, %s1461_s29   ;;  %s1762_s27 = smov %s1457_s28 }
 0x86e   : > { %p25_p5 = scmp.ge.s32.totalorder %s28_s29, 4   ;;  %s1763_s28 = smov %s1765_s30 }
 0x870   :  { %27 = sbr.rel (!%p25_p5) target bundleno = 4 (0x4), region = 131 }

// kernel: translator_forward.6
= control target key start
LH: loop header
LB: loop body
LE: loop exit
PB: predicated region body
PF: predicated region fallthrough
CT: control target
= control target key end

     0   :  { %s2103_s0 = inlined_call_operand.vmem [shape: f32[16,32], index: 0, kind: input, shape index: {}, may-alias: {0,1}]   ;;  %s2104_s1 = inlined_call_operand.vmem [shape: f32[16,32], index: 1, kind: input, shape index: {}, may-alias: {0,1}]   ;;  %s2105_s2 = inlined_call_operand.vmem [shape: f32[8,8], index: 2, kind: input, shape index: {}]   ;;  %s2106_s3 = inlined_call_operand.vmem [shape: f32[2,1,8], index: 3, kind: input, shape index: {}]   ;;  %s2107_s4 = inlined_call_operand.vmem [shape: bf16[32,32], index: 4, kind: input, shape index: {}]   ;;  %s2108_s5 = inlined_call_operand.vmem [shape: f32[1,32], index: 5, kind: input, shape index: {}]   ;;  %s2109_s6 = inlined_call_operand.vmem [shape: bf16[32,64], index: 6, kind: input, shape index: {}]   ;;  %s2110_s7 = inlined_call_operand.vmem [shape: f32[1,64], index: 7, kind: input, shape index: {}]   ;;  %s2111_s8 = inlined_call_operand.vmem [shape: bf16[32,32], index: 8, kind: input, shape index: {}]   ;;  %s2112_s9 = inlined_call_operand.vmem [shape: f32[1,32], index: 9, kind: input, shape index: {}]   ;;  %s2113_s10 = inlined_call_operand.vmem [shape: f32[1,32], index: 10, kind: input, shape index: {}]   ;;  %s2114_s11 = inlined_call_operand.vmem [shape: f32[1,32], index: 11, kind: input, shape index: {}]   ;;  %s2115_s12 = inlined_call_operand.vmem [shape: bf16[32,64], index: 12, kind: input, shape index: {}]   ;;  %s2116_s13 = inlined_call_operand.vmem [shape: f32[1,64], index: 13, kind: input, shape index: {}]   ;;  %s2117_s14 = inlined_call_operand.vmem [shape: bf16[64,32], index: 14, kind: input, shape index: {}]   ;;  %s2118_s15 = inlined_call_operand.vmem [shape: f32[1,32], index: 15, kind: input, shape index: {}]   ;;  %s2119_s16 = inlined_call_operand.vmem [shape: f32[1,32], index: 16, kind: input, shape index: {}]   ;;  %s2120_s17 = inlined_call_operand.hbm [shape: f32[1,32], index: 17, kind: input, shape index: {}]   ;;  %s2121_s18 = inlined_call_operand.hbm [shape: f32[1,32], index: 18, kind: input, shape index: {}]   ;;  %s2122_s19 = inlined_call_operand.hbm [shape: f32[1,32], index: 19, kind: input, shape index: {}]   ;;  %s2123_s20 = inlined_call_operand.vmem [shape: f32[16,32], index: 20, kind: output, shape index: {}]  }
   0x1   :  { %2127 = sst [smem:[#allocation11_spill]] %s2103_s0 }
   0x2   :  { %2128 = sst [smem:[#allocation12_spill]] %s2104_s1 }
   0x3   :  { %2129 = sst [smem:[#allocation13_spill]] %s2105_s2 }
   0x4   :  { %2130 = sst [smem:[#allocation14_spill]] %s2106_s3 }
   0x5   :  { %2131 = sst [smem:[#allocation15_spill]] %s2107_s4 }
   0x6   :  { %2132 = sst [smem:[#allocation16_spill]] %s2120_s17 }
   0x7   :  { %2133 = sst [smem:[#allocation17_spill]] %s2121_s18 }
   0x8   :  { %2134 = sst [smem:[#allocation18_spill]] %s2122_s19 }
   0x9   :  { %2135 = sst [smem:[#allocation19_spill]] %s2123_s20 }
   0xa   :  { %25 = vsyncpa [#allocation3], 0 }
   0xb   :  { %26 = vsyncpa [#allocation5], 0  ;;  %s1882_s1 = smov 0   ;;  %s1884_s22 = smov 0  }
   0xc   :  { %s1886_s23 = smov 0  }
   0xd LB: > { %2136 = sst [smem:[#allocation9_spill]] %s1757_s22  ;;  %s1449_s3 = sadd.s32 4294967295, %s1761_s23   ;;  %s1761_s23 = sphi %s1886_s23, %s32_s23   ;;  %s1757_s22 = sphi %s1884_s22, %s2152_s22   ;;  %s1753_s1 = sphi %s1882_s1, %s2151_s1  }
   0xe   : > { %2137 = sst [smem:[#allocation10_spill]] %s1761_s23  ;;  %p1451_p0 = scmp.ge.s32.totalorder %s1761_s23, 1 }
   0xf   : > { %s2138_s18 = sld [smem:[#allocation17_spill]]  ;;  %p519_p1 = scmp.lt.s32.totalorder %s1761_s23, 3 }
  0x10   : > { %p1903_p2 = scmp.eq.s32.totalorder %s1449_s3, 0  ;;  %s1763_s28 = smov [#allocation4]  }
  0x11   : > { %p1907_p3 = pnand %p1451_p0, %p519_p1  ;;  %s591_s4 = sshll.u32 %s1763_s28, 4  ;;  %s592_s4 = int_to_ptr.vmem [resolvable:$true] %s591_s4 }
  0x12   : > { %s44_s30 = sadd.s32 1, %s1757_s22  ;;  %s2142_s17 = sld [smem:[#allocation16_spill]] }
  0x13   : > { %p1551_p4 = pneg %p1907_p3  ;;  %p46_p6 = scmp.ge.s32.totalorder %s44_s30, 2 }
  0x14   : > { %s2143_s19 = sld [smem:[#allocation18_spill]]  ;;  %s1765_s22 = smov [#allocation6]  }
  0x15   : > { %s589_s25 = sshll.u32 %s2138_s18, 4  ;;  %p1915_p5 = pnand %p1903_p2, %p1551_p4  ;;  %s590_s25 = int_to_ptr.hbm [resolvable:$true] %s589_s25 }
  0x16   : > { %s2154_s30 = smov (%p46_p6, %s44_s30), 0  ;;  %s1764_s18 = smov [#allocation2]  }
  0x17   : > { %1557 = dma.hbm_to_vmem [thread:$0]  (!%p1915_p5), %s590_s25, 16, %s592_s4, [#allocation5]  }
  0x18   : > { %s577_s24 = sshll.u32 %s2142_s17, 4  ;;  %s579_s23 = sshll.u32 %s1764_s18, 4  ;;  %s578_s24 = int_to_ptr.hbm [resolvable:$true] %s577_s24  ;;  %s580_s23 = int_to_ptr.vmem [resolvable:$true] %s579_s23 }
  0x19   : > { %1554 = dma.hbm_to_vmem [thread:$0]  (!%p1915_p5), %s578_s24, 16, %s580_s23, [#allocation3]  }
  0x1a   : > { %s601_s28 = sshll.u32 %s2143_s19, 4  ;;  %s603_s20 = sshll.u32 %s1765_s22, 4  ;;  %s602_s28 = int_to_ptr.hbm [resolvable:$true] %s601_s28  ;;  %s604_s20 = int_to_ptr.vmem [resolvable:$true] %s603_s20 }
  0x1b   : > { %1560 = dma.hbm_to_vmem [thread:$0]  (!%p1915_p5), %s602_s28, 16, %s604_s20, [#allocation5]  }
  0x1c   : > { %638 = sbr.rel (%p1907_p3) target bundleno = 2450 (0x992), region = 100 }
  0x21   : > { %1744 = dma.done.wait (%p1903_p2), [#allocation3], 16  }
  0x22   : > { %1746 = vsyncadd (%p1903_p2), [#allocation3], 4294967280 }
  0x23   : > { %1748 = dma.done.wait (%p1903_p2), [#allocation5], 32  }
  0x24   : > { %1750 = vsyncadd (%p1903_p2), [#allocation5], 4294967264  ;;  %p719_p7 = scmp.lt.s32.totalorder %s1753_s1, 1  ;;  %s2144_s23 = sld [smem:[#allocation11_spill]]  ;;  %v1530_v1 = vld [vmem:[%s2109_s6 + $0x8] sm:$0xff]  ;;  %v1529_v3 = vld [vmem:[%s2109_s6] sm:$0xff] }
  0x25   : > { %s2145_s29 = sld [smem:[#allocation12_spill]]  ;;  %825 = vmatpush.bf16.msra.mxu1 %v1530_v1  ;;  %vm783_vm0 = vcmask 261120   ;;  %v1605_v8 = vld [vmem:[%s2108_s5] ss:$0 sm:$0xff]  ;;  %vm835_vm1 = vcmask 64512   ;;  %s1767_s27 = smov 120  }
  0x26   : > { %s2156_s1 = smov (!%p719_p7, %s1753_s1), 1  ;;  %s2146_s24 = sld [smem:[#allocation15_spill]]  ;;  %v1606_v9 = vld [vmem:[%s2110_s7] ss:$0 sm:$0xff]  ;;  %vm875_vm2 = vcmask 1043456   ;;  %vm1085_vm3 = vcmask 130048  }
  0x27   : > { %s1949_s18 = sshll.u32 %s2156_s1, 3  ;;  %s1768_s21 = smov 112   ;;  %vm1088_vm4 = vcmask 195584   ;;  %vm1236_vm9 = vcmask 523264  }
  0x28   : > { %s1769_s2 = smov 104   ;;  %s2148_s28 = sld [smem:[#allocation13_spill]] }
  0x29   : > { %826 = vmatpush.bf16.msra.mxu1 %v1529_v3  ;;  %s1770_s20 = smov 88   ;;  %s1771_s17 = smov 80  }
  0x2a   : > { %s722_s25 = scalar_lea.vmem %s2144_s23, %s1949_s18  ;;  %s1772_s22 = smov 72  }
  0x2b   : > { %s727_s0 = scalar_lea.vmem %s2145_s29, %s1949_s18  ;;  %v1971_v4 = vld [vmem:[%s722_s25] sm:$0xff]  ;;  %s1766_s25 = smov 96  }
  0x2c   : > { %v1528_v0 = vld [vmem:[%s2146_s24 + $0x8] sm:$0xff]  ;;  %v1527_v2 = vld [vmem:[%s2146_s24] sm:$0xff]  ;;  %v767_v6 = vpack.c.bf16 %v1971_v4, %v1971_v4  ;;  %s1773_s19 = smov 8   ;;  %s1774_s23 = smov 16  }
  0x2d   : > { %793 = vmatpush.bf16.msra.mxu0 %v1528_v0  ;;  %v749_v5 = vld [vmem:[%s727_s0] sm:$0xff]  ;;  %s2147_s0 = sld [smem:[#allocation14_spill]] }
  0x2e   : > { %v800_v7 = vpack.c.bf16 %v749_v5, %v749_v5  ;;  %v743_v32 = vld [vmem:[%s2148_s28] sm:$0xff] }
  0x30   : > { %1481 = vmatmul.msk.bf16.vlgmr.msra.gmra.mxu1 %vm783_vm0, %v800_v7 }
  0x31   : > { %794 = vmatpush.bf16.msra.mxu0 %v1527_v2 }
  0x33   : > { %s734_s26 = scalar_lea.vmem %s2147_s0, %s2156_s1 }
  0x34   : > { %1472 = vmatmul.msk.bf16.vlgmr.msra.gmra.mxu0 %vm783_vm0, %v767_v6  ;;  %v1607_v31 = vld [vmem:[%s734_s26] ss:$0 sm:$0xff] }
  0x35   : > { %v748_v34 = vadd.f32 %v1607_v31, %v743_v32 }
  0xad   : > { %v828_v11 = vpop.f32.mrf.mxu1 }
  0xae   : > { %v829_v13 = vadd.f32 %v1606_v9, %v828_v11 }
  0xb0   : > { %v834_v15 = vpack.c.bf16 %v829_v13, %v829_v13 }
  0xb1   : > { %v796_v10 = vpop.f32.mrf.mxu0 }
  0xb2   : > { %v797_v12 = vadd.f32 %v1605_v8, %v796_v10  ;;  %v868_v17 = vunpack.c.l.b16 %v834_v15  ;;  %v840_v18 = vsel %vm835_vm1, %v834_v15, 0 }
  0xb3   : > { %849 = vmatpush.bf16.xpose.msra.mxu2 %v840_v18 }
  0xb4   : > { %v832_v14 = vmul.f32 0.35355338, %v797_v12  ;;  %v1984_v20 = vpack.c.b16 %v868_v17, %v868_v17 }
  0xb5   : > { %v830_v22 = vpop.f32.mrf.mxu1 }
  0xb6   : > { %v833_v16 = vpack.c.bf16 %v832_v14, %v832_v14  ;;  %870 = vrot.lane.b32.xlu1 %v1984_v20, %s1766_s25  ;;  %s1775_s25 = smov 24  }
  0xb8   : > { %v894_v19 = vunpack.c.l.b16 %v833_v16 }
  0xb9   : > { %v798_v21 = vpop.f32.mrf.mxu0 }
  0xba   : > { %v895_v23 = vpack.c.b16 %v894_v19, %v894_v19  ;;  %1482 = vmatmul.msk.bf16.vlgmr.msra.gmra.mxu2 %vm835_vm1, %v833_v16 }
  0xbc   : > { %896 = vrot.lane.b32.xlu2 %v895_v23, %s1767_s27 }
  0xbe   : > { %898 = vrot.lane.b32.xlu1 %v1984_v20, %s1767_s27 }
  0xc4   : > { %955 = vrot.lane.b32.xlu2 %v1984_v20, %s1768_s21 }
  0xc6   : > { %953 = vrot.lane.b32.xlu1 %v895_v23, %s1768_s21 }
  0xcc   : > { %1010 = vrot.lane.b32.xlu2 %v895_v23, %s1769_s2 }
 0x116   : > { %v897_v24 = vpop.permute.xlu2 %896 }
 0x11e   : > { %v956_v25 = vpop.permute.xlu2 %955 }
 0x11f   : > { %v961_v26 = vsel %vm835_vm1, %v956_v25, 0 }
 0x120   : > { %970 = vmatpush.bf16.xpose.msrb.mxu1 %v961_v26 }
 0x126   : > { %v1011_v48 = vpop.permute.xlu2 %1010 }
 0x128   : > { %v871_v27 = vpop.permute.xlu1 %870 }
 0x129   : > { %v877_v28 = vsel %vm875_vm2, %v871_v27, 0 }
 0x12a   : > { %886 = vmatpush.bf16.msra.mxu3 %v877_v28 }
 0x130   : > { %v899_v29 = vpop.permute.xlu1 %898 }
 0x131   : > { %v904_v30 = vsel %vm835_vm1, %v899_v29, 0 }
 0x132   : > { %913 = vmatpush.bf16.xpose.msrb.mxu3 %v904_v30 }
 0x138   : > { %v954_v33 = vpop.permute.xlu1 %953 }
 0x139   : > { %1486 = vmatmul.msk.bf16.vlgmr.msrb.gmra.mxu1 %vm835_vm1, %v954_v33 }
 0x13d   : > { %v851_v35 = vpop.f32.mrf.mxu2 }
 0x13e   : > { %v852_v36 = vadd.f32 %v851_v35, %v748_v34 }
 0x140   : > { %v855_v37 = vsel %vm835_vm1, %v852_v36, -inf }
 0x141   : > { %856 = vmax.xlane.f32.xlu0 %v855_v37 }
 0x145   : > { %v853_v38 = vpop.f32.mrf.mxu2 }
 0x1b4   : > { %v857_v39 = vpop.xlane.xlu0 %856 }
 0x1b5   : > { %v858_v40 = vsub.f32 %v852_v36, %v857_v39 }
 0x1b6   : > { %v972_v41 = vpop.f32.mrf.mxu1 }
 0x1b7   : > { %v859_v42 = vmul.f32 1.442695, %v858_v40  ;;  %v973_v43 = vadd.f32 %v972_v41, %v748_v34 }
 0x1b9   : > { %1617 = vpow2.f32 %v859_v42  ;;  %v976_v44 = vsel %vm835_vm1, %v973_v43, -inf }
 0x1ba   : > { %977 = vmax.xlane.f32.xlu2 %v976_v44 }
 0x1be   : > { %v974_v45 = vpop.f32.mrf.mxu1 }
 0x1bf   : > { %v1618_v46 = vpop.eup %1617 }
 0x1c0   : > { %v861_v47 = vsel %vm835_vm1, %v1618_v46, 0.0 }
 0x1c1   : > { %862 = vadd.xlane.f32.xlu0 %v861_v47 }
 0x1d5   : > { %1012 = vrot.lane.b32.xlu0 %v1984_v20, %s1769_s2 }
 0x22d   : > { %v978_v49 = vpop.xlane.xlu2 %977 }
 0x22e   : > { %v979_v50 = vsub.f32 %v973_v43, %v978_v49 }
 0x230   : > { %v980_v51 = vmul.f32 1.442695, %v979_v50  ;;  %v1532_v50 = vld [vmem:[%s2111_s8 + $0x8] sm:$0xff] }
 0x231   : > { %1114 = vmatpush.bf16.msra.mxu1 %v1532_v50 }
 0x232   : > { %1619 = vpow2.f32 %v980_v51  ;;  %v1531_v51 = vld [vmem:[%s2111_s8] sm:$0xff] }
 0x234   : > { %v863_v52 = vpop.xlane.xlu0 %862 }
 0x235   : > { %1621 = vrcp.f32 %v863_v52  ;;  %1115 = vmatpush.bf16.msra.mxu1 %v1531_v51 }
 0x238   : > { %v1620_v53 = vpop.eup %1619 }
 0x239   : > { %v982_v54 = vsel %vm835_vm1, %v1620_v53, 0.0 }
 0x23a   : > { %983 = vadd.xlane.f32.xlu2 %v982_v54 }
 0x23b   : > { %v1622_v55 = vpop.eup %1621 }
 0x23c   : > { %v865_v56 = vmul.f32 %v1622_v55, %v1618_v46 }
 0x23e   : > { %v866_v57 = vpack.c.bf16 %v865_v56, %v865_v56 }
 0x240   : > { %1483 = vmatmul.msk.bf16.vlgmr.msra.gmra.mxu3 %vm835_vm1, %v866_v57 }
 0x247   : > { %v1013_v58 = vpop.permute.xlu0 %1012 }
 0x248   : > { %v1018_v59 = vsel %vm835_vm1, %v1013_v58, 0 }
 0x249   : > { %1027 = vmatpush.bf16.xpose.msra.mxu3 %v1018_v59  ;;  %v1608_v59 = vld [vmem:[%s2112_s9] ss:$0 sm:$0xff] }
 0x250   : > { %1484 = vmatmul.msk.bf16.vlgmr.msrb.gmra.mxu3 %vm835_vm1, %v897_v24 }
 0x260   : > { %1488 = vmatmul.msk.bf16.vlgmr.msra.gmra.mxu3 %vm835_vm1, %v1011_v48 }
 0x2ad   : > { %v984_v19 = vpop.xlane.xlu2 %983 }
 0x2c3   : > { %v2012_v60 = vpop.f32.mrf.mxu3 }
 0x2cb   : > { %v890_v61 = vpop.f32.mrf.mxu3 }
 0x2d3   : > { %v915_v62 = vpop.f32.mrf.mxu3 }
 0x2d4   : > { %v916_v63 = vadd.f32 %v915_v62, %v748_v34 }
 0x2d6   : > { %v919_v0 = vsel %vm835_vm1, %v916_v63, -inf }
 0x2d7   : > { %920 = vmax.xlane.f32.xlu1 %v919_v0 }
 0x2db   : > { %v917_v1 = vpop.f32.mrf.mxu3 }
 0x2dc   : > { %v1776_v1 = vmov 32.0  }
 0x2e3   : > { %v1029_v2 = vpop.f32.mrf.mxu3 }
 0x2e4   : > { %v1030_v3 = vadd.f32 %v1029_v2, %v748_v34 }
 0x2e6   : > { %v1033_v5 = vsel %vm835_vm1, %v1030_v3, -inf }
 0x2e7   : > { %1034 = vmax.xlane.f32.xlu0 %v1033_v5 }
 0x2eb   : > { %v1031_v6 = vpop.f32.mrf.mxu3 }
 0x2f0   : > { %931 = vrot.lane.b32.xlu1 %v1984_v20, %s1770_s20 }
 0x34a   : > { %v921_v7 = vpop.xlane.xlu1 %920 }
 0x34b   : > { %v922_v8 = vsub.f32 %v916_v63, %v921_v7 }
 0x34d   : > { %v923_v9 = vmul.f32 1.442695, %v922_v8 }
 0x34f   : > { %1623 = vpow2.f32 %v923_v9 }
 0x355   : > { %v1624_v10 = vpop.eup %1623 }
 0x356   : > { %v925_v11 = vsel %vm835_vm1, %v1624_v10, 0.0 }
 0x357   : > { %926 = vadd.xlane.f32.xlu2 %v925_v11 }
 0x35a   : > { %v1035_v12 = vpop.xlane.xlu0 %1034 }
 0x35b   : > { %v1036_v13 = vsub.f32 %v1030_v3, %v1035_v12 }
 0x35d   : > { %v1037_v14 = vmul.f32 1.442695, %v1036_v13  ;;  %v1534_v13 = vld [vmem:[%s2115_s12 + $0x8] sm:$0xff] }
 0x35f   : > { %1625 = vpow2.f32 %v1037_v14  ;;  %v1533_v14 = vld [vmem:[%s2115_s12] sm:$0xff] }
 0x360   : > { %1627 = vrcp.f32 %v984_v19 }
 0x362   : > { %v932_v15 = vpop.permute.xlu1 %931 }
 0x363   : > { %v937_v16 = vsel %vm875_vm2, %v932_v15, 0  ;;  %v1538_v15 = vld [vmem:[%s2117_s14 + $0x18] sm:$0xff] }
 0x364   : > { %946 = vmatpush.bf16.msrb.mxu0 %v937_v16  ;;  %1244 = vmatpush.bf16.msrb.mxu3 %v1538_v15 }
 0x365   : > { %v1626_v17 = vpop.eup %1625 }
 0x366   : > { %v1039_v18 = vsel %vm835_vm1, %v1626_v17, 0.0  ;;  %v1628_v22 = vpop.eup %1627 }
 0x367   : > { %1040 = vadd.xlane.f32.xlu0 %v1039_v18  ;;  %v986_v24 = vmul.f32 %v1628_v22, %v1620_v53  ;;  %v892_v53 = vpack.c.bf16 %v2012_v60, %v2012_v60  ;;  %v1537_v18 = vld [vmem:[%s2117_s14 + $0x10] sm:$0xff] }
 0x368   : > { %1245 = vmatpush.bf16.msrb.mxu3 %v1537_v18 }
 0x369   : > { %v987_v29 = vpack.c.bf16 %v986_v24, %v986_v24 }
 0x36f   : > { %988 = vrot.lane.b32.xlu2 %v1984_v20, %s1771_s17 }
 0x37b   : > { %1045 = vrot.lane.b32.xlu0 %v1984_v20, %s1772_s22 }
 0x3ca   : > { %v927_v21 = vpop.xlane.xlu2 %926 }
 0x3cb   : > { %1629 = vrcp.f32 %v927_v21 }
 0x3d1   : > { %v1630_v23 = vpop.eup %1629 }
 0x3d2   : > { %v929_v25 = vmul.f32 %v1630_v23, %v1624_v10  ;;  %v989_v26 = vpop.permute.xlu2 %988 }
 0x3d3   : > { %v994_v27 = vsel %vm875_vm2, %v989_v26, 0 }
 0x3d4   : > { %1003 = vmatpush.bf16.msrb.mxu2 %v994_v27  ;;  %v930_v28 = vpack.c.bf16 %v929_v25, %v929_v25  ;;  %v1609_v27 = vld [vmem:[%s2113_s10] ss:$0 sm:$0xff] }
 0x3d6   : > { %1485 = vmatmul.msk.bf16.vlgmr.msrb.gmra.mxu0 %vm835_vm1, %v930_v28 }
 0x3d7   : > { %1487 = vmatmul.msk.bf16.vlgmr.msrb.gmra.mxu2 %vm835_vm1, %v987_v29  ;;  %v1610_v29 = vld [vmem:[%s2114_s11] ss:$0 sm:$0xff] }
 0x3d8   : > { %1200 = vmatpush.bf16.msra.mxu2 %v1534_v13 }
 0x3da   : > { %v1041_v30 = vpop.xlane.xlu0 %1040 }
 0x3db   : > { %1631 = vrcp.f32 %v1041_v30 }
 0x3dc   : > { %1633 = vrcp.f32 %v1776_v1  ;;  %1201 = vmatpush.bf16.msra.mxu2 %v1533_v14 }
 0x3e1   : > { %v1632_v20 = vpop.eup %1631 }
 0x3e2   : > { %v1043_v31 = vmul.f32 %v1632_v20, %v1626_v17  ;;  %v1634_v2 = vpop.eup %1633 }
 0x3e3   : > { %v1126_v3 = vmul.f32 32.0, %v1634_v2  ;;  %vm1130_vm5 = vweird.f32 %v1634_v2 }
 0x3e4   : > { %v1044_v34 = vpack.c.bf16 %v1043_v31, %v1043_v31 }
 0x3e5   : > { %v1127_v5 = vsub.f32 1.0, %v1126_v3 }
 0x3e7   : > { %v1128_v6 = vmul.f32 %v1634_v2, %v1127_v5 }
 0x3e9   : > { %v1129_v7 = vadd.f32 %v1634_v2, %v1128_v6 }
 0x3eb   : > { %v2042_v8 = vsel %vm1130_vm5, %v1634_v2, %v1129_v7 }
 0x3ed   : > { %v1046_v32 = vpop.permute.xlu0 %1045 }
 0x3ee   : > { %v1051_v33 = vsel %vm875_vm2, %v1046_v32, 0 }
 0x3ef   : > { %1060 = vmatpush.bf16.msra.mxu0 %v1051_v33  ;;  %v1536_v33 = vld [vmem:[%s2117_s14 + $0x8] sm:$0xff] }
 0x3f0   : > { %1246 = vmatpush.bf16.msrb.mxu3 %v1536_v33 }
 0x3f2   : > { %1489 = vmatmul.msk.bf16.vlgmr.msra.gmra.mxu0 %vm835_vm1, %v1044_v34  ;;  %v1535_v34 = vld [vmem:[%s2117_s14] sm:$0xff] }
 0x3f4   : > { %1247 = vmatpush.bf16.msrb.mxu3 %v1535_v34 }
 0x453   : > { %v948_v35 = vpop.f32.mrf.mxu0 }
 0x454   : > { %v952_v36 = vpack.c.bf16 %v948_v35, %v948_v35  ;;  %v1611_v35 = vld [vmem:[%s2116_s13] ss:$0 sm:$0xff] }
 0x456   : > { %v1068_v37 = vunpack.c.l.b16 %v952_v36 }
 0x458   : > { %v1069_v38 = vpack.c.b16 %v1068_v37, %v1068_v37 }
 0x45a   : > { %v1005_v39 = vpop.f32.mrf.mxu2  ;;  %1070 = vrot.lane.b32.xlu1 %v1069_v38, %s1773_s19 }
 0x45b   : > { %v1009_v40 = vpack.c.bf16 %v1005_v39, %v1005_v39  ;;  %v950_v41 = vpop.f32.mrf.mxu0 }
 0x45c   : > { %v1612_v41 = vld [vmem:[%s2118_s15] ss:$0 sm:$0xff] }
 0x45d   : > { %v1073_v42 = vunpack.c.l.b16 %v1009_v40 }
 0x45f   : > { %v1074_v43 = vpack.c.b16 %v1073_v42, %v1073_v42 }
 0x462   : > { %v1007_v44 = vpop.f32.mrf.mxu2  ;;  %1075 = vrot.lane.b32.xlu1 %v1074_v43, %s1774_s23  ;;  %s2149_s23 = sld [smem:[#allocation19_spill]] }
 0x46f   : > { %v1062_v45 = vpop.f32.mrf.mxu0 }
 0x470   : > { %v1066_v46 = vpack.c.bf16 %v1062_v45, %v1062_v45 }
 0x472   : > { %v1078_v47 = vunpack.c.l.b16 %v1066_v46 }
 0x474   : > { %v1079_v48 = vpack.c.b16 %v1078_v47, %v1078_v47 }
 0x476   : > { %1080 = vrot.lane.b32.xlu2 %v1079_v48, %s1775_s25  ;;  %s739_s25 = scalar_lea.vmem %s2149_s23, %s1949_s18 }
 0x477   : > { %v1064_v49 = vpop.f32.mrf.mxu0 }
 0x4cc   : > { %v1071_v52 = vpop.permute.xlu1 %1070 }
 0x4cd   : > { %v1084_v54 = vsel %vm835_vm1, %v892_v53, %v1071_v52 }
 0x4d0   : > { %v1081_v56 = vpop.permute.xlu2 %1080 }
 0x4d4   : > { %v1076_v55 = vpop.permute.xlu1 %1075 }
 0x4d5   : > { %v1087_v57 = vsel %vm1085_vm3, %v1084_v54, %v1076_v55 }
 0x4d6   : > { %v1090_v58 = vsel %vm1088_vm4, %v1087_v57, %v1081_v56 }
 0x4d7   : > { %1498 = vmatmul.msk.bf16.vlgmr.msra.gmra.mxu1 %vm783_vm0, %v1090_v58 }
 0x554   : > { %v1117_v61 = vpop.f32.mrf.mxu1 }
 0x555   : > { %v1118_v62 = vadd.f32 %v1608_v59, %v1117_v61 }
 0x557   : > { %v1121_v63 = vadd.f32 %v1118_v62, %v1971_v4  ;;  %v1613_v62 = vld [vmem:[%s2119_s16] ss:$0 sm:$0xff] }
 0x559   : > { %v1122_v60 = vsel %vm783_vm0, %v1121_v63, 0.0 }
 0x55a   : > { %1123 = vadd.xlane.f32.xlu0 %v1122_v60 }
 0x55c   : > { %v1119_v0 = vpop.f32.mrf.mxu1 }
 0x55d   : > { %v1614_v0 = vld [vmem:[#allocation2] ss:$0 sm:$0xff] }
 0x5cd   : > { %v1124_v9 = vpop.xlane.xlu0 %1123 }
 0x5ce   : > { %v1132_v10 = vmul.f32 %v2042_v8, %v1124_v9 }
 0x5d0   : > { %v1133_v11 = vsub.f32 %v1121_v63, %v1132_v10 }
 0x5d2   : > { %v1134_v12 = vmul.f32 %v1133_v11, %v1133_v11 }
 0x5d4   : > { %v1135_v4 = vsel %vm783_vm0, %v1134_v12, 0.0 }
 0x5d5   : > { %1136 = vadd.xlane.f32.xlu1 %v1135_v4 }
 0x648   : > { %v1137_v16 = vpop.xlane.xlu1 %1136 }
 0x649   : > { %v1138_v17 = vmul.f32 %v1137_v16, %v2042_v8 }
 0x64b   : > { %v1139_v19 = vadd.f32 1e-05, %v1138_v17 }
 0x64d   : > { %1635 = vrsqrt.f32 %v1139_v19  ;;  %vm1146_vm7 = vweird.f32 %v1139_v19 }
 0x653   : > { %v1636_v21 = vpop.eup %1635 }
 0x654   : > { %v1141_v22 = vmul.f32 %v1636_v21, %v1139_v19  ;;  %vm1147_vm6 = vweird.f32 %v1636_v21  ;;  %v1615_v19 = vld [vmem:[#allocation4] ss:$0 sm:$0xff] }
 0x655   : > { %vm1148_vm8 = vmor %vm1146_vm7, %vm1147_vm6 }
 0x656   : > { %v1142_v23 = vmul.f32 %v1636_v21, %v1141_v22  ;;  %v1616_v22 = vld [vmem:[#allocation6] ss:$0 sm:$0xff] }
 0x658   : > { %v1143_v24 = vmul.f32 0.5, %v1142_v23 }
 0x65a   : > { %v1144_v25 = vsub.f32 1.5, %v1143_v24 }
 0x65c   : > { %v1145_v26 = vmul.f32 %v1636_v21, %v1144_v25 }
 0x65e   : > { %v1149_v28 = vsel %vm1148_vm8, %v1636_v21, %v1145_v26 }
 0x65f   : > { %v1150_v30 = vmul.f32 %v1149_v28, %v1133_v11 }
 0x661   : > { %v1154_v20 = vmul.f32 %v1609_v27, %v1150_v30 }
 0x663   : > { %v1158_v31 = vadd.f32 %v1610_v29, %v1154_v20 }
 0x665   : > { %v1175_v32 = vpack.c.bf16 %v1158_v31, %v1158_v31 }
 0x667   : > { %1507 = vmatmul.msk.bf16.vlgmr.msra.gmra.mxu2 %vm783_vm0, %v1175_v32 }
 0x6ea   : > { %v1203_v36 = vpop.f32.mrf.mxu2 }
 0x6eb   : > { %v1204_v37 = vadd.f32 %v1611_v35, %v1203_v36 }
 0x6ed   : > { %v1207_v38 = vmax.f32 %v1204_v37, 0.0 }
 0x6ef   : > { %v1208_v39 = vpack.c.bf16 %v1207_v38, %v1207_v38 }
 0x6f1   : > { %1524 = vmatmul.msk.bf16.vlgmr.msrb.gmra.mxu3 %vm1236_vm9, %v1208_v39 }
 0x6f2   : > { %v1205_v40 = vpop.f32.mrf.mxu2 }
 0x774   : > { %v1249_v42 = vpop.f32.mrf.mxu3 }
 0x775   : > { %v1250_v43 = vadd.f32 %v1612_v41, %v1249_v42 }
 0x777   : > { %v1253_v44 = vadd.f32 %v1250_v43, %v1158_v31 }
 0x779   : > { %v1254_v45 = vsel %vm783_vm0, %v1253_v44, 0.0 }
 0x77a   : > { %1255 = vadd.xlane.f32.xlu2 %v1254_v45 }
 0x77c   : > { %v1251_v46 = vpop.f32.mrf.mxu3 }
 0x7ed   : > { %v1256_v47 = vpop.xlane.xlu2 %1255 }
 0x7ee   : > { %v1257_v48 = vmul.f32 %v1256_v47, %v2042_v8 }
 0x7f0   : > { %v1258_v49 = vsub.f32 %v1253_v44, %v1257_v48 }
 0x7f2   : > { %v1259_v50 = vmul.f32 %v1258_v49, %v1258_v49 }
 0x7f4   : > { %v1260_v51 = vsel %vm783_vm0, %v1259_v50, 0.0 }
 0x7f5   : > { %1261 = vadd.xlane.f32.xlu0 %v1260_v51 }
 0x868   : > { %v1262_v52 = vpop.xlane.xlu0 %1261 }
 0x869   : > { %v1263_v53 = vmul.f32 %v1262_v52, %v2042_v8 }
 0x86b   : > { %v1264_v54 = vadd.f32 1e-05, %v1263_v53 }
 0x86d   : > { %1637 = vrsqrt.f32 %v1264_v54  ;;  %vm1271_vm11 = vweird.f32 %v1264_v54 }
 0x873   : > { %v1638_v55 = vpop.eup %1637 }
 0x874   : > { %v1266_v56 = vmul.f32 %v1638_v55, %v1264_v54  ;;  %vm1272_vm10 = vweird.f32 %v1638_v55 }
 0x875   : > { %vm1273_vm12 = vmor %vm1271_vm11, %vm1272_vm10 }
 0x876   : > { %v1267_v57 = vmul.f32 %v1638_v55, %v1266_v56 }
 0x878   : > { %v1268_v58 = vmul.f32 0.5, %v1267_v57 }
 0x87a   : > { %v1269_v59 = vsub.f32 1.5, %v1268_v58 }
 0x87c   : > { %v1270_v61 = vmul.f32 %v1638_v55, %v1269_v59 }
 0x87e   : > { %v1274_v63 = vsel %vm1273_vm12, %v1638_v55, %v1270_v61 }
 0x87f   : > { %v1275_v60 = vmul.f32 %v1274_v63, %v1258_v49 }
 0x881   : > { %v1279_v1 = vmul.f32 %v1613_v62, %v1275_v60 }
 0x883   : > { %v1283_v2 = vadd.f32 %v1614_v0, %v1279_v1 }
 0x885   : > { %v1286_v3 = vsel %vm783_vm0, %v1283_v2, 0.0 }
 0x886   : > { %1287 = vadd.xlane.f32.xlu1 %v1286_v3 }
 0x8f9   : > { %v1288_v5 = vpop.xlane.xlu1 %1287 }
 0x8fa   : > { %v1289_v6 = vmul.f32 %v1288_v5, %v2042_v8 }
 0x8fc   : > { %v1290_v7 = vsub.f32 %v1283_v2, %v1289_v6 }
 0x8fe   : > { %v1291_v9 = vmul.f32 %v1290_v7, %v1290_v7 }
 0x900   : > { %v1292_v10 = vsel %vm783_vm0, %v1291_v9, 0.0 }
 0x901   : > { %1293 = vadd.xlane.f32.xlu2 %v1292_v10 }
 0x974   : > { %v1294_v11 = vpop.xlane.xlu2 %1293 }
 0x975   : > { %v1295_v12 = vmul.f32 %v1294_v11, %v2042_v8 }
 0x977   : > { %v1296_v4 = vadd.f32 1e-05, %v1295_v12 }
 0x979   : > { %1639 = vrsqrt.f32 %v1296_v4  ;;  %vm1303_vm14 = vweird.f32 %v1296_v4 }
 0x97f   : > { %v1640_v13 = vpop.eup %1639 }
 0x980   : > { %v1298_v14 = vmul.f32 %v1640_v13, %v1296_v4  ;;  %vm1304_vm13 = vweird.f32 %v1640_v13 }
 0x981   : > { %vm1305_vm15 = vmor %vm1303_vm14, %vm1304_vm13 }
 0x982   : > { %v1299_v15 = vmul.f32 %v1640_v13, %v1298_v14 }
 0x984   : > { %v1300_v16 = vmul.f32 0.5, %v1299_v15 }
 0x986   : > { %v1301_v17 = vsub.f32 1.5, %v1300_v16 }
 0x988   : > { %v1302_v18 = vmul.f32 %v1640_v13, %v1301_v17 }
 0x98a   : > { %v1306_v21 = vsel %vm1305_vm15, %v1640_v13, %v1302_v18 }
 0x98b   : > { %v1307_v23 = vmul.f32 %v1306_v21, %v1290_v7 }
 0x98d   : > { %v1311_v24 = vmul.f32 %v1615_v19, %v1307_v23 }
 0x98f   : > { %v1315_v8 = vadd.f32 %v1616_v22, %v1311_v24 }
 0x991   : > { %1316 = vst.msk [vmem:[%s739_s25] sm:$0xff] %vm783_vm0, %v1315_v8 }
 0x992 PF: > { %s2150_s27 = sld [smem:[#allocation10_spill]]  ;;  %s2152_s22 = smov %s2154_s30 }
 0x993   : > { %s2151_s1 = sld [smem:[#allocation9_spill]] }
 0x998   : > { %s32_s23 = sadd.s32 1, %s2150_s27  }
 0x999   : > { %p29_p8 = scmp.ge.s32.totalorder %s32_s23, 4  }
 0x99b   :  { %31 = sbr.rel (!%p29_p8) target bundleno = 13 (0xd), region = 152 }
 0x9a0   :  { %1339 = vsyncpa [#allocation3], 1 }
 0x9a1   :  { %1341 = vsyncpa [#allocation3 + $0x1], 1 }
 0x9a2   :  { %1342 = vsyncpa [#allocation5], 1 }

// kernel: translator_forward.9
= control target key start
LH: loop header
LB: loop body
LE: loop exit
PB: predicated region body
PF: predicated region fallthrough
CT: control target
= control target key end

     0   :  { %8 = vsyncpa [#allocation3], 0  ;;  %s651_s0 = inlined_call_operand.vmem [shape: f32[16,32], index: 0, kind: input, shape index: {}]   ;;  %s652_s1 = inlined_call_operand.vmem [shape: bf16[32,50], index: 1, kind: input, shape index: {}]   ;;  %s653_s2 = inlined_call_operand.vmem [shape: f32[1,50], index: 2, kind: input, shape index: {}]   ;;  %s654_s3 = inlined_call_operand.hbm [shape: f32[16,50], index: 3, kind: output, shape index: {}]  }
   0x1   :  { %10 = vsyncpa [#allocation3 + $0x1], 0  ;;  %s545_s12 = smov 0   ;;  %s547_s13 = smov 0  }
   0x2   :  { %s549_s14 = smov 0   ;;  %s551_s15 = smov 0  }
   0x3   :  { %s553_s16 = smov 0   ;;  %s555_s17 = smov 0  }
   0x4 LB: > { %s365_s18 = sadd.s32 4294967295, %s523_s17   ;;  %s366_s19 = sadd.s32 4294967294, %s523_s17   ;;  %s523_s17 = sphi %s555_s17, %s16_s17   ;;  %s519_s16 = sphi %s553_s16, %s661_s16   ;;  %s515_s15 = sphi %s551_s15, %s660_s15   ;;  %s511_s14 = sphi %s549_s14, %s659_s14   ;;  %s507_s13 = sphi %s547_s13, %s658_s13   ;;  %s503_s12 = sphi %s545_s12, %s657_s12  }
   0x5   : > { %s28_s20 = sadd.s32 1, %s519_s16  ;;  %s115_s21 = sadd.s32 1, %s511_s14 }
   0x6   : > { %p30_p0 = scmp.ge.s32.totalorder %s28_s20, 2  ;;  %p125_p1 = scmp.ne.s32.totalorder %s511_s14, %s507_s13 }
   0x7   : > { %p126_p2 = scmp.eq.s32.totalorder %s365_s18, 1  ;;  %p131_p3 = scmp.ne.s32.totalorder %s507_s13, %s503_s12 }
   0x8   : > { %s663_s20 = smov (%p30_p0, %s28_s20), 0  ;;  %p132_p5 = scmp.eq.s32.totalorder %s366_s19, 1 }
   0x9   : > { %p585_p4 = por %p126_p2, %p125_p1  ;;  %s110_s23 = ssub.s32 %s519_s16, %s663_s20 }
   0xa   : > { %p371_p6 = scmp.ge.s32.totalorder %s523_s17, 1  ;;  %p113_p7 = scmp.eq.s32.totalorder %s110_s23, 0 }
   0xb   : > { %p592_p8 = por %p132_p5, %p131_p3  ;;  %p170_p9 = scmp.lt.s32.totalorder %s523_s17, 3 }
   0xc   : > { %s598_s25 = scalar_select %p113_p7, %s511_s14, %s115_s21  }
   0xd   : > { %p171_p10 = pnand %p371_p6, %p170_p9 }
   0xe   : > { %p200_p11 = scmp.lt.s32.totalorder (!%p171_p10), %s515_s15, 1  ;;  %s197_s8 = sand.u32 (!%p171_p10), 1, %s507_s13  }
   0xf   : > { %174 = sbr.rel (%p171_p10) target bundleno = 162 (0xa2), region = 32  ;;  %s384_s9 = sshll.u32 (!%p171_p10), %s515_s15, 3 }
  0x10   : > { %s372_s10 = sshll.u32 (!%p171_p10), %s197_s8, 3  ;;  %s265_s19 = scalar_lea.hbm (!%p171_p10), %s654_s3, %s384_s9 }
  0x11   : > { %s199_s26 = scalar_lea.vmem (!%p171_p10), [#allocation2], %s372_s10  ;;  %s269_s28 = sshll.u32 (!%p171_p10), %s265_s19, 4  ;;  %s270_s28 = int_to_ptr.hbm [resolvable:$true] %s269_s28 }
  0x12   : > { %s267_s27 = sshll.u32 (!%p171_p10), %s199_s26, 4  ;;  %s459_s29 = sshra.s32 (!%p171_p10), %s270_s28, 4  ;;  %s268_s27 = int_to_ptr.vmem [resolvable:$true] %s267_s27  ;;  %s460_s29 = int_to_ptr.hbm [resolvable:$true] %s459_s29 }
  0x13   : > { %s465_s6 = scalar_lea.hbm (!%p171_p10), %s654_s3, 16  ;;  %p466_p1 = scmp.lt.s32.totalorder (!%p171_p10), %s460_s29, %s654_s3 }
  0x14   : > { %v388_v0 = vld [vmem:[%s652_s1 + $0x8] sm:$0xff]  ;;  %v387_v1 = vld [vmem:[%s652_s1] sm:$0xff]  ;;  %s201_s30 = scalar_select %p200_p11, %s515_s15, 1  ;;  %vm234_vm0 = vcmask 261120   ;;  %vm251_vm1 = vcmask 408576  }
  0x15   : > { %244 = vmatpush.bf16.msra.mxu0 %v388_v0  ;;  %v444_v4 = vld [vmem:[%s653_s2] ss:$0 sm:$0xff]  ;;  %s254_s15 = scalar_lea.sflag [#allocation3], %s197_s8 }
  0x16   : > { %s373_s4 = sshll.u32 %s201_s30, 3  ;;  %s461_s30 = scalar_lea.hbm %s460_s29, 8 }
  0x17   : > { %s203_s7 = scalar_lea.vmem %s651_s0, %s373_s4  ;;  %p462_p12 = scmp.ne.s32.totalorder %s460_s29, %s461_s30 }
  0x18   : > { %v212_v2 = vld [vmem:[%s203_s7] sm:$0xff]  ;;  %p467_p2 = scmp.lt.s32.totalorder %s465_s6, %s461_s30 }
  0x19   : > { %245 = vmatpush.bf16.msra.mxu0 %v387_v1  ;;  %v217_v3 = vpack.c.bf16 %v212_v2, %v212_v2  ;;  %p463_p13 = pnand %p462_p12, %p585_p4 }
  0x1a   : > { %p468_p3 = por %p467_p2, %p466_p1 }
  0x1b   : > { %p464_p0 = pneg %p463_p13 }
  0x1c   : > { %382 = vmatmul.msk.bf16.vlgmr.msra.gmra.mxu0 %vm234_vm0, %v217_v3 }
  0x1d   : > { %p469_p5 = pnand %p468_p3, %p464_p0 }
  0x99   : > { %v247_v5 = vpop.f32.mrf.mxu0 }
  0x9a   : > { %v248_v6 = vadd.f32 %v444_v4, %v247_v5 }
  0x9c   : > { %252 = vst.msk [vmem:[%s199_s26] sm:$0xff] %vm251_vm1, %v248_v6 }
  0x9d   : > { %472 = shalt.err (!%p469_p5)
}
  0x9e   : > { %389 = dma.vmem_to_hbm [thread:$0]  (%p585_p4), %s268_s27, 128, %s270_s28, %s254_s15  }
  0xa1   : > { %v249_v7 = vpop.f32.mrf.mxu0 }
  0xa2 PF: > { %p395_p6 = scmp.ge.s32.totalorder %s523_s17, 2  ;;  %s281_s8 = sand.u32 1, %s503_s12  }
  0xa3   : > { %s282_s10 = scalar_lea.sflag [#allocation3], %s281_s8 }
  0xa4   : > { %p392_p7 = pnand %p395_p6, %p592_p8 }
  0xa6   : > { %p393_p9 = pneg %p392_p7 }
  0xa8   : > { %498 = dma.done.wait (%p393_p9), %s282_s10, 128  }
  0xa9   : > { %500 = vsyncadd (%p393_p9), %s282_s10, 4294967168  ;;  %s16_s17 = sadd.s32 1, %s523_s17   ;;  %s657_s12 = smov %s507_s13 }
  0xaa   : > { %p13_p10 = scmp.ge.s32.totalorder %s16_s17, 4   ;;  %s658_s13 = smov %s511_s14 }
  0xab   : > { %s659_s14 = smov %s598_s25  ;;  %s660_s15 = smov %s519_s16 }
  0xac   : > { %s661_s16 = smov %s663_s20  ;;  %15 = sbr.rel (!%p13_p10) target bundleno = 4 (0x4), region = 73 }
  0xb1   :  { %288 = vsyncpa [#allocation3], 1 }
  0xb2   :  { %290 = vsyncpa [#allocation3 + $0x1], 1 }

</bundles_post_ra>
